<compile_context>
chip_gen: v6e
topology: v6e:2x2x1
jax: 0.10.0
libtpu: 0.0.40
codegen_flags: <defaults>
</compile_context>

<pallas_src>
import functools

import jax
import jax.numpy as jnp
import numpy as np
from jax.experimental import pallas as pl
from jax.experimental.pallas import tpu as pltpu

# ----------------------------- configuration --------------------------------
BATCH = 2
IN_CH = 16          # in_channels
T_DIM = 32          # transformer_dim
FFN_DIM = 64        # ffn_dim
HEAD_DIM = 16       # head_dim  (T_DIM % HEAD_DIM == 0)
N_HEADS = T_DIM // HEAD_DIM
N_BLOCKS = 2        # n_transformer_blocks
PATCH_H = PATCH_W = 2
H = W = 8           # spatial size (divisible by patch size -> no interpolate)
LN_EPS = 1e-5
NEG_INF = -1e30


# ------------------------------ fused kernel ---------------------------------
def mobilevit_fused_kernel(x_ref, masks_ref, bias_ref, w3_ref, b3_ref, w1in_ref,
                           ln1g_ref, ln1b_ref, wqkv_ref, bqkv_ref, wo_ref, bo_ref,
                           ln2g_ref, ln2b_ref, wff1_ref, bff1_ref, wff2_ref,
                           bff2_ref, lng_ref, lnb_ref, wproj_ref, bproj_ref,
                           wfus_ref, bfus_ref, o_ref,
                           *, w, tdim, n_heads, head_dim, n_blocks):
    """Whole MobileViT block for one batch item (grid axis = batch)."""
    hw = x_ref.shape[1]

    def sigmoid(t):
        return 1.0 / (1.0 + jnp.exp(-t))

    def silu(t):
        return t * sigmoid(t)

    def layernorm(t, g, b):
        mu = jnp.mean(t, axis=-1, keepdims=True)
        var = jnp.mean(jnp.square(t - mu), axis=-1, keepdims=True)
        return (t - mu) * jax.lax.rsqrt(var + LN_EPS) * g + b

    def shift_tokens(xf, d):
        # y[t] = xf[t + d] for 0 <= t + d < hw, 0 otherwise (value-level only).
        if d == 0:
            return xf
        pad = jnp.zeros((abs(d), xf.shape[1]), jnp.float32)
        if d > 0:
            return jnp.concatenate([xf[d:, :], pad], axis=0)
        return jnp.concatenate([pad, xf[:d, :]], axis=0)

    def conv3x3(x_flat, w_mat, b_row):
        # im2col (hw, 9*C) via masked token shifts, then a single MXU matmul.
        cols = []
        k = 0
        for dy in (-1, 0, 1):
            for dx in (-1, 0, 1):
                cols.append(shift_tokens(x_flat, dy * w + dx) * masks_ref[k])
                k += 1
        patches = jnp.concatenate(cols, axis=-1)
        return jnp.dot(patches, w_mat, preferred_element_type=jnp.float32) + b_row

    x = x_ref[0].astype(jnp.float32)                         # (hw, cin)

    # ---- local_rep: 3x3 conv (folded BN) + SiLU  ->  1x1 conv (no norm/act) ----
    y = silu(conv3x3(x, w3_ref[...], b3_ref[...]))           # (hw, cin)
    tok = jnp.dot(y, w1in_ref[...],
                  preferred_element_type=jnp.float32)        # (hw, tdim)

    # ---- global_rep: transformer blocks + final LayerNorm -------------------
    # Attention runs on the spatial token layout; bias_ref masks attention to
    # tokens sharing the same intra-patch position, which is mathematically
    # identical to unfold -> per-sequence attention -> fold.
    attn_bias = bias_ref[...]                                # (hw, hw)
    dims_qkT = (((1,), (1,)), ((), ()))                      # contract head dims

    for blk in range(n_blocks):
        xn = layernorm(tok, ln1g_ref[blk], ln1b_ref[blk])
        qkv = jnp.dot(xn, wqkv_ref[blk],
                      preferred_element_type=jnp.float32) + bqkv_ref[blk]
        wo = wo_ref[blk]                                     # (tdim, tdim)
        mha = jnp.zeros((hw, tdim), jnp.float32)
        for hd in range(n_heads):
            off = hd * head_dim
            qh = qkv[:, off:off + head_dim]                  # scale folded in W_q
            kh = qkv[:, tdim + off:tdim + off + head_dim]
            vh = qkv[:, 2 * tdim + off:2 * tdim + off + head_dim]
            s = jax.lax.dot_general(qh, kh, dims_qkT,
                                    preferred_element_type=jnp.float32) + attn_bias
            s = s - jnp.max(s, axis=-1, keepdims=True)
            e = jnp.exp(s)
            p_attn = e * pl.reciprocal(jnp.sum(e, axis=-1, keepdims=True),
                                       approx=True)
            ctx = jnp.dot(p_attn, vh, preferred_element_type=jnp.float32)
            # concat(ctx_h) @ Wo  ==  sum_h ctx_h @ Wo[h*hd:(h+1)*hd, :]
            mha = mha + jnp.dot(ctx, wo[off:off + head_dim, :],
                                preferred_element_type=jnp.float32)
        tok = tok + mha + bo_ref[blk]

        xn2 = layernorm(tok, ln2g_ref[blk], ln2b_ref[blk])
        hid = silu(jnp.dot(xn2, wff1_ref[blk],
                           preferred_element_type=jnp.float32) + bff1_ref[blk])
        tok = tok + jnp.dot(hid, wff2_ref[blk],
                            preferred_element_type=jnp.float32) + bff2_ref[blk]

    tok = layernorm(tok, lng_ref[...], lnb_ref[...])

    # ---- conv_proj: 1x1 conv (folded BN) + SiLU ------------------------------
    fm = silu(jnp.dot(tok, wproj_ref[...],
                      preferred_element_type=jnp.float32) + bproj_ref[...])   # (hw, cin)

    # ---- fusion: concat(residual, fm) on channels -> 3x3 conv (BN) + SiLU ----
    cat = jnp.concatenate([x, fm], axis=-1)                                    # (hw, 2cin)
    out = silu(conv3x3(cat, wfus_ref[...], bfus_ref[...]))                     # (hw, cin)

    o_ref[0] = out.astype(o_ref.dtype)


# ------------------------------ wrapper --------------------------------------
def mobilevit_block(x_nchw, p):
    n, cin, h, w = x_nchw.shape
    hw = h * w
    tdim = p["c1in_w"].shape[1]
    nb = len(p["blocks"])

    # Flat token layout (n, hw, cin): token t = i*w + j holds pixel (i, j).
    x_tok = jnp.transpose(x_nchw, (0, 2, 3, 1)).reshape(n, hw, cin).astype(jnp.float32)

    # Fold BatchNorm scale into conv weights at trace time (bias kept separate).
    w3 = (p["c3in_w"] * p["c3in_scale"][None, None, None, :]).reshape(9 * cin, cin)
    b3 = p["c3in_bias"].reshape(1, cin)
    wproj = p["proj_w"] * p["proj_scale"][None, :]
    bproj = p["proj_bias"].reshape(1, cin)
    wfus = (p["fus_w"] * p["fus_scale"][None, None, None, :]).reshape(9 * 2 * cin, cin)
    bfus = p["fus_bias"].reshape(1, cin)

    # Host-side constants: per-tap validity masks for the 3x3 convs and the
    # intra-patch-position attention bias (0 inside a group, -1e30 outside).
    ii = np.arange(hw) // w
    jj = np.arange(hw) % w
    mlist = []
    for dy in (-1, 0, 1):
        for dx in (-1, 0, 1):
            mlist.append(((ii + dy >= 0) & (ii + dy < h) &
                          (jj + dx >= 0) & (jj + dx < w)).astype(np.float32))
    masks = jnp.asarray(np.stack(mlist, 0)[:, :, None])              # (9, hw, 1)

    grp = (ii % PATCH_H) * PATCH_W + (jj % PATCH_W)
    attn_bias = jnp.asarray(
        np.where(grp[:, None] == grp[None, :], 0.0, NEG_INF).astype(np.float32))

    # Per-transformer-block params; fold q-scale (head_dim**-0.5) into QKV proj.
    qscale = np.concatenate([np.full(tdim, HEAD_DIM ** -0.5, np.float32),
                             np.ones(2 * tdim, np.float32)])
    stk_m = lambda k: jnp.stack([b[k] for b in p["blocks"]], 0)
    stk_v = lambda k: jnp.stack([b[k].reshape(1, -1) for b in p["blocks"]], 0)
    wqkv = jnp.stack([b["qkv_w"] * qscale[None, :] for b in p["blocks"]], 0)
    bqkv = jnp.stack([(b["qkv_b"] * qscale).reshape(1, -1) for b in p["blocks"]], 0)

    args = [
        x_tok, masks, attn_bias, w3, b3, p["c1in_w"],
        stk_v("ln1_g"), stk_v("ln1_b"), wqkv, bqkv,
        stk_m("out_w"), stk_v("out_b"), stk_v("ln2_g"), stk_v("ln2_b"),
        stk_m("w1"), stk_v("b1"), stk_m("w2"), stk_v("b2"),
        p["ln_g"].reshape(1, tdim), p["ln_b"].reshape(1, tdim),
        wproj, bproj, wfus, bfus,
    ]

    in_specs = [pl.BlockSpec((1, hw, cin), lambda i: (i, 0, 0))]
    for a in args[1:]:
        in_specs.append(pl.BlockSpec(a.shape, lambda i, nd=a.ndim: (0,) * nd))

    kern = functools.partial(
        mobilevit_fused_kernel, w=w, tdim=tdim,
        n_heads=N_HEADS, head_dim=HEAD_DIM, n_blocks=nb)

    out = pl.pallas_call(
        kern,
        out_shape=jax.ShapeDtypeStruct((n, hw, cin), jnp.float32),
        grid_spec=pltpu.PrefetchScalarGridSpec(
            num_scalar_prefetch=0,
            grid=(n,),
            in_specs=in_specs,
            out_specs=pl.BlockSpec((1, hw, cin), lambda i: (i, 0, 0))),
        compiler_params=pltpu.CompilerParams(dimension_semantics=("parallel",)),
    )(*args)

    return jnp.transpose(out.reshape(n, h, w, cin), (0, 3, 1, 2)).astype(x_nchw.dtype)


# ----------------------------- parameter init --------------------------------
def init_params(key):
    keys = iter(jax.random.split(key, 64))

    def nxt():
        return next(keys)

    def nrm(shape, s=0.05):
        return s * jax.random.normal(nxt(), shape, jnp.float32)

    def bn(c):
        gamma = 1.0 + 0.1 * jax.random.normal(nxt(), (c,), jnp.float32)
        beta = 0.1 * jax.random.normal(nxt(), (c,), jnp.float32)
        mean = 0.1 * jax.random.normal(nxt(), (c,), jnp.float32)
        var = 1.0 + 0.1 * jax.random.uniform(nxt(), (c,), jnp.float32)
        scale = gamma * jax.lax.rsqrt(var + 1e-5)
        return scale, beta - mean * scale

    p = {}
    p["c3in_w"] = nrm((3, 3, IN_CH, IN_CH))                  # HWIO
    p["c3in_scale"], p["c3in_bias"] = bn(IN_CH)
    p["c1in_w"] = nrm((IN_CH, T_DIM))
    p["proj_w"] = nrm((T_DIM, IN_CH))
    p["proj_scale"], p["proj_bias"] = bn(IN_CH)
    p["fus_w"] = nrm((3, 3, 2 * IN_CH, IN_CH))
    p["fus_scale"], p["fus_bias"] = bn(IN_CH)
    blocks = []
    for _ in range(N_BLOCKS):
        blocks.append(dict(
            ln1_g=1.0 + 0.1 * jax.random.normal(nxt(), (T_DIM,), jnp.float32),
            ln1_b=0.1 * jax.random.normal(nxt(), (T_DIM,), jnp.float32),
            qkv_w=nrm((T_DIM, 3 * T_DIM)),
            qkv_b=0.02 * jax.random.normal(nxt(), (3 * T_DIM,), jnp.float32),
            out_w=nrm((T_DIM, T_DIM)),
            out_b=0.02 * jax.random.normal(nxt(), (T_DIM,), jnp.float32),
            ln2_g=1.0 + 0.1 * jax.random.normal(nxt(), (T_DIM,), jnp.float32),
            ln2_b=0.1 * jax.random.normal(nxt(), (T_DIM,), jnp.float32),
            w1=nrm((T_DIM, FFN_DIM)),
            b1=0.02 * jax.random.normal(nxt(), (FFN_DIM,), jnp.float32),
            w2=nrm((FFN_DIM, T_DIM)),
            b2=0.02 * jax.random.normal(nxt(), (T_DIM,), jnp.float32),
        ))
    p["blocks"] = blocks
    p["ln_g"] = 1.0 + 0.1 * jax.random.normal(nxt(), (T_DIM,), jnp.float32)
    p["ln_b"] = 0.1 * jax.random.normal(nxt(), (T_DIM,), jnp.float32)
    return p


# ----------------------- pure-JAX reference (validation) ---------------------
def unfolding(x_nchw, ph, pw):
    b, c, h, w = x_nchw.shape
    nph, npw = h // ph, w // pw
    num_patches = nph * npw
    x = x_nchw.reshape(b * c * nph, ph, npw, pw)
    x = jnp.swapaxes(x, 1, 2)
    x = x.reshape(b, c, num_patches, ph * pw)
    x = jnp.swapaxes(x, 1, 3)
    x = x.reshape(b * ph * pw, num_patches, c)
    return x, (b, nph, npw)


def folding(x, info, ph, pw):
    b, nph, npw = info
    c = x.shape[-1]
    x = x.reshape(b, ph * pw, nph * npw, c)
    x = jnp.swapaxes(x, 1, 3)
    x = x.reshape(b * c * nph, npw, ph, pw)
    x = jnp.swapaxes(x, 1, 2)
    x = x.reshape(b, c, nph * ph, npw * pw)
    return x


def _ref_conv3x3(x, w, scale, bias):
    y = jax.lax.conv_general_dilated(x, w, (1, 1), "SAME",
                                     dimension_numbers=("NCHW", "HWIO", "NCHW"))
    y = y * scale[None, :, None, None] + bias[None, :, None, None]
    return y * jax.nn.sigmoid(y)


def _ref_conv1x1(x, w, scale, bias, act):
    y = jnp.einsum("nchw,cd->ndhw", x, w)
    y = y * scale[None, :, None, None] + bias[None, :, None, None]
    return y * jax.nn.sigmoid(y) if act else y


def _ref_ln(z, g, b):
    mu = z.mean(-1, keepdims=True)
    var = ((z - mu) ** 2).mean(-1, keepdims=True)
    return (z - mu) / jnp.sqrt(var + LN_EPS) * g + b


def _ref_transformer(x, p):
    bp, n, c = x.shape
    xn = _ref_ln(x, p["ln1_g"], p["ln1_b"])
    qkv = xn @ p["qkv_w"] + p["qkv_b"]
    q = qkv[..., :c] * (HEAD_DIM ** -0.5)
    k, v = qkv[..., c:2 * c], qkv[..., 2 * c:]
    qh = q.reshape(bp, n, N_HEADS, HEAD_DIM).transpose(0, 2, 1, 3)
    kh = k.reshape(bp, n, N_HEADS, HEAD_DIM).transpose(0, 2, 1, 3)
    vh = v.reshape(bp, n, N_HEADS, HEAD_DIM).transpose(0, 2, 1, 3)
    attn = jax.nn.softmax(qh @ kh.transpose(0, 1, 3, 2), axis=-1)
    ctx = (attn @ vh).transpose(0, 2, 1, 3).reshape(bp, n, c)
    x = x + ctx @ p["out_w"] + p["out_b"]
    xn2 = _ref_ln(x, p["ln2_g"], p["ln2_b"])
    h = xn2 @ p["w1"] + p["b1"]
    h = h * jax.nn.sigmoid(h)
    return x + h @ p["w2"] + p["b2"]


def ref_forward(x, p):
    res = x
    fm = _ref_conv3x3(x, p["c3in_w"], p["c3in_scale"], p["c3in_bias"])
    fm = _ref_conv1x1(fm, p["c1in_w"], jnp.ones(T_DIM), jnp.zeros(T_DIM), act=False)
    patches, info = unfolding(fm, PATCH_H, PATCH_W)
    for blk in p["blocks"]:
        patches = _ref_transformer(patches, blk)
    patches = _ref_ln(patches, p["ln_g"], p["ln_b"])
    fm = folding(patches, info, PATCH_H, PATCH_W)
    fm = _ref_conv1x1(fm, p["proj_w"], p["proj_scale"], p["proj_bias"], act=True)
    return _ref_conv3x3(jnp.concatenate([res, fm], axis=1),
                        p["fus_w"], p["fus_scale"], p["fus_bias"])


# ---------------------------------- main -------------------------------------
if __name__ == "__main__":
    key = jax.random.PRNGKey(0)
    kx, kp = jax.random.split(key)
    x = jax.random.normal(kx, (BATCH, IN_CH, H, W), jnp.float32)   # NCHW like torch
    params = init_params(kp)

    out = jax.block_until_ready(mobilevit_block(x, params))
    assert out.shape == (BATCH, IN_CH, H, W)

    ref = jax.block_until_ready(ref_forward(x, params))
    np.testing.assert_allclose(np.asarray(out), np.asarray(ref), rtol=2e-2, atol=2e-2)
    print("KERNEL_OK")
</pallas_src>

<mosaic_0001>
module attributes {stable_mosaic.version = 11 : i64} {
  func.func @mobilevit_fused_kernel(%arg0: i32, %arg1: memref<1x64x16xf32, #tpu.memory_space<vmem>>, %arg2: memref<9x64x1xf32, #tpu.memory_space<vmem>>, %arg3: memref<64x64xf32, #tpu.memory_space<vmem>>, %arg4: memref<144x16xf32, #tpu.memory_space<vmem>>, %arg5: memref<1x16xf32, #tpu.memory_space<vmem>>, %arg6: memref<16x32xf32, #tpu.memory_space<vmem>>, %arg7: memref<2x1x32xf32, #tpu.memory_space<vmem>>, %arg8: memref<2x1x32xf32, #tpu.memory_space<vmem>>, %arg9: memref<2x32x96xf32, #tpu.memory_space<vmem>>, %arg10: memref<2x1x96xf32, #tpu.memory_space<vmem>>, %arg11: memref<2x32x32xf32, #tpu.memory_space<vmem>>, %arg12: memref<2x1x32xf32, #tpu.memory_space<vmem>>, %arg13: memref<2x1x32xf32, #tpu.memory_space<vmem>>, %arg14: memref<2x1x32xf32, #tpu.memory_space<vmem>>, %arg15: memref<2x32x64xf32, #tpu.memory_space<vmem>>, %arg16: memref<2x1x64xf32, #tpu.memory_space<vmem>>, %arg17: memref<2x64x32xf32, #tpu.memory_space<vmem>>, %arg18: memref<2x1x32xf32, #tpu.memory_space<vmem>>, %arg19: memref<1x32xf32, #tpu.memory_space<vmem>>, %arg20: memref<1x32xf32, #tpu.memory_space<vmem>>, %arg21: memref<32x16xf32, #tpu.memory_space<vmem>>, %arg22: memref<1x16xf32, #tpu.memory_space<vmem>>, %arg23: memref<288x16xf32, #tpu.memory_space<vmem>>, %arg24: memref<1x16xf32, #tpu.memory_space<vmem>>, %arg25: memref<1x64x16xf32, #tpu.memory_space<vmem>>) attributes {dimension_semantics = [#tpu.dimension_semantics<parallel>], iteration_bounds = array<i64: 2>, scalar_prefetch = 0 : i64, scratch_operands = 0 : i64, tpu.core_type = #tpu.core_type<tc>, window_params = [{transform_indices = @transform_0, window_bounds = array<i64: 1, 64, 16>}, {pipeline_mode = #tpu.pipeline_mode<synchronous>, transform_indices = @transform_1, window_bounds = array<i64: 9, 64, 1>}, {pipeline_mode = #tpu.pipeline_mode<synchronous>, transform_indices = @transform_2, window_bounds = array<i64: 64, 64>}, {pipeline_mode = #tpu.pipeline_mode<synchronous>, transform_indices = @transform_3, window_bounds = array<i64: 144, 16>}, {pipeline_mode = #tpu.pipeline_mode<synchronous>, transform_indices = @transform_4, window_bounds = array<i64: 1, 16>}, {pipeline_mode = #tpu.pipeline_mode<synchronous>, transform_indices = @transform_5, window_bounds = array<i64: 16, 32>}, {pipeline_mode = #tpu.pipeline_mode<synchronous>, transform_indices = @transform_6, window_bounds = array<i64: 2, 1, 32>}, {pipeline_mode = #tpu.pipeline_mode<synchronous>, transform_indices = @transform_7, window_bounds = array<i64: 2, 1, 32>}, {pipeline_mode = #tpu.pipeline_mode<synchronous>, transform_indices = @transform_8, window_bounds = array<i64: 2, 32, 96>}, {pipeline_mode = #tpu.pipeline_mode<synchronous>, transform_indices = @transform_9, window_bounds = array<i64: 2, 1, 96>}, {pipeline_mode = #tpu.pipeline_mode<synchronous>, transform_indices = @transform_10, window_bounds = array<i64: 2, 32, 32>}, {pipeline_mode = #tpu.pipeline_mode<synchronous>, transform_indices = @transform_11, window_bounds = array<i64: 2, 1, 32>}, {pipeline_mode = #tpu.pipeline_mode<synchronous>, transform_indices = @transform_12, window_bounds = array<i64: 2, 1, 32>}, {pipeline_mode = #tpu.pipeline_mode<synchronous>, transform_indices = @transform_13, window_bounds = array<i64: 2, 1, 32>}, {pipeline_mode = #tpu.pipeline_mode<synchronous>, transform_indices = @transform_14, window_bounds = array<i64: 2, 32, 64>}, {pipeline_mode = #tpu.pipeline_mode<synchronous>, transform_indices = @transform_15, window_bounds = array<i64: 2, 1, 64>}, {pipeline_mode = #tpu.pipeline_mode<synchronous>, transform_indices = @transform_16, window_bounds = array<i64: 2, 64, 32>}, {pipeline_mode = #tpu.pipeline_mode<synchronous>, transform_indices = @transform_17, window_bounds = array<i64: 2, 1, 32>}, {pipeline_mode = #tpu.pipeline_mode<synchronous>, transform_indices = @transform_18, window_bounds = array<i64: 1, 32>}, {pipeline_mode = #tpu.pipeline_mode<synchronous>, transform_indices = @transform_19, window_bounds = array<i64: 1, 32>}, {pipeline_mode = #tpu.pipeline_mode<synchronous>, transform_indices = @transform_20, window_bounds = array<i64: 32, 16>}, {pipeline_mode = #tpu.pipeline_mode<synchronous>, transform_indices = @transform_21, window_bounds = array<i64: 1, 16>}, {pipeline_mode = #tpu.pipeline_mode<synchronous>, transform_indices = @transform_22, window_bounds = array<i64: 288, 16>}, {pipeline_mode = #tpu.pipeline_mode<synchronous>, transform_indices = @transform_23, window_bounds = array<i64: 1, 16>}, {transform_indices = @transform_24, window_bounds = array<i64: 1, 64, 16>}]} {
    %c0 = arith.constant 0 : index
    %c0_0 = arith.constant 0 : index
    %c0_1 = arith.constant 0 : index
    %0 = vector.load %arg1[%c0, %c0_0, %c0_1] : memref<1x64x16xf32, #tpu.memory_space<vmem>>, vector<1x64x16xf32>
    %1 = vector.shape_cast %0 : vector<1x64x16xf32> to vector<64x16xf32>
    %c0_2 = arith.constant 0 : index
    %c0_3 = arith.constant 0 : index
    %2 = vector.load %arg4[%c0_2, %c0_3] : memref<144x16xf32, #tpu.memory_space<vmem>>, vector<144x16xf32>
    %c0_4 = arith.constant 0 : index
    %c0_5 = arith.constant 0 : index
    %3 = vector.load %arg5[%c0_4, %c0_5] : memref<1x16xf32, #tpu.memory_space<vmem>>, vector<1x16xf32>
    %cst = arith.constant 0.000000e+00 : f32
    %4 = vector.broadcast %cst : f32 to vector<9x16xf32>
    %5 = vector.extract_strided_slice %1 {offsets = [0, 0], sizes = [55, 16], strides = [1, 1]} : vector<64x16xf32> to vector<55x16xf32>
    %6 = tpu.concatenate %4, %5 in 0 : vector<9x16xf32>, vector<55x16xf32> -> vector<64x16xf32>
    %c0_6 = arith.constant 0 : index
    %c0_7 = arith.constant 0 : index
    %c0_8 = arith.constant 0 : index
    %7 = vector.load %arg2[%c0_6, %c0_7, %c0_8] : memref<9x64x1xf32, #tpu.memory_space<vmem>>, vector<1x64x1xf32>
    %8 = vector.shape_cast %7 : vector<1x64x1xf32> to vector<64x1xf32>
    %9 = vector.broadcast %8 : vector<64x1xf32> to vector<64x16xf32>
    %10 = arith.mulf %6, %9 : vector<64x16xf32>
    %cst_9 = arith.constant 0.000000e+00 : f32
    %11 = vector.broadcast %cst_9 : f32 to vector<8x16xf32>
    %12 = vector.extract_strided_slice %1 {offsets = [0, 0], sizes = [56, 16], strides = [1, 1]} : vector<64x16xf32> to vector<56x16xf32>
    %13 = tpu.concatenate %11, %12 in 0 : vector<8x16xf32>, vector<56x16xf32> -> vector<64x16xf32>
    %c1 = arith.constant 1 : index
    %c0_10 = arith.constant 0 : index
    %c0_11 = arith.constant 0 : index
    %14 = vector.load %arg2[%c1, %c0_10, %c0_11] : memref<9x64x1xf32, #tpu.memory_space<vmem>>, vector<1x64x1xf32>
    %15 = vector.shape_cast %14 : vector<1x64x1xf32> to vector<64x1xf32>
    %16 = vector.broadcast %15 : vector<64x1xf32> to vector<64x16xf32>
    %17 = arith.mulf %13, %16 : vector<64x16xf32>
    %cst_12 = arith.constant 0.000000e+00 : f32
    %18 = vector.broadcast %cst_12 : f32 to vector<7x16xf32>
    %19 = vector.extract_strided_slice %1 {offsets = [0, 0], sizes = [57, 16], strides = [1, 1]} : vector<64x16xf32> to vector<57x16xf32>
    %20 = tpu.concatenate %18, %19 in 0 : vector<7x16xf32>, vector<57x16xf32> -> vector<64x16xf32>
    %c2 = arith.constant 2 : index
    %c0_13 = arith.constant 0 : index
    %c0_14 = arith.constant 0 : index
    %21 = vector.load %arg2[%c2, %c0_13, %c0_14] : memref<9x64x1xf32, #tpu.memory_space<vmem>>, vector<1x64x1xf32>
    %22 = vector.shape_cast %21 : vector<1x64x1xf32> to vector<64x1xf32>
    %23 = vector.broadcast %22 : vector<64x1xf32> to vector<64x16xf32>
    %24 = arith.mulf %20, %23 : vector<64x16xf32>
    %cst_15 = arith.constant 0.000000e+00 : f32
    %25 = vector.broadcast %cst_15 : f32 to vector<1x16xf32>
    %26 = vector.extract_strided_slice %1 {offsets = [0, 0], sizes = [63, 16], strides = [1, 1]} : vector<64x16xf32> to vector<63x16xf32>
    %27 = tpu.concatenate %25, %26 in 0 : vector<1x16xf32>, vector<63x16xf32> -> vector<64x16xf32>
    %c3 = arith.constant 3 : index
    %c0_16 = arith.constant 0 : index
    %c0_17 = arith.constant 0 : index
    %28 = vector.load %arg2[%c3, %c0_16, %c0_17] : memref<9x64x1xf32, #tpu.memory_space<vmem>>, vector<1x64x1xf32>
    %29 = vector.shape_cast %28 : vector<1x64x1xf32> to vector<64x1xf32>
    %30 = vector.broadcast %29 : vector<64x1xf32> to vector<64x16xf32>
    %31 = arith.mulf %27, %30 : vector<64x16xf32>
    %c4 = arith.constant 4 : index
    %c0_18 = arith.constant 0 : index
    %c0_19 = arith.constant 0 : index
    %32 = vector.load %arg2[%c4, %c0_18, %c0_19] : memref<9x64x1xf32, #tpu.memory_space<vmem>>, vector<1x64x1xf32>
    %33 = vector.shape_cast %32 : vector<1x64x1xf32> to vector<64x1xf32>
    %34 = vector.broadcast %33 : vector<64x1xf32> to vector<64x16xf32>
    %35 = arith.mulf %1, %34 : vector<64x16xf32>
    %cst_20 = arith.constant 0.000000e+00 : f32
    %36 = vector.broadcast %cst_20 : f32 to vector<1x16xf32>
    %37 = vector.extract_strided_slice %1 {offsets = [1, 0], sizes = [63, 16], strides = [1, 1]} : vector<64x16xf32> to vector<63x16xf32>
    %38 = tpu.concatenate %37, %36 in 0 : vector<63x16xf32>, vector<1x16xf32> -> vector<64x16xf32>
    %c5 = arith.constant 5 : index
    %c0_21 = arith.constant 0 : index
    %c0_22 = arith.constant 0 : index
    %39 = vector.load %arg2[%c5, %c0_21, %c0_22] : memref<9x64x1xf32, #tpu.memory_space<vmem>>, vector<1x64x1xf32>
    %40 = vector.shape_cast %39 : vector<1x64x1xf32> to vector<64x1xf32>
    %41 = vector.broadcast %40 : vector<64x1xf32> to vector<64x16xf32>
    %42 = arith.mulf %38, %41 : vector<64x16xf32>
    %cst_23 = arith.constant 0.000000e+00 : f32
    %43 = vector.broadcast %cst_23 : f32 to vector<7x16xf32>
    %44 = vector.extract_strided_slice %1 {offsets = [7, 0], sizes = [57, 16], strides = [1, 1]} : vector<64x16xf32> to vector<57x16xf32>
    %45 = tpu.concatenate %44, %43 in 0 : vector<57x16xf32>, vector<7x16xf32> -> vector<64x16xf32>
    %c6 = arith.constant 6 : index
    %c0_24 = arith.constant 0 : index
    %c0_25 = arith.constant 0 : index
    %46 = vector.load %arg2[%c6, %c0_24, %c0_25] : memref<9x64x1xf32, #tpu.memory_space<vmem>>, vector<1x64x1xf32>
    %47 = vector.shape_cast %46 : vector<1x64x1xf32> to vector<64x1xf32>
    %48 = vector.broadcast %47 : vector<64x1xf32> to vector<64x16xf32>
    %49 = arith.mulf %45, %48 : vector<64x16xf32>
    %cst_26 = arith.constant 0.000000e+00 : f32
    %50 = vector.broadcast %cst_26 : f32 to vector<8x16xf32>
    %51 = vector.extract_strided_slice %1 {offsets = [8, 0], sizes = [56, 16], strides = [1, 1]} : vector<64x16xf32> to vector<56x16xf32>
    %52 = tpu.concatenate %51, %50 in 0 : vector<56x16xf32>, vector<8x16xf32> -> vector<64x16xf32>
    %c7 = arith.constant 7 : index
    %c0_27 = arith.constant 0 : index
    %c0_28 = arith.constant 0 : index
    %53 = vector.load %arg2[%c7, %c0_27, %c0_28] : memref<9x64x1xf32, #tpu.memory_space<vmem>>, vector<1x64x1xf32>
    %54 = vector.shape_cast %53 : vector<1x64x1xf32> to vector<64x1xf32>
    %55 = vector.broadcast %54 : vector<64x1xf32> to vector<64x16xf32>
    %56 = arith.mulf %52, %55 : vector<64x16xf32>
    %cst_29 = arith.constant 0.000000e+00 : f32
    %57 = vector.broadcast %cst_29 : f32 to vector<9x16xf32>
    %58 = vector.extract_strided_slice %1 {offsets = [9, 0], sizes = [55, 16], strides = [1, 1]} : vector<64x16xf32> to vector<55x16xf32>
    %59 = tpu.concatenate %58, %57 in 0 : vector<55x16xf32>, vector<9x16xf32> -> vector<64x16xf32>
    %c8 = arith.constant 8 : index
    %c0_30 = arith.constant 0 : index
    %c0_31 = arith.constant 0 : index
    %60 = vector.load %arg2[%c8, %c0_30, %c0_31] : memref<9x64x1xf32, #tpu.memory_space<vmem>>, vector<1x64x1xf32>
    %61 = vector.shape_cast %60 : vector<1x64x1xf32> to vector<64x1xf32>
    %62 = vector.broadcast %61 : vector<64x1xf32> to vector<64x16xf32>
    %63 = arith.mulf %59, %62 : vector<64x16xf32>
    %64 = tpu.concatenate %10, %17, %24, %31, %35, %42, %49, %56, %63 in 1 : vector<64x16xf32>, vector<64x16xf32>, vector<64x16xf32>, vector<64x16xf32>, vector<64x16xf32>, vector<64x16xf32>, vector<64x16xf32>, vector<64x16xf32>, vector<64x16xf32> -> vector<64x144xf32>
    %cst_32 = arith.constant dense<0.000000e+00> : vector<64x16xf32>
    %65 = tpu.matmul %64, %2, %cst_32 {dimension_numbers = #tpu.dot_dimension_numbers<[1], [0], [0], [1], [0, 0, 1, 1], [], []>} : vector<64x144xf32>, vector<144x16xf32>, vector<64x16xf32> -> vector<64x16xf32>
    %66 = vector.broadcast %3 : vector<1x16xf32> to vector<64x16xf32>
    %67 = arith.addf %65, %66 : vector<64x16xf32>
    %cst_33 = arith.constant 0.000000e+00 : f32
    %68 = vector.broadcast %cst_33 : f32 to vector<64x16xf32>
    %69 = arith.subf %68, %67 : vector<64x16xf32>
    %70 = math.exp %69 : vector<64x16xf32>
    %cst_34 = arith.constant 1.000000e+00 : f32
    %71 = vector.broadcast %cst_34 : f32 to vector<64x16xf32>
    %72 = arith.addf %71, %70 : vector<64x16xf32>
    %cst_35 = arith.constant 1.000000e+00 : f32
    %73 = vector.broadcast %cst_35 : f32 to vector<64x16xf32>
    %74 = arith.divf %73, %72 : vector<64x16xf32>
    %75 = arith.mulf %67, %74 : vector<64x16xf32>
    %c0_36 = arith.constant 0 : index
    %c0_37 = arith.constant 0 : index
    %76 = vector.load %arg6[%c0_36, %c0_37] : memref<16x32xf32, #tpu.memory_space<vmem>>, vector<16x32xf32>
    %cst_38 = arith.constant dense<0.000000e+00> : vector<64x32xf32>
    %77 = tpu.matmul %75, %76, %cst_38 {dimension_numbers = #tpu.dot_dimension_numbers<[1], [0], [0], [1], [0, 0, 1, 1], [], []>} : vector<64x16xf32>, vector<16x32xf32>, vector<64x32xf32> -> vector<64x32xf32>
    %c0_39 = arith.constant 0 : index
    %c0_40 = arith.constant 0 : index
    %78 = vector.load %arg3[%c0_39, %c0_40] : memref<64x64xf32, #tpu.memory_space<vmem>>, vector<64x64xf32>
    %c0_41 = arith.constant 0 : index
    %c0_42 = arith.constant 0 : index
    %c0_43 = arith.constant 0 : index
    %79 = vector.load %arg7[%c0_41, %c0_42, %c0_43] : memref<2x1x32xf32, #tpu.memory_space<vmem>>, vector<1x1x32xf32>
    %80 = vector.shape_cast %79 : vector<1x1x32xf32> to vector<1x32xf32>
    %c0_44 = arith.constant 0 : index
    %c0_45 = arith.constant 0 : index
    %c0_46 = arith.constant 0 : index
    %81 = vector.load %arg8[%c0_44, %c0_45, %c0_46] : memref<2x1x32xf32, #tpu.memory_space<vmem>>, vector<1x1x32xf32>
    %82 = vector.shape_cast %81 : vector<1x1x32xf32> to vector<1x32xf32>
    %cst_47 = arith.constant dense<0.000000e+00> : vector<64xf32>
    %83 = vector.multi_reduction <add>, %77, %cst_47 [1] : vector<64x32xf32> to vector<64xf32>
    %84 = vector.shape_cast %83 : vector<64xf32> to vector<64x1xf32>
    %cst_48 = arith.constant 3.200000e+01 : f32
    %85 = vector.broadcast %cst_48 : f32 to vector<64x1xf32>
    %86 = arith.divf %84, %85 : vector<64x1xf32>
    %87 = vector.broadcast %86 : vector<64x1xf32> to vector<64x32xf32>
    %88 = arith.subf %77, %87 : vector<64x32xf32>
    %89 = arith.mulf %88, %88 : vector<64x32xf32>
    %cst_49 = arith.constant dense<0.000000e+00> : vector<64xf32>
    %90 = vector.multi_reduction <add>, %89, %cst_49 [1] : vector<64x32xf32> to vector<64xf32>
    %91 = vector.shape_cast %90 : vector<64xf32> to vector<64x1xf32>
    %cst_50 = arith.constant 3.200000e+01 : f32
    %92 = vector.broadcast %cst_50 : f32 to vector<64x1xf32>
    %93 = arith.divf %91, %92 : vector<64x1xf32>
    %94 = vector.broadcast %86 : vector<64x1xf32> to vector<64x32xf32>
    %95 = arith.subf %77, %94 : vector<64x32xf32>
    %cst_51 = arith.constant 9.99999974E-6 : f32
    %96 = vector.broadcast %cst_51 : f32 to vector<64x1xf32>
    %97 = arith.addf %93, %96 : vector<64x1xf32>
    %98 = math.rsqrt %97 : vector<64x1xf32>
    %99 = vector.broadcast %98 : vector<64x1xf32> to vector<64x32xf32>
    %100 = arith.mulf %95, %99 : vector<64x32xf32>
    %101 = vector.broadcast %80 : vector<1x32xf32> to vector<64x32xf32>
    %102 = arith.mulf %100, %101 : vector<64x32xf32>
    %103 = vector.broadcast %82 : vector<1x32xf32> to vector<64x32xf32>
    %104 = arith.addf %102, %103 : vector<64x32xf32>
    %c0_52 = arith.constant 0 : index
    %c0_53 = arith.constant 0 : index
    %c0_54 = arith.constant 0 : index
    %105 = vector.load %arg9[%c0_52, %c0_53, %c0_54] : memref<2x32x96xf32, #tpu.memory_space<vmem>>, vector<1x32x96xf32>
    %106 = vector.shape_cast %105 : vector<1x32x96xf32> to vector<32x96xf32>
    %cst_55 = arith.constant dense<0.000000e+00> : vector<64x96xf32>
    %107 = tpu.matmul %104, %106, %cst_55 {dimension_numbers = #tpu.dot_dimension_numbers<[1], [0], [0], [1], [0, 0, 1, 1], [], []>} : vector<64x32xf32>, vector<32x96xf32>, vector<64x96xf32> -> vector<64x96xf32>
    %c0_56 = arith.constant 0 : index
    %c0_57 = arith.constant 0 : index
    %c0_58 = arith.constant 0 : index
    %108 = vector.load %arg10[%c0_56, %c0_57, %c0_58] : memref<2x1x96xf32, #tpu.memory_space<vmem>>, vector<1x1x96xf32>
    %109 = vector.shape_cast %108 : vector<1x1x96xf32> to vector<1x96xf32>
    %110 = vector.broadcast %109 : vector<1x96xf32> to vector<64x96xf32>
    %111 = arith.addf %107, %110 : vector<64x96xf32>
    %c0_59 = arith.constant 0 : index
    %c0_60 = arith.constant 0 : index
    %c0_61 = arith.constant 0 : index
    %112 = vector.load %arg11[%c0_59, %c0_60, %c0_61] : memref<2x32x32xf32, #tpu.memory_space<vmem>>, vector<1x32x32xf32>
    %113 = vector.shape_cast %112 : vector<1x32x32xf32> to vector<32x32xf32>
    %cst_62 = arith.constant 0.000000e+00 : f32
    %114 = vector.broadcast %cst_62 : f32 to vector<64x32xf32>
    %115 = vector.extract_strided_slice %111 {offsets = [0, 0], sizes = [64, 16], strides = [1, 1]} : vector<64x96xf32> to vector<64x16xf32>
    %116 = vector.extract_strided_slice %111 {offsets = [0, 32], sizes = [64, 16], strides = [1, 1]} : vector<64x96xf32> to vector<64x16xf32>
    %117 = vector.extract_strided_slice %111 {offsets = [0, 64], sizes = [64, 16], strides = [1, 1]} : vector<64x96xf32> to vector<64x16xf32>
    %cst_63 = arith.constant dense<0.000000e+00> : vector<64x64xf32>
    %118 = tpu.matmul %115, %116, %cst_63 {dimension_numbers = #tpu.dot_dimension_numbers<[1], [1], [0], [0], [0, 0, 1, 0], [], []>} : vector<64x16xf32>, vector<64x16xf32>, vector<64x64xf32> -> vector<64x64xf32>
    %119 = arith.addf %118, %78 : vector<64x64xf32>
    %cst_64 = arith.constant dense<0xFF800000> : vector<64xf32>
    %120 = vector.multi_reduction <maximumf>, %119, %cst_64 [1] : vector<64x64xf32> to vector<64xf32>
    %121 = vector.shape_cast %120 : vector<64xf32> to vector<64x1xf32>
    %122 = vector.broadcast %121 : vector<64x1xf32> to vector<64x64xf32>
    %123 = arith.subf %119, %122 : vector<64x64xf32>
    %124 = math.exp %123 : vector<64x64xf32>
    %cst_65 = arith.constant dense<0.000000e+00> : vector<64xf32>
    %125 = vector.multi_reduction <add>, %124, %cst_65 [1] : vector<64x64xf32> to vector<64xf32>
    %126 = vector.shape_cast %125 : vector<64xf32> to vector<64x1xf32>
    %127 = tpu.reciprocal %126 {approx = true} : vector<64x1xf32> -> vector<64x1xf32>
    %128 = vector.broadcast %127 : vector<64x1xf32> to vector<64x64xf32>
    %129 = arith.mulf %124, %128 : vector<64x64xf32>
    %cst_66 = arith.constant dense<0.000000e+00> : vector<64x16xf32>
    %130 = tpu.matmul %129, %117, %cst_66 {dimension_numbers = #tpu.dot_dimension_numbers<[1], [0], [0], [1], [0, 0, 1, 1], [], []>} : vector<64x64xf32>, vector<64x16xf32>, vector<64x16xf32> -> vector<64x16xf32>
    %131 = vector.extract_strided_slice %113 {offsets = [0, 0], sizes = [16, 32], strides = [1, 1]} : vector<32x32xf32> to vector<16x32xf32>
    %cst_67 = arith.constant dense<0.000000e+00> : vector<64x32xf32>
    %132 = tpu.matmul %130, %131, %cst_67 {dimension_numbers = #tpu.dot_dimension_numbers<[1], [0], [0], [1], [0, 0, 1, 1], [], []>} : vector<64x16xf32>, vector<16x32xf32>, vector<64x32xf32> -> vector<64x32xf32>
    %133 = arith.addf %114, %132 : vector<64x32xf32>
    %134 = vector.extract_strided_slice %111 {offsets = [0, 16], sizes = [64, 16], strides = [1, 1]} : vector<64x96xf32> to vector<64x16xf32>
    %135 = vector.extract_strided_slice %111 {offsets = [0, 48], sizes = [64, 16], strides = [1, 1]} : vector<64x96xf32> to vector<64x16xf32>
    %136 = vector.extract_strided_slice %111 {offsets = [0, 80], sizes = [64, 16], strides = [1, 1]} : vector<64x96xf32> to vector<64x16xf32>
    %cst_68 = arith.constant dense<0.000000e+00> : vector<64x64xf32>
    %137 = tpu.matmul %134, %135, %cst_68 {dimension_numbers = #tpu.dot_dimension_numbers<[1], [1], [0], [0], [0, 0, 1, 0], [], []>} : vector<64x16xf32>, vector<64x16xf32>, vector<64x64xf32> -> vector<64x64xf32>
    %138 = arith.addf %137, %78 : vector<64x64xf32>
    %cst_69 = arith.constant dense<0xFF800000> : vector<64xf32>
    %139 = vector.multi_reduction <maximumf>, %138, %cst_69 [1] : vector<64x64xf32> to vector<64xf32>
    %140 = vector.shape_cast %139 : vector<64xf32> to vector<64x1xf32>
    %141 = vector.broadcast %140 : vector<64x1xf32> to vector<64x64xf32>
    %142 = arith.subf %138, %141 : vector<64x64xf32>
    %143 = math.exp %142 : vector<64x64xf32>
    %cst_70 = arith.constant dense<0.000000e+00> : vector<64xf32>
    %144 = vector.multi_reduction <add>, %143, %cst_70 [1] : vector<64x64xf32> to vector<64xf32>
    %145 = vector.shape_cast %144 : vector<64xf32> to vector<64x1xf32>
    %146 = tpu.reciprocal %145 {approx = true} : vector<64x1xf32> -> vector<64x1xf32>
    %147 = vector.broadcast %146 : vector<64x1xf32> to vector<64x64xf32>
    %148 = arith.mulf %143, %147 : vector<64x64xf32>
    %cst_71 = arith.constant dense<0.000000e+00> : vector<64x16xf32>
    %149 = tpu.matmul %148, %136, %cst_71 {dimension_numbers = #tpu.dot_dimension_numbers<[1], [0], [0], [1], [0, 0, 1, 1], [], []>} : vector<64x64xf32>, vector<64x16xf32>, vector<64x16xf32> -> vector<64x16xf32>
    %150 = vector.extract_strided_slice %113 {offsets = [16, 0], sizes = [16, 32], strides = [1, 1]} : vector<32x32xf32> to vector<16x32xf32>
    %cst_72 = arith.constant dense<0.000000e+00> : vector<64x32xf32>
    %151 = tpu.matmul %149, %150, %cst_72 {dimension_numbers = #tpu.dot_dimension_numbers<[1], [0], [0], [1], [0, 0, 1, 1], [], []>} : vector<64x16xf32>, vector<16x32xf32>, vector<64x32xf32> -> vector<64x32xf32>
    %152 = arith.addf %133, %151 : vector<64x32xf32>
    %153 = arith.addf %77, %152 : vector<64x32xf32>
    %c0_73 = arith.constant 0 : index
    %c0_74 = arith.constant 0 : index
    %c0_75 = arith.constant 0 : index
    %154 = vector.load %arg12[%c0_73, %c0_74, %c0_75] : memref<2x1x32xf32, #tpu.memory_space<vmem>>, vector<1x1x32xf32>
    %155 = vector.shape_cast %154 : vector<1x1x32xf32> to vector<1x32xf32>
    %156 = vector.broadcast %155 : vector<1x32xf32> to vector<64x32xf32>
    %157 = arith.addf %153, %156 : vector<64x32xf32>
    %c0_76 = arith.constant 0 : index
    %c0_77 = arith.constant 0 : index
    %c0_78 = arith.constant 0 : index
    %158 = vector.load %arg13[%c0_76, %c0_77, %c0_78] : memref<2x1x32xf32, #tpu.memory_space<vmem>>, vector<1x1x32xf32>
    %159 = vector.shape_cast %158 : vector<1x1x32xf32> to vector<1x32xf32>
    %c0_79 = arith.constant 0 : index
    %c0_80 = arith.constant 0 : index
    %c0_81 = arith.constant 0 : index
    %160 = vector.load %arg14[%c0_79, %c0_80, %c0_81] : memref<2x1x32xf32, #tpu.memory_space<vmem>>, vector<1x1x32xf32>
    %161 = vector.shape_cast %160 : vector<1x1x32xf32> to vector<1x32xf32>
    %cst_82 = arith.constant dense<0.000000e+00> : vector<64xf32>
    %162 = vector.multi_reduction <add>, %157, %cst_82 [1] : vector<64x32xf32> to vector<64xf32>
    %163 = vector.shape_cast %162 : vector<64xf32> to vector<64x1xf32>
    %cst_83 = arith.constant 3.200000e+01 : f32
    %164 = vector.broadcast %cst_83 : f32 to vector<64x1xf32>
    %165 = arith.divf %163, %164 : vector<64x1xf32>
    %166 = vector.broadcast %165 : vector<64x1xf32> to vector<64x32xf32>
    %167 = arith.subf %157, %166 : vector<64x32xf32>
    %168 = arith.mulf %167, %167 : vector<64x32xf32>
    %cst_84 = arith.constant dense<0.000000e+00> : vector<64xf32>
    %169 = vector.multi_reduction <add>, %168, %cst_84 [1] : vector<64x32xf32> to vector<64xf32>
    %170 = vector.shape_cast %169 : vector<64xf32> to vector<64x1xf32>
    %cst_85 = arith.constant 3.200000e+01 : f32
    %171 = vector.broadcast %cst_85 : f32 to vector<64x1xf32>
    %172 = arith.divf %170, %171 : vector<64x1xf32>
    %173 = vector.broadcast %165 : vector<64x1xf32> to vector<64x32xf32>
    %174 = arith.subf %157, %173 : vector<64x32xf32>
    %cst_86 = arith.constant 9.99999974E-6 : f32
    %175 = vector.broadcast %cst_86 : f32 to vector<64x1xf32>
    %176 = arith.addf %172, %175 : vector<64x1xf32>
    %177 = math.rsqrt %176 : vector<64x1xf32>
    %178 = vector.broadcast %177 : vector<64x1xf32> to vector<64x32xf32>
    %179 = arith.mulf %174, %178 : vector<64x32xf32>
    %180 = vector.broadcast %159 : vector<1x32xf32> to vector<64x32xf32>
    %181 = arith.mulf %179, %180 : vector<64x32xf32>
    %182 = vector.broadcast %161 : vector<1x32xf32> to vector<64x32xf32>
    %183 = arith.addf %181, %182 : vector<64x32xf32>
    %c0_87 = arith.constant 0 : index
    %c0_88 = arith.constant 0 : index
    %c0_89 = arith.constant 0 : index
    %184 = vector.load %arg15[%c0_87, %c0_88, %c0_89] : memref<2x32x64xf32, #tpu.memory_space<vmem>>, vector<1x32x64xf32>
    %185 = vector.shape_cast %184 : vector<1x32x64xf32> to vector<32x64xf32>
    %cst_90 = arith.constant dense<0.000000e+00> : vector<64x64xf32>
    %186 = tpu.matmul %183, %185, %cst_90 {dimension_numbers = #tpu.dot_dimension_numbers<[1], [0], [0], [1], [0, 0, 1, 1], [], []>} : vector<64x32xf32>, vector<32x64xf32>, vector<64x64xf32> -> vector<64x64xf32>
    %c0_91 = arith.constant 0 : index
    %c0_92 = arith.constant 0 : index
    %c0_93 = arith.constant 0 : index
    %187 = vector.load %arg16[%c0_91, %c0_92, %c0_93] : memref<2x1x64xf32, #tpu.memory_space<vmem>>, vector<1x1x64xf32>
    %188 = vector.shape_cast %187 : vector<1x1x64xf32> to vector<1x64xf32>
    %189 = vector.broadcast %188 : vector<1x64xf32> to vector<64x64xf32>
    %190 = arith.addf %186, %189 : vector<64x64xf32>
    %cst_94 = arith.constant 0.000000e+00 : f32
    %191 = vector.broadcast %cst_94 : f32 to vector<64x64xf32>
    %192 = arith.subf %191, %190 : vector<64x64xf32>
    %193 = math.exp %192 : vector<64x64xf32>
    %cst_95 = arith.constant 1.000000e+00 : f32
    %194 = vector.broadcast %cst_95 : f32 to vector<64x64xf32>
    %195 = arith.addf %194, %193 : vector<64x64xf32>
    %cst_96 = arith.constant 1.000000e+00 : f32
    %196 = vector.broadcast %cst_96 : f32 to vector<64x64xf32>
    %197 = arith.divf %196, %195 : vector<64x64xf32>
    %198 = arith.mulf %190, %197 : vector<64x64xf32>
    %c0_97 = arith.constant 0 : index
    %c0_98 = arith.constant 0 : index
    %c0_99 = arith.constant 0 : index
    %199 = vector.load %arg17[%c0_97, %c0_98, %c0_99] : memref<2x64x32xf32, #tpu.memory_space<vmem>>, vector<1x64x32xf32>
    %200 = vector.shape_cast %199 : vector<1x64x32xf32> to vector<64x32xf32>
    %cst_100 = arith.constant dense<0.000000e+00> : vector<64x32xf32>
    %201 = tpu.matmul %198, %200, %cst_100 {dimension_numbers = #tpu.dot_dimension_numbers<[1], [0], [0], [1], [0, 0, 1, 1], [], []>} : vector<64x64xf32>, vector<64x32xf32>, vector<64x32xf32> -> vector<64x32xf32>
    %202 = arith.addf %157, %201 : vector<64x32xf32>
    %c0_101 = arith.constant 0 : index
    %c0_102 = arith.constant 0 : index
    %c0_103 = arith.constant 0 : index
    %203 = vector.load %arg18[%c0_101, %c0_102, %c0_103] : memref<2x1x32xf32, #tpu.memory_space<vmem>>, vector<1x1x32xf32>
    %204 = vector.shape_cast %203 : vector<1x1x32xf32> to vector<1x32xf32>
    %205 = vector.broadcast %204 : vector<1x32xf32> to vector<64x32xf32>
    %206 = arith.addf %202, %205 : vector<64x32xf32>
    %c1_104 = arith.constant 1 : index
    %c0_105 = arith.constant 0 : index
    %c0_106 = arith.constant 0 : index
    %207 = vector.load %arg7[%c1_104, %c0_105, %c0_106] : memref<2x1x32xf32, #tpu.memory_space<vmem>>, vector<1x1x32xf32>
    %208 = vector.shape_cast %207 : vector<1x1x32xf32> to vector<1x32xf32>
    %c1_107 = arith.constant 1 : index
    %c0_108 = arith.constant 0 : index
    %c0_109 = arith.constant 0 : index
    %209 = vector.load %arg8[%c1_107, %c0_108, %c0_109] : memref<2x1x32xf32, #tpu.memory_space<vmem>>, vector<1x1x32xf32>
    %210 = vector.shape_cast %209 : vector<1x1x32xf32> to vector<1x32xf32>
    %cst_110 = arith.constant dense<0.000000e+00> : vector<64xf32>
    %211 = vector.multi_reduction <add>, %206, %cst_110 [1] : vector<64x32xf32> to vector<64xf32>
    %212 = vector.shape_cast %211 : vector<64xf32> to vector<64x1xf32>
    %cst_111 = arith.constant 3.200000e+01 : f32
    %213 = vector.broadcast %cst_111 : f32 to vector<64x1xf32>
    %214 = arith.divf %212, %213 : vector<64x1xf32>
    %215 = vector.broadcast %214 : vector<64x1xf32> to vector<64x32xf32>
    %216 = arith.subf %206, %215 : vector<64x32xf32>
    %217 = arith.mulf %216, %216 : vector<64x32xf32>
    %cst_112 = arith.constant dense<0.000000e+00> : vector<64xf32>
    %218 = vector.multi_reduction <add>, %217, %cst_112 [1] : vector<64x32xf32> to vector<64xf32>
    %219 = vector.shape_cast %218 : vector<64xf32> to vector<64x1xf32>
    %cst_113 = arith.constant 3.200000e+01 : f32
    %220 = vector.broadcast %cst_113 : f32 to vector<64x1xf32>
    %221 = arith.divf %219, %220 : vector<64x1xf32>
    %222 = vector.broadcast %214 : vector<64x1xf32> to vector<64x32xf32>
    %223 = arith.subf %206, %222 : vector<64x32xf32>
    %cst_114 = arith.constant 9.99999974E-6 : f32
    %224 = vector.broadcast %cst_114 : f32 to vector<64x1xf32>
    %225 = arith.addf %221, %224 : vector<64x1xf32>
    %226 = math.rsqrt %225 : vector<64x1xf32>
    %227 = vector.broadcast %226 : vector<64x1xf32> to vector<64x32xf32>
    %228 = arith.mulf %223, %227 : vector<64x32xf32>
    %229 = vector.broadcast %208 : vector<1x32xf32> to vector<64x32xf32>
    %230 = arith.mulf %228, %229 : vector<64x32xf32>
    %231 = vector.broadcast %210 : vector<1x32xf32> to vector<64x32xf32>
    %232 = arith.addf %230, %231 : vector<64x32xf32>
    %c1_115 = arith.constant 1 : index
    %c0_116 = arith.constant 0 : index
    %c0_117 = arith.constant 0 : index
    %233 = vector.load %arg9[%c1_115, %c0_116, %c0_117] : memref<2x32x96xf32, #tpu.memory_space<vmem>>, vector<1x32x96xf32>
    %234 = vector.shape_cast %233 : vector<1x32x96xf32> to vector<32x96xf32>
    %cst_118 = arith.constant dense<0.000000e+00> : vector<64x96xf32>
    %235 = tpu.matmul %232, %234, %cst_118 {dimension_numbers = #tpu.dot_dimension_numbers<[1], [0], [0], [1], [0, 0, 1, 1], [], []>} : vector<64x32xf32>, vector<32x96xf32>, vector<64x96xf32> -> vector<64x96xf32>
    %c1_119 = arith.constant 1 : index
    %c0_120 = arith.constant 0 : index
    %c0_121 = arith.constant 0 : index
    %236 = vector.load %arg10[%c1_119, %c0_120, %c0_121] : memref<2x1x96xf32, #tpu.memory_space<vmem>>, vector<1x1x96xf32>
    %237 = vector.shape_cast %236 : vector<1x1x96xf32> to vector<1x96xf32>
    %238 = vector.broadcast %237 : vector<1x96xf32> to vector<64x96xf32>
    %239 = arith.addf %235, %238 : vector<64x96xf32>
    %c1_122 = arith.constant 1 : index
    %c0_123 = arith.constant 0 : index
    %c0_124 = arith.constant 0 : index
    %240 = vector.load %arg11[%c1_122, %c0_123, %c0_124] : memref<2x32x32xf32, #tpu.memory_space<vmem>>, vector<1x32x32xf32>
    %241 = vector.shape_cast %240 : vector<1x32x32xf32> to vector<32x32xf32>
    %cst_125 = arith.constant 0.000000e+00 : f32
    %242 = vector.broadcast %cst_125 : f32 to vector<64x32xf32>
    %243 = vector.extract_strided_slice %239 {offsets = [0, 0], sizes = [64, 16], strides = [1, 1]} : vector<64x96xf32> to vector<64x16xf32>
    %244 = vector.extract_strided_slice %239 {offsets = [0, 32], sizes = [64, 16], strides = [1, 1]} : vector<64x96xf32> to vector<64x16xf32>
    %245 = vector.extract_strided_slice %239 {offsets = [0, 64], sizes = [64, 16], strides = [1, 1]} : vector<64x96xf32> to vector<64x16xf32>
    %cst_126 = arith.constant dense<0.000000e+00> : vector<64x64xf32>
    %246 = tpu.matmul %243, %244, %cst_126 {dimension_numbers = #tpu.dot_dimension_numbers<[1], [1], [0], [0], [0, 0, 1, 0], [], []>} : vector<64x16xf32>, vector<64x16xf32>, vector<64x64xf32> -> vector<64x64xf32>
    %247 = arith.addf %246, %78 : vector<64x64xf32>
    %cst_127 = arith.constant dense<0xFF800000> : vector<64xf32>
    %248 = vector.multi_reduction <maximumf>, %247, %cst_127 [1] : vector<64x64xf32> to vector<64xf32>
    %249 = vector.shape_cast %248 : vector<64xf32> to vector<64x1xf32>
    %250 = vector.broadcast %249 : vector<64x1xf32> to vector<64x64xf32>
    %251 = arith.subf %247, %250 : vector<64x64xf32>
    %252 = math.exp %251 : vector<64x64xf32>
    %cst_128 = arith.constant dense<0.000000e+00> : vector<64xf32>
    %253 = vector.multi_reduction <add>, %252, %cst_128 [1] : vector<64x64xf32> to vector<64xf32>
    %254 = vector.shape_cast %253 : vector<64xf32> to vector<64x1xf32>
    %255 = tpu.reciprocal %254 {approx = true} : vector<64x1xf32> -> vector<64x1xf32>
    %256 = vector.broadcast %255 : vector<64x1xf32> to vector<64x64xf32>
    %257 = arith.mulf %252, %256 : vector<64x64xf32>
    %cst_129 = arith.constant dense<0.000000e+00> : vector<64x16xf32>
    %258 = tpu.matmul %257, %245, %cst_129 {dimension_numbers = #tpu.dot_dimension_numbers<[1], [0], [0], [1], [0, 0, 1, 1], [], []>} : vector<64x64xf32>, vector<64x16xf32>, vector<64x16xf32> -> vector<64x16xf32>
    %259 = vector.extract_strided_slice %241 {offsets = [0, 0], sizes = [16, 32], strides = [1, 1]} : vector<32x32xf32> to vector<16x32xf32>
    %cst_130 = arith.constant dense<0.000000e+00> : vector<64x32xf32>
    %260 = tpu.matmul %258, %259, %cst_130 {dimension_numbers = #tpu.dot_dimension_numbers<[1], [0], [0], [1], [0, 0, 1, 1], [], []>} : vector<64x16xf32>, vector<16x32xf32>, vector<64x32xf32> -> vector<64x32xf32>
    %261 = arith.addf %242, %260 : vector<64x32xf32>
    %262 = vector.extract_strided_slice %239 {offsets = [0, 16], sizes = [64, 16], strides = [1, 1]} : vector<64x96xf32> to vector<64x16xf32>
    %263 = vector.extract_strided_slice %239 {offsets = [0, 48], sizes = [64, 16], strides = [1, 1]} : vector<64x96xf32> to vector<64x16xf32>
    %264 = vector.extract_strided_slice %239 {offsets = [0, 80], sizes = [64, 16], strides = [1, 1]} : vector<64x96xf32> to vector<64x16xf32>
    %cst_131 = arith.constant dense<0.000000e+00> : vector<64x64xf32>
    %265 = tpu.matmul %262, %263, %cst_131 {dimension_numbers = #tpu.dot_dimension_numbers<[1], [1], [0], [0], [0, 0, 1, 0], [], []>} : vector<64x16xf32>, vector<64x16xf32>, vector<64x64xf32> -> vector<64x64xf32>
    %266 = arith.addf %265, %78 : vector<64x64xf32>
    %cst_132 = arith.constant dense<0xFF800000> : vector<64xf32>
    %267 = vector.multi_reduction <maximumf>, %266, %cst_132 [1] : vector<64x64xf32> to vector<64xf32>
    %268 = vector.shape_cast %267 : vector<64xf32> to vector<64x1xf32>
    %269 = vector.broadcast %268 : vector<64x1xf32> to vector<64x64xf32>
    %270 = arith.subf %266, %269 : vector<64x64xf32>
    %271 = math.exp %270 : vector<64x64xf32>
    %cst_133 = arith.constant dense<0.000000e+00> : vector<64xf32>
    %272 = vector.multi_reduction <add>, %271, %cst_133 [1] : vector<64x64xf32> to vector<64xf32>
    %273 = vector.shape_cast %272 : vector<64xf32> to vector<64x1xf32>
    %274 = tpu.reciprocal %273 {approx = true} : vector<64x1xf32> -> vector<64x1xf32>
    %275 = vector.broadcast %274 : vector<64x1xf32> to vector<64x64xf32>
    %276 = arith.mulf %271, %275 : vector<64x64xf32>
    %cst_134 = arith.constant dense<0.000000e+00> : vector<64x16xf32>
    %277 = tpu.matmul %276, %264, %cst_134 {dimension_numbers = #tpu.dot_dimension_numbers<[1], [0], [0], [1], [0, 0, 1, 1], [], []>} : vector<64x64xf32>, vector<64x16xf32>, vector<64x16xf32> -> vector<64x16xf32>
    %278 = vector.extract_strided_slice %241 {offsets = [16, 0], sizes = [16, 32], strides = [1, 1]} : vector<32x32xf32> to vector<16x32xf32>
    %cst_135 = arith.constant dense<0.000000e+00> : vector<64x32xf32>
    %279 = tpu.matmul %277, %278, %cst_135 {dimension_numbers = #tpu.dot_dimension_numbers<[1], [0], [0], [1], [0, 0, 1, 1], [], []>} : vector<64x16xf32>, vector<16x32xf32>, vector<64x32xf32> -> vector<64x32xf32>
    %280 = arith.addf %261, %279 : vector<64x32xf32>
    %281 = arith.addf %206, %280 : vector<64x32xf32>
    %c1_136 = arith.constant 1 : index
    %c0_137 = arith.constant 0 : index
    %c0_138 = arith.constant 0 : index
    %282 = vector.load %arg12[%c1_136, %c0_137, %c0_138] : memref<2x1x32xf32, #tpu.memory_space<vmem>>, vector<1x1x32xf32>
    %283 = vector.shape_cast %282 : vector<1x1x32xf32> to vector<1x32xf32>
    %284 = vector.broadcast %283 : vector<1x32xf32> to vector<64x32xf32>
    %285 = arith.addf %281, %284 : vector<64x32xf32>
    %c1_139 = arith.constant 1 : index
    %c0_140 = arith.constant 0 : index
    %c0_141 = arith.constant 0 : index
    %286 = vector.load %arg13[%c1_139, %c0_140, %c0_141] : memref<2x1x32xf32, #tpu.memory_space<vmem>>, vector<1x1x32xf32>
    %287 = vector.shape_cast %286 : vector<1x1x32xf32> to vector<1x32xf32>
    %c1_142 = arith.constant 1 : index
    %c0_143 = arith.constant 0 : index
    %c0_144 = arith.constant 0 : index
    %288 = vector.load %arg14[%c1_142, %c0_143, %c0_144] : memref<2x1x32xf32, #tpu.memory_space<vmem>>, vector<1x1x32xf32>
    %289 = vector.shape_cast %288 : vector<1x1x32xf32> to vector<1x32xf32>
    %cst_145 = arith.constant dense<0.000000e+00> : vector<64xf32>
    %290 = vector.multi_reduction <add>, %285, %cst_145 [1] : vector<64x32xf32> to vector<64xf32>
    %291 = vector.shape_cast %290 : vector<64xf32> to vector<64x1xf32>
    %cst_146 = arith.constant 3.200000e+01 : f32
    %292 = vector.broadcast %cst_146 : f32 to vector<64x1xf32>
    %293 = arith.divf %291, %292 : vector<64x1xf32>
    %294 = vector.broadcast %293 : vector<64x1xf32> to vector<64x32xf32>
    %295 = arith.subf %285, %294 : vector<64x32xf32>
    %296 = arith.mulf %295, %295 : vector<64x32xf32>
    %cst_147 = arith.constant dense<0.000000e+00> : vector<64xf32>
    %297 = vector.multi_reduction <add>, %296, %cst_147 [1] : vector<64x32xf32> to vector<64xf32>
    %298 = vector.shape_cast %297 : vector<64xf32> to vector<64x1xf32>
    %cst_148 = arith.constant 3.200000e+01 : f32
    %299 = vector.broadcast %cst_148 : f32 to vector<64x1xf32>
    %300 = arith.divf %298, %299 : vector<64x1xf32>
    %301 = vector.broadcast %293 : vector<64x1xf32> to vector<64x32xf32>
    %302 = arith.subf %285, %301 : vector<64x32xf32>
    %cst_149 = arith.constant 9.99999974E-6 : f32
    %303 = vector.broadcast %cst_149 : f32 to vector<64x1xf32>
    %304 = arith.addf %300, %303 : vector<64x1xf32>
    %305 = math.rsqrt %304 : vector<64x1xf32>
    %306 = vector.broadcast %305 : vector<64x1xf32> to vector<64x32xf32>
    %307 = arith.mulf %302, %306 : vector<64x32xf32>
    %308 = vector.broadcast %287 : vector<1x32xf32> to vector<64x32xf32>
    %309 = arith.mulf %307, %308 : vector<64x32xf32>
    %310 = vector.broadcast %289 : vector<1x32xf32> to vector<64x32xf32>
    %311 = arith.addf %309, %310 : vector<64x32xf32>
    %c1_150 = arith.constant 1 : index
    %c0_151 = arith.constant 0 : index
    %c0_152 = arith.constant 0 : index
    %312 = vector.load %arg15[%c1_150, %c0_151, %c0_152] : memref<2x32x64xf32, #tpu.memory_space<vmem>>, vector<1x32x64xf32>
    %313 = vector.shape_cast %312 : vector<1x32x64xf32> to vector<32x64xf32>
    %cst_153 = arith.constant dense<0.000000e+00> : vector<64x64xf32>
    %314 = tpu.matmul %311, %313, %cst_153 {dimension_numbers = #tpu.dot_dimension_numbers<[1], [0], [0], [1], [0, 0, 1, 1], [], []>} : vector<64x32xf32>, vector<32x64xf32>, vector<64x64xf32> -> vector<64x64xf32>
    %c1_154 = arith.constant 1 : index
    %c0_155 = arith.constant 0 : index
    %c0_156 = arith.constant 0 : index
    %315 = vector.load %arg16[%c1_154, %c0_155, %c0_156] : memref<2x1x64xf32, #tpu.memory_space<vmem>>, vector<1x1x64xf32>
    %316 = vector.shape_cast %315 : vector<1x1x64xf32> to vector<1x64xf32>
    %317 = vector.broadcast %316 : vector<1x64xf32> to vector<64x64xf32>
    %318 = arith.addf %314, %317 : vector<64x64xf32>
    %cst_157 = arith.constant 0.000000e+00 : f32
    %319 = vector.broadcast %cst_157 : f32 to vector<64x64xf32>
    %320 = arith.subf %319, %318 : vector<64x64xf32>
    %321 = math.exp %320 : vector<64x64xf32>
    %cst_158 = arith.constant 1.000000e+00 : f32
    %322 = vector.broadcast %cst_158 : f32 to vector<64x64xf32>
    %323 = arith.addf %322, %321 : vector<64x64xf32>
    %cst_159 = arith.constant 1.000000e+00 : f32
    %324 = vector.broadcast %cst_159 : f32 to vector<64x64xf32>
    %325 = arith.divf %324, %323 : vector<64x64xf32>
    %326 = arith.mulf %318, %325 : vector<64x64xf32>
    %c1_160 = arith.constant 1 : index
    %c0_161 = arith.constant 0 : index
    %c0_162 = arith.constant 0 : index
    %327 = vector.load %arg17[%c1_160, %c0_161, %c0_162] : memref<2x64x32xf32, #tpu.memory_space<vmem>>, vector<1x64x32xf32>
    %328 = vector.shape_cast %327 : vector<1x64x32xf32> to vector<64x32xf32>
    %cst_163 = arith.constant dense<0.000000e+00> : vector<64x32xf32>
    %329 = tpu.matmul %326, %328, %cst_163 {dimension_numbers = #tpu.dot_dimension_numbers<[1], [0], [0], [1], [0, 0, 1, 1], [], []>} : vector<64x64xf32>, vector<64x32xf32>, vector<64x32xf32> -> vector<64x32xf32>
    %330 = arith.addf %285, %329 : vector<64x32xf32>
    %c1_164 = arith.constant 1 : index
    %c0_165 = arith.constant 0 : index
    %c0_166 = arith.constant 0 : index
    %331 = vector.load %arg18[%c1_164, %c0_165, %c0_166] : memref<2x1x32xf32, #tpu.memory_space<vmem>>, vector<1x1x32xf32>
    %332 = vector.shape_cast %331 : vector<1x1x32xf32> to vector<1x32xf32>
    %333 = vector.broadcast %332 : vector<1x32xf32> to vector<64x32xf32>
    %334 = arith.addf %330, %333 : vector<64x32xf32>
    %c0_167 = arith.constant 0 : index
    %c0_168 = arith.constant 0 : index
    %335 = vector.load %arg19[%c0_167, %c0_168] : memref<1x32xf32, #tpu.memory_space<vmem>>, vector<1x32xf32>
    %c0_169 = arith.constant 0 : index
    %c0_170 = arith.constant 0 : index
    %336 = vector.load %arg20[%c0_169, %c0_170] : memref<1x32xf32, #tpu.memory_space<vmem>>, vector<1x32xf32>
    %cst_171 = arith.constant dense<0.000000e+00> : vector<64xf32>
    %337 = vector.multi_reduction <add>, %334, %cst_171 [1] : vector<64x32xf32> to vector<64xf32>
    %338 = vector.shape_cast %337 : vector<64xf32> to vector<64x1xf32>
    %cst_172 = arith.constant 3.200000e+01 : f32
    %339 = vector.broadcast %cst_172 : f32 to vector<64x1xf32>
    %340 = arith.divf %338, %339 : vector<64x1xf32>
    %341 = vector.broadcast %340 : vector<64x1xf32> to vector<64x32xf32>
    %342 = arith.subf %334, %341 : vector<64x32xf32>
    %343 = arith.mulf %342, %342 : vector<64x32xf32>
    %cst_173 = arith.constant dense<0.000000e+00> : vector<64xf32>
    %344 = vector.multi_reduction <add>, %343, %cst_173 [1] : vector<64x32xf32> to vector<64xf32>
    %345 = vector.shape_cast %344 : vector<64xf32> to vector<64x1xf32>
    %cst_174 = arith.constant 3.200000e+01 : f32
    %346 = vector.broadcast %cst_174 : f32 to vector<64x1xf32>
    %347 = arith.divf %345, %346 : vector<64x1xf32>
    %348 = vector.broadcast %340 : vector<64x1xf32> to vector<64x32xf32>
    %349 = arith.subf %334, %348 : vector<64x32xf32>
    %cst_175 = arith.constant 9.99999974E-6 : f32
    %350 = vector.broadcast %cst_175 : f32 to vector<64x1xf32>
    %351 = arith.addf %347, %350 : vector<64x1xf32>
    %352 = math.rsqrt %351 : vector<64x1xf32>
    %353 = vector.broadcast %352 : vector<64x1xf32> to vector<64x32xf32>
    %354 = arith.mulf %349, %353 : vector<64x32xf32>
    %355 = vector.broadcast %335 : vector<1x32xf32> to vector<64x32xf32>
    %356 = arith.mulf %354, %355 : vector<64x32xf32>
    %357 = vector.broadcast %336 : vector<1x32xf32> to vector<64x32xf32>
    %358 = arith.addf %356, %357 : vector<64x32xf32>
    %c0_176 = arith.constant 0 : index
    %c0_177 = arith.constant 0 : index
    %359 = vector.load %arg21[%c0_176, %c0_177] : memref<32x16xf32, #tpu.memory_space<vmem>>, vector<32x16xf32>
    %cst_178 = arith.constant dense<0.000000e+00> : vector<64x16xf32>
    %360 = tpu.matmul %358, %359, %cst_178 {dimension_numbers = #tpu.dot_dimension_numbers<[1], [0], [0], [1], [0, 0, 1, 1], [], []>} : vector<64x32xf32>, vector<32x16xf32>, vector<64x16xf32> -> vector<64x16xf32>
    %c0_179 = arith.constant 0 : index
    %c0_180 = arith.constant 0 : index
    %361 = vector.load %arg22[%c0_179, %c0_180] : memref<1x16xf32, #tpu.memory_space<vmem>>, vector<1x16xf32>
    %362 = vector.broadcast %361 : vector<1x16xf32> to vector<64x16xf32>
    %363 = arith.addf %360, %362 : vector<64x16xf32>
    %cst_181 = arith.constant 0.000000e+00 : f32
    %364 = vector.broadcast %cst_181 : f32 to vector<64x16xf32>
    %365 = arith.subf %364, %363 : vector<64x16xf32>
    %366 = math.exp %365 : vector<64x16xf32>
    %cst_182 = arith.constant 1.000000e+00 : f32
    %367 = vector.broadcast %cst_182 : f32 to vector<64x16xf32>
    %368 = arith.addf %367, %366 : vector<64x16xf32>
    %cst_183 = arith.constant 1.000000e+00 : f32
    %369 = vector.broadcast %cst_183 : f32 to vector<64x16xf32>
    %370 = arith.divf %369, %368 : vector<64x16xf32>
    %371 = arith.mulf %363, %370 : vector<64x16xf32>
    %372 = tpu.concatenate %1, %371 in 1 : vector<64x16xf32>, vector<64x16xf32> -> vector<64x32xf32>
    %c0_184 = arith.constant 0 : index
    %c0_185 = arith.constant 0 : index
    %373 = vector.load %arg23[%c0_184, %c0_185] : memref<288x16xf32, #tpu.memory_space<vmem>>, vector<288x16xf32>
    %c0_186 = arith.constant 0 : index
    %c0_187 = arith.constant 0 : index
    %374 = vector.load %arg24[%c0_186, %c0_187] : memref<1x16xf32, #tpu.memory_space<vmem>>, vector<1x16xf32>
    %cst_188 = arith.constant 0.000000e+00 : f32
    %375 = vector.broadcast %cst_188 : f32 to vector<9x32xf32>
    %376 = vector.extract_strided_slice %372 {offsets = [0, 0], sizes = [55, 32], strides = [1, 1]} : vector<64x32xf32> to vector<55x32xf32>
    %377 = tpu.concatenate %375, %376 in 0 : vector<9x32xf32>, vector<55x32xf32> -> vector<64x32xf32>
    %c0_189 = arith.constant 0 : index
    %c0_190 = arith.constant 0 : index
    %c0_191 = arith.constant 0 : index
    %378 = vector.load %arg2[%c0_189, %c0_190, %c0_191] : memref<9x64x1xf32, #tpu.memory_space<vmem>>, vector<1x64x1xf32>
    %379 = vector.shape_cast %378 : vector<1x64x1xf32> to vector<64x1xf32>
    %380 = vector.broadcast %379 : vector<64x1xf32> to vector<64x32xf32>
    %381 = arith.mulf %377, %380 : vector<64x32xf32>
    %cst_192 = arith.constant 0.000000e+00 : f32
    %382 = vector.broadcast %cst_192 : f32 to vector<8x32xf32>
    %383 = vector.extract_strided_slice %372 {offsets = [0, 0], sizes = [56, 32], strides = [1, 1]} : vector<64x32xf32> to vector<56x32xf32>
    %384 = tpu.concatenate %382, %383 in 0 : vector<8x32xf32>, vector<56x32xf32> -> vector<64x32xf32>
    %c1_193 = arith.constant 1 : index
    %c0_194 = arith.constant 0 : index
    %c0_195 = arith.constant 0 : index
    %385 = vector.load %arg2[%c1_193, %c0_194, %c0_195] : memref<9x64x1xf32, #tpu.memory_space<vmem>>, vector<1x64x1xf32>
    %386 = vector.shape_cast %385 : vector<1x64x1xf32> to vector<64x1xf32>
    %387 = vector.broadcast %386 : vector<64x1xf32> to vector<64x32xf32>
    %388 = arith.mulf %384, %387 : vector<64x32xf32>
    %cst_196 = arith.constant 0.000000e+00 : f32
    %389 = vector.broadcast %cst_196 : f32 to vector<7x32xf32>
    %390 = vector.extract_strided_slice %372 {offsets = [0, 0], sizes = [57, 32], strides = [1, 1]} : vector<64x32xf32> to vector<57x32xf32>
    %391 = tpu.concatenate %389, %390 in 0 : vector<7x32xf32>, vector<57x32xf32> -> vector<64x32xf32>
    %c2_197 = arith.constant 2 : index
    %c0_198 = arith.constant 0 : index
    %c0_199 = arith.constant 0 : index
    %392 = vector.load %arg2[%c2_197, %c0_198, %c0_199] : memref<9x64x1xf32, #tpu.memory_space<vmem>>, vector<1x64x1xf32>
    %393 = vector.shape_cast %392 : vector<1x64x1xf32> to vector<64x1xf32>
    %394 = vector.broadcast %393 : vector<64x1xf32> to vector<64x32xf32>
    %395 = arith.mulf %391, %394 : vector<64x32xf32>
    %cst_200 = arith.constant 0.000000e+00 : f32
    %396 = vector.broadcast %cst_200 : f32 to vector<1x32xf32>
    %397 = vector.extract_strided_slice %372 {offsets = [0, 0], sizes = [63, 32], strides = [1, 1]} : vector<64x32xf32> to vector<63x32xf32>
    %398 = tpu.concatenate %396, %397 in 0 : vector<1x32xf32>, vector<63x32xf32> -> vector<64x32xf32>
    %c3_201 = arith.constant 3 : index
    %c0_202 = arith.constant 0 : index
    %c0_203 = arith.constant 0 : index
    %399 = vector.load %arg2[%c3_201, %c0_202, %c0_203] : memref<9x64x1xf32, #tpu.memory_space<vmem>>, vector<1x64x1xf32>
    %400 = vector.shape_cast %399 : vector<1x64x1xf32> to vector<64x1xf32>
    %401 = vector.broadcast %400 : vector<64x1xf32> to vector<64x32xf32>
    %402 = arith.mulf %398, %401 : vector<64x32xf32>
    %c4_204 = arith.constant 4 : index
    %c0_205 = arith.constant 0 : index
    %c0_206 = arith.constant 0 : index
    %403 = vector.load %arg2[%c4_204, %c0_205, %c0_206] : memref<9x64x1xf32, #tpu.memory_space<vmem>>, vector<1x64x1xf32>
    %404 = vector.shape_cast %403 : vector<1x64x1xf32> to vector<64x1xf32>
    %405 = vector.broadcast %404 : vector<64x1xf32> to vector<64x32xf32>
    %406 = arith.mulf %372, %405 : vector<64x32xf32>
    %cst_207 = arith.constant 0.000000e+00 : f32
    %407 = vector.broadcast %cst_207 : f32 to vector<1x32xf32>
    %408 = vector.extract_strided_slice %372 {offsets = [1, 0], sizes = [63, 32], strides = [1, 1]} : vector<64x32xf32> to vector<63x32xf32>
    %409 = tpu.concatenate %408, %407 in 0 : vector<63x32xf32>, vector<1x32xf32> -> vector<64x32xf32>
    %c5_208 = arith.constant 5 : index
    %c0_209 = arith.constant 0 : index
    %c0_210 = arith.constant 0 : index
    %410 = vector.load %arg2[%c5_208, %c0_209, %c0_210] : memref<9x64x1xf32, #tpu.memory_space<vmem>>, vector<1x64x1xf32>
    %411 = vector.shape_cast %410 : vector<1x64x1xf32> to vector<64x1xf32>
    %412 = vector.broadcast %411 : vector<64x1xf32> to vector<64x32xf32>
    %413 = arith.mulf %409, %412 : vector<64x32xf32>
    %cst_211 = arith.constant 0.000000e+00 : f32
    %414 = vector.broadcast %cst_211 : f32 to vector<7x32xf32>
    %415 = vector.extract_strided_slice %372 {offsets = [7, 0], sizes = [57, 32], strides = [1, 1]} : vector<64x32xf32> to vector<57x32xf32>
    %416 = tpu.concatenate %415, %414 in 0 : vector<57x32xf32>, vector<7x32xf32> -> vector<64x32xf32>
    %c6_212 = arith.constant 6 : index
    %c0_213 = arith.constant 0 : index
    %c0_214 = arith.constant 0 : index
    %417 = vector.load %arg2[%c6_212, %c0_213, %c0_214] : memref<9x64x1xf32, #tpu.memory_space<vmem>>, vector<1x64x1xf32>
    %418 = vector.shape_cast %417 : vector<1x64x1xf32> to vector<64x1xf32>
    %419 = vector.broadcast %418 : vector<64x1xf32> to vector<64x32xf32>
    %420 = arith.mulf %416, %419 : vector<64x32xf32>
    %cst_215 = arith.constant 0.000000e+00 : f32
    %421 = vector.broadcast %cst_215 : f32 to vector<8x32xf32>
    %422 = vector.extract_strided_slice %372 {offsets = [8, 0], sizes = [56, 32], strides = [1, 1]} : vector<64x32xf32> to vector<56x32xf32>
    %423 = tpu.concatenate %422, %421 in 0 : vector<56x32xf32>, vector<8x32xf32> -> vector<64x32xf32>
    %c7_216 = arith.constant 7 : index
    %c0_217 = arith.constant 0 : index
    %c0_218 = arith.constant 0 : index
    %424 = vector.load %arg2[%c7_216, %c0_217, %c0_218] : memref<9x64x1xf32, #tpu.memory_space<vmem>>, vector<1x64x1xf32>
    %425 = vector.shape_cast %424 : vector<1x64x1xf32> to vector<64x1xf32>
    %426 = vector.broadcast %425 : vector<64x1xf32> to vector<64x32xf32>
    %427 = arith.mulf %423, %426 : vector<64x32xf32>
    %cst_219 = arith.constant 0.000000e+00 : f32
    %428 = vector.broadcast %cst_219 : f32 to vector<9x32xf32>
    %429 = vector.extract_strided_slice %372 {offsets = [9, 0], sizes = [55, 32], strides = [1, 1]} : vector<64x32xf32> to vector<55x32xf32>
    %430 = tpu.concatenate %429, %428 in 0 : vector<55x32xf32>, vector<9x32xf32> -> vector<64x32xf32>
    %c8_220 = arith.constant 8 : index
    %c0_221 = arith.constant 0 : index
    %c0_222 = arith.constant 0 : index
    %431 = vector.load %arg2[%c8_220, %c0_221, %c0_222] : memref<9x64x1xf32, #tpu.memory_space<vmem>>, vector<1x64x1xf32>
    %432 = vector.shape_cast %431 : vector<1x64x1xf32> to vector<64x1xf32>
    %433 = vector.broadcast %432 : vector<64x1xf32> to vector<64x32xf32>
    %434 = arith.mulf %430, %433 : vector<64x32xf32>
    %435 = tpu.concatenate %381, %388, %395, %402, %406, %413, %420, %427, %434 in 1 : vector<64x32xf32>, vector<64x32xf32>, vector<64x32xf32>, vector<64x32xf32>, vector<64x32xf32>, vector<64x32xf32>, vector<64x32xf32>, vector<64x32xf32>, vector<64x32xf32> -> vector<64x288xf32>
    %cst_223 = arith.constant dense<0.000000e+00> : vector<64x16xf32>
    %436 = tpu.matmul %435, %373, %cst_223 {dimension_numbers = #tpu.dot_dimension_numbers<[1], [0], [0], [1], [0, 0, 1, 1], [], []>} : vector<64x288xf32>, vector<288x16xf32>, vector<64x16xf32> -> vector<64x16xf32>
    %437 = vector.broadcast %374 : vector<1x16xf32> to vector<64x16xf32>
    %438 = arith.addf %436, %437 : vector<64x16xf32>
    %cst_224 = arith.constant 0.000000e+00 : f32
    %439 = vector.broadcast %cst_224 : f32 to vector<64x16xf32>
    %440 = arith.subf %439, %438 : vector<64x16xf32>
    %441 = math.exp %440 : vector<64x16xf32>
    %cst_225 = arith.constant 1.000000e+00 : f32
    %442 = vector.broadcast %cst_225 : f32 to vector<64x16xf32>
    %443 = arith.addf %442, %441 : vector<64x16xf32>
    %cst_226 = arith.constant 1.000000e+00 : f32
    %444 = vector.broadcast %cst_226 : f32 to vector<64x16xf32>
    %445 = arith.divf %444, %443 : vector<64x16xf32>
    %446 = arith.mulf %438, %445 : vector<64x16xf32>
    %c0_227 = arith.constant 0 : index
    %c0_228 = arith.constant 0 : index
    %c0_229 = arith.constant 0 : index
    %447 = vector.load %arg25[%c0_227, %c0_228, %c0_229] : memref<1x64x16xf32, #tpu.memory_space<vmem>>, vector<1x64x16xf32>
    %448 = vector.shape_cast %447 : vector<1x64x16xf32> to vector<64x16xf32>
    %449 = vector.shape_cast %446 : vector<64x16xf32> to vector<1x64x16xf32>
    tpu.vector_store %arg25[%c0_227, %c0_228, %c0_229], %449 {strides = array<i32>} : memref<1x64x16xf32, #tpu.memory_space<vmem>>, vector<1x64x16xf32>,
    return
  }
  func.func @transform_0(%arg0: i32) -> (i32, i32, i32) {
    %c0_i32 = arith.constant 0 : i32
    %c0_i32_0 = arith.constant 0 : i32
    %c0_i32_1 = arith.constant 0 : i32
    return %arg0, %c0_i32, %c0_i32_0 : i32, i32, i32
  }
  func.func @transform_1(%arg0: i32) -> (i32, i32, i32) {
    %c0_i32 = arith.constant 0 : i32
    %c0_i32_0 = arith.constant 0 : i32
    %c0_i32_1 = arith.constant 0 : i32
    %c0_i32_2 = arith.constant 0 : i32
    return %c0_i32, %c0_i32_0, %c0_i32_1 : i32, i32, i32
  }
  func.func @transform_2(%arg0: i32) -> (i32, i32) {
    %c0_i32 = arith.constant 0 : i32
    %c0_i32_0 = arith.constant 0 : i32
    %c0_i32_1 = arith.constant 0 : i32
    return %c0_i32, %c0_i32_0 : i32, i32
  }
  func.func @transform_3(%arg0: i32) -> (i32, i32) {
    %c0_i32 = arith.constant 0 : i32
    %c0_i32_0 = arith.constant 0 : i32
    %c0_i32_1 = arith.constant 0 : i32
    return %c0_i32, %c0_i32_0 : i32, i32
  }
  func.func @transform_4(%arg0: i32) -> (i32, i32) {
    %c0_i32 = arith.constant 0 : i32
    %c0_i32_0 = arith.constant 0 : i32
    %c0_i32_1 = arith.constant 0 : i32
    return %c0_i32, %c0_i32_0 : i32, i32
  }
  func.func @transform_5(%arg0: i32) -> (i32, i32) {
    %c0_i32 = arith.constant 0 : i32
    %c0_i32_0 = arith.constant 0 : i32
    %c0_i32_1 = arith.constant 0 : i32
    return %c0_i32, %c0_i32_0 : i32, i32
  }
  func.func @transform_6(%arg0: i32) -> (i32, i32, i32) {
    %c0_i32 = arith.constant 0 : i32
    %c0_i32_0 = arith.constant 0 : i32
    %c0_i32_1 = arith.constant 0 : i32
    %c0_i32_2 = arith.constant 0 : i32
    return %c0_i32, %c0_i32_0, %c0_i32_1 : i32, i32, i32
  }
  func.func @transform_7(%arg0: i32) -> (i32, i32, i32) {
    %c0_i32 = arith.constant 0 : i32
    %c0_i32_0 = arith.constant 0 : i32
    %c0_i32_1 = arith.constant 0 : i32
    %c0_i32_2 = arith.constant 0 : i32
    return %c0_i32, %c0_i32_0, %c0_i32_1 : i32, i32, i32
  }
  func.func @transform_8(%arg0: i32) -> (i32, i32, i32) {
    %c0_i32 = arith.constant 0 : i32
    %c0_i32_0 = arith.constant 0 : i32
    %c0_i32_1 = arith.constant 0 : i32
    %c0_i32_2 = arith.constant 0 : i32
    return %c0_i32, %c0_i32_0, %c0_i32_1 : i32, i32, i32
  }
  func.func @transform_9(%arg0: i32) -> (i32, i32, i32) {
    %c0_i32 = arith.constant 0 : i32
    %c0_i32_0 = arith.constant 0 : i32
    %c0_i32_1 = arith.constant 0 : i32
    %c0_i32_2 = arith.constant 0 : i32
    return %c0_i32, %c0_i32_0, %c0_i32_1 : i32, i32, i32
  }
  func.func @transform_10(%arg0: i32) -> (i32, i32, i32) {
    %c0_i32 = arith.constant 0 : i32
    %c0_i32_0 = arith.constant 0 : i32
    %c0_i32_1 = arith.constant 0 : i32
    %c0_i32_2 = arith.constant 0 : i32
    return %c0_i32, %c0_i32_0, %c0_i32_1 : i32, i32, i32
  }
  func.func @transform_11(%arg0: i32) -> (i32, i32, i32) {
    %c0_i32 = arith.constant 0 : i32
    %c0_i32_0 = arith.constant 0 : i32
    %c0_i32_1 = arith.constant 0 : i32
    %c0_i32_2 = arith.constant 0 : i32
    return %c0_i32, %c0_i32_0, %c0_i32_1 : i32, i32, i32
  }
  func.func @transform_12(%arg0: i32) -> (i32, i32, i32) {
    %c0_i32 = arith.constant 0 : i32
    %c0_i32_0 = arith.constant 0 : i32
    %c0_i32_1 = arith.constant 0 : i32
    %c0_i32_2 = arith.constant 0 : i32
    return %c0_i32, %c0_i32_0, %c0_i32_1 : i32, i32, i32
  }
  func.func @transform_13(%arg0: i32) -> (i32, i32, i32) {
    %c0_i32 = arith.constant 0 : i32
    %c0_i32_0 = arith.constant 0 : i32
    %c0_i32_1 = arith.constant 0 : i32
    %c0_i32_2 = arith.constant 0 : i32
    return %c0_i32, %c0_i32_0, %c0_i32_1 : i32, i32, i32
  }
  func.func @transform_14(%arg0: i32) -> (i32, i32, i32) {
    %c0_i32 = arith.constant 0 : i32
    %c0_i32_0 = arith.constant 0 : i32
    %c0_i32_1 = arith.constant 0 : i32
    %c0_i32_2 = arith.constant 0 : i32
    return %c0_i32, %c0_i32_0, %c0_i32_1 : i32, i32, i32
  }
  func.func @transform_15(%arg0: i32) -> (i32, i32, i32) {
    %c0_i32 = arith.constant 0 : i32
    %c0_i32_0 = arith.constant 0 : i32
    %c0_i32_1 = arith.constant 0 : i32
    %c0_i32_2 = arith.constant 0 : i32
    return %c0_i32, %c0_i32_0, %c0_i32_1 : i32, i32, i32
  }
  func.func @transform_16(%arg0: i32) -> (i32, i32, i32) {
    %c0_i32 = arith.constant 0 : i32
    %c0_i32_0 = arith.constant 0 : i32
    %c0_i32_1 = arith.constant 0 : i32
    %c0_i32_2 = arith.constant 0 : i32
    return %c0_i32, %c0_i32_0, %c0_i32_1 : i32, i32, i32
  }
  func.func @transform_17(%arg0: i32) -> (i32, i32, i32) {
    %c0_i32 = arith.constant 0 : i32
    %c0_i32_0 = arith.constant 0 : i32
    %c0_i32_1 = arith.constant 0 : i32
    %c0_i32_2 = arith.constant 0 : i32
    return %c0_i32, %c0_i32_0, %c0_i32_1 : i32, i32, i32
  }
  func.func @transform_18(%arg0: i32) -> (i32, i32) {
    %c0_i32 = arith.constant 0 : i32
    %c0_i32_0 = arith.constant 0 : i32
    %c0_i32_1 = arith.constant 0 : i32
    return %c0_i32, %c0_i32_0 : i32, i32
  }
  func.func @transform_19(%arg0: i32) -> (i32, i32) {
    %c0_i32 = arith.constant 0 : i32
    %c0_i32_0 = arith.constant 0 : i32
    %c0_i32_1 = arith.constant 0 : i32
    return %c0_i32, %c0_i32_0 : i32, i32
  }
  func.func @transform_20(%arg0: i32) -> (i32, i32) {
    %c0_i32 = arith.constant 0 : i32
    %c0_i32_0 = arith.constant 0 : i32
    %c0_i32_1 = arith.constant 0 : i32
    return %c0_i32, %c0_i32_0 : i32, i32
  }
  func.func @transform_21(%arg0: i32) -> (i32, i32) {
    %c0_i32 = arith.constant 0 : i32
    %c0_i32_0 = arith.constant 0 : i32
    %c0_i32_1 = arith.constant 0 : i32
    return %c0_i32, %c0_i32_0 : i32, i32
  }
  func.func @transform_22(%arg0: i32) -> (i32, i32) {
    %c0_i32 = arith.constant 0 : i32
    %c0_i32_0 = arith.constant 0 : i32
    %c0_i32_1 = arith.constant 0 : i32
    return %c0_i32, %c0_i32_0 : i32, i32
  }
  func.func @transform_23(%arg0: i32) -> (i32, i32) {
    %c0_i32 = arith.constant 0 : i32
    %c0_i32_0 = arith.constant 0 : i32
    %c0_i32_1 = arith.constant 0 : i32
    return %c0_i32, %c0_i32_0 : i32, i32
  }
  func.func @transform_24(%arg0: i32) -> (i32, i32, i32) {
    %c0_i32 = arith.constant 0 : i32
    %c0_i32_0 = arith.constant 0 : i32
    %c0_i32_1 = arith.constant 0 : i32
    return %arg0, %c0_i32, %c0_i32_0 : i32, i32, i32
  }
}

</mosaic_0001>

<bundles_post_ra>
// kernel: tpu_custom_call.1
= control target key start
LH: loop header
LB: loop body
LE: loop exit
PB: predicated region body
PF: predicated region fallthrough
CT: control target
= control target key end

     0   :  { %s11432_s0 = inlined_call_operand.vmem [shape: f32[2,64,16], index: 0, kind: input, shape index: {}]   ;;  %s11433_s1 = inlined_call_operand.vmem [shape: f32[9,64,1], index: 1, kind: input, shape index: {}]   ;;  %s11434_s2 = inlined_call_operand.vmem [shape: f32[64,64], index: 2, kind: input, shape index: {}]   ;;  %s11435_s3 = inlined_call_operand.vmem [shape: f32[144,16], index: 3, kind: input, shape index: {}]   ;;  %s11436_s4 = inlined_call_operand.vmem [shape: f32[1,16], index: 4, kind: input, shape index: {}]   ;;  %s11437_s5 = inlined_call_operand.vmem [shape: f32[16,32], index: 5, kind: input, shape index: {}]   ;;  %s11438_s6 = inlined_call_operand.vmem [shape: f32[2,1,32], index: 6, kind: input, shape index: {}]   ;;  %s11439_s7 = inlined_call_operand.vmem [shape: f32[2,1,32], index: 7, kind: input, shape index: {}]   ;;  %s11440_s8 = inlined_call_operand.vmem [shape: f32[2,32,96], index: 8, kind: input, shape index: {}]   ;;  %s11441_s9 = inlined_call_operand.vmem [shape: f32[2,1,96], index: 9, kind: input, shape index: {}]   ;;  %s11442_s10 = inlined_call_operand.vmem [shape: f32[2,32,32], index: 10, kind: input, shape index: {}]   ;;  %s11443_s11 = inlined_call_operand.vmem [shape: f32[2,1,32], index: 11, kind: input, shape index: {}]   ;;  %s11444_s12 = inlined_call_operand.vmem [shape: f32[2,1,32], index: 12, kind: input, shape index: {}]   ;;  %s11445_s13 = inlined_call_operand.vmem [shape: f32[2,1,32], index: 13, kind: input, shape index: {}]   ;;  %s11446_s14 = inlined_call_operand.vmem [shape: f32[2,32,64], index: 14, kind: input, shape index: {}]   ;;  %s11447_s15 = inlined_call_operand.vmem [shape: f32[2,1,64], index: 15, kind: input, shape index: {}]   ;;  %s11448_s16 = inlined_call_operand.vmem [shape: f32[2,64,32], index: 16, kind: input, shape index: {}]   ;;  %s11449_s17 = inlined_call_operand.vmem [shape: f32[2,1,32], index: 17, kind: input, shape index: {}]   ;;  %s11450_s18 = inlined_call_operand.vmem [shape: f32[1,32], index: 18, kind: input, shape index: {}]   ;;  %s11451_s19 = inlined_call_operand.vmem [shape: f32[1,32], index: 19, kind: input, shape index: {}]   ;;  %s11452_s20 = inlined_call_operand.vmem [shape: f32[32,16], index: 20, kind: input, shape index: {}]   ;;  %s11453_s21 = inlined_call_operand.vmem [shape: f32[1,16], index: 21, kind: input, shape index: {}]   ;;  %s11454_s22 = inlined_call_operand.vmem [shape: f32[288,16], index: 22, kind: input, shape index: {}]   ;;  %s11455_s23 = inlined_call_operand.vmem [shape: f32[1,16], index: 23, kind: input, shape index: {}]   ;;  %s11456_s24 = inlined_call_operand.vmem [shape: f32[2,64,16], index: 24, kind: output, shape index: {}]  }
   0x1   :  { %11545 = sst [smem:[#allocation64_spill]] %s11432_s0 }
   0x2   :  { %11546 = sst [smem:[#allocation65_spill]] %s11433_s1 }
   0x3   :  { %11547 = sst [smem:[#allocation66_spill]] %s11434_s2 }
   0x4   :  { %11548 = sst [smem:[#allocation67_spill]] %s11435_s3 }
   0x5   :  { %11549 = sst [smem:[#allocation68_spill]] %s11436_s4 }
   0x6   :  { %11550 = sst [smem:[#allocation69_spill]] %s11437_s5  ;;  %s8764_s5 = smov 0  }
   0x7   :  { %11551 = sst [smem:[#allocation70_spill]] %s11438_s6 }
   0x8   :  { %11552 = sst [smem:[#allocation71_spill]] %s11439_s7 }
   0x9   :  { %11553 = sst [smem:[#allocation72_spill]] %s11440_s8 }
   0xa   :  { %11554 = sst [smem:[#allocation73_spill]] %s11455_s23 }
   0xb   :  { %11555 = sst [smem:[#allocation74_spill]] %s11456_s24 }
   0xc LB: > { %11556 = sst [smem:[#allocation2_spill]] %s8628_s5  ;;  %s6822_s26 = sadd.s32 4294967295, %s8628_s5   ;;  %s8628_s5 = sphi %s8764_s5, %s34_s5  }
   0xd   : > { %p6826_p0 = scmp.ge.s32.totalorder %s8628_s5, 1  ;;  %p662_p1 = scmp.lt.s32.totalorder %s8628_s5, 3 }
   0xf   : > { %p663_p2 = pnand %p6826_p0, %p662_p1 }
  0x11   : > { %666 = sbr.rel (%p663_p2) target bundleno = 7805 (0x1e7d), region = 116 }
  0x16   : > { %s11557_s6 = sld [smem:[#allocation65_spill]]  ;;  %v8630_v2 = vmov 0   ;;  %p728_p3 = scmp.lt.s32.totalorder %s6822_s26, 1  ;;  %v8631_v63 = vmov 0.0   ;;  %vm908_vm0 = vcmask 1046528   ;;  %vm772_vm1 = vcmask 1040384  }
  0x17   : > { %7992 = vset.pattern.permute.xlu1 %v8630_v2  ;;  %7991 = vset.pattern.permute.xlu0 %v8630_v2  ;;  %s11559_s2 = sld [smem:[#allocation67_spill]]  ;;  %s11503_s30 = smov 16   ;;  %vm1563_vm2 = vcmask 130048   ;;  %vm1572_vm3 = vcmask 261120   ;;  %vm1581_vm4 = vcmask 392192   ;;  %vm1590_vm5 = vcmask 523264  }
  0x18   : > { %s11700_s26 = smov (!%p728_p3, %s6822_s26), 1  ;;  %1656 = vmatprep.subr.mxu0 %v8631_v63  ;;  %s11560_s4 = sld [smem:[#allocation64_spill]]  ;;  %vm1599_vm6 = vcmask 654336   ;;  %vm1608_vm7 = vcmask 785408   ;;  %vm1617_vm8 = vcmask 916480  }
  0x19   : > { %11558 = sst [smem:[#allocation3_spill]] %s11700_s26  ;;  %s11464_s3 = sshll.u32 %s11700_s26, 6 }
  0x1a   : > { %s11501_s0 = smov 32   ;;  %s11505_s27 = smov 48  }
  0x1b   : > { %s11511_s7 = smov 64   ;;  %s11509_s8 = smov 80  }
  0x1c   : > { %v6847_v0 = vld [vmem:[%s11557_s6 + $0xc0] sm:$0xff]  ;;  %v6832_v6 = vld [vmem:[%s11557_s6 + $0x48] sm:$0xff]  ;;  %v6833_v11 = vld [vmem:[%s11557_s6 + $0x50] sm:$0xff]  ;;  %s11513_s29 = smov 96   ;;  %s11507_s28 = smov 112  }
  0x1d   : > { %v6831_v1 = vld [vmem:[%s11557_s6 + $0x40] sm:$0xff]  ;;  %1004 = vperm.xlu1 %7992, %v6847_v0   ;;  %v6840_v8 = vld [vmem:[%s11557_s6 + $0x88] sm:$0xff]  ;;  %v6841_v13 = vld [vmem:[%s11557_s6 + $0x90] sm:$0xff]  ;;  %s11632_s26 = smov 16   ;;  %s11697_s24 = sld [smem:[#allocation74_spill]] }
  0x1e   : > { %861 = vperm.xlu0 %7991, %v6831_v1   ;;  %v6855_v3 = vld [vmem:[%s11557_s6 + $0x100] sm:$0xff]  ;;  %v6848_v10 = vld [vmem:[%s11557_s6 + $0xc8] sm:$0xff]  ;;  %v6849_v15 = vld [vmem:[%s11557_s6 + $0xd0] sm:$0xff]  ;;  %s8978_s1 = scalar_lea.vmem %s11560_s4, %s11464_s3  ;;  %s11621_s4 = sld [smem:[#allocation69_spill]] }
  0x1f   : > { %v6839_v4 = vld [vmem:[%s11557_s6 + $0x80] sm:$0xff]  ;;  %v6856_v12 = vld [vmem:[%s11557_s6 + $0x108] sm:$0xff]  ;;  %v6857_v17 = vld [vmem:[%s11557_s6 + $0x110] sm:$0xff]  ;;  %11561 = sst [smem:[#allocation4_spill]] %s8978_s1 }
  0x20   : > { %v6863_v5 = vld [vmem:[%s11557_s6 + $0x140] sm:$0xff]  ;;  %v6864_v14 = vld [vmem:[%s11557_s6 + $0x148] sm:$0xff]  ;;  %v6865_v19 = vld [vmem:[%s11557_s6 + $0x150] sm:$0xff]  ;;  %s11629_s3 = sld [smem:[#allocation66_spill]] }
  0x21   : > { %1061 = vperm.xlu1 %7992, %v6855_v3   ;;  %v6871_v7 = vld [vmem:[%s11557_s6 + $0x180] sm:$0xff]  ;;  %v6872_v16 = vld [vmem:[%s11557_s6 + $0x188] sm:$0xff]  ;;  %v6834_v20 = vld [vmem:[%s11557_s6 + $0x58] sm:$0xff] }
  0x22   : > { %944 = vperm.xlu0 %7991, %v6839_v4   ;;  %v6879_v9 = vld [vmem:[%s11557_s6 + $0x1c0] sm:$0xff]  ;;  %v6880_v18 = vld [vmem:[%s11557_s6 + $0x1c8] sm:$0xff]  ;;  %v6873_v21 = vld [vmem:[%s11557_s6 + $0x190] sm:$0xff] }
  0x23   : > { %v6842_v22 = vld [vmem:[%s11557_s6 + $0x98] sm:$0xff]  ;;  %v6881_v23 = vld [vmem:[%s11557_s6 + $0x1d0] sm:$0xff]  ;;  %v6835_v25 = vld [vmem:[%s11557_s6 + $0x60] sm:$0xff] }
  0x24   : > { %v6850_v24 = vld [vmem:[%s11557_s6 + $0xd8] sm:$0xff]  ;;  %v6843_v27 = vld [vmem:[%s11557_s6 + $0xa0] sm:$0xff]  ;;  %v6836_v34 = vld [vmem:[%s11557_s6 + $0x68] sm:$0xff] }
  0x25   : > { %1120 = vperm.xlu1 %7992, %v6863_v5   ;;  %v6858_v26 = vld [vmem:[%s11557_s6 + $0x118] sm:$0xff]  ;;  %v6851_v29 = vld [vmem:[%s11557_s6 + $0xe0] sm:$0xff]  ;;  %v6844_v36 = vld [vmem:[%s11557_s6 + $0xa8] sm:$0xff] }
  0x26   : > { %866 = vperm.xlu0 %7991, %v6832_v6   ;;  %v6866_v28 = vld [vmem:[%s11557_s6 + $0x158] sm:$0xff]  ;;  %v6859_v31 = vld [vmem:[%s11557_s6 + $0x120] sm:$0xff]  ;;  %v6852_v38 = vld [vmem:[%s11557_s6 + $0xe8] sm:$0xff] }
  0x27   : > { %v6874_v30 = vld [vmem:[%s11557_s6 + $0x198] sm:$0xff]  ;;  %v6867_v33 = vld [vmem:[%s11557_s6 + $0x160] sm:$0xff]  ;;  %v6837_v39 = vld [vmem:[%s11557_s6 + $0x70] sm:$0xff] }
  0x28   : > { %v6882_v32 = vld [vmem:[%s11557_s6 + $0x1d8] sm:$0xff]  ;;  %v6875_v35 = vld [vmem:[%s11557_s6 + $0x1a0] sm:$0xff]  ;;  %v6860_v40 = vld [vmem:[%s11557_s6 + $0x128] sm:$0xff] }
  0x29   : > { %1179 = vperm.xlu1 %7992, %v6871_v7   ;;  %v6883_v37 = vld [vmem:[%s11557_s6 + $0x1e0] sm:$0xff]  ;;  %v6845_v41 = vld [vmem:[%s11557_s6 + $0xb0] sm:$0xff]  ;;  %v6868_v42 = vld [vmem:[%s11557_s6 + $0x168] sm:$0xff] }
  0x2a   : > { %949 = vperm.xlu0 %7991, %v6840_v8   ;;  %v6853_v43 = vld [vmem:[%s11557_s6 + $0xf0] sm:$0xff]  ;;  %v6876_v44 = vld [vmem:[%s11557_s6 + $0x1a8] sm:$0xff]  ;;  %v6838_v48 = vld [vmem:[%s11557_s6 + $0x78] sm:$0xff] }
  0x2b   : > { %v6861_v45 = vld [vmem:[%s11557_s6 + $0x130] sm:$0xff]  ;;  %v6884_v46 = vld [vmem:[%s11557_s6 + $0x1e8] sm:$0xff]  ;;  %v6846_v50 = vld [vmem:[%s11557_s6 + $0xb8] sm:$0xff] }
  0x2c   : > { %v6869_v47 = vld [vmem:[%s11557_s6 + $0x170] sm:$0xff]  ;;  %v6854_v52 = vld [vmem:[%s11557_s6 + $0xf8] sm:$0xff]  ;;  %v795_v57 = vld [vmem:[%s11557_s6 + $0x8] sm:$0xff] }
  0x2d   : > { %1236 = vperm.xlu1 %7992, %v6879_v9   ;;  %v6877_v49 = vld [vmem:[%s11557_s6 + $0x1b0] sm:$0xff]  ;;  %v6870_v53 = vld [vmem:[%s11557_s6 + $0x178] sm:$0xff]  ;;  %v794_v58 = vld [vmem:[%s11557_s6] sm:$0xff] }
  0x2e   : > { %1009 = vperm.xlu0 %7991, %v6848_v10   ;;  %v6885_v51 = vld [vmem:[%s11557_s6 + $0x1f0] sm:$0xff]  ;;  %v6862_v54 = vld [vmem:[%s11557_s6 + $0x138] sm:$0xff]  ;;  %v6888_v59 = vld [vmem:[%s11557_s6 + $0x208] sm:$0xff] }
  0x2f   : > { %v6886_v55 = vld [vmem:[%s11557_s6 + $0x1f8] sm:$0xff]  ;;  %v6887_v60 = vld [vmem:[%s11557_s6 + $0x200] sm:$0xff]  ;;  %v796_v62 = vld [vmem:[%s11557_s6 + $0x10] sm:$0xff] }
  0x30   : > { %v6878_v56 = vld [vmem:[%s11557_s6 + $0x1b8] sm:$0xff]  ;;  %v760_v0 = vld [vmem:[%s11559_s2 + $0x70] sm:$0xff]  ;;  %v759_v3 = vld [vmem:[%s11559_s2 + $0x68] sm:$0xff] }
  0x31   : > { %871 = vperm.xlu1 %7992, %v6833_v11   ;;  %v761_v61 = vld [vmem:[%s11559_s2 + $0x78] sm:$0xff]  ;;  %v758_v4 = vld [vmem:[%s11559_s2 + $0x60] sm:$0xff]  ;;  %v8991_v6 = vld [vmem:[%s8978_s1 + $0x8] sm:$0xff] }
  0x32   : > { %1066 = vperm.xlu0 %7991, %v6856_v12   ;;  %1657 = vmatpush1.msra.mxu0 %v761_v61  ;;  %v8988_v5 = vld [vmem:[%s8978_s1] sm:$0xff]  ;;  %v757_v9 = vld [vmem:[%s11559_s2 + $0x58] sm:$0xff]  ;;  %v910_v11 = vrot.slane %v8991_v6, 1  ;;  %v756_v12 = vld [vmem:[%s11559_s2 + $0x50] sm:$0xff] }
  0x33   : > { %1658 = vmatprep.subr.mxu0 %v8631_v63  ;;  %v909_v10 = vrot.slane %v8988_v5, 1 }
  0x34   : > { %1659 = vmatpush1.msra.mxu0 %v760_v0 }
  0x35   : > { %954 = vperm.xlu1 %7992, %v6841_v13   ;;  %1660 = vmatprep.subr.mxu0 %v8631_v63  ;;  %v773_v13 = vrot.slane %v8988_v5, 7 }
  0x36   : > { %1125 = vperm.xlu0 %7991, %v6864_v14   ;;  %1661 = vmatpush1.msra.mxu0 %v759_v3  ;;  %v762_v3 = vld [vmem:[%s11559_s2 + $0x80] sm:$0xff] }
  0x37   : > { %1662 = vmatprep.subr.mxu0 %v8631_v63 }
  0x38   : > { %1663 = vmatpush1.msra.mxu0 %v758_v4 }
  0x39   : > { %1014 = vperm.xlu1 %7992, %v6849_v15   ;;  %1664 = vmatprep.subr.mxu0 %v8631_v63 }
  0x3a   : > { %1184 = vperm.xlu0 %7991, %v6872_v16   ;;  %1665 = vmatpush1.msra.mxu0 %v757_v9  ;;  %v755_v16 = vld [vmem:[%s11559_s2 + $0x48] sm:$0xff] }
  0x3b   : > { %1666 = vmatprep.subr.mxu0 %v8631_v63 }
  0x3c   : > { %1667 = vmatpush1.msra.mxu0 %v756_v12  ;;  %v9144_v12 = vld [vmem:[%s8978_s1 + $0x18] sm:$0xff] }
  0x3d   : > { %1071 = vperm.xlu1 %7992, %v6857_v17   ;;  %1668 = vmatprep.subr.mxu0 %v8631_v63 }
  0x3e   : > { %1241 = vperm.xlu0 %7991, %v6880_v18   ;;  %1669 = vmatpush1.msra.mxu0 %v755_v16 }
  0x3f   : > { %1670 = vmatprep.subr.mxu0 %v8631_v63 }
  0x41   : > { %1130 = vperm.xlu1 %7992, %v6865_v19   ;;  %v932_v19 = vsel %vm908_vm0, 0.0, %v909_v10 }
  0x42   : > { %876 = vperm.xlu0 %7991, %v6834_v20   ;;  %v911_v20 = vsel %vm908_vm0, %v909_v10, %v910_v11 }
  0x45   : > { %1189 = vperm.xlu1 %7992, %v6873_v21   ;;  %v774_v21 = vrot.slane %v8991_v6, 7 }
  0x46   : > { %959 = vperm.xlu0 %7991, %v6842_v22   ;;  %v754_v22 = vld [vmem:[%s11559_s2 + $0x40] sm:$0xff] }
  0x47   : > { %1671 = vmatpush1.msra.mxu0 %v754_v22  ;;  %v798_v22 = vld [vmem:[%s11557_s6 + $0x20] sm:$0xff] }
  0x48   : > { %1672 = vmatprep.subr.mxu0 %v8631_v63 }
  0x49   : > { %1246 = vperm.xlu1 %7992, %v6881_v23  }
  0x4a   : > { %1019 = vperm.xlu0 %7991, %v6850_v24   ;;  %v9029_v24 = vsel %vm772_vm1, 0.0, %v773_v13 }
  0x4d   : > { %881 = vperm.xlu1 %7992, %v6835_v25  }
  0x4e   : > { %1076 = vperm.xlu0 %7991, %v6858_v26  }
  0x51   : > { %964 = vperm.xlu1 %7992, %v6843_v27   ;;  %v753_v27 = vld [vmem:[%s11559_s2 + $0x38] sm:$0xff] }
  0x52   : > { %1135 = vperm.xlu0 %7991, %v6866_v28   ;;  %1673 = vmatpush1.msra.mxu0 %v753_v27 }
  0x53   : > { %1674 = vmatprep.subr.mxu0 %v8631_v63 }
  0x55   : > { %1024 = vperm.xlu1 %7992, %v6851_v29  }
  0x56   : > { %1194 = vperm.xlu0 %7991, %v6874_v30   ;;  %v9043_v30 = vsel %vm772_vm1, %v773_v13, %v774_v21 }
  0x59   : > { %1081 = vperm.xlu1 %7992, %v6859_v31   ;;  %v752_v31 = vld [vmem:[%s11559_s2 + $0x30] sm:$0xff] }
  0x5a   : > { %1251 = vperm.xlu0 %7991, %v6882_v32   ;;  %1675 = vmatpush1.msra.mxu0 %v752_v31 }
  0x5b   : > { %1676 = vmatprep.subr.mxu0 %v8631_v63 }
  0x5d   : > { %1140 = vperm.xlu1 %7992, %v6867_v33  }
  0x5e   : > { %886 = vperm.xlu0 %7991, %v6836_v34   ;;  %v9052_v34 = vld [vmem:[%s8978_s1 + $0x10] sm:$0xff] }
  0x61   : > { %1199 = vperm.xlu1 %7992, %v6875_v35  }
  0x62   : > { %969 = vperm.xlu0 %7991, %v6844_v36  }
  0x65   : > { %1256 = vperm.xlu1 %7992, %v6883_v37   ;;  %v751_v37 = vld [vmem:[%s11559_s2 + $0x28] sm:$0xff] }
  0x66   : > { %1029 = vperm.xlu0 %7991, %v6852_v38   ;;  %v750_v38 = vld [vmem:[%s11559_s2 + $0x20] sm:$0xff]  ;;  %1677 = vmatpush1.msra.mxu0 %v751_v37 }
  0x67   : > { %1678 = vmatprep.subr.mxu0 %v8631_v63  ;;  %v9178_v37 = vld [vmem:[%s8978_s1 + $0x20] sm:$0xff] }
  0x68   : > { %1679 = vmatpush1.msra.mxu0 %v750_v38 }
  0x69   : > { %891 = vperm.xlu1 %7992, %v6837_v39   ;;  %1680 = vmatprep.subr.mxu0 %v8631_v63 }
  0x6a   : > { %1086 = vperm.xlu0 %7991, %v6860_v40   ;;  %v912_v40 = vrot.slane %v9052_v34, 1 }
  0x6d   : > { %974 = vperm.xlu1 %7992, %v6845_v41  }
  0x6e   : > { %1145 = vperm.xlu0 %7991, %v6868_v42  }
  0x71   : > { %1034 = vperm.xlu1 %7992, %v6853_v43  }
  0x72   : > { %1204 = vperm.xlu0 %7991, %v6876_v44   ;;  %v749_v44 = vld [vmem:[%s11559_s2 + $0x18] sm:$0xff] }
  0x73   : > { %1681 = vmatpush1.msra.mxu0 %v749_v44 }
  0x74   : > { %1682 = vmatprep.subr.mxu0 %v8631_v63 }
  0x75   : > { %1091 = vperm.xlu1 %7992, %v6861_v45   ;;  %v748_v45 = vld [vmem:[%s11559_s2 + $0x10] sm:$0xff] }
  0x76   : > { %1261 = vperm.xlu0 %7991, %v6884_v46   ;;  %1683 = vmatpush1.msra.mxu0 %v748_v45  ;;  %v6890_v45 = vld [vmem:[%s11557_s6 + $0x218] sm:$0xff] }
  0x77   : > { %1684 = vmatprep.subr.mxu0 %v8631_v63 }
  0x79   : > { %1150 = vperm.xlu1 %7992, %v6869_v47  }
  0x7a   : > { %896 = vperm.xlu0 %7991, %v6838_v48   ;;  %v9089_v48 = vsel %vm908_vm0, %v910_v11, %v912_v40 }
  0x7d   : > { %1209 = vperm.xlu1 %7992, %v6877_v49   ;;  %v776_v49 = vrot.slane %v9052_v34, 7 }
  0x7e   : > { %979 = vperm.xlu0 %7991, %v6846_v50  }
  0x81   : > { %1266 = vperm.xlu1 %7992, %v6885_v51  }
  0x82   : > { %1039 = vperm.xlu0 %7991, %v6854_v52  }
  0x85   : > { %1155 = vperm.xlu1 %7992, %v6870_v53   ;;  %v747_v53 = vld [vmem:[%s11559_s2 + $0x8] sm:$0xff] }
  0x86   : > { %1096 = vperm.xlu0 %7991, %v6862_v54   ;;  %1685 = vmatpush1.msra.mxu0 %v747_v53 }
  0x87   : > { %1686 = vmatprep.subr.mxu0 %v8631_v63 }
  0x89   : > { %1271 = vperm.xlu1 %7992, %v6886_v55  }
  0x8a   : > { %1214 = vperm.xlu0 %7991, %v6878_v56   ;;  %v746_v56 = vld [vmem:[%s11559_s2] sm:$0xff] }
  0x8b   : > { %1687 = vmatpush1.msra.mxu0 %v746_v56  ;;  %v780_v56 = vrot.slane %v9178_v37, 7 }
  0x8c   : > { %1716 = vmatprep.subr.mxu0 %v8631_v63 }
  0x8d   : > { %809 = vperm.xlu1 %7992, %v795_v57   ;;  %v9111_v57 = vsel %vm772_vm1, %v774_v21, %v776_v49 }
  0x8e   : > { %804 = vperm.xlu0 %7991, %v794_v58   ;;  %v797_v58 = vld [vmem:[%s11557_s6 + $0x18] sm:$0xff] }
  0x91   : > { %1298 = vperm.xlu1 %7992, %v6888_v59  }
  0x92   : > { %1293 = vperm.xlu0 %7991, %v6887_v60  }
  0x96   : > { %814 = vperm.xlu0 %7991, %v796_v62   ;;  %v763_v62 = vld [vmem:[%s11559_s2 + $0x88] sm:$0xff]  ;;  %s11630_s2 = smov 112  }
  0x97   : > { %1717 = vmatpush2.msra.mxu0 %v763_v62 }
  0x98   : > { %v8971_v1 = vpop.permute.xlu1 %1004  ;;  %1718 = vmatprep.subr.mxu0 %v8631_v63  ;;  %v6889_v63 = vld [vmem:[%s11557_s6 + $0x210] sm:$0xff] }
  0x99   : > { %v862_v2 = vpop.permute.xlu0 %861  ;;  %v1042_v32 = vmul.f32 %v8971_v1, %v9029_v24  ;;  %1719 = vmatpush2.msra.mxu0 %v762_v3  ;;  %v799_v3 = vld [vmem:[%s11557_s6 + $0x28] sm:$0xff] }
  0x9a   : > { %v9016_v17 = vmul.f32 0.0, %v862_v2 }
  0x9c   : > { %v8993_v7 = vpop.permute.xlu1 %1061 }
  0x9d   : > { %11562 = vst [vmem:[#allocation5_spill] sm:$0xff] %v8993_v7  ;;  %v8995_v8 = vpop.permute.xlu0 %944  ;;  %v1099_v46 = vmul.f32 %v8993_v7, %v8988_v5  ;;  %v745_v7 = vld [vmem:[%s8978_s1 + $0x38] sm:$0xff] }
  0x9e   : > { %v982_v28 = vmul.f32 %v8995_v8, %v932_v19 }
  0xa0   : > { %v9008_v14 = vpop.permute.xlu1 %1120 }
  0xa1   : > { %v9010_v15 = vpop.permute.xlu0 %866  ;;  %v1158_v54 = vmul.f32 %v9008_v14, %v911_v20 }
  0xa2   : > { %11563 = vst [vmem:[#allocation6_spill] sm:$0xff] %v9010_v15  ;;  %v900_v18 = vmul.f32 %v9010_v15, %v8988_v5 }
  0xa4   : > { %v7993_v23 = vpack.i.bf16 %v900_v18, %v9016_v17  ;;  %v9031_v25 = vpop.permute.xlu1 %1179  ;;  %v914_v18 = vrot.slane %v9144_v12, 1 }
  0xa5   : > { %v9033_v26 = vpop.permute.xlu0 %949  ;;  %v1217_v0 = vmul.f32 %v9031_v25, %v9043_v30 }
  0xa6   : > { %v983_v29 = vmul.f32 %v9033_v26, %v911_v20  ;;  %7994 = vrot.lane.b32.xlu1 %v7993_v23, %s11503_s30  ;;  %v9165_v27 = vsel %vm908_vm0, %v912_v40, %v914_v18 }
  0xa8   : > { %v7998_v33 = vpack.i.bf16 %v983_v29, %v982_v28  ;;  %v9054_v35 = vpop.permute.xlu1 %1236 }
  0xa9   : > { %v9056_v36 = vpop.permute.xlu0 %1009  ;;  %v1274_v10 = vmul.f32 %v9054_v35, %v8991_v6 }
  0xaa   : > { %v1043_v39 = vmul.f32 %v9056_v36, %v9043_v30  ;;  %7999 = vrot.lane.b32.xlu1 %v7998_v33, %s11501_s0 }
  0xac   : > { %v8003_v41 = vpack.i.bf16 %v1043_v39, %v1042_v32  ;;  %v9070_v42 = vpop.permute.xlu1 %871 }
  0xad   : > { %11564 = vst [vmem:[#allocation7_spill] sm:$0xff] %v9070_v42  ;;  %v9072_v43 = vpop.permute.xlu0 %1066  ;;  %v901_v20 = vmul.f32 %v9070_v42, %v8991_v6 }
  0xae   : > { %11565 = vst [vmem:[#allocation8_spill] sm:$0xff] %v9072_v43  ;;  %v1100_v47 = vmul.f32 %v9072_v43, %v8991_v6  ;;  %8004 = vrot.lane.b32.xlu0 %v8003_v41, %s11505_s27  ;;  %v778_v6 = vrot.slane %v9144_v12, 7 }
  0xb0   : > { %v8008_v50 = vpack.i.bf16 %v1100_v47, %v1099_v46  ;;  %v9093_v51 = vpop.permute.xlu1 %954  ;;  %v9183_v38 = vsel %vm772_vm1, %v776_v49, %v778_v6  ;;  %v916_v46 = vrot.slane %v9178_v37, 1 }
  0xb1   : > { %11566 = vst [vmem:[#allocation9_spill] sm:$0xff] %v9093_v51  ;;  %v9095_v52 = vpop.permute.xlu0 %1125  ;;  %v984_v31 = vmul.f32 %v9093_v51, %v9089_v48 }
  0xb2   : > { %11567 = vst [vmem:[#allocation10_spill] sm:$0xff] %v9095_v52  ;;  %v1159_v55 = vmul.f32 %v9095_v52, %v9089_v48  ;;  %8009 = vrot.lane.b32.xlu0 %v8008_v50, %s11511_s7 }
  0xb4   : > { %v8013_v59 = vpack.i.bf16 %v1159_v55, %v1158_v54  ;;  %v9117_v60 = vpop.permute.xlu1 %1014  ;;  %v9208_v55 = vsel %vm908_vm0, %v914_v18, %v916_v46 }
  0xb5   : > { %11568 = vst [vmem:[#allocation11_spill] sm:$0xff] %v9117_v60  ;;  %v9119_v61 = vpop.permute.xlu0 %1184  ;;  %v1044_v41 = vmul.f32 %v9117_v60, %v9111_v57 }
  0xb6   : > { %11569 = vst [vmem:[#allocation12_spill] sm:$0xff] %v9119_v61  ;;  %v1218_v2 = vmul.f32 %v9119_v61, %v9111_v57  ;;  %8014 = vrot.lane.b32.xlu1 %v8013_v59, %s11509_s8  ;;  %819 = vperm.xlu0 %7991, %v797_v58  }
  0xb8   : > { %v8018_v4 = vpack.i.bf16 %v1218_v2, %v1217_v0  ;;  %v9134_v5 = vpop.permute.xlu1 %1071  ;;  %v9221_v2 = vsel %vm772_vm1, %v778_v6, %v780_v56  ;;  %v9245_v6 = vld [vmem:[%s8978_s1 + $0x28] sm:$0xff] }
  0xb9   : > { %11570 = vst [vmem:[#allocation13_spill] sm:$0xff] %v9134_v5  ;;  %v9136_v9 = vpop.permute.xlu0 %1241  ;;  %v1101_v53 = vmul.f32 %v9134_v5, %v9052_v34 }
  0xba   : > { %v1275_v11 = vmul.f32 %v9136_v9, %v9052_v34  ;;  %8019 = vrot.lane.b32.xlu1 %v8018_v4, %s11513_s29 }
  0xbc   : > { %v8023_v13 = vpack.i.bf16 %v1275_v11, %v1274_v10  ;;  %v9149_v16 = vpop.permute.xlu1 %1130 }
  0xbd   : > { %11571 = vst [vmem:[#allocation14_spill] sm:$0xff] %v9149_v16  ;;  %v9152_v19 = vpop.permute.xlu0 %876  ;;  %v1160_v0 = vmul.f32 %v9149_v16, %v9165_v27 }
  0xbe   : > { %11572 = vst [vmem:[#allocation15_spill] sm:$0xff] %v9152_v19  ;;  %v902_v21 = vmul.f32 %v9152_v19, %v9052_v34  ;;  %1303 = vperm.xlu1 %7992, %v6889_v63   ;;  %8024 = vrot.lane.b32.xlu0 %v8023_v13, %s11507_s28 }
  0xc0   : > { %v8028_v23 = vpack.i.bf16 %v902_v21, %v901_v20  ;;  %v9167_v28 = vpop.permute.xlu1 %1189 }
  0xc1   : > { %11573 = vst [vmem:[#allocation16_spill] sm:$0xff] %v9167_v28  ;;  %v9170_v29 = vpop.permute.xlu0 %959  ;;  %v1219_v63 = vmul.f32 %v9167_v28, %v9183_v38 }
  0xc2   : > { %11574 = vst [vmem:[#allocation17_spill] sm:$0xff] %v9170_v29  ;;  %v985_v32 = vmul.f32 %v9170_v29, %v9165_v27  ;;  %824 = vperm.xlu1 %7992, %v798_v22   ;;  %8029 = vrot.lane.b32.xlu0 %v8028_v23, %s11503_s30  ;;  %v9813_v29 = vld [vmem:[%s11629_s3 + $0x38] sm:$0xff] }
  0xc4   : > { %v8033_v33 = vpack.i.bf16 %v985_v32, %v984_v31  ;;  %v9185_v39 = vpop.permute.xlu1 %1246  ;;  %v6891_v31 = vld [vmem:[%s11557_s6 + $0x220] sm:$0xff] }
  0xc5   : > { %11575 = vst [vmem:[#allocation18_spill] sm:$0xff] %v9185_v39  ;;  %v9187_v40 = vpop.permute.xlu0 %1019  ;;  %v1276_v22 = vmul.f32 %v9185_v39, %v9144_v12 }
  0xc6   : > { %11576 = vst [vmem:[#allocation19_spill] sm:$0xff] %v9187_v40  ;;  %v1045_v44 = vmul.f32 %v9187_v40, %v9183_v38  ;;  %8034 = vrot.lane.b32.xlu0 %v8033_v33, %s11501_s0 }
  0xc8   : > { %v8038_v47 = vpack.i.bf16 %v1045_v44, %v1044_v41  ;;  %v9198_v49 = vpop.permute.xlu1 %881  ;;  %v918_v41 = vrot.slane %v9245_v6, 1 }
  0xc9   : > { %11577 = vst [vmem:[#allocation20_spill] sm:$0xff] %v9198_v49  ;;  %v9200_v50 = vpop.permute.xlu0 %1076 }
  0xca   : > { %11578 = vst [vmem:[#allocation21_spill] sm:$0xff] %v9200_v50  ;;  %v1102_v54 = vmul.f32 %v9200_v50, %v9144_v12  ;;  %8039 = vrot.lane.b32.xlu1 %v8038_v47, %s11505_s27  ;;  %1308 = vperm.xlu0 %7991, %v6890_v45   ;;  %v903_v45 = vmul.f32 %v9198_v49, %v9144_v12 }
  0xcc   : > { %v8043_v58 = vpack.i.bf16 %v1102_v54, %v1101_v53  ;;  %v9211_v59 = vpop.permute.xlu1 %964  ;;  %v800_v53 = vld [vmem:[%s11557_s6 + $0x30] sm:$0xff] }
  0xcd   : > { %11579 = vst [vmem:[#allocation22_spill] sm:$0xff] %v9211_v59  ;;  %v9213_v62 = vpop.permute.xlu0 %1135  ;;  %v986_v12 = vmul.f32 %v9211_v59, %v9208_v55 }
  0xce   : > { %11580 = vst [vmem:[#allocation23_spill] sm:$0xff] %v9213_v62  ;;  %v1161_v34 = vmul.f32 %v9213_v62, %v9208_v55  ;;  %8044 = vrot.lane.b32.xlu1 %v8043_v58, %s11511_s7  ;;  %v9264_v58 = vsel %vm908_vm0, %v916_v46, %v918_v41 }
  0xd0   : > { %v8048_v4 = vpack.i.bf16 %v1161_v34, %v1160_v0  ;;  %v9226_v10 = vpop.permute.xlu1 %1024  ;;  %v782_v34 = vrot.slane %v9245_v6, 7 }
  0xd1   : > { %11581 = vst [vmem:[#allocation24_spill] sm:$0xff] %v9226_v10  ;;  %v9228_v11 = vpop.permute.xlu0 %1194 }
  0xd2   : > { %11582 = vst [vmem:[#allocation25_spill] sm:$0xff] %v9228_v11  ;;  %v1220_v13 = vmul.f32 %v9228_v11, %v9221_v2  ;;  %829 = vperm.xlu1 %7992, %v799_v3   ;;  %8049 = vrot.lane.b32.xlu0 %v8048_v4, %s11509_s8  ;;  %v9280_v46 = vsel %vm772_vm1, %v780_v56, %v782_v34  ;;  %v9819_v11 = vld [vmem:[%s11629_s3 + $0x30] sm:$0xff] }
  0xd4   : > { %v8053_v18 = vpack.i.bf16 %v1220_v13, %v1219_v63  ;;  %v9235_v20 = vpop.permute.xlu1 %1081  ;;  %v9277_v13 = vld [vmem:[%s8978_s1 + $0x30] sm:$0xff] }
  0xd5   : > { %11583 = vst [vmem:[#allocation26_spill] sm:$0xff] %v9235_v20  ;;  %v9237_v21 = vpop.permute.xlu0 %1251 }
  0xd6   : > { %11584 = vst [vmem:[#allocation27_spill] sm:$0xff] %v9237_v21  ;;  %v1277_v23 = vmul.f32 %v9237_v21, %v9178_v37  ;;  %8054 = vrot.lane.b32.xlu0 %v8053_v18, %s11513_s29 }
  0xd8   : > { %v8058_v32 = vpack.i.bf16 %v1277_v23, %v1276_v22  ;;  %v9250_v33 = vpop.permute.xlu1 %1140  ;;  %v1046_v23 = vmul.f32 %v9226_v10, %v9221_v2 }
  0xd9   : > { %11585 = vst [vmem:[#allocation28_spill] sm:$0xff] %v9250_v33  ;;  %v9253_v44 = vpop.permute.xlu0 %886  ;;  %v1162_v5 = vmul.f32 %v9250_v33, %v9264_v58 }
  0xda   : > { %11586 = vst [vmem:[#allocation29_spill] sm:$0xff] %v9253_v44  ;;  %v904_v47 = vmul.f32 %v9253_v44, %v9178_v37  ;;  %8059 = vrot.lane.b32.xlu1 %v8058_v32, %s11507_s28  ;;  %1313 = vperm.xlu0 %7991, %v6891_v31   ;;  %v6892_v32 = vld [vmem:[%s11557_s6 + $0x228] sm:$0xff]  ;;  %v6893_v44 = vld [vmem:[%s11557_s6 + $0x230] sm:$0xff] }
  0xdc   : > { %v8063_v54 = vpack.i.bf16 %v904_v47, %v903_v45  ;;  %v9266_v0 = vpop.permute.xlu1 %1199  ;;  %v920_v45 = vrot.slane %v9277_v13, 1 }
  0xdd   : > { %11587 = vst [vmem:[#allocation30_spill] sm:$0xff] %v9266_v0  ;;  %v9269_v3 = vpop.permute.xlu0 %969 }
  0xde   : > { %11588 = vst [vmem:[#allocation31_spill] sm:$0xff] %v9269_v3  ;;  %v987_v4 = vmul.f32 %v9269_v3, %v9264_v58  ;;  %8064 = vrot.lane.b32.xlu1 %v8063_v54, %s11503_s30  ;;  %834 = vperm.xlu0 %7991, %v800_v53   ;;  %v1103_v54 = vmul.f32 %v9235_v20, %v9178_v37 }
  0xe0   : > { %v8068_v63 = vpack.i.bf16 %v987_v4, %v986_v12  ;;  %v9282_v18 = vpop.permute.xlu1 %1256  ;;  %v9305_v4 = vsel %vm908_vm0, %v918_v41, %v920_v45  ;;  %v801_v41 = vld [vmem:[%s11557_s6 + $0x38] sm:$0xff] }
  0xe1   : > { %11589 = vst [vmem:[#allocation32_spill] sm:$0xff] %v9282_v18  ;;  %v9284_v22 = vpop.permute.xlu0 %1029 }
  0xe2   : > { %11590 = vst [vmem:[#allocation33_spill] sm:$0xff] %v9284_v22  ;;  %v1047_v31 = vmul.f32 %v9284_v22, %v9280_v46  ;;  %8069 = vrot.lane.b32.xlu1 %v8068_v63, %s11501_s0  ;;  %v784_v63 = vrot.slane %v9277_v13, 7  ;;  %v990_v22 = vrot.slane %v745_v7, 7 }
  0xe4   : > { %v8073_v56 = vpack.i.bf16 %v1047_v31, %v1046_v23  ;;  %v9295_v47 = vpop.permute.xlu1 %891 }
  0xe5   : > { %11591 = vst [vmem:[#allocation34_spill] sm:$0xff] %v9295_v47  ;;  %v9297_v53 = vpop.permute.xlu0 %1086 }
  0xe6   : > { %11592 = vst [vmem:[#allocation35_spill] sm:$0xff] %v9297_v53  ;;  %v1104_v12 = vmul.f32 %v9297_v53, %v9245_v6  ;;  %1318 = vperm.xlu1 %7992, %v6892_v32   ;;  %8074 = vrot.lane.b32.xlu0 %v8073_v56, %s11505_s27  ;;  %v9318_v32 = vsel %vm772_vm1, %v782_v34, %v784_v63 }
  0xe7   : > { %v1221_v53 = vmul.f32 %v9266_v0, %v9280_v46 }
  0xe8   : > { %v8078_v50 = vpack.i.bf16 %v1104_v12, %v1103_v54  ;;  %v9308_v23 = vpop.permute.xlu1 %974 }
  0xe9   : > { %11593 = vst [vmem:[#allocation36_spill] sm:$0xff] %v9308_v23  ;;  %v9310_v31 = vpop.permute.xlu0 %1145 }
  0xea   : > { %11594 = vst [vmem:[#allocation37_spill] sm:$0xff] %v9310_v31  ;;  %v1163_v37 = vmul.f32 %v9310_v31, %v9305_v4  ;;  %8079 = vrot.lane.b32.xlu0 %v8078_v50, %s11511_s7  ;;  %v905_v31 = vmul.f32 %v9295_v47, %v9245_v6 }
  0xec   : > { %v8083_v56 = vpack.i.bf16 %v1163_v37, %v1162_v5  ;;  %v9323_v54 = vpop.permute.xlu1 %1034  ;;  %v1278_v5 = vmul.f32 %v9282_v18, %v9245_v6 }
  0xed   : > { %11595 = vst [vmem:[#allocation38_spill] sm:$0xff] %v9323_v54  ;;  %v9325_v12 = vpop.permute.xlu0 %1204 }
  0xee   : > { %11596 = vst [vmem:[#allocation39_spill] sm:$0xff] %v9325_v12  ;;  %v1222_v20 = vmul.f32 %v9325_v12, %v9318_v32  ;;  %8084 = vrot.lane.b32.xlu1 %v8083_v56, %s11509_s8  ;;  %839 = vperm.xlu0 %7991, %v801_v41  }
  0xf0   : > { %v8088_v50 = vpack.i.bf16 %v1222_v20, %v1221_v53  ;;  %v9332_v34 = vpop.permute.xlu1 %1091  ;;  %v922_v20 = vrot.slane %v745_v7, 1 }
  0xf1   : > { %11597 = vst [vmem:[#allocation40_spill] sm:$0xff] %v9332_v34  ;;  %v9334_v43 = vpop.permute.xlu0 %1261 }
  0xf2   : > { %11598 = vst [vmem:[#allocation41_spill] sm:$0xff] %v9334_v43  ;;  %v1279_v37 = vmul.f32 %v9334_v43, %v9277_v13  ;;  %8089 = vrot.lane.b32.xlu1 %v8088_v50, %s11513_s29  ;;  %v9355_v12 = vsel %vm908_vm0, %v920_v45, %v922_v20  ;;  %v1048_v45 = vmul.f32 %v9323_v54, %v9318_v32 }
  0xf4   : > { %v8093_v56 = vpack.i.bf16 %v1279_v37, %v1278_v5  ;;  %v9345_v41 = vpop.permute.xlu1 %1150  ;;  %v988_v37 = vmul.f32 %v9308_v23, %v9305_v4 }
  0xf5   : > { %11599 = vst [vmem:[#allocation42_spill] sm:$0xff] %v9345_v41  ;;  %v9347_v53 = vpop.permute.xlu0 %896 }
  0xf6   : > { %11600 = vst [vmem:[#allocation43_spill] sm:$0xff] %v9347_v53  ;;  %v906_v3 = vmul.f32 %v9347_v53, %v9277_v13  ;;  %1323 = vperm.xlu1 %7992, %v6893_v44   ;;  %8094 = vrot.lane.b32.xlu0 %v8093_v56, %s11507_s28  ;;  %v991_v56 = vsel %vm772_vm1, %v784_v63, %v990_v22  ;;  %v6894_v53 = vld [vmem:[%s11557_s6 + $0x238] sm:$0xff]  ;;  %s11631_s6 = smov 48  }
  0xf8   : > { %v8098_v50 = vpack.i.bf16 %v906_v3, %v905_v31  ;;  %v9364_v6 = vpop.permute.xlu1 %1209 }
  0xf9   : > { %v9357_v5 = vpop.permute.xlu0 %979  ;;  %11602 = vst [vmem:[#allocation45_spill] sm:$0xff] %v9364_v6 }
  0xfa   : > { %11601 = vst [vmem:[#allocation44_spill] sm:$0xff] %v9357_v5  ;;  %v989_v43 = vmul.f32 %v9357_v5, %v9355_v12  ;;  %8099 = vrot.lane.b32.xlu0 %v8098_v50, %s11503_s30  ;;  %s11624_s30 = sld [smem:[#allocation70_spill]] }
  0xfc   : > { %v8103_v44 = vpack.i.bf16 %v989_v43, %v988_v37  ;;  %v9376_v50 = vpop.permute.xlu1 %1266  ;;  %v1105_v43 = vmul.f32 %v9332_v34, %v9277_v13  ;;  %v1164_v37 = vmul.f32 %v9345_v41, %v9355_v12 }
  0xfd   : > { %v9367_v3 = vpop.permute.xlu0 %1039  ;;  %11604 = vst [vmem:[#allocation47_spill] sm:$0xff] %v9376_v50  ;;  %v1280_v13 = vmul.f32 %v9376_v50, %v745_v7 }
  0xfe   : > { %11603 = vst [vmem:[#allocation46_spill] sm:$0xff] %v9367_v3  ;;  %v1049_v31 = vmul.f32 %v9367_v3, %v991_v56  ;;  %8104 = vrot.lane.b32.xlu1 %v8103_v44, %s11501_s0  ;;  %s11628_s0 = smov 80  }
 0x100   : > { %v8108_v5 = vpack.i.bf16 %v1049_v31, %v1048_v45  ;;  %v9390_v45 = vpop.permute.xlu1 %1155  ;;  %v1223_v31 = vmul.f32 %v9364_v6, %v991_v56 }
 0x101   : > { %v9378_v23 = vpop.permute.xlu0 %1096  ;;  %11607 = vst [vmem:[#allocation50_spill] sm:$0xff] %v9390_v45 }
 0x102   : > { %11605 = vst [vmem:[#allocation48_spill] sm:$0xff] %v9378_v23  ;;  %v1106_v63 = vmul.f32 %v9378_v23, %v745_v7  ;;  %1328 = vperm.xlu1 %7992, %v6894_v53   ;;  %8109 = vrot.lane.b32.xlu0 %v8108_v5, %s11505_s27  ;;  %v9395_v53 = vsel %vm908_vm0, %v922_v20, 0.0  ;;  %v1167_v5 = vsel %vm772_vm1, %v990_v22, 0.0  ;;  %s11623_s27 = sld [smem:[#allocation72_spill]] }
 0x104   : > { %v8113_v44 = vpack.i.bf16 %v1106_v63, %v1105_v43  ;;  %v1165_v43 = vmul.f32 %v9390_v45, %v9395_v53 }
 0x105   : > { %v9386_v3 = vpop.permute.xlu0 %1214 }
 0x106   : > { %11606 = vst [vmem:[#allocation49_spill] sm:$0xff] %v9386_v3  ;;  %1487 = vrot.lane.b32.xlu1 %v1164_v37, %s11509_s8  ;;  %8114 = vrot.lane.b32.xlu0 %v8113_v44, %s11511_s7  ;;  %v1224_v63 = vmul.f32 %v9386_v3, %v1167_v5  ;;  %v1272_v37 = vpop.permute.xlu1 %1271  ;;  %s11626_s7 = smov 96  }
 0x107   : > { %v9409_v22 = vmul.f32 0.0, %v1272_v37 }
 0x109   : > { %v805_v23 = vpop.permute.xlu0 %804  ;;  %11608 = vst [vmem:[#allocation51_spill] sm:$0xff] %v9409_v22 }
 0x10a   : > { %1551 = vrot.lane.b32.xlu1 %v1280_v13, %s11507_s28  ;;  %1519 = vrot.lane.b32.xlu0 %v1223_v31, %s11513_s29  ;;  %v9414_v20 = vpop.permute.xlu1 %809  ;;  %v9420_v37 = vmul.f32 0.0, %v805_v23 }
 0x10b   : > { %11609 = vst [vmem:[#allocation52_spill] sm:$0xff] %v9414_v20  ;;  %v843_v23 = vmul.f32 %v9414_v20, %v9029_v24 }
 0x10c   : > { %11611 = vst [vmem:[#allocation54_spill] sm:$0xff] %v9420_v37 }
 0x10d   : > { %v9403_v44 = vpop.permute.xlu0 %1293 }
 0x10e   : > { %1521 = vrot.lane.b32.xlu1 %v1224_v63, %s11513_s29  ;;  %1489 = vrot.lane.b32.xlu0 %v1165_v43, %s11509_s8  ;;  %v1331_v7 = vmul.f32 %v9403_v44, %v9089_v48  ;;  %v9416_v56 = vpop.permute.xlu1 %1298  ;;  %s11622_s8 = sld [smem:[#allocation68_spill]]  ;;  %s11627_s29 = smov 64  }
 0x110   : > { %6896 = vmatprep.mubr.msk.f32.mxu0 %vm1563_vm2, %v1331_v7 }
 0x111   : > { %v9418_v13 = vpop.permute.xlu0 %814 }
 0x112   : > { %1553 = vrot.lane.b32.xlu0 %v9409_v22, %s11507_s28  ;;  %11610 = vst [vmem:[#allocation53_spill] sm:$0xff] %v9418_v13  ;;  %s11625_s28 = sld [smem:[#allocation71_spill]] }
 0x118   : > { %v7995_v31 = vpop.permute.xlu1 %7994 }
 0x119   : > { %v7996_v3 = vunpack.i.l.bf16 %v7995_v31  ;;  %v7997_v54 = vunpack.i.h.bf16 %v7995_v31 }
 0x11b   : > { %v1564_v6 = vsel %vm1563_vm2, %v9420_v37, %v7996_v3  ;;  %v1565_v3 = vsel %vm1563_vm2, %v843_v23, %v7997_v54 }
 0x11c   : > { %v8000_v5 = vpop.permute.xlu1 %7999 }
 0x11d   : > { %v8001_v48 = vunpack.i.l.bf16 %v8000_v5  ;;  %v8002_v41 = vunpack.i.h.bf16 %v8000_v5 }
 0x11f   : > { %v1573_v18 = vsel %vm1572_vm3, %v1564_v6, %v8001_v48  ;;  %v1574_v48 = vsel %vm1572_vm3, %v1565_v3, %v8002_v41 }
 0x120   : > { %v8005_v63 = vpop.permute.xlu0 %8004 }
 0x121   : > { %v8006_v7 = vunpack.i.l.bf16 %v8005_v63  ;;  %v8007_v0 = vunpack.i.h.bf16 %v8005_v63 }
 0x123   : > { %v1582_v59 = vsel %vm1581_vm4, %v1573_v18, %v8006_v7  ;;  %v1332_v18 = vmul.f32 %v9416_v56, %v9165_v27 }
 0x124   : > { %v8010_v34 = vpop.permute.xlu0 %8009 }
 0x125   : > { %v8011_v22 = vunpack.i.l.bf16 %v8010_v34  ;;  %v8012_v49 = vunpack.i.h.bf16 %v8010_v34  ;;  %v1583_v34 = vsel %vm1581_vm4, %v1574_v48, %v8007_v0 }
 0x127   : > { %v1591_v31 = vsel %vm1590_vm5, %v1582_v59, %v8011_v22  ;;  %v1592_v22 = vsel %vm1590_vm5, %v1583_v34, %v8012_v49 }
 0x128   : > { %v8015_v43 = vpop.permute.xlu1 %8014 }
 0x129   : > { %v8016_v47 = vunpack.i.l.bf16 %v8015_v43  ;;  %v8017_v37 = vunpack.i.h.bf16 %v8015_v43 }
 0x12b   : > { %v1600_v6 = vsel %vm1599_vm6, %v1591_v31, %v8016_v47  ;;  %v1601_v47 = vsel %vm1599_vm6, %v1592_v22, %v8017_v37 }
 0x12c   : > { %v8020_v45 = vpop.permute.xlu1 %8019 }
 0x12d   : > { %v8021_v10 = vunpack.i.l.bf16 %v8020_v45  ;;  %v8022_v33 = vunpack.i.h.bf16 %v8020_v45 }
 0x12f   : > { %v1609_v24 = vsel %vm1608_vm7, %v1600_v6, %v8021_v10  ;;  %v1610_v10 = vsel %vm1608_vm7, %v1601_v47, %v8022_v33  ;;  %v844_v33 = vmul.f32 %v9418_v13, %v9043_v30 }
 0x131   : > { %v9422_v50 = vpop.permute.xlu0 %819 }
 0x132   : > { %11612 = vst [vmem:[#allocation55_spill] sm:$0xff] %v9422_v50  ;;  %v845_v22 = vmul.f32 %v9422_v50, %v9111_v57 }
 0x135   : > { %v8025_v19 = vpop.permute.xlu0 %8024 }
 0x136   : > { %v8026_v5 = vunpack.i.l.bf16 %v8025_v19  ;;  %v8027_v63 = vunpack.i.h.bf16 %v8025_v19 }
 0x138   : > { %v1618_v59 = vsel %vm1617_vm8, %v1609_v24, %v8026_v5  ;;  %v1619_v0 = vsel %vm1617_vm8, %v1610_v10, %v8027_v63 }
 0x139   : > { %v9440_v54 = vpop.permute.xlu1 %1303  ;;  %1721 = vmatmul.mubr.f32.vlgmr.msra.gmra.mxu0 %v1618_v59  ;;  %v8030_v41 = vpop.permute.xlu0 %8029 }
 0x13a   : > { %6897 = vmatprep.mubr.msk.f32.mxu0 %vm1563_vm2, %v1332_v18  ;;  %v1333_v27 = vmul.f32 %v9440_v54, %v9208_v55  ;;  %v8031_v37 = vunpack.i.l.bf16 %v8030_v41  ;;  %v8032_v48 = vunpack.i.h.bf16 %v8030_v41 }
 0x13c   : > { %v1566_v24 = vsel %vm1563_vm2, %v844_v33, %v8031_v37  ;;  %v1567_v13 = vsel %vm1563_vm2, %v845_v22, %v8032_v48 }
 0x13d   : > { %v9448_v19 = vpop.permute.xlu1 %824  ;;  %1726 = vmatmul.mubr.f32.gmra.mxu0 %v1619_v0  ;;  %v8035_v49 = vpop.permute.xlu0 %8034 }
 0x13e   : > { %11613 = vst [vmem:[#allocation56_spill] sm:$0xff] %v9448_v19  ;;  %6898 = vmatprep.mubr.msk.f32.mxu0 %vm1563_vm2, %v1333_v27  ;;  %v8036_v31 = vunpack.i.l.bf16 %v8035_v49  ;;  %v8037_v34 = vunpack.i.h.bf16 %v8035_v49 }
 0x140   : > { %v1575_v63 = vsel %vm1572_vm3, %v1566_v24, %v8036_v31  ;;  %v1576_v49 = vsel %vm1572_vm3, %v1567_v13, %v8037_v34 }
 0x141   : > { %v8040_v45 = vpop.permute.xlu1 %8039 }
 0x142   : > { %v8041_v3 = vunpack.i.l.bf16 %v8040_v45  ;;  %v8042_v47 = vunpack.i.h.bf16 %v8040_v45 }
 0x144   : > { %v1584_v10 = vsel %vm1581_vm4, %v1575_v63, %v8041_v3  ;;  %v1585_v57 = vsel %vm1581_vm4, %v1576_v49, %v8042_v47 }
 0x145   : > { %v9451_v43 = vpop.permute.xlu0 %1308  ;;  %v8045_v7 = vpop.permute.xlu1 %8044 }
 0x146   : > { %v8046_v55 = vunpack.i.l.bf16 %v8045_v7  ;;  %v8047_v30 = vunpack.i.h.bf16 %v8045_v7  ;;  %v1334_v45 = vmul.f32 %v9451_v43, %v9264_v58 }
 0x148   : > { %v1593_v27 = vsel %vm1590_vm5, %v1584_v10, %v8046_v55  ;;  %v1594_v55 = vsel %vm1590_vm5, %v1585_v57, %v8047_v30  ;;  %v846_v30 = vmul.f32 %v9448_v19, %v9183_v38 }
 0x149   : > { %v8050_v23 = vpop.permute.xlu0 %8049 }
 0x14a   : > { %v8051_v18 = vunpack.i.l.bf16 %v8050_v23  ;;  %v8052_v41 = vunpack.i.h.bf16 %v8050_v23 }
 0x14c   : > { %v1602_v37 = vsel %vm1599_vm6, %v1593_v27, %v8051_v18  ;;  %v1603_v13 = vsel %vm1599_vm6, %v1594_v55, %v8052_v41 }
 0x14d   : > { %v9455_v5 = vpop.permute.xlu1 %829  ;;  %v8055_v6 = vpop.permute.xlu0 %8054 }
 0x14e   : > { %11614 = vst [vmem:[#allocation57_spill] sm:$0xff] %v9455_v5  ;;  %v8056_v59 = vunpack.i.l.bf16 %v8055_v6  ;;  %v8057_v31 = vunpack.i.h.bf16 %v8055_v6 }
 0x150   : > { %v1611_v33 = vsel %vm1608_vm7, %v1602_v37, %v8056_v59  ;;  %v1612_v6 = vsel %vm1608_vm7, %v1603_v13, %v8057_v31 }
 0x151   : > { %v8060_v0 = vpop.permute.xlu1 %8059 }
 0x152   : > { %v8061_v20 = vunpack.i.l.bf16 %v8060_v0  ;;  %v8062_v7 = vunpack.i.h.bf16 %v8060_v0 }
 0x154   : > { %v1620_v3 = vsel %vm1617_vm8, %v1611_v33, %v8061_v20  ;;  %v1621_v58 = vsel %vm1617_vm8, %v1612_v6, %v8062_v7  ;;  %v847_v7 = vmul.f32 %v9455_v5, %v9221_v2 }
 0x155   : > { %v9472_v48 = vpop.permute.xlu0 %1313  ;;  %1731 = vmatmul.mubr.f32.gmra.mxu0 %v1620_v3  ;;  %v8065_v23 = vpop.permute.xlu1 %8064 }
 0x156   : > { %11615 = vst [vmem:[#allocation58_spill] sm:$0xff] %v9472_v48  ;;  %6899 = vmatprep.mubr.msk.f32.mxu0 %vm1563_vm2, %v1334_v45  ;;  %v1335_v24 = vmul.f32 %v9472_v48, %v9305_v4  ;;  %v8066_v47 = vunpack.i.l.bf16 %v8065_v23  ;;  %v8067_v37 = vunpack.i.h.bf16 %v8065_v23 }
 0x158   : > { %v1568_v49 = vsel %vm1563_vm2, %v846_v30, %v8066_v47 }
 0x159   : > { %v9480_v18 = vpop.permute.xlu0 %834  ;;  %1736 = vmatmul.mubr.f32.gmra.mxu0 %v1621_v58  ;;  %v8070_v20 = vpop.permute.xlu1 %8069 }
 0x15a   : > { %11616 = vst [vmem:[#allocation59_spill] sm:$0xff] %v9480_v18  ;;  %6900 = vmatprep.mubr.msk.f32.mxu0 %vm1563_vm2, %v1335_v24  ;;  %v8071_v10 = vunpack.i.l.bf16 %v8070_v20  ;;  %v8072_v33 = vunpack.i.h.bf16 %v8070_v20  ;;  %v1569_v24 = vsel %vm1563_vm2, %v847_v7, %v8067_v37 }
 0x15c   : > { %v1577_v57 = vsel %vm1572_vm3, %v1568_v49, %v8071_v10  ;;  %v1578_v20 = vsel %vm1572_vm3, %v1569_v24, %v8072_v33 }
 0x15d   : > { %v8075_v34 = vpop.permute.xlu0 %8074 }
 0x15e   : > { %v8076_v27 = vunpack.i.l.bf16 %v8075_v34  ;;  %v8077_v3 = vunpack.i.h.bf16 %v8075_v34 }
 0x160   : > { %v1586_v55 = vsel %vm1581_vm4, %v1577_v57, %v8076_v27  ;;  %v1587_v2 = vsel %vm1581_vm4, %v1578_v20, %v8077_v3 }
 0x161   : > { %v9483_v63 = vpop.permute.xlu1 %1318  ;;  %v8080_v59 = vpop.permute.xlu0 %8079 }
 0x162   : > { %11617 = vst [vmem:[#allocation60_spill] sm:$0xff] %v9483_v63  ;;  %v8081_v4 = vunpack.i.l.bf16 %v8080_v59  ;;  %v8082_v38 = vunpack.i.h.bf16 %v8080_v59  ;;  %v1336_v34 = vmul.f32 %v9483_v63, %v9355_v12 }
 0x164   : > { %v1595_v13 = vsel %vm1590_vm5, %v1586_v55, %v8081_v4  ;;  %v1596_v4 = vsel %vm1590_vm5, %v1587_v2, %v8082_v38  ;;  %v848_v55 = vmul.f32 %v9480_v18, %v9280_v46 }
 0x165   : > { %v8085_v22 = vpop.permute.xlu1 %8084 }
 0x166   : > { %v8086_v31 = vunpack.i.l.bf16 %v8085_v22  ;;  %v8087_v23 = vunpack.i.h.bf16 %v8085_v22 }
 0x168   : > { %v1604_v47 = vsel %vm1599_vm6, %v1595_v13, %v8086_v31 }
 0x169   : > { %v8090_v0 = vpop.permute.xlu1 %8089  ;;  %v9487_v41 = vpop.permute.xlu0 %839 }
 0x16a   : > { %11618 = vst [vmem:[#allocation61_spill] sm:$0xff] %v9487_v41  ;;  %v8091_v45 = vunpack.i.l.bf16 %v8090_v0  ;;  %v8092_v10 = vunpack.i.h.bf16 %v8090_v0  ;;  %v1605_v0 = vsel %vm1599_vm6, %v1596_v4, %v8087_v23 }
 0x16c   : > { %v1613_v30 = vsel %vm1608_vm7, %v1604_v47, %v8091_v45  ;;  %v1614_v49 = vsel %vm1608_vm7, %v1605_v0, %v8092_v10  ;;  %v849_v10 = vmul.f32 %v9487_v41, %v9318_v32 }
 0x16d   : > { %v8095_v6 = vpop.permute.xlu0 %8094 }
 0x16e   : > { %v8096_v58 = vunpack.i.l.bf16 %v8095_v6  ;;  %v8097_v59 = vunpack.i.h.bf16 %v8095_v6 }
 0x170   : > { %v1622_v27 = vsel %vm1617_vm8, %v1613_v30, %v8096_v58  ;;  %v1623_v12 = vsel %vm1617_vm8, %v1614_v49, %v8097_v59 }
 0x171   : > { %v9504_v37 = vpop.permute.xlu1 %1323  ;;  %v8100_v22 = vpop.permute.xlu0 %8099  ;;  %1741 = vmatmul.mubr.f32.gmra.mxu0 %v1622_v27 }
 0x172   : > { %11619 = vst [vmem:[#allocation62_spill] sm:$0xff] %v9504_v37  ;;  %6901 = vmatprep.mubr.msk.f32.mxu0 %vm1563_vm2, %v1336_v34  ;;  %v1337_v31 = vmul.f32 %v9504_v37, %v9395_v53  ;;  %v8101_v45 = vunpack.i.l.bf16 %v8100_v22  ;;  %v8102_v58 = vunpack.i.h.bf16 %v8100_v22 }
 0x174   : > { %v1570_v38 = vsel %vm1563_vm2, %v848_v55, %v8101_v45  ;;  %v1571_v34 = vsel %vm1563_vm2, %v849_v10, %v8102_v58 }
 0x175   : > { %v8110_v33 = vpop.permute.xlu0 %8109  ;;  %1746 = vmatmul.mubr.f32.gmra.mxu0 %v1623_v12  ;;  %v8105_v57 = vpop.permute.xlu1 %8104 }
 0x176   : > { %6902 = vmatprep.mubr.msk.f32.mxu0 %vm1563_vm2, %v1337_v31  ;;  %v8106_v7 = vunpack.i.l.bf16 %v8105_v57  ;;  %v8111_v13 = vunpack.i.l.bf16 %v8110_v33  ;;  %v8107_v47 = vunpack.i.h.bf16 %v8105_v57  ;;  %v8112_v59 = vunpack.i.h.bf16 %v8110_v33 }
 0x178   : > { %v1579_v6 = vsel %vm1572_vm3, %v1570_v38, %v8106_v7  ;;  %v1580_v27 = vsel %vm1572_vm3, %v1571_v34, %v8107_v47  ;;  %v1818_v38 = vld [vmem:[%s11621_s4 + $0x8] sm:$0xff] }
 0x179   : > { %v8115_v3 = vpop.permute.xlu0 %8114  ;;  %v1588_v20 = vsel %vm1581_vm4, %v1579_v6, %v8111_v13  ;;  %v1589_v32 = vsel %vm1581_vm4, %v1580_v27, %v8112_v59  ;;  %7494 = vmatprep.subr.mxu1 %v1818_v38  ;;  %v1817_v13 = vld [vmem:[%s11621_s4] sm:$0xff] }
 0x17a   : > { %v8116_v24 = vunpack.i.l.bf16 %v8115_v3  ;;  %v8117_v4 = vunpack.i.h.bf16 %v8115_v3  ;;  %7495 = vmatpush3.msra.mxu1 %v1818_v38  ;;  %v9544_v6 = vld [vmem:[%s11622_s8] ss:$0 sm:$0xff] }
 0x17b   : > { %7496 = vmatprep.subr.mxu1 %v1817_v13 }
 0x17c   : > { %v1597_v2 = vsel %vm1590_vm5, %v1588_v20, %v8116_v24  ;;  %v1598_v57 = vsel %vm1590_vm5, %v1589_v32, %v8117_v4  ;;  %7497 = vmatpush3.msra.mxu1 %v1817_v13 }
 0x17d   : > { %v1329_v53 = vpop.permute.xlu1 %1328  ;;  %v1520_v23 = vpop.permute.xlu0 %1519 }
 0x17e   : > { %v9525_v31 = vmul.f32 0.0, %v1329_v53 }
 0x180   : > { %11620 = vst [vmem:[#allocation63_spill] sm:$0xff] %v9525_v31 }
 0x181   : > { %v1488_v30 = vpop.permute.xlu1 %1487  ;;  %v1490_v0 = vpop.permute.xlu0 %1489 }
 0x182   : > { %v1606_v46 = vsel %vm1599_vm6, %v1597_v2, %v1488_v30  ;;  %v1607_v33 = vsel %vm1599_vm6, %v1598_v57, %v1490_v0 }
 0x183   : > { %v1615_v22 = vsel %vm1608_vm7, %v1606_v46, %v1520_v23 }
 0x185   : > { %v1552_v49 = vpop.permute.xlu1 %1551  ;;  %v1554_v7 = vpop.permute.xlu0 %1553 }
 0x186   : > { %v1624_v12 = vsel %vm1617_vm8, %v1615_v22, %v1552_v49 }
 0x187   : > { %1751 = vmatmul.mubr.f32.gmra.mxu0 %v1624_v12 }
 0x188   : > { %6903 = vmatprep.mubr.msk.f32.mxu0 %vm1563_vm2, %v9525_v31 }
 0x189   : > { %v1522_v45 = vpop.permute.xlu1 %1521 }
 0x18a   : > { %v1616_v3 = vsel %vm1608_vm7, %v1607_v33, %v1522_v45 }
 0x18b   : > { %v1625_v55 = vsel %vm1617_vm8, %v1616_v3, %v1554_v7 }
 0x18c   : > { %1756 = vmatmul.mubr.f32.gmra.mxu0 %v1625_v55 }
 0x1f9   : > { %v1722_v24 = vpop.f32.mrf.mxu0 }
 0x1fa   : > { %v1723_v53 = vadd.f32 %v9544_v6, %v1722_v24 }
 0x1fb   : > { %v1724_v23 = vpop.f32.mrf.mxu0 }
 0x1fc   : > { %v1761_v58 = vsub.f32 0.0, %v1723_v53 }
 0x1fd   : > { %v1727_v47 = vpop.f32.mrf.mxu0 }
 0x1fe   : > { %v1769_v20 = vmul.f32 1.442695, %v1761_v58  ;;  %v1728_v10 = vadd.f32 %v9544_v6, %v1727_v47 }
 0x1ff   : > { %v1729_v30 = vpop.f32.mrf.mxu0 }
 0x200   : > { %8238 = vpow2.f32 %v1769_v20  ;;  %v1762_v2 = vsub.f32 0.0, %v1728_v10 }
 0x202   : > { %v1771_v46 = vmul.f32 1.442695, %v1762_v2 }
 0x204   : > { %8240 = vpow2.f32 %v1771_v46 }
 0x20d   : > { %v8239_v34 = vpop.eup %8238 }
 0x20e   : > { %v1785_v59 = vadd.f32 1.0, %v8239_v34 }
 0x210   : > { %8242 = vrcp.f32 %v1785_v59 }
 0x211   : > { %v8241_v27 = vpop.eup %8240 }
 0x212   : > { %v1786_v4 = vadd.f32 1.0, %v8241_v27 }
 0x214   : > { %8244 = vrcp.f32 %v1786_v4 }
 0x215   : > { %v1732_v0 = vpop.f32.mrf.mxu0 }
 0x216   : > { %v1733_v49 = vadd.f32 %v9544_v6, %v1732_v0 }
 0x217   : > { %v1734_v22 = vpop.f32.mrf.mxu0 }
 0x218   : > { %v1763_v12 = vsub.f32 0.0, %v1733_v49 }
 0x219   : > { %v1737_v32 = vpop.f32.mrf.mxu0 }
 0x21a   : > { %v1773_v57 = vmul.f32 1.442695, %v1763_v12  ;;  %v1738_v33 = vadd.f32 %v9544_v6, %v1737_v32 }
 0x21b   : > { %v1739_v45 = vpop.f32.mrf.mxu0 }
 0x21c   : > { %8246 = vpow2.f32 %v1773_v57  ;;  %v1764_v7 = vsub.f32 0.0, %v1738_v33 }
 0x21d   : > { %v8243_v3 = vpop.eup %8242 }
 0x21e   : > { %v1775_v55 = vmul.f32 1.442695, %v1764_v7  ;;  %v1809_v38 = vmul.f32 %v8243_v3, %v1723_v53 }
 0x220   : > { %8248 = vpow2.f32 %v1775_v55  ;;  %7498 = vmatprep.mubr.msk.f32.mxu1 %vm1563_vm2, %v1809_v38 }
 0x221   : > { %v8245_v13 = vpop.eup %8244 }
 0x222   : > { %v1810_v24 = vmul.f32 %v8245_v13, %v1728_v10 }
 0x224   : > { %7499 = vmatmul.mubr.msk.f32.vlgmr.msra.gmra.mxu1 %vm1563_vm2, %v1810_v24 }
 0x229   : > { %v8247_v23 = vpop.eup %8246 }
 0x22a   : > { %v1787_v58 = vadd.f32 1.0, %v8247_v23 }
 0x22c   : > { %8250 = vrcp.f32 %v1787_v58 }
 0x22d   : > { %v8249_v47 = vpop.eup %8248 }
 0x22e   : > { %v1788_v20 = vadd.f32 1.0, %v8249_v47 }
 0x230   : > { %8252 = vrcp.f32 %v1788_v20 }
 0x231   : > { %v1742_v30 = vpop.f32.mrf.mxu0 }
 0x232   : > { %v1743_v2 = vadd.f32 %v9544_v6, %v1742_v30 }
 0x233   : > { %v1744_v46 = vpop.f32.mrf.mxu0 }
 0x234   : > { %v1765_v34 = vsub.f32 0.0, %v1743_v2 }
 0x235   : > { %v1747_v59 = vpop.f32.mrf.mxu0 }
 0x236   : > { %v1777_v53 = vmul.f32 1.442695, %v1765_v34  ;;  %v1748_v27 = vadd.f32 %v9544_v6, %v1747_v59 }
 0x237   : > { %v1749_v4 = vpop.f32.mrf.mxu0 }
 0x238   : > { %8254 = vpow2.f32 %v1777_v53  ;;  %v1766_v10 = vsub.f32 0.0, %v1748_v27 }
 0x239   : > { %v8251_v0 = vpop.eup %8250 }
 0x23a   : > { %v1811_v22 = vmul.f32 %v8251_v0, %v1733_v49  ;;  %v1779_v12 = vmul.f32 1.442695, %v1766_v10 }
 0x23c   : > { %8256 = vpow2.f32 %v1779_v12  ;;  %7501 = vmatprep.mubr.msk.f32.mxu1 %vm1563_vm2, %v1811_v22 }
 0x23d   : > { %v8253_v32 = vpop.eup %8252 }
 0x23e   : > { %v1812_v57 = vmul.f32 %v8253_v32, %v1738_v33 }
 0x240   : > { %7502 = vmatmul.mubr.msk.f32.gmra.mxu1 %vm1563_vm2, %v1812_v57 }
 0x245   : > { %v8255_v45 = vpop.eup %8254 }
 0x246   : > { %v1789_v7 = vadd.f32 1.0, %v8255_v45 }
 0x247   : > { %v1752_v3 = vpop.f32.mrf.mxu0 }
 0x248   : > { %8258 = vrcp.f32 %v1789_v7  ;;  %v1753_v55 = vadd.f32 %v9544_v6, %v1752_v3 }
 0x249   : > { %v8257_v38 = vpop.eup %8256  ;;  %v1754_v13 = vpop.f32.mrf.mxu0 }
 0x24a   : > { %v1790_v24 = vadd.f32 1.0, %v8257_v38  ;;  %v1767_v23 = vsub.f32 0.0, %v1753_v55 }
 0x24c   : > { %8260 = vrcp.f32 %v1790_v24  ;;  %v1781_v49 = vmul.f32 1.442695, %v1767_v23  ;;  %v1757_v58 = vpop.f32.mrf.mxu0 }
 0x24d   : > { %v1758_v47 = vadd.f32 %v9544_v6, %v1757_v58 }
 0x24e   : > { %8262 = vpow2.f32 %v1781_v49  ;;  %v1759_v20 = vpop.f32.mrf.mxu0 }
 0x24f   : > { %v1768_v33 = vsub.f32 0.0, %v1758_v47 }
 0x251   : > { %v1783_v30 = vmul.f32 1.442695, %v1768_v33 }
 0x253   : > { %8264 = vpow2.f32 %v1783_v30 }
 0x255   : > { %v8259_v46 = vpop.eup %8258 }
 0x256   : > { %v1813_v34 = vmul.f32 %v8259_v46, %v1743_v2 }
 0x258   : > { %7504 = vmatprep.mubr.msk.f32.mxu1 %vm1563_vm2, %v1813_v34 }
 0x259   : > { %v8261_v59 = vpop.eup %8260 }
 0x25a   : > { %v1814_v53 = vmul.f32 %v8261_v59, %v1748_v27 }
 0x25b   : > { %v8263_v4 = vpop.eup %8262 }
 0x25c   : > { %v1791_v10 = vadd.f32 1.0, %v8263_v4  ;;  %7505 = vmatmul.mubr.msk.f32.gmra.mxu1 %vm1563_vm2, %v1814_v53 }
 0x25e   : > { %8266 = vrcp.f32 %v1791_v10 }
 0x260   : > { %v8265_v0 = vpop.eup %8264 }
 0x261   : > { %v1792_v22 = vadd.f32 1.0, %v8265_v0 }
 0x263   : > { %8268 = vrcp.f32 %v1792_v22 }
 0x26b   : > { %v8267_v6 = vpop.eup %8266 }
 0x26c   : > { %v1815_v12 = vmul.f32 %v8267_v6, %v1753_v55 }
 0x26e   : > { %7507 = vmatprep.mubr.msk.f32.mxu1 %vm1563_vm2, %v1815_v12 }
 0x270   : > { %v8269_v32 = vpop.eup %8268 }
 0x271   : > { %v1816_v57 = vmul.f32 %v8269_v32, %v1758_v47 }
 0x273   : > { %7508 = vmatmul.mubr.msk.f32.gmra.mxu1 %vm1563_vm2, %v1816_v57 }
 0x2e4   : > { %v9562_v2 = vpop.f32.mrf.mxu1 }
 0x2e5   : > { %v1961_v27 = vsel %vm1572_vm3, %v9562_v2, 0.0 }
 0x2e6   : > { %1962 = vadd.xlane.f32.xlu0 %v1961_v27  ;;  %v9566_v45 = vpop.f32.mrf.mxu1 }
 0x2e7   : > { %v1958_v7 = vsel %vm1572_vm3, %v9566_v45, 0.0 }
 0x2e8   : > { %1959 = vadd.xlane.f32.xlu1 %v1958_v7 }
 0x300   : > { %v9570_v3 = vpop.f32.mrf.mxu1 }
 0x301   : > { %v1967_v55 = vsel %vm1572_vm3, %v9570_v3, 0.0 }
 0x302   : > { %1968 = vadd.xlane.f32.xlu1 %v1967_v55  ;;  %v9574_v38 = vpop.f32.mrf.mxu1 }
 0x303   : > { %v1964_v13 = vsel %vm1572_vm3, %v9574_v38, 0.0 }
 0x304   : > { %1965 = vadd.xlane.f32.xlu0 %v1964_v13 }
 0x31c   : > { %v9578_v24 = vpop.f32.mrf.mxu1 }
 0x31d   : > { %v1973_v23 = vsel %vm1572_vm3, %v9578_v24, 0.0 }
 0x31e   : > { %1974 = vadd.xlane.f32.xlu1 %v1973_v23  ;;  %v9582_v49 = vpop.f32.mrf.mxu1 }
 0x31f   : > { %v1970_v58 = vsel %vm1572_vm3, %v9582_v49, 0.0 }
 0x320   : > { %1971 = vadd.xlane.f32.xlu0 %v1970_v58 }
 0x333   : > { %v9586_v47 = vpop.f32.mrf.mxu1 }
 0x334   : > { %v1979_v20 = vsel %vm1572_vm3, %v9586_v47, 0.0 }
 0x335   : > { %1980 = vadd.xlane.f32.xlu1 %v1979_v20  ;;  %v9590_v33 = vpop.f32.mrf.mxu1 }
 0x336   : > { %v1976_v30 = vsel %vm1572_vm3, %v9590_v33, 0.0 }
 0x337   : > { %1977 = vadd.xlane.f32.xlu0 %v1976_v30  ;;  %v2094_v30 = vld [vmem:[%s11623_s27 + $0x18] sm:$0xff] }
 0x338   : > { %7510 = vmatprep.subr.mxu1 %v2094_v30 }
 0x339   : > { %7511 = vmatpush3.msra.mxu1 %v2094_v30 }
 0x36f   : > { %v1963_v46 = vpop.xlane.xlu0 %1962 }
 0x370   : > { %v1984_v34 = vmul.f32 0.03125, %v1963_v46 }
 0x371   : > { %v1960_v59 = vpop.xlane.xlu1 %1959 }
 0x372   : > { %v9595_v53 = vsub.f32 %v9562_v2, %v1984_v34  ;;  %v1983_v4 = vmul.f32 0.03125, %v1960_v59  ;;  %v2093_v34 = vld [vmem:[%s11623_s27 + $0x10] sm:$0xff]  ;;  %v2092_v59 = vld [vmem:[%s11623_s27 + $0x8] sm:$0xff] }
 0x373   : > { %7512 = vmatprep.subr.mxu1 %v2093_v34 }
 0x374   : > { %v9598_v10 = vsub.f32 %v9566_v45, %v1983_v4  ;;  %v2000_v0 = vmul.f32 %v9595_v53, %v9595_v53  ;;  %7513 = vmatpush3.msra.mxu1 %v2093_v34  ;;  %v2091_v4 = vld [vmem:[%s11623_s27] sm:$0xff] }
 0x375   : > { %7514 = vmatprep.subr.mxu1 %v2092_v59 }
 0x376   : > { %v2010_v22 = vsel %vm1572_vm3, %v2000_v0, 0.0  ;;  %v1999_v6 = vmul.f32 %v9598_v10, %v9598_v10  ;;  %7515 = vmatpush3.msra.mxu1 %v2092_v59 }
 0x377   : > { %2011 = vadd.xlane.f32.xlu1 %v2010_v22  ;;  %7516 = vmatprep.subr.mxu1 %v2091_v4 }
 0x378   : > { %v2007_v12 = vsel %vm1572_vm3, %v1999_v6, 0.0  ;;  %7517 = vmatpush3.msra.mxu1 %v2091_v4 }
 0x379   : > { %2008 = vadd.xlane.f32.xlu0 %v2007_v12 }
 0x38b   : > { %v1969_v32 = vpop.xlane.xlu1 %1968 }
 0x38c   : > { %v1986_v57 = vmul.f32 0.03125, %v1969_v32 }
 0x38d   : > { %v1966_v27 = vpop.xlane.xlu0 %1965 }
 0x38e   : > { %v9607_v7 = vsub.f32 %v9570_v3, %v1986_v57  ;;  %v1985_v55 = vmul.f32 0.03125, %v1966_v27 }
 0x390   : > { %v9610_v13 = vsub.f32 %v9574_v38, %v1985_v55  ;;  %v2002_v23 = vmul.f32 %v9607_v7, %v9607_v7 }
 0x392   : > { %v2016_v58 = vsel %vm1572_vm3, %v2002_v23, 0.0  ;;  %v2001_v20 = vmul.f32 %v9610_v13, %v9610_v13 }
 0x393   : > { %2017 = vadd.xlane.f32.xlu1 %v2016_v58 }
 0x394   : > { %v2013_v46 = vsel %vm1572_vm3, %v2001_v20, 0.0 }
 0x395   : > { %2014 = vadd.xlane.f32.xlu0 %v2013_v46 }
 0x3a7   : > { %v1975_v0 = vpop.xlane.xlu1 %1974 }
 0x3a8   : > { %v1988_v22 = vmul.f32 0.03125, %v1975_v0 }
 0x3a9   : > { %v1972_v6 = vpop.xlane.xlu0 %1971 }
 0x3aa   : > { %v9631_v12 = vsub.f32 %v9578_v24, %v1988_v22  ;;  %v1987_v32 = vmul.f32 0.03125, %v1972_v6 }
 0x3ac   : > { %v9634_v57 = vsub.f32 %v9582_v49, %v1987_v32  ;;  %v2004_v27 = vmul.f32 %v9631_v12, %v9631_v12 }
 0x3ae   : > { %v2022_v55 = vsel %vm1572_vm3, %v2004_v27, 0.0  ;;  %v2003_v23 = vmul.f32 %v9634_v57, %v9634_v57 }
 0x3af   : > { %2023 = vadd.xlane.f32.xlu1 %v2022_v55 }
 0x3b0   : > { %v2019_v58 = vsel %vm1572_vm3, %v2003_v23, 0.0 }
 0x3b1   : > { %2020 = vadd.xlane.f32.xlu0 %v2019_v58 }
 0x3be   : > { %v1981_v20 = vpop.xlane.xlu1 %1980 }
 0x3bf   : > { %v1990_v30 = vmul.f32 0.03125, %v1981_v20 }
 0x3c0   : > { %v1978_v46 = vpop.xlane.xlu0 %1977 }
 0x3c1   : > { %v9643_v34 = vsub.f32 %v9586_v47, %v1990_v30  ;;  %v1989_v59 = vmul.f32 0.03125, %v1978_v46 }
 0x3c3   : > { %v9646_v4 = vsub.f32 %v9590_v33, %v1989_v59  ;;  %v2006_v0 = vmul.f32 %v9643_v34, %v9643_v34  ;;  %v6912_v59 = vld [vmem:[%s11624_s30] ss:$0 sm:$0xff] }
 0x3c5   : > { %v2028_v22 = vsel %vm1572_vm3, %v2006_v0, 0.0  ;;  %v2005_v6 = vmul.f32 %v9646_v4, %v9646_v4 }
 0x3c6   : > { %2029 = vadd.xlane.f32.xlu1 %v2028_v22 }
 0x3c7   : > { %v2025_v32 = vsel %vm1572_vm3, %v2005_v6, 0.0 }
 0x3c8   : > { %2026 = vadd.xlane.f32.xlu0 %v2025_v32  ;;  %v6913_v32 = vld [vmem:[%s11625_s28] ss:$0 sm:$0xff] }
 0x400   : > { %v2012_v27 = vpop.xlane.xlu1 %2011 }
 0x401   : > { %v2032_v55 = vmul.f32 0.03125, %v2012_v27 }
 0x402   : > { %v2009_v23 = vpop.xlane.xlu0 %2008 }
 0x403   : > { %v2040_v58 = vadd.f32 1e-05, %v2032_v55  ;;  %v2031_v20 = vmul.f32 0.03125, %v2009_v23 }
 0x405   : > { %8270 = vrsqrt.f32 %v2040_v58  ;;  %v2039_v30 = vadd.f32 1e-05, %v2031_v20 }
 0x407   : > { %8272 = vrsqrt.f32 %v2039_v30 }
 0x412   : > { %v8271_v46 = vpop.eup %8270 }
 0x413   : > { %v2056_v0 = vmul.f32 %v8271_v46, %v9595_v53 }
 0x414   : > { %v8273_v41 = vpop.eup %8272 }
 0x415   : > { %v2055_v22 = vmul.f32 %v8273_v41, %v9598_v10  ;;  %v2070_v6 = vmul.f32 %v6912_v59, %v2056_v0 }
 0x417   : > { %v2069_v27 = vmul.f32 %v6912_v59, %v2055_v22  ;;  %v2084_v23 = vadd.f32 %v6913_v32, %v2070_v6 }
 0x419   : > { %v2083_v55 = vadd.f32 %v6913_v32, %v2069_v27 }
 0x41b   : > { %7518 = vmatprep.mubr.msk.f32.mxu1 %vm1572_vm3, %v2083_v55 }
 0x41c   : > { %v2018_v58 = vpop.xlane.xlu1 %2017  ;;  %7519 = vmatmul.mubr.msk.f32.vlgmr.msra.gmra.mxu1 %vm1572_vm3, %v2084_v23 }
 0x41d   : > { %v2034_v20 = vmul.f32 0.03125, %v2018_v58 }
 0x41e   : > { %v2015_v30 = vpop.xlane.xlu0 %2014 }
 0x41f   : > { %v2042_v18 = vadd.f32 1e-05, %v2034_v20  ;;  %v2033_v53 = vmul.f32 0.03125, %v2015_v30 }
 0x421   : > { %8274 = vrsqrt.f32 %v2042_v18  ;;  %v2041_v46 = vadd.f32 1e-05, %v2033_v53 }
 0x423   : > { %8276 = vrsqrt.f32 %v2041_v46 }
 0x42e   : > { %v8275_v41 = vpop.eup %8274 }
 0x42f   : > { %v2058_v10 = vmul.f32 %v8275_v41, %v9607_v7 }
 0x430   : > { %v8277_v0 = vpop.eup %8276 }
 0x431   : > { %v2057_v22 = vmul.f32 %v8277_v0, %v9610_v13  ;;  %v2072_v27 = vmul.f32 %v6912_v59, %v2058_v10 }
 0x433   : > { %v2071_v6 = vmul.f32 %v6912_v59, %v2057_v22  ;;  %v2086_v55 = vadd.f32 %v6913_v32, %v2072_v27 }
 0x435   : > { %v2085_v5 = vadd.f32 %v6913_v32, %v2071_v6 }
 0x437   : > { %7521 = vmatprep.mubr.msk.f32.mxu1 %vm1572_vm3, %v2085_v5 }
 0x438   : > { %v2024_v23 = vpop.xlane.xlu1 %2023  ;;  %7522 = vmatmul.mubr.msk.f32.gmra.mxu1 %vm1572_vm3, %v2086_v55 }
 0x439   : > { %v2036_v58 = vmul.f32 0.03125, %v2024_v23 }
 0x43a   : > { %v2021_v20 = vpop.xlane.xlu0 %2020 }
 0x43b   : > { %v2044_v18 = vadd.f32 1e-05, %v2036_v58  ;;  %v2035_v30 = vmul.f32 0.03125, %v2021_v20 }
 0x43d   : > { %8278 = vrsqrt.f32 %v2044_v18  ;;  %v2043_v53 = vadd.f32 1e-05, %v2035_v30 }
 0x43f   : > { %8280 = vrsqrt.f32 %v2043_v53 }
 0x44a   : > { %v8279_v7 = vpop.eup %8278 }
 0x44b   : > { %v2060_v46 = vmul.f32 %v8279_v7, %v9631_v12 }
 0x44c   : > { %v8281_v13 = vpop.eup %8280 }
 0x44d   : > { %v2059_v41 = vmul.f32 %v8281_v13, %v9634_v57  ;;  %v2074_v10 = vmul.f32 %v6912_v59, %v2060_v46 }
 0x44f   : > { %v2030_v0 = vpop.xlane.xlu1 %2029  ;;  %v2073_v22 = vmul.f32 %v6912_v59, %v2059_v41  ;;  %v2088_v19 = vadd.f32 %v6913_v32, %v2074_v10 }
 0x450   : > { %v2038_v5 = vmul.f32 0.03125, %v2030_v0 }
 0x451   : > { %v2027_v27 = vpop.xlane.xlu0 %2026  ;;  %v2087_v6 = vadd.f32 %v6913_v32, %v2073_v22 }
 0x452   : > { %v2046_v55 = vadd.f32 1e-05, %v2038_v5  ;;  %v2037_v23 = vmul.f32 0.03125, %v2027_v27 }
 0x453   : > { %7524 = vmatprep.mubr.msk.f32.mxu1 %vm1572_vm3, %v2087_v6 }
 0x454   : > { %8282 = vrsqrt.f32 %v2046_v55  ;;  %v2045_v58 = vadd.f32 1e-05, %v2037_v23  ;;  %7525 = vmatmul.mubr.msk.f32.gmra.mxu1 %vm1572_vm3, %v2088_v19  ;;  %v6914_v19 = vld [vmem:[%s11441_s9] ss:$0 sm:$0xff] }
 0x456   : > { %8284 = vrsqrt.f32 %v2045_v58 }
 0x461   : > { %v8283_v12 = vpop.eup %8282 }
 0x462   : > { %v2062_v20 = vmul.f32 %v8283_v12, %v9643_v34 }
 0x463   : > { %v8285_v57 = vpop.eup %8284 }
 0x464   : > { %v2061_v18 = vmul.f32 %v8285_v57, %v9646_v4  ;;  %v2076_v30 = vmul.f32 %v6912_v59, %v2062_v20 }
 0x466   : > { %v2075_v53 = vmul.f32 %v6912_v59, %v2061_v18  ;;  %v2090_v46 = vadd.f32 %v6913_v32, %v2076_v30 }
 0x468   : > { %v2089_v7 = vadd.f32 %v6913_v32, %v2075_v53 }
 0x46a   : > { %7527 = vmatprep.mubr.msk.f32.mxu1 %vm1572_vm3, %v2089_v7 }
 0x46b   : > { %7528 = vmatmul.mubr.msk.f32.gmra.mxu1 %vm1572_vm3, %v2090_v46 }
 0x4dc   : > { %v7520_v13 = vpop.f32.mrf.mxu1 }
 0x4dd   : > { %v9707_v12 = vadd.f32 %v7520_v13, %v6914_v19 }
 0x4de   : > { %v2192_v41 = vpop.f32.mrf.mxu1 }
 0x4df   : > { %v9679_v10 = vadd.f32 %v6914_v19, %v2192_v41 }
 0x4e1   : > { %7546 = vmatprep.mubr.msk.f32.mxu1 %vm1563_vm2, %v9679_v10 }
 0x4f8   : > { %v7523_v34 = vpop.f32.mrf.mxu1 }
 0x4f9   : > { %v9701_v58 = vadd.f32 %v7523_v34, %v6914_v19 }
 0x4fa   : > { %v2202_v4 = vpop.f32.mrf.mxu1 }
 0x4fb   : > { %v9697_v23 = vadd.f32 %v6914_v19, %v2202_v4 }
 0x514   : > { %v7526_v59 = vpop.f32.mrf.mxu1 }
 0x515   : > { %v9693_v55 = vadd.f32 %v7526_v59, %v6914_v19 }
 0x516   : > { %v2212_v0 = vpop.f32.mrf.mxu1 }
 0x517   : > { %v9689_v6 = vadd.f32 %v6914_v19, %v2212_v0 }
 0x52b   : > { %v7529_v32 = vpop.f32.mrf.mxu1 }
 0x52c   : > { %v9683_v22 = vadd.f32 %v7529_v32, %v6914_v19 }
 0x52d   : > { %v2222_v5 = vpop.f32.mrf.mxu1 }
 0x52e   : > { %v9685_v27 = vadd.f32 %v6914_v19, %v2222_v5  ;;  %2257 = vrot.lane.b32.xlu0 %v9683_v22, %s11626_s7 }
 0x530   : > { %2255 = vrot.lane.b32.xlu1 %v9685_v27, %s11626_s7 }
 0x532   : > { %2251 = vrot.lane.b32.xlu0 %v9689_v6, %s11626_s7 }
 0x534   : > { %2253 = vrot.lane.b32.xlu1 %v9693_v55, %s11626_s7 }
 0x536   : > { %2247 = vrot.lane.b32.xlu0 %v9697_v23, %s11626_s7 }
 0x538   : > { %2249 = vrot.lane.b32.xlu1 %v9701_v58, %s11626_s7 }
 0x53a   : > { %2243 = vrot.lane.b32.xlu0 %v9679_v10, %s11626_s7 }
 0x53c   : > { %2245 = vrot.lane.b32.xlu1 %v9707_v12, %s11626_s7 }
 0x53e   : > { %2498 = vrot.lane.b32.xlu0 %v9683_v22, %s11627_s29 }
 0x540   : > { %2494 = vrot.lane.b32.xlu1 %v9693_v55, %s11627_s29 }
 0x542   : > { %2492 = vrot.lane.b32.xlu0 %v9689_v6, %s11627_s29 }
 0x544   : > { %2488 = vrot.lane.b32.xlu1 %v9697_v23, %s11627_s29 }
 0x546   : > { %2490 = vrot.lane.b32.xlu0 %v9701_v58, %s11627_s29 }
 0x548   : > { %2484 = vrot.lane.b32.xlu1 %v9679_v10, %s11627_s29 }
 0x54a   : > { %2486 = vrot.lane.b32.xlu0 %v9707_v12, %s11627_s29 }
 0x54c   : > { %2663 = vrot.lane.b32.xlu1 %v9693_v55, %s11628_s0 }
 0x54e   : > { %2667 = vrot.lane.b32.xlu0 %v9683_v22, %s11628_s0 }
 0x550   : > { %2496 = vrot.lane.b32.xlu1 %v9685_v27, %s11627_s29 }
 0x554   : > { %2665 = vrot.lane.b32.xlu1 %v9685_v27, %s11628_s0 }
 0x5a0   : > { %v2258_v20 = vpop.permute.xlu0 %2257 }
 0x5a1   : > { %7530 = vmatprep.subr.msk.mxu1 %vm1563_vm2, %v2258_v20 }
 0x5a2   : > { %7531 = vmatpush3.xpose.msk.msra.mxu1 %vm1563_vm2, %v2258_v20  ;;  %v2256_v57 = vpop.permute.xlu1 %2255 }
 0x5a3   : > { %7532 = vmatprep.subr.msk.mxu1 %vm1563_vm2, %v2256_v57 }
 0x5a4   : > { %v2252_v18 = vpop.permute.xlu0 %2251 }
 0x5a6   : > { %7533 = vmatpush3.xpose.msk.msra.mxu1 %vm1563_vm2, %v2256_v57  ;;  %v2254_v30 = vpop.permute.xlu1 %2253 }
 0x5a7   : > { %7534 = vmatprep.subr.msk.mxu1 %vm1563_vm2, %v2254_v30 }
 0x5a8   : > { %v2248_v7 = vpop.permute.xlu0 %2247 }
 0x5aa   : > { %7535 = vmatpush3.xpose.msk.msra.mxu1 %vm1563_vm2, %v2254_v30  ;;  %v2250_v53 = vpop.permute.xlu1 %2249 }
 0x5ab   : > { %7536 = vmatprep.subr.msk.mxu1 %vm1563_vm2, %v2252_v18 }
 0x5ac   : > { %v2244_v13 = vpop.permute.xlu0 %2243 }
 0x5ae   : > { %7537 = vmatpush3.xpose.msk.msra.mxu1 %vm1563_vm2, %v2252_v18  ;;  %v2246_v46 = vpop.permute.xlu1 %2245  ;;  %v9774_v18 = vld [vmem:[%s11629_s3 + $0x8] sm:$0xff] }
 0x5af   : > { %7538 = vmatprep.subr.msk.mxu1 %vm1563_vm2, %v2250_v53 }
 0x5b0   : > { %v2499_v34 = vpop.permute.xlu0 %2498 }
 0x5b2   : > { %7539 = vmatpush3.xpose.msk.msra.mxu1 %vm1563_vm2, %v2250_v53  ;;  %v2495_v19 = vpop.permute.xlu1 %2494  ;;  %v9779_v53 = vld [vmem:[%s11629_s3] sm:$0xff] }
 0x5b3   : > { %7540 = vmatprep.subr.msk.mxu1 %vm1563_vm2, %v2248_v7 }
 0x5b4   : > { %v2493_v59 = vpop.permute.xlu0 %2492 }
 0x5b6   : > { %7541 = vmatpush3.xpose.msk.msra.mxu1 %vm1563_vm2, %v2248_v7  ;;  %v2489_v41 = vpop.permute.xlu1 %2488 }
 0x5b7   : > { %7542 = vmatprep.subr.msk.mxu1 %vm1563_vm2, %v2246_v46 }
 0x5b8   : > { %v2491_v5 = vpop.permute.xlu0 %2490 }
 0x5ba   : > { %7543 = vmatpush3.xpose.msk.msra.mxu1 %vm1563_vm2, %v2246_v46  ;;  %v2485_v4 = vpop.permute.xlu1 %2484 }
 0x5bb   : > { %7544 = vmatprep.subr.msk.mxu1 %vm1563_vm2, %v2244_v13 }
 0x5bc   : > { %v2487_v20 = vpop.permute.xlu0 %2486 }
 0x5be   : > { %7545 = vmatpush3.xpose.msk.msra.mxu1 %vm1563_vm2, %v2244_v13  ;;  %v9751_v0 = vpop.permute.xlu1 %2663  ;;  %v9785_v13 = vld [vmem:[%s11629_s3 + $0x18] sm:$0xff] }
 0x5bf   : > { %7558 = vmatprep.subr.mxu1 %v2499_v34 }
 0x5c0   : > { %v9767_v57 = vpop.permute.xlu0 %2667 }
 0x5c1   : > { %7547 = vmatmul.mubr.msk.f32.vlgmr.msra.gmra.mxu1 %vm1563_vm2, %v9707_v12 }
 0x5c2   : > { %7549 = vmatprep.mubr.msk.f32.mxu1 %vm1563_vm2, %v9697_v23  ;;  %7559 = vmatpush3.msra.mxu1 %v2499_v34  ;;  %v2497_v32 = vpop.permute.xlu1 %2496 }
 0x5c3   : > { %7560 = vmatprep.subr.mxu1 %v2497_v32 }
 0x5c4   : > { %7561 = vmatpush3.msra.mxu1 %v2497_v32 }
 0x5c5   : > { %7550 = vmatmul.mubr.msk.f32.gmra.mxu1 %vm1563_vm2, %v9701_v58  ;;  %7562 = vmatprep.subr.mxu1 %v2495_v19 }
 0x5c6   : > { %7552 = vmatprep.mubr.msk.f32.mxu1 %vm1563_vm2, %v9689_v6  ;;  %7563 = vmatpush3.msra.mxu1 %v2495_v19 }
 0x5c7   : > { %7564 = vmatprep.subr.mxu1 %v2493_v59 }
 0x5c8   : > { %7565 = vmatpush3.msra.mxu1 %v2493_v59 }
 0x5c9   : > { %7553 = vmatmul.mubr.msk.f32.gmra.mxu1 %vm1563_vm2, %v9693_v55  ;;  %7566 = vmatprep.subr.mxu1 %v2491_v5 }
 0x5ca   : > { %7555 = vmatprep.mubr.msk.f32.mxu1 %vm1563_vm2, %v9685_v27  ;;  %7567 = vmatpush3.msra.mxu1 %v2491_v5 }
 0x5cb   : > { %7568 = vmatprep.subr.mxu1 %v2489_v41 }
 0x5cc   : > { %7569 = vmatpush3.msra.mxu1 %v2489_v41 }
 0x5cd   : > { %7556 = vmatmul.mubr.msk.f32.gmra.mxu1 %vm1563_vm2, %v9683_v22  ;;  %7570 = vmatprep.subr.mxu1 %v2487_v20 }
 0x5ce   : > { %7571 = vmatpush3.msra.mxu1 %v2487_v20  ;;  %v9799_v20 = vld [vmem:[%s11629_s3 + $0x28] sm:$0xff] }
 0x5cf   : > { %7572 = vmatprep.subr.mxu1 %v2485_v4 }
 0x5d0   : > { %7573 = vmatpush3.msra.mxu1 %v2485_v4  ;;  %v9792_v4 = vld [vmem:[%s11629_s3 + $0x10] sm:$0xff] }
 0x5d1   : > { %7586 = vmatprep.subr.msk.mxu1 %vm1563_vm2, %v9767_v57 }
 0x681   : > { %v7548_v30 = vpop.f32.mrf.mxu1 }
 0x682   : > { %v2363_v7 = vadd.f32 %v7548_v30, %v9774_v18 }
 0x683   : > { %v2357_v46 = vpop.f32.mrf.mxu1 }
 0x684   : > { %v2358_v19 = vadd.f32 %v2357_v46, %v9779_v53  ;;  %v2399_v41 = vsel %vm1590_vm5, %v2363_v7, -inf }
 0x685   : > { %2400 = vmax.xlane.f32.xlu0 %v2399_v41  ;;  %v7551_v34 = vpop.f32.mrf.mxu1  ;;  %v9805_v41 = vld [vmem:[%s11629_s3 + $0x20] sm:$0xff] }
 0x686   : > { %v2373_v59 = vadd.f32 %v7551_v34, %v9785_v13  ;;  %v2396_v32 = vsel %vm1590_vm5, %v2358_v19, -inf }
 0x687   : > { %v2367_v5 = vpop.f32.mrf.mxu1  ;;  %2397 = vmax.xlane.f32.xlu1 %v2396_v32 }
 0x688   : > { %v2368_v30 = vadd.f32 %v2367_v5, %v9792_v4  ;;  %v2405_v62 = vsel %vm1590_vm5, %v2373_v59, -inf }
 0x689   : > { %v7554_v46 = vpop.f32.mrf.mxu1 }
 0x68a   : > { %v2383_v50 = vadd.f32 %v7554_v46, %v9799_v20  ;;  %v2402_v34 = vsel %vm1590_vm5, %v2368_v30, -inf }
 0x68b   : > { %v2377_v32 = vpop.f32.mrf.mxu1  ;;  %2403 = vmax.xlane.f32.xlu0 %v2402_v34  ;;  %2406 = vmax.xlane.f32.xlu1 %v2405_v62 }
 0x68c   : > { %v2378_v5 = vadd.f32 %v2377_v32, %v9805_v41  ;;  %v2411_v34 = vsel %vm1590_vm5, %v2383_v50, -inf }
 0x68d   : > { %v7557_v31 = vpop.f32.mrf.mxu1 }
 0x68e   : > { %v2393_v46 = vadd.f32 %v7557_v31, %v9813_v29  ;;  %v2408_v40 = vsel %vm1590_vm5, %v2378_v5, -inf  ;;  %v9834_v31 = vpop.permute.xlu1 %2665 }
 0x68f   : > { %v2387_v62 = vpop.f32.mrf.mxu1  ;;  %2409 = vmax.xlane.f32.xlu0 %v2408_v40  ;;  %2412 = vmax.xlane.f32.xlu1 %v2411_v34 }
 0x690   : > { %v9825_v21 = vadd.f32 %v2387_v62, %v9819_v11  ;;  %v2417_v39 = vsel %vm1590_vm5, %v2393_v46, -inf }
 0x692   : > { %v2414_v32 = vsel %vm1590_vm5, %v9825_v21, -inf }
 0x693   : > { %2415 = vmax.xlane.f32.xlu0 %v2414_v32  ;;  %2418 = vmax.xlane.f32.xlu1 %v2417_v39 }
 0x6a4   : > { %2659 = vrot.lane.b32.xlu1 %v9701_v58, %s11628_s0 }
 0x6a9   : > { %2661 = vrot.lane.b32.xlu0 %v9689_v6, %s11628_s0 }
 0x70e   : > { %v2401_v40 = vpop.xlane.xlu0 %2400 }
 0x70f   : > { %v2421_v34 = vsub.f32 %v2363_v7, %v2401_v40 }
 0x710   : > { %v2398_v60 = vpop.xlane.xlu1 %2397 }
 0x711   : > { %v2430_v62 = vmul.f32 1.442695, %v2421_v34  ;;  %v2420_v37 = vsub.f32 %v2358_v19, %v2398_v60 }
 0x713   : > { %8286 = vpow2.f32 %v2430_v62  ;;  %v2428_v28 = vmul.f32 1.442695, %v2420_v37 }
 0x714   : > { %v2404_v7 = vpop.xlane.xlu0 %2403  ;;  %v2407_v60 = vpop.xlane.xlu1 %2406 }
 0x715   : > { %8288 = vpow2.f32 %v2428_v28  ;;  %v2422_v28 = vsub.f32 %v2368_v30, %v2404_v7  ;;  %v2423_v40 = vsub.f32 %v2373_v59, %v2407_v60 }
 0x717   : > { %v2432_v34 = vmul.f32 1.442695, %v2422_v28  ;;  %v2434_v63 = vmul.f32 1.442695, %v2423_v40 }
 0x718   : > { %v2410_v37 = vpop.xlane.xlu0 %2409  ;;  %v2413_v19 = vpop.xlane.xlu1 %2412 }
 0x719   : > { %v2424_v62 = vsub.f32 %v2378_v5, %v2410_v37  ;;  %8290 = vpow2.f32 %v2432_v34 }
 0x71a   : > { %8292 = vpow2.f32 %v2434_v63 }
 0x71b   : > { %v2436_v48 = vmul.f32 1.442695, %v2424_v62 }
 0x71c   : > { %v2419_v16 = vpop.xlane.xlu1 %2418 }
 0x71d   : > { %v2427_v15 = vsub.f32 %v2393_v46, %v2419_v16  ;;  %8294 = vpow2.f32 %v2436_v48  ;;  %v2416_v46 = vpop.xlane.xlu0 %2415 }
 0x71e   : > { %v2426_v7 = vsub.f32 %v9825_v21, %v2416_v46 }
 0x71f   : > { %v2442_v52 = vmul.f32 1.442695, %v2427_v15 }
 0x720   : > { %v9836_v51 = vpop.eup %8286  ;;  %v2440_v60 = vmul.f32 1.442695, %v2426_v7  ;;  %v2660_v37 = vpop.permute.xlu1 %2659 }
 0x721   : > { %v2447_v39 = vsel %vm1590_vm5, %v9836_v51, 0.0 }
 0x722   : > { %v9840_v32 = vpop.eup %8288  ;;  %2448 = vadd.xlane.f32.xlu1 %v2447_v39  ;;  %v2425_v39 = vsub.f32 %v2383_v50, %v2413_v19  ;;  %v2662_v19 = vpop.permute.xlu0 %2661 }
 0x723   : > { %v2444_v42 = vsel %vm1590_vm5, %v9840_v32, 0.0 }
 0x724   : > { %2445 = vadd.xlane.f32.xlu0 %v2444_v42  ;;  %v2438_v42 = vmul.f32 1.442695, %v2425_v39 }
 0x726   : > { %8296 = vpow2.f32 %v2438_v42  ;;  %v9848_v61 = vpop.eup %8290 }
 0x727   : > { %8298 = vpow2.f32 %v2442_v52  ;;  %v9850_v30 = vpop.eup %8292  ;;  %v2450_v59 = vsel %vm1590_vm5, %v9848_v61, 0.0 }
 0x728   : > { %v2453_v50 = vsel %vm1590_vm5, %v9850_v30, 0.0  ;;  %8300 = vpow2.f32 %v2440_v60 }
 0x72a   : > { %v9854_v5 = vpop.eup %8294 }
 0x72b   : > { %v2456_v15 = vsel %vm1590_vm5, %v9854_v5, 0.0 }
 0x733   : > { %2655 = vrot.lane.b32.xlu1 %v9707_v12, %s11628_s0  ;;  %v9858_v63 = vpop.eup %8296 }
 0x734   : > { %v2459_v52 = vsel %vm1590_vm5, %v9858_v63, 0.0  ;;  %v9864_v16 = vpop.eup %8298 }
 0x735   : > { %v2465_v48 = vsel %vm1590_vm5, %v9864_v16, 0.0  ;;  %v9881_v28 = vpop.eup %8300 }
 0x736   : > { %v2462_v21 = vsel %vm1590_vm5, %v9881_v28, 0.0 }
 0x73a   : > { %2657 = vrot.lane.b32.xlu0 %v9697_v23, %s11628_s0 }
 0x757   : > { %2451 = vadd.xlane.f32.xlu1 %v2450_v59 }
 0x759   : > { %2454 = vadd.xlane.f32.xlu0 %v2453_v50 }
 0x75b   : > { %2457 = vadd.xlane.f32.xlu1 %v2456_v15 }
 0x75d   : > { %2460 = vadd.xlane.f32.xlu0 %v2459_v52 }
 0x761   : > { %2466 = vadd.xlane.f32.xlu0 %v2465_v48 }
 0x76c   : > { %2637 = vrot.lane.b32.xlu1 %v9679_v10, %s11630_s2 }
 0x777   : > { %2653 = vrot.lane.b32.xlu0 %v9679_v10, %s11628_s0 }
 0x77b   : > { %2639 = vrot.lane.b32.xlu0 %v9707_v12, %s11630_s2 }
 0x77f   : > { %2643 = vrot.lane.b32.xlu0 %v9701_v58, %s11630_s2 }
 0x783   : > { %2647 = vrot.lane.b32.xlu0 %v9693_v55, %s11630_s2 }
 0x787   : > { %2651 = vrot.lane.b32.xlu0 %v9683_v22, %s11630_s2 }
 0x790   : > { %2463 = vadd.xlane.f32.xlu1 %v2462_v21 }
 0x7a1   : > { %2641 = vrot.lane.b32.xlu1 %v9697_v23, %s11630_s2 }
 0x7a5   : > { %2645 = vrot.lane.b32.xlu1 %v9689_v6, %s11630_s2 }
 0x7a9   : > { %2649 = vrot.lane.b32.xlu1 %v9685_v27, %s11630_s2 }
 0x7ab   : > { %v2449_v40 = vpop.xlane.xlu1 %2448 }
 0x7ac   : > { %8302 = vrcp.f32 %v2449_v40 }
 0x7ad   : > { %v2446_v34 = vpop.xlane.xlu0 %2445 }
 0x7ae   : > { %8304 = vrcp.f32 %v2446_v34 }
 0x7b9   : > { %v8303_v62 = vpop.eup %8302 }
 0x7ba   : > { %v2477_v59 = vmul.f32 %v8303_v62, %v9836_v51  ;;  %v2658_v51 = vpop.permute.xlu0 %2657 }
 0x7bb   : > { %v8305_v39 = vpop.eup %8304 }
 0x7bc   : > { %v2476_v42 = vmul.f32 %v8305_v39, %v9840_v32 }
 0x7be   : > { %7574 = vmatprep.mubr.msk.f32.mxu1 %vm1590_vm5, %v2476_v42 }
 0x7bf   : > { %7575 = vmatmul.mubr.msk.f32.vlgmr.msra.gmra.mxu1 %vm1590_vm5, %v2477_v59 }
 0x7c0   : > { %7587 = vmatpush3.xpose.msk.msra.mxu1 %vm1563_vm2, %v9767_v57  ;;  %v2656_v57 = vpop.permute.xlu1 %2655 }
 0x7c1   : > { %7588 = vmatprep.subr.msk.mxu1 %vm1563_vm2, %v9834_v31 }
 0x7c4   : > { %7589 = vmatpush3.xpose.msk.msra.mxu1 %vm1563_vm2, %v9834_v31 }
 0x7c5   : > { %7590 = vmatprep.subr.msk.mxu1 %vm1563_vm2, %v9751_v0 }
 0x7c8   : > { %7591 = vmatpush3.xpose.msk.msra.mxu1 %vm1563_vm2, %v9751_v0 }
 0x7c9   : > { %7592 = vmatprep.subr.msk.mxu1 %vm1563_vm2, %v2662_v19 }
 0x7cc   : > { %7593 = vmatpush3.xpose.msk.msra.mxu1 %vm1563_vm2, %v2662_v19 }
 0x7cd   : > { %7594 = vmatprep.subr.msk.mxu1 %vm1563_vm2, %v2660_v37 }
 0x7d0   : > { %7595 = vmatpush3.xpose.msk.msra.mxu1 %vm1563_vm2, %v2660_v37 }
 0x7d1   : > { %7596 = vmatprep.subr.msk.mxu1 %vm1563_vm2, %v2658_v51 }
 0x7d4   : > { %7597 = vmatpush3.xpose.msk.msra.mxu1 %vm1563_vm2, %v2658_v51 }
 0x7d5   : > { %7598 = vmatprep.subr.msk.mxu1 %vm1563_vm2, %v2656_v57 }
 0x7d8   : > { %7599 = vmatpush3.xpose.msk.msra.mxu1 %vm1563_vm2, %v2656_v57  ;;  %v2231_v57 = vld [vmem:[%s11442_s10] sm:$0xff] }
 0x7e0   : > { %v2452_v31 = vpop.xlane.xlu1 %2451 }
 0x7e1   : > { %8306 = vrcp.f32 %v2452_v31 }
 0x7e2   : > { %v2455_v0 = vpop.xlane.xlu0 %2454 }
 0x7e3   : > { %8308 = vrcp.f32 %v2455_v0 }
 0x7e4   : > { %v2458_v32 = vpop.xlane.xlu1 %2457 }
 0x7e5   : > { %8310 = vrcp.f32 %v2458_v32 }
 0x7e6   : > { %v2461_v50 = vpop.xlane.xlu0 %2460 }
 0x7e7   : > { %8312 = vrcp.f32 %v2461_v50 }
 0x7e8   : > { %v2638_v34 = vpop.permute.xlu1 %2637 }
 0x7ea   : > { %v2467_v15 = vpop.xlane.xlu0 %2466 }
 0x7eb   : > { %8314 = vrcp.f32 %v2467_v15 }
 0x7ee   : > { %v8307_v52 = vpop.eup %8306  ;;  %v2654_v48 = vpop.permute.xlu0 %2653 }
 0x7ef   : > { %7600 = vmatprep.subr.msk.mxu1 %vm1563_vm2, %v2654_v48  ;;  %v2478_v46 = vmul.f32 %v8307_v52, %v9848_v61  ;;  %v2232_v61 = vld [vmem:[%s11442_s10 + $0x8] sm:$0xff] }
 0x7f0   : > { %v8309_v7 = vpop.eup %8308  ;;  %7601 = vmatpush3.xpose.msk.msra.mxu1 %vm1563_vm2, %v2654_v48 }
 0x7f1   : > { %7577 = vmatprep.mubr.msk.f32.mxu1 %vm1590_vm5, %v2478_v46  ;;  %v2479_v60 = vmul.f32 %v8309_v7, %v9850_v30  ;;  %7658 = vmatprep.subr.mxu1 %v2232_v61 }
 0x7f2   : > { %v8311_v21 = vpop.eup %8310  ;;  %v2640_v42 = vpop.permute.xlu0 %2639 }
 0x7f3   : > { %7578 = vmatmul.mubr.msk.f32.gmra.mxu1 %vm1590_vm5, %v2479_v60  ;;  %v2480_v37 = vmul.f32 %v8311_v21, %v9854_v5 }
 0x7f4   : > { %v8313_v19 = vpop.eup %8312 }
 0x7f5   : > { %7580 = vmatprep.mubr.msk.f32.mxu1 %vm1590_vm5, %v2480_v37  ;;  %v2481_v40 = vmul.f32 %v8313_v19, %v9858_v63 }
 0x7f6   : > { %v2644_v51 = vpop.permute.xlu0 %2643 }
 0x7f7   : > { %7581 = vmatmul.mubr.msk.f32.gmra.mxu1 %vm1590_vm5, %v2481_v40 }
 0x7f8   : > { %v8315_v62 = vpop.eup %8314 }
 0x7f9   : > { %v2483_v59 = vmul.f32 %v8315_v62, %v9864_v16 }
 0x7fa   : > { %v2648_v16 = vpop.permute.xlu0 %2647 }
 0x7fe   : > { %v2652_v0 = vpop.permute.xlu0 %2651 }
 0x819   : > { %v2464_v30 = vpop.xlane.xlu1 %2463 }
 0x81a   : > { %8316 = vrcp.f32 %v2464_v30 }
 0x81d   : > { %v2642_v63 = vpop.permute.xlu1 %2641 }
 0x827   : > { %v8317_v39 = vpop.eup %8316 }
 0x828   : > { %v2482_v5 = vmul.f32 %v8317_v39, %v9881_v28  ;;  %v2646_v28 = vpop.permute.xlu1 %2645 }
 0x82a   : > { %7583 = vmatprep.mubr.msk.f32.mxu1 %vm1590_vm5, %v2482_v5 }
 0x82b   : > { %7584 = vmatmul.mubr.msk.f32.gmra.mxu1 %vm1590_vm5, %v2483_v59 }
 0x82c   : > { %7602 = vmatprep.mubr.msk.f32.mxu1 %vm1563_vm2, %v2638_v34  ;;  %v2650_v31 = vpop.permute.xlu1 %2649 }
 0x82f   : > { %7603 = vmatmul.mubr.msk.f32.vlgmr.msra.gmra.mxu1 %vm1563_vm2, %v2640_v42 }
 0x830   : > { %7605 = vmatprep.mubr.msk.f32.mxu1 %vm1563_vm2, %v2642_v63  ;;  %7659 = vmatpush3.msra.mxu1 %v2232_v61 }
 0x831   : > { %7660 = vmatprep.subr.mxu1 %v2231_v57 }
 0x832   : > { %7661 = vmatpush3.msra.mxu1 %v2231_v57 }
 0x833   : > { %7606 = vmatmul.mubr.msk.f32.gmra.mxu1 %vm1563_vm2, %v2644_v51 }
 0x834   : > { %7608 = vmatprep.mubr.msk.f32.mxu1 %vm1563_vm2, %v2646_v28 }
 0x837   : > { %7609 = vmatmul.mubr.msk.f32.gmra.mxu1 %vm1563_vm2, %v2648_v16 }
 0x838   : > { %7611 = vmatprep.mubr.msk.f32.mxu1 %vm1563_vm2, %v2650_v31 }
 0x83b   : > { %7612 = vmatmul.mubr.msk.f32.gmra.mxu1 %vm1563_vm2, %v2652_v0 }
 0x87f   : > { %v7576_v32 = vpop.f32.mrf.mxu1 }
 0x881   : > { %v2598_v50 = vpop.f32.mrf.mxu1 }
 0x882   : > { %7662 = vmatprep.mubr.msk.f32.mxu1 %vm1563_vm2, %v2598_v50 }
 0x883   : > { %7663 = vmatmul.mubr.msk.f32.vlgmr.msra.gmra.mxu1 %vm1563_vm2, %v7576_v32 }
 0x8b3   : > { %v7579_v15 = vpop.f32.mrf.mxu1 }
 0x8b5   : > { %v2608_v52 = vpop.f32.mrf.mxu1 }
 0x8b6   : > { %7665 = vmatprep.mubr.msk.f32.mxu1 %vm1563_vm2, %v2608_v52 }
 0x8b7   : > { %v7582_v48 = vpop.f32.mrf.mxu1  ;;  %7666 = vmatmul.mubr.msk.f32.gmra.mxu1 %vm1563_vm2, %v7579_v15 }
 0x8b9   : > { %v2618_v46 = vpop.f32.mrf.mxu1 }
 0x8ba   : > { %7668 = vmatprep.mubr.msk.f32.mxu1 %vm1563_vm2, %v2618_v46 }
 0x8bb   : > { %7669 = vmatmul.mubr.msk.f32.gmra.mxu1 %vm1563_vm2, %v7582_v48 }
 0x8eb   : > { %v7585_v7 = vpop.f32.mrf.mxu1 }
 0x8ed   : > { %v2628_v60 = vpop.f32.mrf.mxu1 }
 0x8ee   : > { %7671 = vmatprep.mubr.msk.f32.mxu1 %vm1563_vm2, %v2628_v60 }
 0x8ef   : > { %v7604_v21 = vpop.f32.mrf.mxu1  ;;  %7672 = vmatmul.mubr.msk.f32.gmra.mxu1 %vm1563_vm2, %v7585_v7 }
 0x8f0   : > { %v2773_v37 = vadd.f32 %v7604_v21, %v9774_v18 }
 0x8f1   : > { %v2767_v19 = vpop.f32.mrf.mxu1 }
 0x8f2   : > { %v2768_v40 = vadd.f32 %v2767_v19, %v9779_v53  ;;  %v2809_v61 = vsel %vm1590_vm5, %v2773_v37, -inf }
 0x8f3   : > { %2810 = vmax.xlane.f32.xlu0 %v2809_v61  ;;  %v7607_v34 = vpop.f32.mrf.mxu1 }
 0x8f4   : > { %v2783_v30 = vadd.f32 %v7607_v34, %v9785_v13  ;;  %v2806_v62 = vsel %vm1590_vm5, %v2768_v40, -inf }
 0x8f5   : > { %2807 = vmax.xlane.f32.xlu1 %v2806_v62  ;;  %v2777_v39 = vpop.f32.mrf.mxu1 }
 0x8f6   : > { %v2778_v42 = vadd.f32 %v2777_v39, %v9792_v4  ;;  %v2815_v18 = vsel %vm1590_vm5, %v2783_v30, -inf }
 0x8f7   : > { %v7610_v5 = vpop.f32.mrf.mxu1 }
 0x8f8   : > { %v2793_v59 = vadd.f32 %v7610_v5, %v9799_v20  ;;  %v2812_v63 = vsel %vm1590_vm5, %v2778_v42, -inf }
 0x8f9   : > { %2816 = vmax.xlane.f32.xlu1 %v2815_v18  ;;  %2813 = vmax.xlane.f32.xlu0 %v2812_v63  ;;  %v2787_v53 = vpop.f32.mrf.mxu1 }
 0x8fa   : > { %v2788_v51 = vadd.f32 %v2787_v53, %v9805_v41  ;;  %v2821_v28 = vsel %vm1590_vm5, %v2793_v59, -inf }
 0x8fb   : > { %v7613_v57 = vpop.f32.mrf.mxu1 }
 0x8fc   : > { %v2803_v13 = vadd.f32 %v7613_v57, %v9813_v29  ;;  %v2818_v16 = vsel %vm1590_vm5, %v2788_v51, -inf }
 0x8fd   : > { %2822 = vmax.xlane.f32.xlu1 %v2821_v28  ;;  %2819 = vmax.xlane.f32.xlu0 %v2818_v16  ;;  %v2797_v4 = vpop.f32.mrf.mxu1 }
 0x8fe   : > { %v2798_v20 = vadd.f32 %v2797_v4, %v9819_v11  ;;  %v2827_v31 = vsel %vm1590_vm5, %v2803_v13, -inf }
 0x900   : > { %v2824_v0 = vsel %vm1590_vm5, %v2798_v20, -inf }
 0x901   : > { %2828 = vmax.xlane.f32.xlu1 %v2827_v31  ;;  %2825 = vmax.xlane.f32.xlu0 %v2824_v0 }
 0x912   : > { %2906 = vrot.lane.b32.xlu1 %v9685_v27, %s11631_s6 }
 0x916   : > { %2904 = vrot.lane.b32.xlu1 %v9693_v55, %s11631_s6 }
 0x917   : > { %2908 = vrot.lane.b32.xlu0 %v9683_v22, %s11631_s6 }
 0x91a   : > { %2900 = vrot.lane.b32.xlu1 %v9701_v58, %s11631_s6 }
 0x91b   : > { %2902 = vrot.lane.b32.xlu0 %v9689_v6, %s11631_s6 }
 0x91f   : > { %2898 = vrot.lane.b32.xlu0 %v9697_v23, %s11631_s6 }
 0x97c   : > { %v2811_v29 = vpop.xlane.xlu0 %2810 }
 0x97d   : > { %v2831_v11 = vsub.f32 %v2773_v37, %v2811_v29 }
 0x97e   : > { %v2808_v41 = vpop.xlane.xlu1 %2807 }
 0x97f   : > { %v2840_v32 = vmul.f32 1.442695, %v2831_v11  ;;  %v2830_v27 = vsub.f32 %v2768_v40, %v2808_v41 }
 0x981   : > { %8318 = vpow2.f32 %v2840_v32  ;;  %v2838_v50 = vmul.f32 1.442695, %v2830_v27 }
 0x982   : > { %v2814_v55 = vpop.xlane.xlu0 %2813  ;;  %v2817_v15 = vpop.xlane.xlu1 %2816 }
 0x983   : > { %8320 = vpow2.f32 %v2838_v50  ;;  %v2832_v22 = vsub.f32 %v2778_v42, %v2814_v55  ;;  %v2833_v52 = vsub.f32 %v2783_v30, %v2817_v15 }
 0x985   : > { %v2842_v48 = vmul.f32 1.442695, %v2832_v22  ;;  %v2844_v58 = vmul.f32 1.442695, %v2833_v52 }
 0x986   : > { %v2820_v46 = vpop.xlane.xlu0 %2819  ;;  %v2823_v7 = vpop.xlane.xlu1 %2822 }
 0x987   : > { %8322 = vpow2.f32 %v2842_v48  ;;  %v2834_v6 = vsub.f32 %v2788_v51, %v2820_v46  ;;  %v2835_v60 = vsub.f32 %v2793_v59, %v2823_v7 }
 0x988   : > { %8324 = vpow2.f32 %v2844_v58 }
 0x989   : > { %v2846_v23 = vmul.f32 1.442695, %v2834_v6  ;;  %v2848_v21 = vmul.f32 1.442695, %v2835_v60 }
 0x98a   : > { %v2826_v37 = vpop.xlane.xlu0 %2825  ;;  %v2829_v19 = vpop.xlane.xlu1 %2828 }
 0x98b   : > { %8326 = vpow2.f32 %v2846_v23  ;;  %v2836_v40 = vsub.f32 %v2798_v20, %v2826_v37  ;;  %v2837_v61 = vsub.f32 %v2803_v13, %v2829_v19  ;;  %v2234_v37 = vld [vmem:[%s11442_s10 + $0x18] sm:$0xff] }
 0x98c   : > { %8328 = vpow2.f32 %v2848_v21 }
 0x98d   : > { %v2850_v34 = vmul.f32 1.442695, %v2836_v40  ;;  %v2852_v62 = vmul.f32 1.442695, %v2837_v61 }
 0x98e   : > { %v9977_v39 = vpop.eup %8318  ;;  %v2909_v30 = vpop.permute.xlu0 %2908 }
 0x98f   : > { %v2907_v42 = vpop.permute.xlu1 %2906  ;;  %8330 = vpow2.f32 %v2850_v34  ;;  %7614 = vmatprep.subr.mxu0 %v2909_v30  ;;  %v2857_v5 = vsel %vm1590_vm5, %v9977_v39, 0.0 }
 0x990   : > { %v8321_v59 = vpop.eup %8320  ;;  %8332 = vpow2.f32 %v2852_v62  ;;  %2858 = vadd.xlane.f32.xlu1 %v2857_v5  ;;  %7615 = vmatpush3.msra.mxu0 %v2909_v30 }
 0x991   : > { %7616 = vmatprep.subr.mxu0 %v2907_v42  ;;  %v2854_v18 = vsel %vm1590_vm5, %v8321_v59, 0.0 }
 0x992   : > { %v2903_v63 = vpop.permute.xlu0 %2902  ;;  %2855 = vadd.xlane.f32.xlu0 %v2854_v18  ;;  %7617 = vmatpush3.msra.mxu0 %v2907_v42 }
 0x993   : > { %v2905_v53 = vpop.permute.xlu1 %2904 }
 0x994   : > { %7618 = vmatprep.subr.mxu0 %v2905_v53  ;;  %v8323_v51 = vpop.eup %8322 }
 0x995   : > { %7619 = vmatpush3.msra.mxu0 %v2905_v53  ;;  %v9982_v57 = vpop.eup %8324  ;;  %v2860_v13 = vsel %vm1590_vm5, %v8323_v51, 0.0 }
 0x996   : > { %7620 = vmatprep.subr.mxu0 %v2903_v63  ;;  %2861 = vadd.xlane.f32.xlu0 %v2860_v13  ;;  %v2863_v28 = vsel %vm1590_vm5, %v9982_v57, 0.0  ;;  %v2899_v20 = vpop.permute.xlu0 %2898 }
 0x997   : > { %7621 = vmatpush3.msra.mxu0 %v2903_v63  ;;  %v2901_v16 = vpop.permute.xlu1 %2900  ;;  %2864 = vadd.xlane.f32.xlu1 %v2863_v28  ;;  %v2233_v63 = vld [vmem:[%s11442_s10 + $0x10] sm:$0xff] }
 0x998   : > { %7622 = vmatprep.subr.mxu0 %v2901_v16  ;;  %v8327_v4 = vpop.eup %8326 }
 0x999   : > { %7623 = vmatpush3.msra.mxu0 %v2901_v16  ;;  %v8329_v31 = vpop.eup %8328  ;;  %v2866_v0 = vsel %vm1590_vm5, %v8327_v4, 0.0 }
 0x99a   : > { %7624 = vmatprep.subr.mxu0 %v2899_v20  ;;  %2867 = vadd.xlane.f32.xlu0 %v2866_v0  ;;  %v2869_v29 = vsel %vm1590_vm5, %v8329_v31, 0.0 }
 0x99b   : > { %7625 = vmatpush3.msra.mxu0 %v2899_v20  ;;  %2870 = vadd.xlane.f32.xlu1 %v2869_v29 }
 0x99c   : > { %v8331_v11 = vpop.eup %8330 }
 0x99d   : > { %v8333_v41 = vpop.eup %8332  ;;  %v2872_v32 = vsel %vm1590_vm5, %v8331_v11, 0.0 }
 0x99e   : > { %2873 = vadd.xlane.f32.xlu0 %v2872_v32  ;;  %v2875_v27 = vsel %vm1590_vm5, %v8333_v41, 0.0 }
 0x99f   : > { %2876 = vadd.xlane.f32.xlu1 %v2875_v27  ;;  %v6987_v27 = vld [vmem:[%s11443_s11] ss:$0 sm:$0xff] }
 0x9b0   : > { %2896 = vrot.lane.b32.xlu1 %v9707_v12, %s11631_s6 }
 0x9b4   : > { %2894 = vrot.lane.b32.xlu0 %v9679_v10, %s11631_s6 }
 0xa19   : > { %v2859_v55 = vpop.xlane.xlu1 %2858 }
 0xa1b   : > { %v2856_v50 = vpop.xlane.xlu0 %2855 }
 0xa1c   : > { %8334 = vrcp.f32 %v2856_v50 }
 0xa1d   : > { %8336 = vrcp.f32 %v2859_v55 }
 0xa1f   : > { %v2862_v15 = vpop.xlane.xlu0 %2861 }
 0xa20   : > { %8338 = vrcp.f32 %v2862_v15  ;;  %v2865_v22 = vpop.xlane.xlu1 %2864 }
 0xa21   : > { %8340 = vrcp.f32 %v2865_v22 }
 0xa23   : > { %v2868_v52 = vpop.xlane.xlu0 %2867 }
 0xa24   : > { %8342 = vrcp.f32 %v2868_v52  ;;  %v2871_v48 = vpop.xlane.xlu1 %2870 }
 0xa25   : > { %8344 = vrcp.f32 %v2871_v48 }
 0xa27   : > { %v2874_v58 = vpop.xlane.xlu0 %2873 }
 0xa28   : > { %8346 = vrcp.f32 %v2874_v58  ;;  %v2877_v46 = vpop.xlane.xlu1 %2876 }
 0xa29   : > { %v8335_v7 = vpop.eup %8334  ;;  %8348 = vrcp.f32 %v2877_v46 }
 0xa2a   : > { %v2886_v12 = vmul.f32 %v8335_v7, %v8321_v59  ;;  %v8337_v6 = vpop.eup %8336 }
 0xa2b   : > { %v2895_v23 = vpop.permute.xlu0 %2894  ;;  %v2887_v19 = vmul.f32 %v8337_v6, %v9977_v39 }
 0xa2c   : > { %v2897_v10 = vpop.permute.xlu1 %2896  ;;  %7630 = vmatprep.mubr.msk.f32.mxu0 %vm1590_vm5, %v2886_v12 }
 0xa2d   : > { %v8339_v60 = vpop.eup %8338  ;;  %7626 = vmatprep.subr.mxu0 %v2897_v10 }
 0xa2e   : > { %7627 = vmatpush3.msra.mxu0 %v2897_v10  ;;  %v2888_v21 = vmul.f32 %v8339_v60, %v8323_v51  ;;  %v8341_v40 = vpop.eup %8340 }
 0xa2f   : > { %7628 = vmatprep.subr.mxu0 %v2895_v23  ;;  %v2889_v62 = vmul.f32 %v8341_v40, %v9982_v57 }
 0xa30   : > { %7629 = vmatpush3.msra.mxu0 %v2895_v23 }
 0xa31   : > { %v8343_v61 = vpop.eup %8342  ;;  %7631 = vmatmul.mubr.msk.f32.vlgmr.msra.gmra.mxu0 %vm1590_vm5, %v2887_v19  ;;  %7642 = vmatprep.subr.mxu0 %v2234_v37 }
 0xa32   : > { %7633 = vmatprep.mubr.msk.f32.mxu0 %vm1590_vm5, %v2888_v21  ;;  %v2890_v34 = vmul.f32 %v8343_v61, %v8327_v4  ;;  %7643 = vmatpush3.msra.mxu0 %v2234_v37  ;;  %v8345_v30 = vpop.eup %8344 }
 0xa33   : > { %v2891_v5 = vmul.f32 %v8345_v30, %v8329_v31  ;;  %7644 = vmatprep.subr.mxu0 %v2233_v63  ;;  %v7664_v31 = vpop.f32.mrf.mxu1 }
 0xa34   : > { %7645 = vmatpush3.msra.mxu0 %v2233_v63 }
 0xa35   : > { %v8347_v42 = vpop.eup %8346  ;;  %7634 = vmatmul.mubr.msk.f32.gmra.mxu0 %vm1590_vm5, %v2889_v62  ;;  %v3266_v0 = vpop.f32.mrf.mxu1 }
 0xa36   : > { %7636 = vmatprep.mubr.msk.f32.mxu0 %vm1590_vm5, %v2890_v34  ;;  %v2892_v39 = vmul.f32 %v8347_v42, %v8331_v11  ;;  %v8349_v59 = vpop.eup %8348 }
 0xa37   : > { %v2893_v18 = vmul.f32 %v8349_v59, %v8333_v41  ;;  %v7667_v29 = vpop.f32.mrf.mxu1 }
 0xa39   : > { %7637 = vmatmul.mubr.msk.f32.gmra.mxu0 %vm1590_vm5, %v2891_v5  ;;  %v3276_v11 = vpop.f32.mrf.mxu1 }
 0xa3a   : > { %7639 = vmatprep.mubr.msk.f32.mxu0 %vm1590_vm5, %v2892_v39 }
 0xa3b   : > { %v7670_v22 = vpop.f32.mrf.mxu1 }
 0xa3d   : > { %7640 = vmatmul.mubr.msk.f32.gmra.mxu0 %vm1590_vm5, %v2893_v18  ;;  %v3286_v23 = vpop.f32.mrf.mxu1 }
 0xa3f   : > { %v7673_v40 = vpop.f32.mrf.mxu1 }
 0xa41   : > { %v3296_v18 = vpop.f32.mrf.mxu1 }
 0xaf1   : > { %v7632_v53 = vpop.f32.mrf.mxu0 }
 0xaf3   : > { %v3008_v51 = vpop.f32.mrf.mxu0 }
 0xaf4   : > { %7646 = vmatprep.mubr.msk.f32.mxu0 %vm1563_vm2, %v3008_v51 }
 0xaf5   : > { %v7635_v57 = vpop.f32.mrf.mxu0  ;;  %7647 = vmatmul.mubr.msk.f32.vlgmr.msra.gmra.mxu0 %vm1563_vm2, %v7632_v53 }
 0xaf7   : > { %v3018_v13 = vpop.f32.mrf.mxu0 }
 0xaf8   : > { %7649 = vmatprep.mubr.msk.f32.mxu0 %vm1563_vm2, %v3018_v13 }
 0xaf9   : > { %v7638_v28 = vpop.f32.mrf.mxu0  ;;  %7650 = vmatmul.mubr.msk.f32.gmra.mxu0 %vm1563_vm2, %v7635_v57 }
 0xafb   : > { %v3028_v16 = vpop.f32.mrf.mxu0 }
 0xafc   : > { %7652 = vmatprep.mubr.msk.f32.mxu0 %vm1563_vm2, %v3028_v16 }
 0xafd   : > { %v7641_v4 = vpop.f32.mrf.mxu0  ;;  %7653 = vmatmul.mubr.msk.f32.gmra.mxu0 %vm1563_vm2, %v7638_v28 }
 0xaff   : > { %v3038_v20 = vpop.f32.mrf.mxu0 }
 0xb00   : > { %7655 = vmatprep.mubr.msk.f32.mxu0 %vm1563_vm2, %v3038_v20 }
 0xb01   : > { %7656 = vmatmul.mubr.msk.f32.gmra.mxu0 %vm1563_vm2, %v7641_v4 }
 0xbb5   : > { %v7648_v41 = vpop.f32.mrf.mxu0 }
 0xbb6   : > { %v3272_v32 = vadd.f32 %v7664_v31, %v7648_v41 }
 0xbb7   : > { %v3137_v50 = vpop.f32.mrf.mxu0 }
 0xbb8   : > { %v3306_v55 = vadd.f32 %v9562_v2, %v3272_v32  ;;  %v3267_v15 = vadd.f32 %v3266_v0, %v3137_v50 }
 0xbb9   : > { %v7651_v52 = vpop.f32.mrf.mxu0 }
 0xbba   : > { %v10023_v48 = vadd.f32 %v6987_v27, %v3306_v55  ;;  %v3305_v58 = vadd.f32 %v3267_v15, %v9566_v45  ;;  %v3282_v46 = vadd.f32 %v7667_v29, %v7651_v52 }
 0xbbb   : > { %v3147_v7 = vpop.f32.mrf.mxu0 }
 0xbbc   : > { %v10026_v12 = vadd.f32 %v6987_v27, %v3305_v58  ;;  %v3308_v6 = vadd.f32 %v9570_v3, %v3282_v46  ;;  %v3277_v10 = vadd.f32 %v3276_v11, %v3147_v7  ;;  %v3333_v60 = vsel %vm1572_vm3, %v10023_v48, 0.0 }
 0xbbd   : > { %3334 = vadd.xlane.f32.xlu0 %v3333_v60  ;;  %v7654_v2 = vpop.f32.mrf.mxu0 }
 0xbbe   : > { %v10031_v21 = vadd.f32 %v6987_v27, %v3308_v6  ;;  %v3307_v37 = vadd.f32 %v3277_v10, %v9574_v38  ;;  %v3292_v19 = vadd.f32 %v7670_v22, %v7654_v2  ;;  %v3330_v45 = vsel %vm1572_vm3, %v10026_v12, 0.0 }
 0xbbf   : > { %3331 = vadd.xlane.f32.xlu1 %v3330_v45  ;;  %v3157_v61 = vpop.f32.mrf.mxu0 }
 0xbc0   : > { %v10036_v34 = vadd.f32 %v6987_v27, %v3307_v37  ;;  %v3310_v3 = vadd.f32 %v9578_v24, %v3292_v19  ;;  %v3287_v62 = vadd.f32 %v3286_v23, %v3157_v61  ;;  %v3339_v42 = vsel %vm1572_vm3, %v10031_v21, 0.0 }
 0xbc1   : > { %v7657_v30 = vpop.f32.mrf.mxu0 }
 0xbc2   : > { %v10041_v39 = vadd.f32 %v6987_v27, %v3310_v3  ;;  %v3309_v38 = vadd.f32 %v3287_v62, %v9582_v49  ;;  %v3302_v5 = vadd.f32 %v7673_v40, %v7657_v30  ;;  %v3336_v59 = vsel %vm1572_vm3, %v10036_v34, 0.0 }
 0xbc3   : > { %3340 = vadd.xlane.f32.xlu1 %v3339_v42  ;;  %3337 = vadd.xlane.f32.xlu0 %v3336_v59  ;;  %v3167_v63 = vpop.f32.mrf.mxu0 }
 0xbc4   : > { %v10046_v53 = vadd.f32 %v6987_v27, %v3309_v38  ;;  %v3312_v24 = vadd.f32 %v9586_v47, %v3302_v5  ;;  %v3297_v51 = vadd.f32 %v3296_v18, %v3167_v63  ;;  %v3345_v49 = vsel %vm1572_vm3, %v10041_v39, 0.0 }
 0xbc6   : > { %v10049_v57 = vadd.f32 %v6987_v27, %v3312_v24  ;;  %v3311_v13 = vadd.f32 %v3297_v51, %v9590_v33  ;;  %v3342_v28 = vsel %vm1572_vm3, %v10046_v53, 0.0 }
 0xbc7   : > { %3346 = vadd.xlane.f32.xlu1 %v3345_v49  ;;  %3343 = vadd.xlane.f32.xlu0 %v3342_v28  ;;  %v3465_v28 = vld [vmem:[%s11446_s14 + $0x18] sm:$0xff] }
 0xbc8   : > { %v10056_v16 = vadd.f32 %v6987_v27, %v3311_v13  ;;  %v3351_v4 = vsel %vm1572_vm3, %v10049_v57, 0.0  ;;  %7674 = vmatprep.subr.mxu0 %v3465_v28 }
 0xbc9   : > { %7675 = vmatpush3.msra.mxu0 %v3465_v28 }
 0xbca   : > { %v3348_v47 = vsel %vm1572_vm3, %v10056_v16, 0.0 }
 0xbcb   : > { %3352 = vadd.xlane.f32.xlu1 %v3351_v4  ;;  %3349 = vadd.xlane.f32.xlu0 %v3348_v47  ;;  %v3464_v4 = vld [vmem:[%s11446_s14 + $0x10] sm:$0xff]  ;;  %v3463_v47 = vld [vmem:[%s11446_s14 + $0x8] sm:$0xff] }
 0xbcc   : > { %7676 = vmatprep.subr.mxu0 %v3464_v4 }
 0xbcd   : > { %7677 = vmatpush3.msra.mxu0 %v3464_v4 }
 0xbce   : > { %7678 = vmatprep.subr.mxu0 %v3463_v47 }
 0xbcf   : > { %7679 = vmatpush3.msra.mxu0 %v3463_v47 }
 0xc46   : > { %v3335_v20 = vpop.xlane.xlu0 %3334 }
 0xc47   : > { %v3355_v33 = vmul.f32 0.03125, %v3335_v20  ;;  %v3462_v20 = vld [vmem:[%s11446_s14] sm:$0xff] }
 0xc48   : > { %v3332_v31 = vpop.xlane.xlu1 %3331  ;;  %7680 = vmatprep.subr.mxu0 %v3462_v20 }
 0xc49   : > { %v10063_v0 = vsub.f32 %v10023_v48, %v3355_v33  ;;  %v3354_v29 = vmul.f32 0.03125, %v3332_v31  ;;  %7681 = vmatpush3.msra.mxu0 %v3462_v20 }
 0xc4b   : > { %v10066_v11 = vsub.f32 %v10026_v12, %v3354_v29  ;;  %v3371_v41 = vmul.f32 %v10063_v0, %v10063_v0 }
 0xc4c   : > { %v3341_v32 = vpop.xlane.xlu1 %3340  ;;  %v3338_v27 = vpop.xlane.xlu0 %3337 }
 0xc4d   : > { %v3357_v50 = vmul.f32 0.03125, %v3341_v32  ;;  %v3356_v55 = vmul.f32 0.03125, %v3338_v27  ;;  %v3381_v15 = vsel %vm1572_vm3, %v3371_v41, 0.0  ;;  %v3370_v22 = vmul.f32 %v10066_v11, %v10066_v11 }
 0xc4e   : > { %3382 = vadd.xlane.f32.xlu1 %v3381_v15 }
 0xc4f   : > { %v10074_v52 = vsub.f32 %v10031_v21, %v3357_v50  ;;  %v10077_v58 = vsub.f32 %v10036_v34, %v3356_v55  ;;  %v3378_v46 = vsel %vm1572_vm3, %v3370_v22, 0.0 }
 0xc50   : > { %v3347_v7 = vpop.xlane.xlu1 %3346  ;;  %v3344_v6 = vpop.xlane.xlu0 %3343  ;;  %3379 = vadd.xlane.f32.xlu0 %v3378_v46 }
 0xc51   : > { %v3359_v10 = vmul.f32 0.03125, %v3347_v7  ;;  %v3358_v60 = vmul.f32 0.03125, %v3344_v6  ;;  %v3373_v23 = vmul.f32 %v10074_v52, %v10074_v52  ;;  %v3372_v2 = vmul.f32 %v10077_v58, %v10077_v58 }
 0xc53   : > { %v10085_v37 = vsub.f32 %v10041_v39, %v3359_v10  ;;  %v10088_v19 = vsub.f32 %v10046_v53, %v3358_v60  ;;  %v3387_v45 = vsel %vm1572_vm3, %v3373_v23, 0.0  ;;  %v3384_v40 = vsel %vm1572_vm3, %v3372_v2, 0.0 }
 0xc54   : > { %3388 = vadd.xlane.f32.xlu1 %v3387_v45  ;;  %v3353_v61 = vpop.xlane.xlu1 %3352  ;;  %3385 = vadd.xlane.f32.xlu0 %v3384_v40  ;;  %v3350_v3 = vpop.xlane.xlu0 %3349 }
 0xc55   : > { %v3361_v62 = vmul.f32 0.03125, %v3353_v61  ;;  %v3360_v30 = vmul.f32 0.03125, %v3350_v3  ;;  %v3375_v42 = vmul.f32 %v10085_v37, %v10085_v37  ;;  %v3374_v38 = vmul.f32 %v10088_v19, %v10088_v19 }
 0xc57   : > { %v10097_v5 = vsub.f32 %v10049_v57, %v3361_v62  ;;  %v10100_v59 = vsub.f32 %v10056_v16, %v3360_v30  ;;  %v3393_v18 = vsel %vm1572_vm3, %v3375_v42, 0.0  ;;  %v3390_v63 = vsel %vm1572_vm3, %v3374_v38, 0.0 }
 0xc58   : > { %3394 = vadd.xlane.f32.xlu1 %v3393_v18  ;;  %3391 = vadd.xlane.f32.xlu0 %v3390_v63  ;;  %v6988_v18 = vld [vmem:[%s11444_s12] ss:$0 sm:$0xff] }
 0xc59   : > { %v3377_v24 = vmul.f32 %v10097_v5, %v10097_v5  ;;  %v3376_v51 = vmul.f32 %v10100_v59, %v10100_v59 }
 0xc5b   : > { %v3399_v13 = vsel %vm1572_vm3, %v3377_v24, 0.0  ;;  %v3396_v49 = vsel %vm1572_vm3, %v3376_v51, 0.0 }
 0xc5c   : > { %3400 = vadd.xlane.f32.xlu1 %v3399_v13  ;;  %3397 = vadd.xlane.f32.xlu0 %v3396_v49  ;;  %v6989_v49 = vld [vmem:[%s11445_s13] ss:$0 sm:$0xff] }
 0xcd7   : > { %v3383_v33 = vpop.xlane.xlu1 %3382 }
 0xcd8   : > { %v3403_v31 = vmul.f32 0.03125, %v3383_v33 }
 0xcd9   : > { %v3380_v29 = vpop.xlane.xlu0 %3379 }
 0xcda   : > { %v3411_v41 = vadd.f32 1e-05, %v3403_v31  ;;  %v3402_v32 = vmul.f32 0.03125, %v3380_v29 }
 0xcdc   : > { %8350 = vrsqrt.f32 %v3411_v41  ;;  %v3410_v27 = vadd.f32 1e-05, %v3402_v32 }
 0xcdd   : > { %v3389_v50 = vpop.xlane.xlu1 %3388  ;;  %v3386_v55 = vpop.xlane.xlu0 %3385 }
 0xcde   : > { %8352 = vrsqrt.f32 %v3410_v27  ;;  %v3405_v15 = vmul.f32 0.03125, %v3389_v50  ;;  %v3404_v22 = vmul.f32 0.03125, %v3386_v55 }
 0xce0   : > { %v3413_v46 = vadd.f32 1e-05, %v3405_v15  ;;  %v3412_v7 = vadd.f32 1e-05, %v3404_v22 }
 0xce1   : > { %v3395_v6 = vpop.xlane.xlu1 %3394  ;;  %v3392_v10 = vpop.xlane.xlu0 %3391 }
 0xce2   : > { %8354 = vrsqrt.f32 %v3413_v46  ;;  %v3407_v60 = vmul.f32 0.03125, %v3395_v6  ;;  %v3406_v23 = vmul.f32 0.03125, %v3392_v10 }
 0xce3   : > { %8356 = vrsqrt.f32 %v3412_v7 }
 0xce4   : > { %v3415_v2 = vadd.f32 1e-05, %v3407_v60  ;;  %v3414_v45 = vadd.f32 1e-05, %v3406_v23 }
 0xce5   : > { %v3401_v40 = vpop.xlane.xlu1 %3400  ;;  %v3398_v61 = vpop.xlane.xlu0 %3397 }
 0xce6   : > { %8358 = vrsqrt.f32 %v3415_v2  ;;  %v3409_v3 = vmul.f32 0.03125, %v3401_v40  ;;  %v3408_v62 = vmul.f32 0.03125, %v3398_v61  ;;  %v3662_v40 = vld [vmem:[%s11448_s16 + $0x20] sm:$0xff]  ;;  %v3661_v61 = vld [vmem:[%s11448_s16 + $0x18] sm:$0xff] }
 0xce7   : > { %8360 = vrsqrt.f32 %v3414_v45  ;;  %v3665_v45 = vld [vmem:[%s11448_s16 + $0x38] sm:$0xff] }
 0xce8   : > { %v3417_v30 = vadd.f32 1e-05, %v3409_v3  ;;  %v3416_v42 = vadd.f32 1e-05, %v3408_v62  ;;  %7694 = vmatprep.subr.mxu1 %v3665_v45  ;;  %v3660_v3 = vld [vmem:[%s11448_s16 + $0x10] sm:$0xff]  ;;  %v3659_v62 = vld [vmem:[%s11448_s16 + $0x8] sm:$0xff] }
 0xce9   : > { %v8351_v38 = vpop.eup %8350  ;;  %7695 = vmatpush3.msra.mxu1 %v3665_v45 }
 0xcea   : > { %v3427_v63 = vmul.f32 %v8351_v38, %v10063_v0  ;;  %8362 = vrsqrt.f32 %v3417_v30  ;;  %v3658_v30 = vld [vmem:[%s11448_s16] sm:$0xff] }
 0xceb   : > { %v8353_v24 = vpop.eup %8352  ;;  %8364 = vrsqrt.f32 %v3416_v42  ;;  %v6990_v42 = vld [vmem:[%s11447_s15] ss:$0 sm:$0xff] }
 0xcec   : > { %v3426_v51 = vmul.f32 %v8353_v24, %v10066_v11  ;;  %v3441_v13 = vmul.f32 %v6988_v18, %v3427_v63 }
 0xcee   : > { %v3440_v28 = vmul.f32 %v6988_v18, %v3426_v51  ;;  %v3455_v31 = vadd.f32 %v6989_v49, %v3441_v13 }
 0xcef   : > { %v8355_v4 = vpop.eup %8354 }
 0xcf0   : > { %v8357_v47 = vpop.eup %8356  ;;  %v3454_v20 = vadd.f32 %v6989_v49, %v3440_v28  ;;  %v3429_v33 = vmul.f32 %v8355_v4, %v10074_v52 }
 0xcf1   : > { %v3428_v29 = vmul.f32 %v8357_v47, %v10077_v58 }
 0xcf2   : > { %7682 = vmatprep.mubr.msk.f32.mxu0 %vm1572_vm3, %v3454_v20  ;;  %v3443_v0 = vmul.f32 %v6988_v18, %v3429_v33 }
 0xcf3   : > { %v8359_v41 = vpop.eup %8358  ;;  %7683 = vmatmul.mubr.msk.f32.vlgmr.msra.gmra.mxu0 %vm1572_vm3, %v3455_v31  ;;  %v3442_v11 = vmul.f32 %v6988_v18, %v3428_v29 }
 0xcf4   : > { %v8361_v32 = vpop.eup %8360  ;;  %v3457_v27 = vadd.f32 %v6989_v49, %v3443_v0  ;;  %v3431_v50 = vmul.f32 %v8359_v41, %v10085_v37 }
 0xcf5   : > { %v3456_v55 = vadd.f32 %v6989_v49, %v3442_v11  ;;  %v3430_v15 = vmul.f32 %v8361_v32, %v10088_v19 }
 0xcf6   : > { %v3445_v22 = vmul.f32 %v6988_v18, %v3431_v50 }
 0xcf7   : > { %v8363_v46 = vpop.eup %8362  ;;  %7685 = vmatprep.mubr.msk.f32.mxu0 %vm1572_vm3, %v3456_v55  ;;  %v3444_v52 = vmul.f32 %v6988_v18, %v3430_v15 }
 0xcf8   : > { %v8365_v58 = vpop.eup %8364  ;;  %7686 = vmatmul.mubr.msk.f32.gmra.mxu0 %vm1572_vm3, %v3457_v27  ;;  %v3459_v7 = vadd.f32 %v6989_v49, %v3445_v22  ;;  %v3433_v6 = vmul.f32 %v8363_v46, %v10097_v5  ;;  %v3664_v5 = vld [vmem:[%s11448_s16 + $0x30] sm:$0xff] }
 0xcf9   : > { %v3458_v10 = vadd.f32 %v6989_v49, %v3444_v52  ;;  %v3432_v60 = vmul.f32 %v8365_v58, %v10100_v59  ;;  %7696 = vmatprep.subr.mxu1 %v3664_v5  ;;  %v3663_v59 = vld [vmem:[%s11448_s16 + $0x28] sm:$0xff] }
 0xcfa   : > { %v3447_v23 = vmul.f32 %v6988_v18, %v3433_v6  ;;  %7697 = vmatpush3.msra.mxu1 %v3664_v5 }
 0xcfb   : > { %7688 = vmatprep.mubr.msk.f32.mxu0 %vm1572_vm3, %v3458_v10  ;;  %v3446_v37 = vmul.f32 %v6988_v18, %v3432_v60  ;;  %7698 = vmatprep.subr.mxu1 %v3663_v59 }
 0xcfc   : > { %7689 = vmatmul.mubr.msk.f32.gmra.mxu0 %vm1572_vm3, %v3459_v7  ;;  %v3461_v19 = vadd.f32 %v6989_v49, %v3447_v23  ;;  %7699 = vmatpush3.msra.mxu1 %v3663_v59 }
 0xcfd   : > { %v3460_v2 = vadd.f32 %v6989_v49, %v3446_v37  ;;  %7700 = vmatprep.subr.mxu1 %v3662_v40 }
 0xcfe   : > { %7701 = vmatpush3.msra.mxu1 %v3662_v40 }
 0xcff   : > { %7691 = vmatprep.mubr.msk.f32.mxu0 %vm1572_vm3, %v3460_v2  ;;  %7702 = vmatprep.subr.mxu1 %v3661_v61 }
 0xd00   : > { %7692 = vmatmul.mubr.msk.f32.gmra.mxu0 %vm1572_vm3, %v3461_v19  ;;  %7703 = vmatpush3.msra.mxu1 %v3661_v61 }
 0xd01   : > { %7704 = vmatprep.subr.mxu1 %v3660_v3 }
 0xd02   : > { %7705 = vmatpush3.msra.mxu1 %v3660_v3 }
 0xd03   : > { %7706 = vmatprep.subr.mxu1 %v3659_v62 }
 0xd04   : > { %7707 = vmatpush3.msra.mxu1 %v3659_v62 }
 0xd05   : > { %7708 = vmatprep.subr.mxu1 %v3658_v30 }
 0xd06   : > { %7709 = vmatpush3.msra.mxu1 %v3658_v30 }
 0xdb3   : > { %v7684_v38 = vpop.f32.mrf.mxu0 }
 0xdb4   : > { %v10171_v18 = vadd.f32 %v7684_v38, %v6990_v42 }
 0xdb5   : > { %v3563_v63 = vpop.f32.mrf.mxu0 }
 0xdb6   : > { %v3603_v24 = vsub.f32 0.0, %v10171_v18  ;;  %v3564_v51 = vadd.f32 %v6990_v42, %v3563_v63 }
 0xdb8   : > { %v3612_v13 = vmul.f32 1.442695, %v3603_v24  ;;  %v3602_v49 = vsub.f32 0.0, %v3564_v51  ;;  %v7687_v28 = vpop.f32.mrf.mxu0 }
 0xdb9   : > { %v10174_v4 = vadd.f32 %v7687_v28, %v6990_v42 }
 0xdba   : > { %8366 = vpow2.f32 %v3612_v13  ;;  %v3610_v47 = vmul.f32 1.442695, %v3602_v49  ;;  %v3573_v20 = vpop.f32.mrf.mxu0 }
 0xdbb   : > { %v3605_v33 = vsub.f32 0.0, %v10174_v4  ;;  %v3574_v31 = vadd.f32 %v6990_v42, %v3573_v20 }
 0xdbc   : > { %8368 = vpow2.f32 %v3610_v47  ;;  %v7690_v29 = vpop.f32.mrf.mxu0 }
 0xdbd   : > { %v3616_v0 = vmul.f32 1.442695, %v3605_v33  ;;  %v3604_v41 = vsub.f32 0.0, %v3574_v31  ;;  %v3589_v11 = vadd.f32 %v7690_v29, %v6990_v42 }
 0xdbe   : > { %v3583_v32 = vpop.f32.mrf.mxu0 }
 0xdbf   : > { %8370 = vpow2.f32 %v3616_v0  ;;  %v3614_v27 = vmul.f32 1.442695, %v3604_v41  ;;  %v3607_v50 = vsub.f32 0.0, %v3589_v11  ;;  %v3584_v55 = vadd.f32 %v6990_v42, %v3583_v32 }
 0xdc0   : > { %v7693_v15 = vpop.f32.mrf.mxu0 }
 0xdc1   : > { %8372 = vpow2.f32 %v3614_v27  ;;  %v3620_v22 = vmul.f32 1.442695, %v3607_v50  ;;  %v3606_v46 = vsub.f32 0.0, %v3584_v55  ;;  %v3599_v52 = vadd.f32 %v7693_v15, %v6990_v42 }
 0xdc2   : > { %v3593_v58 = vpop.f32.mrf.mxu0 }
 0xdc3   : > { %8374 = vpow2.f32 %v3620_v22  ;;  %v3618_v7 = vmul.f32 1.442695, %v3606_v46  ;;  %v3609_v6 = vsub.f32 0.0, %v3599_v52  ;;  %v3594_v10 = vadd.f32 %v6990_v42, %v3593_v58 }
 0xdc5   : > { %8376 = vpow2.f32 %v3618_v7  ;;  %v3624_v60 = vmul.f32 1.442695, %v3609_v6  ;;  %v3608_v23 = vsub.f32 0.0, %v3594_v10 }
 0xdc7   : > { %v8367_v37 = vpop.eup %8366  ;;  %8378 = vpow2.f32 %v3624_v60  ;;  %v3622_v19 = vmul.f32 1.442695, %v3608_v23 }
 0xdc8   : > { %v3627_v2 = vadd.f32 1.0, %v8367_v37 }
 0xdc9   : > { %v8369_v45 = vpop.eup %8368  ;;  %8380 = vpow2.f32 %v3622_v19 }
 0xdca   : > { %v3626_v5 = vadd.f32 1.0, %v8369_v45  ;;  %8382 = vrcp.f32 %v3627_v2 }
 0xdcc   : > { %v8371_v59 = vpop.eup %8370  ;;  %8384 = vrcp.f32 %v3626_v5 }
 0xdcd   : > { %v3629_v40 = vadd.f32 1.0, %v8371_v59 }
 0xdce   : > { %v8373_v61 = vpop.eup %8372 }
 0xdcf   : > { %v3628_v3 = vadd.f32 1.0, %v8373_v61  ;;  %8386 = vrcp.f32 %v3629_v40 }
 0xdd0   : > { %v8375_v62 = vpop.eup %8374 }
 0xdd1   : > { %8388 = vrcp.f32 %v3628_v3  ;;  %v3631_v30 = vadd.f32 1.0, %v8375_v62 }
 0xdd2   : > { %v8377_v42 = vpop.eup %8376 }
 0xdd3   : > { %v3630_v38 = vadd.f32 1.0, %v8377_v42  ;;  %8390 = vrcp.f32 %v3631_v30 }
 0xdd4   : > { %v8379_v63 = vpop.eup %8378 }
 0xdd5   : > { %8392 = vrcp.f32 %v3630_v38  ;;  %v3633_v24 = vadd.f32 1.0, %v8379_v63 }
 0xdd6   : > { %v8381_v13 = vpop.eup %8380 }
 0xdd7   : > { %v3632_v49 = vadd.f32 1.0, %v8381_v13  ;;  %v8383_v28 = vpop.eup %8382  ;;  %8394 = vrcp.f32 %v3633_v24 }
 0xdd8   : > { %v3651_v33 = vmul.f32 %v8383_v28, %v10171_v18 }
 0xdd9   : > { %v8385_v47 = vpop.eup %8384  ;;  %8396 = vrcp.f32 %v3632_v49 }
 0xdda   : > { %v3650_v20 = vmul.f32 %v8385_v47, %v3564_v51 }
 0xddc   : > { %7710 = vmatprep.mubr.msk.f32.mxu1 %vm1590_vm5, %v3650_v20  ;;  %v8387_v29 = vpop.eup %8386 }
 0xddd   : > { %7711 = vmatmul.mubr.msk.f32.vlgmr.msra.gmra.mxu1 %vm1590_vm5, %v3651_v33  ;;  %v3653_v32 = vmul.f32 %v8387_v29, %v10174_v4 }
 0xdde   : > { %v8389_v0 = vpop.eup %8388 }
 0xddf   : > { %v3652_v41 = vmul.f32 %v8389_v0, %v3574_v31  ;;  %v7007_v31 = vld [vmem:[%s11449_s17] ss:$0 sm:$0xff] }
 0xde0   : > { %v8391_v27 = vpop.eup %8390 }
 0xde1   : > { %7713 = vmatprep.mubr.msk.f32.mxu1 %vm1590_vm5, %v3652_v41  ;;  %v3655_v22 = vmul.f32 %v8391_v27, %v3589_v11 }
 0xde2   : > { %v8393_v50 = vpop.eup %8392  ;;  %7714 = vmatmul.mubr.msk.f32.gmra.mxu1 %vm1590_vm5, %v3653_v32 }
 0xde3   : > { %v3654_v15 = vmul.f32 %v8393_v50, %v3584_v55 }
 0xde4   : > { %v8395_v51 = vpop.eup %8394 }
 0xde5   : > { %7716 = vmatprep.mubr.msk.f32.mxu1 %vm1590_vm5, %v3654_v15  ;;  %v3657_v58 = vmul.f32 %v8395_v51, %v3599_v52 }
 0xde6   : > { %v8397_v18 = vpop.eup %8396  ;;  %7717 = vmatmul.mubr.msk.f32.gmra.mxu1 %vm1590_vm5, %v3655_v22 }
 0xde7   : > { %v3656_v46 = vmul.f32 %v8397_v18, %v3594_v10 }
 0xde9   : > { %7719 = vmatprep.mubr.msk.f32.mxu1 %vm1590_vm5, %v3656_v46 }
 0xdea   : > { %7720 = vmatmul.mubr.msk.f32.gmra.mxu1 %vm1590_vm5, %v3657_v58 }
 0xe9d   : > { %v7712_v4 = vpop.f32.mrf.mxu1 }
 0xe9e   : > { %v3796_v55 = vadd.f32 %v7712_v4, %v10023_v48 }
 0xe9f   : > { %v3756_v11 = vpop.f32.mrf.mxu1 }
 0xea0   : > { %v10191_v7 = vadd.f32 %v7007_v31, %v3796_v55  ;;  %v3795_v6 = vadd.f32 %v3756_v11, %v10026_v12 }
 0xea2   : > { %v10194_v60 = vadd.f32 %v7007_v31, %v3795_v6  ;;  %v7715_v10 = vpop.f32.mrf.mxu1  ;;  %v3825_v52 = vsel %vm1572_vm3, %v10191_v7, 0.0 }
 0xea3   : > { %v3798_v23 = vadd.f32 %v7715_v10, %v10031_v21  ;;  %3826 = vadd.xlane.f32.xlu1 %v3825_v52 }
 0xea4   : > { %v3766_v37 = vpop.f32.mrf.mxu1  ;;  %v3822_v19 = vsel %vm1572_vm3, %v10194_v60, 0.0 }
 0xea5   : > { %v10201_v2 = vadd.f32 %v7007_v31, %v3798_v23  ;;  %v3797_v48 = vadd.f32 %v3766_v37, %v10036_v34  ;;  %3823 = vadd.xlane.f32.xlu0 %v3822_v19 }
 0xea6   : > { %v7718_v45 = vpop.f32.mrf.mxu1 }
 0xea7   : > { %v10204_v12 = vadd.f32 %v7007_v31, %v3797_v48  ;;  %v3800_v5 = vadd.f32 %v7718_v45, %v10041_v39  ;;  %v3831_v59 = vsel %vm1572_vm3, %v10201_v2, 0.0 }
 0xea8   : > { %3832 = vadd.xlane.f32.xlu1 %v3831_v59  ;;  %v3776_v21 = vpop.f32.mrf.mxu1 }
 0xea9   : > { %v10209_v40 = vadd.f32 %v7007_v31, %v3800_v5  ;;  %v3799_v61 = vadd.f32 %v3776_v21, %v10046_v53  ;;  %v3828_v3 = vsel %vm1572_vm3, %v10204_v12, 0.0 }
 0xeaa   : > { %3829 = vadd.xlane.f32.xlu0 %v3828_v3  ;;  %v7721_v34 = vpop.f32.mrf.mxu1 }
 0xeab   : > { %v10214_v62 = vadd.f32 %v7007_v31, %v3799_v61  ;;  %v3802_v30 = vadd.f32 %v7721_v34, %v10049_v57  ;;  %v3837_v39 = vsel %vm1572_vm3, %v10209_v40, 0.0 }
 0xeac   : > { %3838 = vadd.xlane.f32.xlu1 %v3837_v39  ;;  %v3786_v42 = vpop.f32.mrf.mxu1 }
 0xead   : > { %v10219_v38 = vadd.f32 %v7007_v31, %v3802_v30  ;;  %v3801_v63 = vadd.f32 %v3786_v42, %v10056_v16  ;;  %v3834_v53 = vsel %vm1572_vm3, %v10214_v62, 0.0 }
 0xeae   : > { %3835 = vadd.xlane.f32.xlu0 %v3834_v53  ;;  %v7015_v53 = vld [vmem:[%s11623_s27 + $0x38] sm:$0xff] }
 0xeaf   : > { %v10224_v24 = vadd.f32 %v7007_v31, %v3801_v63  ;;  %v3843_v13 = vsel %vm1572_vm3, %v10219_v38, 0.0  ;;  %7722 = vmatprep.subr.mxu0 %v7015_v53 }
 0xeb0   : > { %3844 = vadd.xlane.f32.xlu1 %v3843_v13  ;;  %v7014_v13 = vld [vmem:[%s11623_s27 + $0x30] sm:$0xff]  ;;  %7723 = vmatpush3.msra.mxu0 %v7015_v53  ;;  %v7011_v53 = vld [vmem:[%s11625_s28 + $0x1] ss:$0 sm:$0xff] }
 0xeb1   : > { %v3840_v57 = vsel %vm1572_vm3, %v10224_v24, 0.0  ;;  %7724 = vmatprep.subr.mxu0 %v7014_v13 }
 0xeb2   : > { %3841 = vadd.xlane.f32.xlu0 %v3840_v57  ;;  %v7013_v57 = vld [vmem:[%s11623_s27 + $0x28] sm:$0xff]  ;;  %7725 = vmatpush3.msra.mxu0 %v7014_v13 }
 0xeb3   : > { %7726 = vmatprep.subr.mxu0 %v7013_v57 }
 0xeb4   : > { %7727 = vmatpush3.msra.mxu0 %v7013_v57 }
 0xf2c   : > { %v3827_v49 = vpop.xlane.xlu1 %3826 }
 0xf2d   : > { %v3847_v28 = vmul.f32 0.03125, %v3827_v49  ;;  %v7012_v49 = vld [vmem:[%s11623_s27 + $0x20] sm:$0xff] }
 0xf2e   : > { %v3824_v47 = vpop.xlane.xlu0 %3823  ;;  %7728 = vmatprep.subr.mxu0 %v7012_v49 }
 0xf2f   : > { %v10231_v20 = vsub.f32 %v10191_v7, %v3847_v28  ;;  %v3846_v16 = vmul.f32 0.03125, %v3824_v47  ;;  %7729 = vmatpush3.msra.mxu0 %v7012_v49 }
 0xf31   : > { %v10234_v33 = vsub.f32 %v10194_v60, %v3846_v16  ;;  %v3833_v29 = vpop.xlane.xlu1 %3832  ;;  %v3863_v0 = vmul.f32 %v10231_v20, %v10231_v20 }
 0xf32   : > { %v3849_v41 = vmul.f32 0.03125, %v3833_v29 }
 0xf33   : > { %v3830_v32 = vpop.xlane.xlu0 %3829  ;;  %v3873_v27 = vsel %vm1572_vm3, %v3863_v0, 0.0  ;;  %v3862_v50 = vmul.f32 %v10234_v33, %v10234_v33 }
 0xf34   : > { %v10242_v15 = vsub.f32 %v10201_v2, %v3849_v41  ;;  %v3848_v22 = vmul.f32 0.03125, %v3830_v32  ;;  %3874 = vadd.xlane.f32.xlu1 %v3873_v27 }
 0xf35   : > { %v3839_v51 = vpop.xlane.xlu1 %3838  ;;  %v3870_v18 = vsel %vm1572_vm3, %v3862_v50, 0.0 }
 0xf36   : > { %v10246_v46 = vsub.f32 %v10204_v12, %v3848_v22  ;;  %v3851_v58 = vmul.f32 0.03125, %v3839_v51  ;;  %3871 = vadd.xlane.f32.xlu0 %v3870_v18  ;;  %v3865_v4 = vmul.f32 %v10242_v15, %v10242_v15 }
 0xf37   : > { %v3836_v31 = vpop.xlane.xlu0 %3835 }
 0xf38   : > { %v10251_v55 = vsub.f32 %v10209_v40, %v3851_v58  ;;  %v3850_v11 = vmul.f32 0.03125, %v3836_v31  ;;  %v3879_v6 = vsel %vm1572_vm3, %v3865_v4, 0.0  ;;  %v3864_v10 = vmul.f32 %v10246_v46, %v10246_v46 }
 0xf39   : > { %3880 = vadd.xlane.f32.xlu1 %v3879_v6  ;;  %v3845_v52 = vpop.xlane.xlu1 %3844 }
 0xf3a   : > { %v10257_v23 = vsub.f32 %v10214_v62, %v3850_v11  ;;  %v3853_v37 = vmul.f32 0.03125, %v3845_v52  ;;  %v3876_v19 = vsel %vm1572_vm3, %v3864_v10, 0.0  ;;  %v3867_v48 = vmul.f32 %v10251_v55, %v10251_v55 }
 0xf3b   : > { %3877 = vadd.xlane.f32.xlu0 %v3876_v19  ;;  %v3842_v45 = vpop.xlane.xlu0 %3841 }
 0xf3c   : > { %v10263_v5 = vsub.f32 %v10219_v38, %v3853_v37  ;;  %v3852_v59 = vmul.f32 0.03125, %v3842_v45  ;;  %v3885_v21 = vsel %vm1572_vm3, %v3867_v48, 0.0  ;;  %v3866_v61 = vmul.f32 %v10257_v23, %v10257_v23 }
 0xf3d   : > { %3886 = vadd.xlane.f32.xlu1 %v3885_v21 }
 0xf3e   : > { %v10269_v3 = vsub.f32 %v10224_v24, %v3852_v59  ;;  %v3882_v34 = vsel %vm1572_vm3, %v3866_v61, 0.0  ;;  %v3869_v30 = vmul.f32 %v10263_v5, %v10263_v5  ;;  %v7010_v61 = vld [vmem:[%s11624_s30 + $0x1] ss:$0 sm:$0xff] }
 0xf3f   : > { %3883 = vadd.xlane.f32.xlu0 %v3882_v34 }
 0xf40   : > { %v3891_v39 = vsel %vm1572_vm3, %v3869_v30, 0.0  ;;  %v3868_v42 = vmul.f32 %v10269_v3, %v10269_v3 }
 0xf41   : > { %3892 = vadd.xlane.f32.xlu1 %v3891_v39 }
 0xf42   : > { %v3888_v63 = vsel %vm1572_vm3, %v3868_v42, 0.0 }
 0xf43   : > { %3889 = vadd.xlane.f32.xlu0 %v3888_v63 }
 0xfbd   : > { %v3875_v28 = vpop.xlane.xlu1 %3874 }
 0xfbe   : > { %v3895_v47 = vmul.f32 0.03125, %v3875_v28 }
 0xfbf   : > { %v3872_v16 = vpop.xlane.xlu0 %3871 }
 0xfc0   : > { %v3903_v29 = vadd.f32 1e-05, %v3895_v47  ;;  %v3894_v0 = vmul.f32 0.03125, %v3872_v16 }
 0xfc2   : > { %8398 = vrsqrt.f32 %v3903_v29  ;;  %v3902_v41 = vadd.f32 1e-05, %v3894_v0  ;;  %v3881_v32 = vpop.xlane.xlu1 %3880 }
 0xfc3   : > { %v3897_v27 = vmul.f32 0.03125, %v3881_v32 }
 0xfc4   : > { %8400 = vrsqrt.f32 %v3902_v41  ;;  %v3878_v50 = vpop.xlane.xlu0 %3877 }
 0xfc5   : > { %v3905_v22 = vadd.f32 1e-05, %v3897_v27  ;;  %v3896_v51 = vmul.f32 0.03125, %v3878_v50 }
 0xfc6   : > { %v3887_v18 = vpop.xlane.xlu1 %3886 }
 0xfc7   : > { %8402 = vrsqrt.f32 %v3905_v22  ;;  %v3904_v58 = vadd.f32 1e-05, %v3896_v51  ;;  %v3899_v4 = vmul.f32 0.03125, %v3887_v18 }
 0xfc8   : > { %v3884_v31 = vpop.xlane.xlu0 %3883 }
 0xfc9   : > { %8404 = vrsqrt.f32 %v3904_v58  ;;  %v3907_v11 = vadd.f32 1e-05, %v3899_v4  ;;  %v3898_v6 = vmul.f32 0.03125, %v3884_v31 }
 0xfca   : > { %v3893_v10 = vpop.xlane.xlu1 %3892 }
 0xfcb   : > { %8406 = vrsqrt.f32 %v3907_v11  ;;  %v3906_v52 = vadd.f32 1e-05, %v3898_v6  ;;  %v3901_v37 = vmul.f32 0.03125, %v3893_v10  ;;  %v7017_v10 = vld [vmem:[%s11441_s9 + $0x1] ss:$0 sm:$0xff] }
 0xfcc   : > { %v3890_v19 = vpop.xlane.xlu0 %3889 }
 0xfcd   : > { %8408 = vrsqrt.f32 %v3906_v52  ;;  %v3909_v48 = vadd.f32 1e-05, %v3901_v37  ;;  %v3900_v45 = vmul.f32 0.03125, %v3890_v19 }
 0xfcf   : > { %v8399_v59 = vpop.eup %8398  ;;  %8410 = vrsqrt.f32 %v3909_v48  ;;  %v3908_v21 = vadd.f32 1e-05, %v3900_v45 }
 0xfd0   : > { %v3919_v34 = vmul.f32 %v8399_v59, %v10231_v20 }
 0xfd1   : > { %v8401_v30 = vpop.eup %8400  ;;  %8412 = vrsqrt.f32 %v3908_v21 }
 0xfd2   : > { %v3918_v39 = vmul.f32 %v8401_v30, %v10234_v33  ;;  %v3933_v42 = vmul.f32 %v7010_v61, %v3919_v34 }
 0xfd4   : > { %v8403_v63 = vpop.eup %8402  ;;  %v3932_v13 = vmul.f32 %v7010_v61, %v3918_v39  ;;  %v3947_v47 = vadd.f32 %v7011_v53, %v3933_v42 }
 0xfd5   : > { %v3921_v57 = vmul.f32 %v8403_v63, %v10242_v15 }
 0xfd6   : > { %v8405_v49 = vpop.eup %8404  ;;  %v3946_v28 = vadd.f32 %v7011_v53, %v3932_v13 }
 0xfd7   : > { %v3920_v16 = vmul.f32 %v8405_v49, %v10246_v46  ;;  %v3935_v20 = vmul.f32 %v7010_v61, %v3921_v57 }
 0xfd8   : > { %v8407_v29 = vpop.eup %8406  ;;  %7730 = vmatprep.mubr.msk.f32.mxu0 %vm1572_vm3, %v3946_v28 }
 0xfd9   : > { %7731 = vmatmul.mubr.msk.f32.vlgmr.msra.gmra.mxu0 %vm1572_vm3, %v3947_v47  ;;  %v3934_v33 = vmul.f32 %v7010_v61, %v3920_v16  ;;  %v3923_v0 = vmul.f32 %v8407_v29, %v10251_v55  ;;  %v3949_v15 = vadd.f32 %v7011_v53, %v3935_v20 }
 0xfda   : > { %v8409_v41 = vpop.eup %8408 }
 0xfdb   : > { %v3948_v32 = vadd.f32 %v7011_v53, %v3934_v33  ;;  %v3922_v27 = vmul.f32 %v8409_v41, %v10257_v23  ;;  %v3937_v22 = vmul.f32 %v7010_v61, %v3923_v0 }
 0xfdc   : > { %v8411_v50 = vpop.eup %8410 }
 0xfdd   : > { %7733 = vmatprep.mubr.msk.f32.mxu0 %vm1572_vm3, %v3948_v32  ;;  %v3936_v51 = vmul.f32 %v7010_v61, %v3922_v27  ;;  %v3925_v46 = vmul.f32 %v8411_v50, %v10263_v5  ;;  %v3951_v31 = vadd.f32 %v7011_v53, %v3937_v22 }
 0xfde   : > { %v8413_v18 = vpop.eup %8412  ;;  %7734 = vmatmul.mubr.msk.f32.gmra.mxu0 %vm1572_vm3, %v3949_v15 }
 0xfdf   : > { %v3950_v58 = vadd.f32 %v7011_v53, %v3936_v51  ;;  %v3924_v4 = vmul.f32 %v8413_v18, %v10269_v3  ;;  %v3939_v55 = vmul.f32 %v7010_v61, %v3925_v46 }
 0xfe1   : > { %7736 = vmatprep.mubr.msk.f32.mxu0 %vm1572_vm3, %v3950_v58  ;;  %v3938_v11 = vmul.f32 %v7010_v61, %v3924_v4  ;;  %v3953_v6 = vadd.f32 %v7011_v53, %v3939_v55  ;;  %v10410_v58 = vld [vmem:[%s11629_s3 + $0x8] sm:$0xff]  ;;  %v10416_v55 = vld [vmem:[%s11629_s3] sm:$0xff] }
 0xfe2   : > { %7737 = vmatmul.mubr.msk.f32.gmra.mxu0 %vm1572_vm3, %v3951_v31 }
 0xfe3   : > { %v3952_v23 = vadd.f32 %v7011_v53, %v3938_v11 }
 0xfe5   : > { %7739 = vmatprep.mubr.msk.f32.mxu0 %vm1572_vm3, %v3952_v23 }
 0xfe6   : > { %7740 = vmatmul.mubr.msk.f32.gmra.mxu0 %vm1572_vm3, %v3953_v6 }
0x1099   : > { %v7732_v5 = vpop.f32.mrf.mxu0 }
0x109a   : > { %v10343_v53 = vadd.f32 %v7732_v5, %v7017_v10  ;;  %v10423_v5 = vld [vmem:[%s11629_s3 + $0x18] sm:$0xff] }
0x109b   : > { %v4057_v52 = vpop.f32.mrf.mxu0 }
0x109c   : > { %v10315_v3 = vadd.f32 %v7017_v10, %v4057_v52 }
0x109e   : > { %v7735_v37 = vpop.f32.mrf.mxu0  ;;  %7758 = vmatprep.mubr.msk.f32.mxu1 %vm1563_vm2, %v10315_v3 }
0x109f   : > { %v10337_v63 = vadd.f32 %v7735_v37, %v7017_v10 }
0x10a0   : > { %v4067_v19 = vpop.f32.mrf.mxu0 }
0x10a1   : > { %v10333_v42 = vadd.f32 %v7017_v10, %v4067_v19  ;;  %v10430_v19 = vld [vmem:[%s11629_s3 + $0x10] sm:$0xff] }
0x10a2   : > { %v7738_v48 = vpop.f32.mrf.mxu0 }
0x10a3   : > { %v10329_v39 = vadd.f32 %v7738_v48, %v7017_v10 }
0x10a4   : > { %v4077_v45 = vpop.f32.mrf.mxu0 }
0x10a5   : > { %v10325_v30 = vadd.f32 %v7017_v10, %v4077_v45 }
0x10a6   : > { %v7741_v59 = vpop.f32.mrf.mxu0 }
0x10a7   : > { %v10319_v21 = vadd.f32 %v7741_v59, %v7017_v10  ;;  %v10436_v59 = vld [vmem:[%s11629_s3 + $0x28] sm:$0xff] }
0x10a8   : > { %v4087_v61 = vpop.f32.mrf.mxu0 }
0x10a9   : > { %v10321_v34 = vadd.f32 %v7017_v10, %v4087_v61  ;;  %4123 = vrot.lane.b32.xlu0 %v10319_v21, %s11626_s7 }
0x10ab   : > { %4121 = vrot.lane.b32.xlu1 %v10321_v34, %s11626_s7 }
0x10ad   : > { %4117 = vrot.lane.b32.xlu0 %v10325_v30, %s11626_s7 }
0x10af   : > { %4119 = vrot.lane.b32.xlu1 %v10329_v39, %s11626_s7 }
0x10b1   : > { %4113 = vrot.lane.b32.xlu0 %v10333_v42, %s11626_s7 }
0x10b3   : > { %4115 = vrot.lane.b32.xlu1 %v10337_v63, %s11626_s7 }
0x10b5   : > { %4109 = vrot.lane.b32.xlu0 %v10315_v3, %s11626_s7 }
0x10b7   : > { %4111 = vrot.lane.b32.xlu1 %v10343_v53, %s11626_s7 }
0x10b9   : > { %4364 = vrot.lane.b32.xlu0 %v10319_v21, %s11627_s29 }
0x10bb   : > { %4360 = vrot.lane.b32.xlu1 %v10329_v39, %s11627_s29 }
0x10bd   : > { %4358 = vrot.lane.b32.xlu0 %v10325_v30, %s11627_s29 }
0x10bf   : > { %4354 = vrot.lane.b32.xlu1 %v10333_v42, %s11627_s29 }
0x10c1   : > { %4356 = vrot.lane.b32.xlu0 %v10337_v63, %s11627_s29 }
0x10c3   : > { %4350 = vrot.lane.b32.xlu1 %v10315_v3, %s11627_s29 }
0x10c5   : > { %4352 = vrot.lane.b32.xlu0 %v10343_v53, %s11627_s29 }
0x10c7   : > { %4529 = vrot.lane.b32.xlu1 %v10329_v39, %s11628_s0 }
0x10c9   : > { %4533 = vrot.lane.b32.xlu0 %v10319_v21, %s11628_s0 }
0x10cb   : > { %4362 = vrot.lane.b32.xlu1 %v10321_v34, %s11627_s29 }
0x10cf   : > { %4531 = vrot.lane.b32.xlu1 %v10321_v34, %s11628_s0 }
0x111b   : > { %v4124_v13 = vpop.permute.xlu0 %4123 }
0x111c   : > { %7742 = vmatprep.subr.msk.mxu1 %vm1563_vm2, %v4124_v13 }
0x111d   : > { %7743 = vmatpush3.xpose.msk.msra.mxu1 %vm1563_vm2, %v4124_v13  ;;  %v4122_v57 = vpop.permute.xlu1 %4121 }
0x111e   : > { %7744 = vmatprep.subr.msk.mxu1 %vm1563_vm2, %v4122_v57 }
0x111f   : > { %v4118_v49 = vpop.permute.xlu0 %4117 }
0x1121   : > { %7745 = vmatpush3.xpose.msk.msra.mxu1 %vm1563_vm2, %v4122_v57  ;;  %v4120_v28 = vpop.permute.xlu1 %4119 }
0x1122   : > { %7746 = vmatprep.subr.msk.mxu1 %vm1563_vm2, %v4120_v28 }
0x1123   : > { %v4114_v47 = vpop.permute.xlu0 %4113 }
0x1125   : > { %7747 = vmatpush3.xpose.msk.msra.mxu1 %vm1563_vm2, %v4120_v28  ;;  %v4116_v16 = vpop.permute.xlu1 %4115  ;;  %v10444_v28 = vld [vmem:[%s11629_s3 + $0x20] sm:$0xff] }
0x1126   : > { %7748 = vmatprep.subr.msk.mxu1 %vm1563_vm2, %v4118_v49 }
0x1127   : > { %v4110_v29 = vpop.permute.xlu0 %4109 }
0x1129   : > { %7749 = vmatpush3.xpose.msk.msra.mxu1 %vm1563_vm2, %v4118_v49  ;;  %v4112_v20 = vpop.permute.xlu1 %4111 }
0x112a   : > { %7750 = vmatprep.subr.msk.mxu1 %vm1563_vm2, %v4116_v16 }
0x112b   : > { %v4365_v33 = vpop.permute.xlu0 %4364 }
0x112c   : > { %7770 = vmatprep.subr.mxu0 %v4365_v33 }
0x112d   : > { %7751 = vmatpush3.xpose.msk.msra.mxu1 %vm1563_vm2, %v4116_v16  ;;  %7771 = vmatpush3.msra.mxu0 %v4365_v33  ;;  %v4361_v0 = vpop.permute.xlu1 %4360 }
0x112e   : > { %7752 = vmatprep.subr.msk.mxu1 %vm1563_vm2, %v4114_v47 }
0x112f   : > { %v4359_v27 = vpop.permute.xlu0 %4358 }
0x1131   : > { %7753 = vmatpush3.xpose.msk.msra.mxu1 %vm1563_vm2, %v4114_v47  ;;  %v4355_v41 = vpop.permute.xlu1 %4354 }
0x1132   : > { %7754 = vmatprep.subr.msk.mxu1 %vm1563_vm2, %v4112_v20 }
0x1133   : > { %v4357_v22 = vpop.permute.xlu0 %4356 }
0x1135   : > { %7755 = vmatpush3.xpose.msk.msra.mxu1 %vm1563_vm2, %v4112_v20  ;;  %v4351_v32 = vpop.permute.xlu1 %4350 }
0x1136   : > { %7756 = vmatprep.subr.msk.mxu1 %vm1563_vm2, %v4110_v29 }
0x1137   : > { %v4353_v51 = vpop.permute.xlu0 %4352 }
0x1139   : > { %7757 = vmatpush3.xpose.msk.msra.mxu1 %vm1563_vm2, %v4110_v29  ;;  %v10387_v50 = vpop.permute.xlu1 %4529  ;;  %v10450_v29 = vld [vmem:[%s11629_s3 + $0x38] sm:$0xff] }
0x113b   : > { %v10403_v46 = vpop.permute.xlu0 %4533 }
0x113c   : > { %7759 = vmatmul.mubr.msk.f32.vlgmr.msra.gmra.mxu1 %vm1563_vm2, %v10343_v53 }
0x113d   : > { %7761 = vmatprep.mubr.msk.f32.mxu1 %vm1563_vm2, %v10333_v42  ;;  %v4363_v15 = vpop.permute.xlu1 %4362 }
0x113e   : > { %7772 = vmatprep.subr.mxu0 %v4363_v15 }
0x113f   : > { %7773 = vmatpush3.msra.mxu0 %v4363_v15 }
0x1140   : > { %7762 = vmatmul.mubr.msk.f32.gmra.mxu1 %vm1563_vm2, %v10337_v63  ;;  %7774 = vmatprep.subr.mxu0 %v4361_v0 }
0x1141   : > { %7764 = vmatprep.mubr.msk.f32.mxu1 %vm1563_vm2, %v10325_v30  ;;  %7775 = vmatpush3.msra.mxu0 %v4361_v0 }
0x1142   : > { %7776 = vmatprep.subr.mxu0 %v4359_v27 }
0x1143   : > { %7777 = vmatpush3.msra.mxu0 %v4359_v27 }
0x1144   : > { %7765 = vmatmul.mubr.msk.f32.gmra.mxu1 %vm1563_vm2, %v10329_v39  ;;  %7778 = vmatprep.subr.mxu0 %v4357_v22 }
0x1145   : > { %7767 = vmatprep.mubr.msk.f32.mxu1 %vm1563_vm2, %v10321_v34  ;;  %7779 = vmatpush3.msra.mxu0 %v4357_v22 }
0x1146   : > { %7780 = vmatprep.subr.mxu0 %v4355_v41 }
0x1147   : > { %7781 = vmatpush3.msra.mxu0 %v4355_v41 }
0x1148   : > { %7768 = vmatmul.mubr.msk.f32.gmra.mxu1 %vm1563_vm2, %v10319_v21  ;;  %7782 = vmatprep.subr.mxu0 %v4353_v51 }
0x1149   : > { %7783 = vmatpush3.msra.mxu0 %v4353_v51  ;;  %v10470_v51 = vpop.permute.xlu1 %4531 }
0x114a   : > { %7784 = vmatprep.subr.mxu0 %v4351_v32 }
0x114b   : > { %7785 = vmatpush3.msra.mxu0 %v4351_v32  ;;  %v10458_v32 = vld [vmem:[%s11629_s3 + $0x30] sm:$0xff] }
0x114c   : > { %7798 = vmatprep.subr.msk.mxu0 %vm1563_vm2, %v10403_v46 }
0x11fc   : > { %v7760_v18 = vpop.f32.mrf.mxu1 }
0x11fd   : > { %v4229_v4 = vadd.f32 %v10410_v58, %v7760_v18 }
0x11fe   : > { %v4223_v31 = vpop.f32.mrf.mxu1 }
0x11ff   : > { %v4224_v11 = vadd.f32 %v10416_v55, %v4223_v31  ;;  %v4265_v23 = vsel %vm1590_vm5, %v4229_v4, -inf }
0x1200   : > { %4266 = vmax.xlane.f32.xlu0 %v4265_v23  ;;  %v7763_v6 = vpop.f32.mrf.mxu1 }
0x1201   : > { %v4239_v10 = vadd.f32 %v10423_v5, %v7763_v6  ;;  %v4262_v52 = vsel %vm1590_vm5, %v4224_v11, -inf }
0x1202   : > { %v4233_v37 = vpop.f32.mrf.mxu1  ;;  %4263 = vmax.xlane.f32.xlu1 %v4262_v52 }
0x1203   : > { %v4234_v48 = vadd.f32 %v10430_v19, %v4233_v37  ;;  %v4271_v57 = vsel %vm1590_vm5, %v4239_v10, -inf }
0x1204   : > { %v7766_v45 = vpop.f32.mrf.mxu1 }
0x1205   : > { %v4249_v61 = vadd.f32 %v10436_v59, %v7766_v45  ;;  %v4268_v13 = vsel %vm1590_vm5, %v4234_v48, -inf }
0x1206   : > { %v4243_v49 = vpop.f32.mrf.mxu1  ;;  %4269 = vmax.xlane.f32.xlu0 %v4268_v13  ;;  %4272 = vmax.xlane.f32.xlu1 %v4271_v57 }
0x1207   : > { %v4244_v47 = vadd.f32 %v10444_v28, %v4243_v49  ;;  %v4277_v0 = vsel %vm1590_vm5, %v4249_v61, -inf }
0x1208   : > { %v7769_v16 = vpop.f32.mrf.mxu1 }
0x1209   : > { %v4259_v20 = vadd.f32 %v10450_v29, %v7769_v16  ;;  %v4274_v33 = vsel %vm1590_vm5, %v4244_v47, -inf }
0x120a   : > { %v4253_v41 = vpop.f32.mrf.mxu1  ;;  %4275 = vmax.xlane.f32.xlu0 %v4274_v33  ;;  %4278 = vmax.xlane.f32.xlu1 %v4277_v0 }
0x120b   : > { %v10461_v27 = vadd.f32 %v10458_v32, %v4253_v41  ;;  %v4283_v22 = vsel %vm1590_vm5, %v4259_v20, -inf }
0x120d   : > { %v4280_v15 = vsel %vm1590_vm5, %v10461_v27, -inf }
0x120e   : > { %4281 = vmax.xlane.f32.xlu0 %v4280_v15  ;;  %4284 = vmax.xlane.f32.xlu1 %v4283_v22 }
0x121f   : > { %4525 = vrot.lane.b32.xlu1 %v10337_v63, %s11628_s0 }
0x1224   : > { %4527 = vrot.lane.b32.xlu0 %v10325_v30, %s11628_s0 }
0x1289   : > { %v4267_v18 = vpop.xlane.xlu0 %4266 }
0x128a   : > { %v4287_v31 = vsub.f32 %v4229_v4, %v4267_v18 }
0x128b   : > { %v4264_v23 = vpop.xlane.xlu1 %4263 }
0x128c   : > { %v4296_v6 = vmul.f32 1.442695, %v4287_v31  ;;  %v4286_v52 = vsub.f32 %v4224_v11, %v4264_v23 }
0x128e   : > { %8414 = vpow2.f32 %v4296_v6  ;;  %v4294_v37 = vmul.f32 1.442695, %v4286_v52 }
0x128f   : > { %v4270_v4 = vpop.xlane.xlu0 %4269  ;;  %v4273_v11 = vpop.xlane.xlu1 %4272 }
0x1290   : > { %8416 = vpow2.f32 %v4294_v37  ;;  %v4288_v16 = vsub.f32 %v4234_v48, %v4270_v4  ;;  %v4289_v41 = vsub.f32 %v4239_v10, %v4273_v11 }
0x1292   : > { %v4298_v15 = vmul.f32 1.442695, %v4288_v16  ;;  %v4300_v18 = vmul.f32 1.442695, %v4289_v41 }
0x1293   : > { %v4276_v33 = vpop.xlane.xlu0 %4275  ;;  %v4279_v0 = vpop.xlane.xlu1 %4278 }
0x1294   : > { %v4290_v22 = vsub.f32 %v4244_v47, %v4276_v33  ;;  %v4291_v31 = vsub.f32 %v4249_v61, %v4279_v0  ;;  %8418 = vpow2.f32 %v4298_v15 }
0x1295   : > { %8420 = vpow2.f32 %v4300_v18 }
0x1296   : > { %v4302_v6 = vmul.f32 1.442695, %v4290_v22  ;;  %v4304_v52 = vmul.f32 1.442695, %v4291_v31 }
0x1297   : > { %v4285_v23 = vpop.xlane.xlu1 %4284  ;;  %v4282_v0 = vpop.xlane.xlu0 %4281 }
0x1298   : > { %v4293_v37 = vsub.f32 %v4259_v20, %v4285_v23  ;;  %8422 = vpow2.f32 %v4302_v6  ;;  %v4292_v41 = vsub.f32 %v10461_v27, %v4282_v0 }
0x1299   : > { %8424 = vpow2.f32 %v4304_v52 }
0x129a   : > { %v4306_v15 = vmul.f32 1.442695, %v4292_v41 }
0x129b   : > { %v10472_v45 = vpop.eup %8414  ;;  %v4526_v18 = vpop.permute.xlu1 %4525 }
0x129c   : > { %v4313_v13 = vsel %vm1590_vm5, %v10472_v45, 0.0  ;;  %v4528_v31 = vpop.permute.xlu0 %4527 }
0x129d   : > { %v10476_v57 = vpop.eup %8416  ;;  %4314 = vadd.xlane.f32.xlu1 %v4313_v13  ;;  %v4308_v13 = vmul.f32 1.442695, %v4293_v37 }
0x129e   : > { %v4310_v49 = vsel %vm1590_vm5, %v10476_v57, 0.0 }
0x129f   : > { %4311 = vadd.xlane.f32.xlu0 %v4310_v49  ;;  %8426 = vpow2.f32 %v4308_v13 }
0x12a0   : > { %8428 = vpow2.f32 %v4306_v15 }
0x12a1   : > { %v10484_v49 = vpop.eup %8418 }
0x12a2   : > { %v10486_v48 = vpop.eup %8420  ;;  %v4316_v10 = vsel %vm1590_vm5, %v10484_v49, 0.0 }
0x12a3   : > { %v4319_v61 = vsel %vm1590_vm5, %v10486_v48, 0.0 }
0x12a5   : > { %v10490_v47 = vpop.eup %8422 }
0x12a6   : > { %v10494_v4 = vpop.eup %8424  ;;  %v4322_v20 = vsel %vm1590_vm5, %v10490_v47, 0.0 }
0x12a7   : > { %v4325_v11 = vsel %vm1590_vm5, %v10494_v4, 0.0 }
0x12ac   : > { %v10500_v16 = vpop.eup %8426 }
0x12ad   : > { %v4331_v33 = vsel %vm1590_vm5, %v10500_v16, 0.0  ;;  %v10519_v27 = vpop.eup %8428 }
0x12ae   : > { %4521 = vrot.lane.b32.xlu1 %v10343_v53, %s11628_s0  ;;  %v4328_v22 = vsel %vm1590_vm5, %v10519_v27, 0.0 }
0x12b5   : > { %4523 = vrot.lane.b32.xlu0 %v10333_v42, %s11628_s0 }
0x12d2   : > { %4317 = vadd.xlane.f32.xlu1 %v4316_v10 }
0x12d4   : > { %4320 = vadd.xlane.f32.xlu0 %v4319_v61 }
0x12d6   : > { %4323 = vadd.xlane.f32.xlu1 %v4322_v20 }
0x12d8   : > { %4326 = vadd.xlane.f32.xlu0 %v4325_v11 }
0x12dc   : > { %4332 = vadd.xlane.f32.xlu0 %v4331_v33 }
0x12e7   : > { %4503 = vrot.lane.b32.xlu1 %v10315_v3, %s11630_s2 }
0x12f2   : > { %4519 = vrot.lane.b32.xlu0 %v10315_v3, %s11628_s0  ;;  %s11634_s0 = smov 32  }
0x12f6   : > { %4505 = vrot.lane.b32.xlu0 %v10343_v53, %s11630_s2 }
0x12fa   : > { %4509 = vrot.lane.b32.xlu0 %v10337_v63, %s11630_s2 }
0x12fe   : > { %4513 = vrot.lane.b32.xlu0 %v10329_v39, %s11630_s2 }
0x1302   : > { %4517 = vrot.lane.b32.xlu0 %v10319_v21, %s11630_s2 }
0x1306   : > { %4774 = vrot.lane.b32.xlu0 %v10319_v21, %s11631_s6 }
0x130b   : > { %4329 = vadd.xlane.f32.xlu1 %v4328_v22 }
0x131c   : > { %4507 = vrot.lane.b32.xlu1 %v10333_v42, %s11630_s2 }
0x1320   : > { %4511 = vrot.lane.b32.xlu1 %v10325_v30, %s11630_s2 }
0x1324   : > { %4515 = vrot.lane.b32.xlu1 %v10321_v34, %s11630_s2  ;;  %s11695_s2 = sld [smem:[#allocation3_spill]] }
0x1326   : > { %v4315_v23 = vpop.xlane.xlu1 %4314 }
0x1327   : > { %8430 = vrcp.f32 %v4315_v23 }
0x1328   : > { %4772 = vrot.lane.b32.xlu1 %v10321_v34, %s11631_s6  ;;  %v4312_v21 = vpop.xlane.xlu0 %4311 }
0x1329   : > { %8432 = vrcp.f32 %v4312_v21 }
0x132a   : > { %s11696_s4 = sshll.u32 %s11695_s2, 6 }
0x132b   : > { %s11404_s1 = scalar_lea.vmem %s11697_s24, %s11696_s4 }
0x132c   : > { %v4524_v34 = vpop.permute.xlu0 %4523 }
0x1334   : > { %v8431_v6 = vpop.eup %8430 }
0x1335   : > { %v4343_v13 = vmul.f32 %v8431_v6, %v10472_v45 }
0x1336   : > { %v8433_v52 = vpop.eup %8432 }
0x1337   : > { %v4342_v37 = vmul.f32 %v8433_v52, %v10476_v57 }
0x1339   : > { %7786 = vmatprep.mubr.msk.f32.mxu0 %vm1590_vm5, %v4342_v37 }
0x133a   : > { %7787 = vmatmul.mubr.msk.f32.vlgmr.msra.gmra.mxu0 %vm1590_vm5, %v4343_v13 }
0x133b   : > { %7799 = vmatpush3.xpose.msk.msra.mxu0 %vm1563_vm2, %v10403_v46  ;;  %v4522_v46 = vpop.permute.xlu1 %4521 }
0x133c   : > { %7800 = vmatprep.subr.msk.mxu0 %vm1563_vm2, %v10470_v51 }
0x133f   : > { %7801 = vmatpush3.xpose.msk.msra.mxu0 %vm1563_vm2, %v10470_v51 }
0x1340   : > { %7802 = vmatprep.subr.msk.mxu0 %vm1563_vm2, %v10387_v50 }
0x1343   : > { %7803 = vmatpush3.xpose.msk.msra.mxu0 %vm1563_vm2, %v10387_v50 }
0x1344   : > { %7804 = vmatprep.subr.msk.mxu0 %vm1563_vm2, %v4528_v31 }
0x1347   : > { %7805 = vmatpush3.xpose.msk.msra.mxu0 %vm1563_vm2, %v4528_v31 }
0x1348   : > { %7806 = vmatprep.subr.msk.mxu0 %vm1563_vm2, %v4526_v18 }
0x134b   : > { %7807 = vmatpush3.xpose.msk.msra.mxu0 %vm1563_vm2, %v4526_v18 }
0x134c   : > { %7808 = vmatprep.subr.msk.mxu0 %vm1563_vm2, %v4524_v34 }
0x134f   : > { %7809 = vmatpush3.xpose.msk.msra.mxu0 %vm1563_vm2, %v4524_v34 }
0x1350   : > { %7810 = vmatprep.subr.msk.mxu0 %vm1563_vm2, %v4522_v46 }
0x1353   : > { %7811 = vmatpush3.xpose.msk.msra.mxu0 %vm1563_vm2, %v4522_v46 }
0x135b   : > { %v4318_v51 = vpop.xlane.xlu1 %4317 }
0x135c   : > { %8434 = vrcp.f32 %v4318_v51 }
0x135d   : > { %v4321_v50 = vpop.xlane.xlu0 %4320 }
0x135e   : > { %8436 = vrcp.f32 %v4321_v50 }
0x135f   : > { %v4324_v45 = vpop.xlane.xlu1 %4323 }
0x1360   : > { %8438 = vrcp.f32 %v4324_v45 }
0x1361   : > { %v4327_v57 = vpop.xlane.xlu0 %4326 }
0x1362   : > { %8440 = vrcp.f32 %v4327_v57  ;;  %v7026_v57 = vld [vmem:[%s11442_s10 + $0x20] sm:$0xff] }
0x1363   : > { %v4504_v52 = vpop.permute.xlu1 %4503 }
0x1365   : > { %v4333_v10 = vpop.xlane.xlu0 %4332 }
0x1366   : > { %8442 = vrcp.f32 %v4333_v10 }
0x1369   : > { %v8435_v61 = vpop.eup %8434  ;;  %v4520_v20 = vpop.permute.xlu0 %4519 }
0x136a   : > { %7812 = vmatprep.subr.msk.mxu0 %vm1563_vm2, %v4520_v20  ;;  %v4344_v11 = vmul.f32 %v8435_v61, %v10484_v49 }
0x136b   : > { %v8437_v33 = vpop.eup %8436  ;;  %7813 = vmatpush3.xpose.msk.msra.mxu0 %vm1563_vm2, %v4520_v20 }
0x136c   : > { %7789 = vmatprep.mubr.msk.f32.mxu0 %vm1590_vm5, %v4344_v11  ;;  %v4345_v0 = vmul.f32 %v8437_v33, %v10486_v48  ;;  %v7027_v48 = vld [vmem:[%s11442_s10 + $0x28] sm:$0xff] }
0x136d   : > { %v8439_v41 = vpop.eup %8438  ;;  %v4506_v15 = vpop.permute.xlu0 %4505  ;;  %7870 = vmatprep.subr.mxu0 %v7027_v48 }
0x136e   : > { %7790 = vmatmul.mubr.msk.f32.gmra.mxu0 %vm1590_vm5, %v4345_v0  ;;  %v4346_v22 = vmul.f32 %v8439_v41, %v10490_v47 }
0x136f   : > { %v8441_v18 = vpop.eup %8440 }
0x1370   : > { %7792 = vmatprep.mubr.msk.f32.mxu0 %vm1590_vm5, %v4346_v22  ;;  %v4347_v31 = vmul.f32 %v8441_v18, %v10494_v4 }
0x1371   : > { %v4510_v23 = vpop.permute.xlu0 %4509 }
0x1372   : > { %7793 = vmatmul.mubr.msk.f32.gmra.mxu0 %vm1590_vm5, %v4347_v31 }
0x1373   : > { %v8443_v34 = vpop.eup %8442 }
0x1374   : > { %v4349_v45 = vmul.f32 %v8443_v34, %v10500_v16 }
0x1375   : > { %v4514_v49 = vpop.permute.xlu0 %4513 }
0x1379   : > { %v4518_v21 = vpop.permute.xlu0 %4517 }
0x137d   : > { %v4775_v6 = vpop.permute.xlu0 %4774 }
0x137e   : > { %7826 = vmatprep.subr.mxu1 %v4775_v6 }
0x137f   : > { %7827 = vmatpush3.msra.mxu1 %v4775_v6 }
0x1394   : > { %v4330_v47 = vpop.xlane.xlu1 %4329 }
0x1395   : > { %8444 = vrcp.f32 %v4330_v47 }
0x1398   : > { %v4508_v37 = vpop.permute.xlu1 %4507 }
0x139c   : > { %v4512_v13 = vpop.permute.xlu1 %4511 }
0x13a0   : > { %v4516_v4 = vpop.permute.xlu1 %4515 }
0x13a2   : > { %v8445_v46 = vpop.eup %8444 }
0x13a3   : > { %v4348_v51 = vmul.f32 %v8445_v46, %v10519_v27 }
0x13a4   : > { %v4773_v50 = vpop.permute.xlu1 %4772 }
0x13a5   : > { %7795 = vmatprep.mubr.msk.f32.mxu0 %vm1590_vm5, %v4348_v51  ;;  %7828 = vmatprep.subr.mxu1 %v4773_v50 }
0x13a6   : > { %7796 = vmatmul.mubr.msk.f32.gmra.mxu0 %vm1590_vm5, %v4349_v45  ;;  %7829 = vmatpush3.msra.mxu1 %v4773_v50 }
0x13a7   : > { %7814 = vmatprep.mubr.msk.f32.mxu0 %vm1563_vm2, %v4504_v52 }
0x13aa   : > { %7815 = vmatmul.mubr.msk.f32.vlgmr.msra.gmra.mxu0 %vm1563_vm2, %v4506_v15 }
0x13ab   : > { %7817 = vmatprep.mubr.msk.f32.mxu0 %vm1563_vm2, %v4508_v37  ;;  %7871 = vmatpush3.msra.mxu0 %v7027_v48 }
0x13ac   : > { %7872 = vmatprep.subr.mxu0 %v7026_v57 }
0x13ad   : > { %7873 = vmatpush3.msra.mxu0 %v7026_v57 }
0x13ae   : > { %7818 = vmatmul.mubr.msk.f32.gmra.mxu0 %vm1563_vm2, %v4510_v23 }
0x13af   : > { %7820 = vmatprep.mubr.msk.f32.mxu0 %vm1563_vm2, %v4512_v13 }
0x13b2   : > { %7821 = vmatmul.mubr.msk.f32.gmra.mxu0 %vm1563_vm2, %v4514_v49 }
0x13b3   : > { %7823 = vmatprep.mubr.msk.f32.mxu0 %vm1563_vm2, %v4516_v4 }
0x13b6   : > { %7824 = vmatmul.mubr.msk.f32.gmra.mxu0 %vm1563_vm2, %v4518_v21 }
0x13fa   : > { %v7788_v16 = vpop.f32.mrf.mxu0 }
0x13fc   : > { %v4464_v27 = vpop.f32.mrf.mxu0 }
0x13fd   : > { %7874 = vmatprep.mubr.msk.f32.mxu0 %vm1563_vm2, %v4464_v27 }
0x13fe   : > { %7875 = vmatmul.mubr.msk.f32.vlgmr.msra.gmra.mxu0 %vm1563_vm2, %v7788_v16 }
0x142e   : > { %v7791_v10 = vpop.f32.mrf.mxu0 }
0x1430   : > { %v4474_v61 = vpop.f32.mrf.mxu0 }
0x1431   : > { %7877 = vmatprep.mubr.msk.f32.mxu0 %vm1563_vm2, %v4474_v61 }
0x1432   : > { %v7794_v20 = vpop.f32.mrf.mxu0  ;;  %7878 = vmatmul.mubr.msk.f32.gmra.mxu0 %vm1563_vm2, %v7791_v10 }
0x1434   : > { %v4484_v11 = vpop.f32.mrf.mxu0 }
0x1435   : > { %7880 = vmatprep.mubr.msk.f32.mxu0 %vm1563_vm2, %v4484_v11 }
0x1436   : > { %7881 = vmatmul.mubr.msk.f32.gmra.mxu0 %vm1563_vm2, %v7794_v20 }
0x1466   : > { %v7797_v33 = vpop.f32.mrf.mxu0 }
0x1468   : > { %v4494_v0 = vpop.f32.mrf.mxu0 }
0x1469   : > { %7883 = vmatprep.mubr.msk.f32.mxu0 %vm1563_vm2, %v4494_v0 }
0x146a   : > { %v7816_v41 = vpop.f32.mrf.mxu0  ;;  %7884 = vmatmul.mubr.msk.f32.gmra.mxu0 %vm1563_vm2, %v7797_v33 }
0x146b   : > { %v4639_v15 = vadd.f32 %v10410_v58, %v7816_v41 }
0x146c   : > { %v4633_v22 = vpop.f32.mrf.mxu0 }
0x146d   : > { %v4634_v18 = vadd.f32 %v10416_v55, %v4633_v22  ;;  %v4675_v31 = vsel %vm1590_vm5, %v4639_v15, -inf }
0x146e   : > { %4676 = vmax.xlane.f32.xlu0 %v4675_v31  ;;  %v7819_v23 = vpop.f32.mrf.mxu0 }
0x146f   : > { %v4672_v49 = vsel %vm1590_vm5, %v4634_v18, -inf  ;;  %v4649_v55 = vadd.f32 %v10423_v5, %v7819_v23 }
0x1470   : > { %4673 = vmax.xlane.f32.xlu1 %v4672_v49  ;;  %v4643_v21 = vpop.f32.mrf.mxu0 }
0x1471   : > { %v4644_v48 = vadd.f32 %v10430_v19, %v4643_v21  ;;  %v4681_v4 = vsel %vm1590_vm5, %v4649_v55, -inf }
0x1472   : > { %v7822_v6 = vpop.f32.mrf.mxu0 }
0x1473   : > { %v4678_v52 = vsel %vm1590_vm5, %v4644_v48, -inf  ;;  %v4659_v19 = vadd.f32 %v10436_v59, %v7822_v6 }
0x1474   : > { %4679 = vmax.xlane.f32.xlu0 %v4678_v52  ;;  %v4653_v47 = vpop.f32.mrf.mxu0 }
0x1475   : > { %v4654_v58 = vadd.f32 %v10444_v28, %v4653_v47  ;;  %v4687_v51 = vsel %vm1590_vm5, %v4659_v19, -inf }
0x1476   : > { %v7825_v13 = vpop.f32.mrf.mxu0 }
0x1477   : > { %v4684_v37 = vsel %vm1590_vm5, %v4654_v58, -inf  ;;  %v4669_v28 = vadd.f32 %v10450_v29, %v7825_v13 }
0x1478   : > { %4685 = vmax.xlane.f32.xlu0 %v4684_v37  ;;  %v4663_v34 = vpop.f32.mrf.mxu0 }
0x1479   : > { %v4664_v46 = vadd.f32 %v10458_v32, %v4663_v34 }
0x1481   : > { %4770 = vrot.lane.b32.xlu1 %v10329_v39, %s11631_s6  ;;  %v4693_v39 = vsel %vm1590_vm5, %v4669_v28, -inf }
0x148e   : > { %4768 = vrot.lane.b32.xlu0 %v10325_v30, %s11631_s6  ;;  %v4690_v30 = vsel %vm1590_vm5, %v4664_v46, -inf }
0x14a5   : > { %4682 = vmax.xlane.f32.xlu1 %v4681_v4 }
0x14a9   : > { %4688 = vmax.xlane.f32.xlu1 %v4687_v51 }
0x14ad   : > { %4694 = vmax.xlane.f32.xlu1 %v4693_v39  ;;  %4691 = vmax.xlane.f32.xlu0 %v4690_v30 }
0x14be   : > { %4764 = vrot.lane.b32.xlu1 %v10333_v42, %s11631_s6 }
0x14c3   : > { %4766 = vrot.lane.b32.xlu0 %v10337_v63, %s11631_s6 }
0x14f7   : > { %v4677_v5 = vpop.xlane.xlu0 %4676 }
0x14f8   : > { %v4697_v59 = vsub.f32 %v4639_v15, %v4677_v5 }
0x14f9   : > { %v4674_v29 = vpop.xlane.xlu1 %4673 }
0x14fa   : > { %v4706_v50 = vmul.f32 1.442695, %v4697_v59  ;;  %v4696_v32 = vsub.f32 %v4634_v18, %v4674_v29 }
0x14fc   : > { %8446 = vpow2.f32 %v4706_v50  ;;  %v4704_v45 = vmul.f32 1.442695, %v4696_v32 }
0x14fd   : > { %v4680_v57 = vpop.xlane.xlu0 %4679  ;;  %v4771_v16 = vpop.permute.xlu1 %4770 }
0x14fe   : > { %8448 = vpow2.f32 %v4704_v45  ;;  %v4698_v27 = vsub.f32 %v4644_v48, %v4680_v57  ;;  %7830 = vmatprep.subr.mxu1 %v4771_v16 }
0x14ff   : > { %7831 = vmatpush3.msra.mxu1 %v4771_v16 }
0x1500   : > { %v4708_v10 = vmul.f32 1.442695, %v4698_v27 }
0x1501   : > { %v4686_v61 = vpop.xlane.xlu0 %4685 }
0x1502   : > { %8450 = vpow2.f32 %v4708_v10  ;;  %v4700_v42 = vsub.f32 %v4654_v58, %v4686_v61 }
0x1504   : > { %v4712_v20 = vmul.f32 1.442695, %v4700_v42 }
0x1505   : > { %v4769_v11 = vpop.permute.xlu0 %4768 }
0x1506   : > { %8452 = vpow2.f32 %v4712_v20  ;;  %7832 = vmatprep.subr.mxu1 %v4769_v11 }
0x1507   : > { %7833 = vmatpush3.msra.mxu1 %v4769_v11 }
0x1509   : > { %v10613_v63 = vpop.eup %8446 }
0x150a   : > { %v4723_v33 = vsel %vm1590_vm5, %v10613_v63, 0.0 }
0x150b   : > { %v8449_v0 = vpop.eup %8448  ;;  %4724 = vadd.xlane.f32.xlu1 %v4723_v33 }
0x150c   : > { %v4720_v41 = vsel %vm1590_vm5, %v8449_v0, 0.0 }
0x150d   : > { %4721 = vadd.xlane.f32.xlu0 %v4720_v41 }
0x150f   : > { %v10618_v15 = vpop.eup %8450 }
0x1510   : > { %v4726_v22 = vsel %vm1590_vm5, %v10618_v15, 0.0 }
0x1511   : > { %4727 = vadd.xlane.f32.xlu0 %v4726_v22 }
0x1513   : > { %v10622_v18 = vpop.eup %8452 }
0x1514   : > { %v4732_v31 = vsel %vm1590_vm5, %v10622_v18, 0.0 }
0x1515   : > { %4733 = vadd.xlane.f32.xlu0 %v4732_v31 }
0x152e   : > { %v4683_v23 = vpop.xlane.xlu1 %4682 }
0x152f   : > { %v4699_v49 = vsub.f32 %v4649_v55, %v4683_v23 }
0x1531   : > { %v4710_v21 = vmul.f32 1.442695, %v4699_v49 }
0x1532   : > { %v4689_v48 = vpop.xlane.xlu1 %4688 }
0x1533   : > { %8454 = vpow2.f32 %v4710_v21  ;;  %v4701_v6 = vsub.f32 %v4659_v19, %v4689_v48 }
0x1535   : > { %v4714_v52 = vmul.f32 1.442695, %v4701_v6 }
0x1536   : > { %v4692_v47 = vpop.xlane.xlu0 %4691  ;;  %v4695_v58 = vpop.xlane.xlu1 %4694 }
0x1537   : > { %8456 = vpow2.f32 %v4714_v52  ;;  %v4702_v37 = vsub.f32 %v4664_v46, %v4692_v47  ;;  %v4703_v13 = vsub.f32 %v4669_v28, %v4695_v58  ;;  %v7028_v58 = vld [vmem:[%s11442_s10 + $0x30] sm:$0xff] }
0x1539   : > { %v4716_v4 = vmul.f32 1.442695, %v4702_v37  ;;  %v4718_v34 = vmul.f32 1.442695, %v4703_v13 }
0x153a   : > { %v4767_v51 = vpop.permute.xlu0 %4766  ;;  %v4765_v39 = vpop.permute.xlu1 %4764 }
0x153b   : > { %8458 = vpow2.f32 %v4716_v4  ;;  %7834 = vmatprep.subr.mxu1 %v4767_v51 }
0x153c   : > { %8460 = vpow2.f32 %v4718_v34  ;;  %7835 = vmatpush3.msra.mxu1 %v4767_v51 }
0x153d   : > { %7836 = vmatprep.subr.mxu1 %v4765_v39 }
0x153e   : > { %7837 = vmatpush3.msra.mxu1 %v4765_v39 }
0x1540   : > { %v8455_v55 = vpop.eup %8454 }
0x1541   : > { %v4729_v30 = vsel %vm1590_vm5, %v8455_v55, 0.0 }
0x1542   : > { %4730 = vadd.xlane.f32.xlu1 %v4729_v30  ;;  %v7876_v30 = vpop.f32.mrf.mxu0 }
0x1544   : > { %v8457_v19 = vpop.eup %8456 }
0x1545   : > { %v4735_v5 = vsel %vm1590_vm5, %v8457_v19, 0.0 }
0x1546   : > { %4736 = vadd.xlane.f32.xlu1 %v4735_v5 }
0x1548   : > { %v8459_v46 = vpop.eup %8458 }
0x1549   : > { %v8461_v28 = vpop.eup %8460  ;;  %v4738_v59 = vsel %vm1590_vm5, %v8459_v46, 0.0 }
0x154a   : > { %4739 = vadd.xlane.f32.xlu1 %v4738_v59  ;;  %v4741_v29 = vsel %vm1590_vm5, %v8461_v28, 0.0 }
0x154b   : > { %4742 = vadd.xlane.f32.xlu0 %v4741_v29  ;;  %v7095_v29 = vld [vmem:[%s11443_s11 + $0x1] ss:$0 sm:$0xff] }
0x155b   : > { %4762 = vrot.lane.b32.xlu1 %v10343_v53, %s11631_s6 }
0x1561   : > { %4760 = vrot.lane.b32.xlu0 %v10315_v3, %s11631_s6  ;;  %s11633_s6 = sld [smem:[#allocation4_spill]] }
0x1594   : > { %v4725_v16 = vpop.xlane.xlu1 %4724 }
0x1596   : > { %v4722_v50 = vpop.xlane.xlu0 %4721 }
0x1597   : > { %8462 = vrcp.f32 %v4722_v50 }
0x1598   : > { %8464 = vrcp.f32 %v4725_v16 }
0x159a   : > { %v4728_v57 = vpop.xlane.xlu0 %4727 }
0x159b   : > { %8466 = vrcp.f32 %v4728_v57 }
0x159e   : > { %v4734_v10 = vpop.xlane.xlu0 %4733 }
0x15a4   : > { %v8463_v32 = vpop.eup %8462 }
0x15a5   : > { %v4752_v45 = vmul.f32 %v8463_v32, %v8449_v0  ;;  %v8465_v3 = vpop.eup %8464  ;;  %v7029_v0 = vld [vmem:[%s11442_s10 + $0x38] sm:$0xff] }
0x15a6   : > { %v4753_v41 = vmul.f32 %v8465_v3, %v10613_v63 }
0x15a7   : > { %7842 = vmatprep.mubr.msk.f32.mxu1 %vm1590_vm5, %v4752_v45 }
0x15a8   : > { %v8467_v11 = vpop.eup %8466 }
0x15a9   : > { %v4754_v31 = vmul.f32 %v8467_v11, %v10618_v15 }
0x15cb   : > { %v4731_v27 = vpop.xlane.xlu1 %4730 }
0x15cc   : > { %8468 = vrcp.f32 %v4731_v27 }
0x15cd   : > { %8470 = vrcp.f32 %v4734_v10 }
0x15cf   : > { %v4737_v61 = vpop.xlane.xlu1 %4736 }
0x15d0   : > { %8472 = vrcp.f32 %v4737_v61 }
0x15d3   : > { %v4740_v53 = vpop.xlane.xlu1 %4739 }
0x15d4   : > { %v4743_v42 = vpop.xlane.xlu0 %4742  ;;  %8474 = vrcp.f32 %v4740_v53 }
0x15d5   : > { %8476 = vrcp.f32 %v4743_v42 }
0x15d7   : > { %v4763_v20 = vpop.permute.xlu1 %4762 }
0x15d8   : > { %7838 = vmatprep.subr.mxu1 %v4763_v20  ;;  %v4761_v33 = vpop.permute.xlu0 %4760 }
0x15d9   : > { %7839 = vmatpush3.msra.mxu1 %v4763_v20  ;;  %v8469_v22 = vpop.eup %8468 }
0x15da   : > { %7840 = vmatprep.subr.mxu1 %v4761_v33  ;;  %v8471_v23 = vpop.eup %8470  ;;  %v4755_v49 = vmul.f32 %v8469_v22, %v8455_v55 }
0x15db   : > { %7841 = vmatpush3.msra.mxu1 %v4761_v33  ;;  %v4756_v48 = vmul.f32 %v8471_v23, %v10622_v18 }
0x15dc   : > { %7843 = vmatmul.mubr.msk.f32.vlgmr.msra.gmra.mxu1 %vm1590_vm5, %v4753_v41  ;;  %7854 = vmatprep.subr.mxu1 %v7029_v0 }
0x15dd   : > { %7845 = vmatprep.mubr.msk.f32.mxu1 %vm1590_vm5, %v4754_v31  ;;  %7855 = vmatpush3.msra.mxu1 %v7029_v0  ;;  %v8473_v21 = vpop.eup %8472 }
0x15de   : > { %v4757_v63 = vmul.f32 %v8473_v21, %v8457_v19  ;;  %7856 = vmatprep.subr.mxu1 %v7028_v58  ;;  %v5132_v19 = vpop.f32.mrf.mxu0 }
0x15df   : > { %7857 = vmatpush3.msra.mxu1 %v7028_v58 }
0x15e0   : > { %7846 = vmatmul.mubr.msk.f32.gmra.mxu1 %vm1590_vm5, %v4755_v49  ;;  %v7879_v5 = vpop.f32.mrf.mxu0 }
0x15e1   : > { %v8475_v6 = vpop.eup %8474  ;;  %7848 = vmatprep.mubr.msk.f32.mxu1 %vm1590_vm5, %v4756_v48 }
0x15e2   : > { %v4758_v52 = vmul.f32 %v8475_v6, %v8459_v46  ;;  %v8477_v47 = vpop.eup %8476  ;;  %v5142_v46 = vpop.f32.mrf.mxu0 }
0x15e3   : > { %v4759_v15 = vmul.f32 %v8477_v47, %v8461_v28 }
0x15e4   : > { %7849 = vmatmul.mubr.msk.f32.gmra.mxu1 %vm1590_vm5, %v4757_v63  ;;  %v7882_v57 = vpop.f32.mrf.mxu0 }
0x15e5   : > { %7851 = vmatprep.mubr.msk.f32.mxu1 %vm1590_vm5, %v4758_v52 }
0x15e6   : > { %v5152_v33 = vpop.f32.mrf.mxu0 }
0x15e8   : > { %7852 = vmatmul.mubr.msk.f32.gmra.mxu1 %vm1590_vm5, %v4759_v15  ;;  %v7885_v31 = vpop.f32.mrf.mxu0 }
0x15ea   : > { %v5162_v15 = vpop.f32.mrf.mxu0 }
0x169c   : > { %v7844_v18 = vpop.f32.mrf.mxu1 }
0x169e   : > { %v4874_v37 = vpop.f32.mrf.mxu1 }
0x169f   : > { %7858 = vmatprep.mubr.msk.f32.mxu1 %vm1563_vm2, %v4874_v37 }
0x16a0   : > { %v7847_v13 = vpop.f32.mrf.mxu1  ;;  %7859 = vmatmul.mubr.msk.f32.vlgmr.msra.gmra.mxu1 %vm1563_vm2, %v7844_v18 }
0x16a2   : > { %v4884_v4 = vpop.f32.mrf.mxu1 }
0x16a3   : > { %7861 = vmatprep.mubr.msk.f32.mxu1 %vm1563_vm2, %v4884_v4 }
0x16a4   : > { %v7850_v34 = vpop.f32.mrf.mxu1  ;;  %7862 = vmatmul.mubr.msk.f32.gmra.mxu1 %vm1563_vm2, %v7847_v13 }
0x16a6   : > { %v4894_v51 = vpop.f32.mrf.mxu1 }
0x16a7   : > { %7864 = vmatprep.mubr.msk.f32.mxu1 %vm1563_vm2, %v4894_v51 }
0x16a8   : > { %v7853_v39 = vpop.f32.mrf.mxu1  ;;  %7865 = vmatmul.mubr.msk.f32.gmra.mxu1 %vm1563_vm2, %v7850_v34 }
0x16aa   : > { %v4904_v55 = vpop.f32.mrf.mxu1 }
0x16ab   : > { %7867 = vmatprep.mubr.msk.f32.mxu1 %vm1563_vm2, %v4904_v55 }
0x16ac   : > { %7868 = vmatmul.mubr.msk.f32.gmra.mxu1 %vm1563_vm2, %v7853_v39 }
0x1760   : > { %v7860_v28 = vpop.f32.mrf.mxu1 }
0x1761   : > { %v5138_v59 = vadd.f32 %v7876_v30, %v7860_v28 }
0x1762   : > { %v5003_v50 = vpop.f32.mrf.mxu1 }
0x1763   : > { %v5172_v32 = vadd.f32 %v5138_v59, %v10191_v7  ;;  %v5133_v45 = vadd.f32 %v5132_v19, %v5003_v50 }
0x1764   : > { %v7863_v16 = vpop.f32.mrf.mxu1 }
0x1765   : > { %v10663_v27 = vadd.f32 %v7095_v29, %v5172_v32  ;;  %v5171_v10 = vadd.f32 %v5133_v45, %v10194_v60  ;;  %v5148_v61 = vadd.f32 %v7879_v5, %v7863_v16 }
0x1766   : > { %v5013_v53 = vpop.f32.mrf.mxu1 }
0x1767   : > { %v10666_v42 = vadd.f32 %v7095_v29, %v5171_v10  ;;  %v5174_v3 = vadd.f32 %v5148_v61, %v10201_v2  ;;  %v5143_v20 = vadd.f32 %v5142_v46, %v5013_v53  ;;  %v5202_v11 = vsel %vm1572_vm3, %v10663_v27, 0.0 }
0x1768   : > { %5203 = vadd.xlane.f32.xlu0 %v5202_v11  ;;  %v7866_v7 = vpop.f32.mrf.mxu1 }
0x1769   : > { %v10671_v0 = vadd.f32 %v7095_v29, %v5174_v3  ;;  %v5173_v41 = vadd.f32 %v5143_v20, %v10204_v12  ;;  %v5158_v22 = vadd.f32 %v7882_v57, %v7866_v7  ;;  %v5199_v60 = vsel %vm1572_vm3, %v10666_v42, 0.0 }
0x176a   : > { %5200 = vadd.xlane.f32.xlu1 %v5199_v60  ;;  %v5023_v23 = vpop.f32.mrf.mxu1 }
0x176b   : > { %v10676_v49 = vadd.f32 %v7095_v29, %v5173_v41  ;;  %v5176_v2 = vadd.f32 %v5158_v22, %v10209_v40  ;;  %v5153_v21 = vadd.f32 %v5152_v33, %v5023_v23  ;;  %v5208_v6 = vsel %vm1572_vm3, %v10671_v0, 0.0 }
0x176c   : > { %v7869_v48 = vpop.f32.mrf.mxu1 }
0x176d   : > { %v10681_v63 = vadd.f32 %v7095_v29, %v5176_v2  ;;  %v5175_v12 = vadd.f32 %v5153_v21, %v10214_v62  ;;  %v5168_v52 = vadd.f32 %v7885_v31, %v7869_v48  ;;  %v5205_v47 = vsel %vm1572_vm3, %v10676_v49, 0.0 }
0x176e   : > { %5209 = vadd.xlane.f32.xlu1 %v5208_v6  ;;  %5206 = vadd.xlane.f32.xlu0 %v5205_v47  ;;  %v5033_v58 = vpop.f32.mrf.mxu1 }
0x176f   : > { %v10686_v18 = vadd.f32 %v7095_v29, %v5175_v12  ;;  %v5178_v40 = vadd.f32 %v5168_v52, %v10219_v38  ;;  %v5163_v37 = vadd.f32 %v5162_v15, %v5033_v58  ;;  %v5214_v62 = vsel %vm1572_vm3, %v10681_v63, 0.0 }
0x1771   : > { %v10689_v13 = vadd.f32 %v7095_v29, %v5178_v40  ;;  %v5177_v4 = vadd.f32 %v5163_v37, %v10224_v24  ;;  %v5211_v34 = vsel %vm1572_vm3, %v10686_v18, 0.0 }
0x1772   : > { %5215 = vadd.xlane.f32.xlu1 %v5214_v62  ;;  %5212 = vadd.xlane.f32.xlu0 %v5211_v34  ;;  %v7103_v34 = vld [vmem:[%s11446_s14 + $0x38] sm:$0xff] }
0x1773   : > { %v10696_v51 = vadd.f32 %v7095_v29, %v5177_v4  ;;  %v5220_v39 = vsel %vm1572_vm3, %v10689_v13, 0.0  ;;  %7886 = vmatprep.subr.mxu1 %v7103_v34 }
0x1774   : > { %7887 = vmatpush3.msra.mxu1 %v7103_v34 }
0x1775   : > { %v5217_v38 = vsel %vm1572_vm3, %v10696_v51, 0.0 }
0x1776   : > { %5221 = vadd.xlane.f32.xlu1 %v5220_v39  ;;  %5218 = vadd.xlane.f32.xlu0 %v5217_v38  ;;  %v7102_v39 = vld [vmem:[%s11446_s14 + $0x30] sm:$0xff]  ;;  %v7101_v38 = vld [vmem:[%s11446_s14 + $0x28] sm:$0xff] }
0x1777   : > { %7888 = vmatprep.subr.mxu1 %v7102_v39 }
0x1778   : > { %7889 = vmatpush3.msra.mxu1 %v7102_v39 }
0x1779   : > { %7890 = vmatprep.subr.mxu1 %v7101_v38 }
0x177a   : > { %7891 = vmatpush3.msra.mxu1 %v7101_v38 }
0x17f1   : > { %v5204_v55 = vpop.xlane.xlu0 %5203 }
0x17f2   : > { %v5224_v24 = vmul.f32 0.03125, %v5204_v55  ;;  %v7100_v55 = vld [vmem:[%s11446_s14 + $0x20] sm:$0xff] }
0x17f3   : > { %v5201_v30 = vpop.xlane.xlu1 %5200  ;;  %7892 = vmatprep.subr.mxu1 %v7100_v55 }
0x17f4   : > { %v10703_v19 = vsub.f32 %v10663_v27, %v5224_v24  ;;  %v5223_v5 = vmul.f32 0.03125, %v5201_v30  ;;  %7893 = vmatpush3.msra.mxu1 %v7100_v55 }
0x17f6   : > { %v10706_v46 = vsub.f32 %v10666_v42, %v5223_v5  ;;  %v5240_v28 = vmul.f32 %v10703_v19, %v10703_v19 }
0x17f7   : > { %v5210_v59 = vpop.xlane.xlu1 %5209  ;;  %v5207_v29 = vpop.xlane.xlu0 %5206 }
0x17f8   : > { %v5226_v50 = vmul.f32 0.03125, %v5210_v59  ;;  %v5225_v32 = vmul.f32 0.03125, %v5207_v29  ;;  %v5250_v45 = vsel %vm1572_vm3, %v5240_v28, 0.0  ;;  %v5239_v57 = vmul.f32 %v10706_v46, %v10706_v46 }
0x17f9   : > { %5251 = vadd.xlane.f32.xlu1 %v5250_v45 }
0x17fa   : > { %v10714_v16 = vsub.f32 %v10671_v0, %v5226_v50  ;;  %v10717_v10 = vsub.f32 %v10676_v49, %v5225_v32  ;;  %v5247_v61 = vsel %vm1572_vm3, %v5239_v57, 0.0 }
0x17fb   : > { %v5216_v53 = vpop.xlane.xlu1 %5215  ;;  %v5213_v3 = vpop.xlane.xlu0 %5212  ;;  %5248 = vadd.xlane.f32.xlu0 %v5247_v61 }
0x17fc   : > { %v5228_v20 = vmul.f32 0.03125, %v5216_v53  ;;  %v5227_v11 = vmul.f32 0.03125, %v5213_v3  ;;  %v5242_v33 = vmul.f32 %v10714_v16, %v10714_v16  ;;  %v5241_v7 = vmul.f32 %v10717_v10, %v10717_v10 }
0x17fe   : > { %v10725_v41 = vsub.f32 %v10681_v63, %v5228_v20  ;;  %v10728_v22 = vsub.f32 %v10686_v18, %v5227_v11  ;;  %v5256_v60 = vsel %vm1572_vm3, %v5242_v33, 0.0  ;;  %v5253_v31 = vsel %vm1572_vm3, %v5241_v7, 0.0 }
0x17ff   : > { %5257 = vadd.xlane.f32.xlu1 %v5256_v60  ;;  %v5222_v23 = vpop.xlane.xlu1 %5221  ;;  %5254 = vadd.xlane.f32.xlu0 %v5253_v31  ;;  %v5219_v2 = vpop.xlane.xlu0 %5218 }
0x1800   : > { %v5230_v21 = vmul.f32 0.03125, %v5222_v23  ;;  %v5229_v48 = vmul.f32 0.03125, %v5219_v2  ;;  %v5244_v6 = vmul.f32 %v10725_v41, %v10725_v41  ;;  %v5243_v12 = vmul.f32 %v10728_v22, %v10728_v22 }
0x1802   : > { %v10737_v52 = vsub.f32 %v10689_v13, %v5230_v21  ;;  %v10740_v47 = vsub.f32 %v10696_v51, %v5229_v48  ;;  %v5262_v15 = vsel %vm1572_vm3, %v5244_v6, 0.0  ;;  %v5259_v58 = vsel %vm1572_vm3, %v5243_v12, 0.0 }
0x1803   : > { %5263 = vadd.xlane.f32.xlu1 %v5262_v15  ;;  %5260 = vadd.xlane.f32.xlu0 %v5259_v58  ;;  %v7098_v15 = vld [vmem:[%s11444_s12 + $0x1] ss:$0 sm:$0xff] }
0x1804   : > { %v5246_v40 = vmul.f32 %v10737_v52, %v10737_v52  ;;  %v5245_v37 = vmul.f32 %v10740_v47, %v10740_v47 }
0x1806   : > { %v5268_v4 = vsel %vm1572_vm3, %v5246_v40, 0.0  ;;  %v5265_v62 = vsel %vm1572_vm3, %v5245_v37, 0.0 }
0x1807   : > { %5269 = vadd.xlane.f32.xlu1 %v5268_v4  ;;  %5266 = vadd.xlane.f32.xlu0 %v5265_v62  ;;  %v7099_v62 = vld [vmem:[%s11445_s13 + $0x1] ss:$0 sm:$0xff] }
0x1882   : > { %v5252_v24 = vpop.xlane.xlu1 %5251 }
0x1883   : > { %v5272_v30 = vmul.f32 0.03125, %v5252_v24 }
0x1884   : > { %v5249_v5 = vpop.xlane.xlu0 %5248 }
0x1885   : > { %v5280_v28 = vadd.f32 1e-05, %v5272_v30  ;;  %v5271_v59 = vmul.f32 0.03125, %v5249_v5 }
0x1887   : > { %8478 = vrsqrt.f32 %v5280_v28  ;;  %v5279_v29 = vadd.f32 1e-05, %v5271_v59 }
0x1888   : > { %v5258_v50 = vpop.xlane.xlu1 %5257  ;;  %v5255_v32 = vpop.xlane.xlu0 %5254 }
0x1889   : > { %8480 = vrsqrt.f32 %v5279_v29  ;;  %v5274_v45 = vmul.f32 0.03125, %v5258_v50  ;;  %v5273_v57 = vmul.f32 0.03125, %v5255_v32 }
0x188b   : > { %v5282_v61 = vadd.f32 1e-05, %v5274_v45  ;;  %v5281_v53 = vadd.f32 1e-05, %v5273_v57 }
0x188c   : > { %v5264_v3 = vpop.xlane.xlu1 %5263  ;;  %v5261_v20 = vpop.xlane.xlu0 %5260 }
0x188d   : > { %8482 = vrsqrt.f32 %v5282_v61  ;;  %v5276_v11 = vmul.f32 0.03125, %v5264_v3  ;;  %v5275_v33 = vmul.f32 0.03125, %v5261_v20 }
0x188e   : > { %8484 = vrsqrt.f32 %v5281_v53 }
0x188f   : > { %v5284_v7 = vadd.f32 1e-05, %v5276_v11  ;;  %v5283_v60 = vadd.f32 1e-05, %v5275_v33 }
0x1890   : > { %v5270_v31 = vpop.xlane.xlu1 %5269  ;;  %v5267_v23 = vpop.xlane.xlu0 %5266 }
0x1891   : > { %8486 = vrsqrt.f32 %v5284_v7  ;;  %v5278_v2 = vmul.f32 0.03125, %v5270_v31  ;;  %v5277_v21 = vmul.f32 0.03125, %v5267_v23  ;;  %v7118_v31 = vld [vmem:[%s11448_s16 + $0x60] sm:$0xff]  ;;  %v7117_v23 = vld [vmem:[%s11448_s16 + $0x58] sm:$0xff] }
0x1892   : > { %8488 = vrsqrt.f32 %v5283_v60  ;;  %v7121_v60 = vld [vmem:[%s11448_s16 + $0x78] sm:$0xff] }
0x1893   : > { %v5286_v48 = vadd.f32 1e-05, %v5278_v2  ;;  %v5285_v6 = vadd.f32 1e-05, %v5277_v21  ;;  %7906 = vmatprep.subr.mxu0 %v7121_v60  ;;  %v7116_v2 = vld [vmem:[%s11448_s16 + $0x50] sm:$0xff]  ;;  %v7115_v21 = vld [vmem:[%s11448_s16 + $0x48] sm:$0xff] }
0x1894   : > { %v8479_v12 = vpop.eup %8478  ;;  %7907 = vmatpush3.msra.mxu0 %v7121_v60 }
0x1895   : > { %v5296_v58 = vmul.f32 %v8479_v12, %v10703_v19  ;;  %8490 = vrsqrt.f32 %v5286_v48  ;;  %v7114_v48 = vld [vmem:[%s11448_s16 + $0x40] sm:$0xff] }
0x1896   : > { %v8481_v40 = vpop.eup %8480  ;;  %8492 = vrsqrt.f32 %v5285_v6  ;;  %v7105_v6 = vld [vmem:[%s11447_s15 + $0x1] ss:$0 sm:$0xff] }
0x1897   : > { %v5295_v37 = vmul.f32 %v8481_v40, %v10706_v46  ;;  %v5310_v4 = vmul.f32 %v7098_v15, %v5296_v58 }
0x1899   : > { %v5309_v34 = vmul.f32 %v7098_v15, %v5295_v37  ;;  %v5324_v30 = vadd.f32 %v7099_v62, %v5310_v4 }
0x189a   : > { %v8483_v39 = vpop.eup %8482 }
0x189b   : > { %v8485_v38 = vpop.eup %8484  ;;  %v5323_v55 = vadd.f32 %v7099_v62, %v5309_v34  ;;  %v5298_v24 = vmul.f32 %v8483_v39, %v10714_v16 }
0x189c   : > { %v5297_v5 = vmul.f32 %v8485_v38, %v10717_v10 }
0x189d   : > { %7894 = vmatprep.mubr.msk.f32.mxu1 %vm1572_vm3, %v5323_v55  ;;  %v5312_v19 = vmul.f32 %v7098_v15, %v5298_v24 }
0x189e   : > { %v8487_v28 = vpop.eup %8486  ;;  %7895 = vmatmul.mubr.msk.f32.vlgmr.msra.gmra.mxu1 %vm1572_vm3, %v5324_v30  ;;  %v5311_v46 = vmul.f32 %v7098_v15, %v5297_v5 }
0x189f   : > { %v8489_v59 = vpop.eup %8488  ;;  %v5326_v29 = vadd.f32 %v7099_v62, %v5312_v19  ;;  %v5300_v50 = vmul.f32 %v8487_v28, %v10725_v41 }
0x18a0   : > { %v5325_v32 = vadd.f32 %v7099_v62, %v5311_v46  ;;  %v5299_v45 = vmul.f32 %v8489_v59, %v10728_v22 }
0x18a1   : > { %v5314_v57 = vmul.f32 %v7098_v15, %v5300_v50 }
0x18a2   : > { %v8491_v61 = vpop.eup %8490  ;;  %7897 = vmatprep.mubr.msk.f32.mxu1 %vm1572_vm3, %v5325_v32  ;;  %v5313_v16 = vmul.f32 %v7098_v15, %v5299_v45 }
0x18a3   : > { %v8493_v10 = vpop.eup %8492  ;;  %7898 = vmatmul.mubr.msk.f32.gmra.mxu1 %vm1572_vm3, %v5326_v29  ;;  %v5328_v53 = vadd.f32 %v7099_v62, %v5314_v57  ;;  %v5302_v3 = vmul.f32 %v8491_v61, %v10737_v52  ;;  %v7120_v52 = vld [vmem:[%s11448_s16 + $0x70] sm:$0xff] }
0x18a4   : > { %v5327_v20 = vadd.f32 %v7099_v62, %v5313_v16  ;;  %v5301_v11 = vmul.f32 %v8493_v10, %v10740_v47  ;;  %7908 = vmatprep.subr.mxu0 %v7120_v52  ;;  %v7119_v47 = vld [vmem:[%s11448_s16 + $0x68] sm:$0xff] }
0x18a5   : > { %v5316_v33 = vmul.f32 %v7098_v15, %v5302_v3  ;;  %7909 = vmatpush3.msra.mxu0 %v7120_v52 }
0x18a6   : > { %7900 = vmatprep.mubr.msk.f32.mxu1 %vm1572_vm3, %v5327_v20  ;;  %v5315_v41 = vmul.f32 %v7098_v15, %v5301_v11  ;;  %7910 = vmatprep.subr.mxu0 %v7119_v47 }
0x18a7   : > { %7901 = vmatmul.mubr.msk.f32.gmra.mxu1 %vm1572_vm3, %v5328_v53  ;;  %v5330_v22 = vadd.f32 %v7099_v62, %v5316_v33  ;;  %7911 = vmatpush3.msra.mxu0 %v7119_v47 }
0x18a8   : > { %v5329_v7 = vadd.f32 %v7099_v62, %v5315_v41  ;;  %7912 = vmatprep.subr.mxu0 %v7118_v31 }
0x18a9   : > { %7913 = vmatpush3.msra.mxu0 %v7118_v31 }
0x18aa   : > { %7903 = vmatprep.mubr.msk.f32.mxu1 %vm1572_vm3, %v5329_v7  ;;  %7914 = vmatprep.subr.mxu0 %v7117_v23 }
0x18ab   : > { %7904 = vmatmul.mubr.msk.f32.gmra.mxu1 %vm1572_vm3, %v5330_v22  ;;  %7915 = vmatpush3.msra.mxu0 %v7117_v23 }
0x18ac   : > { %7916 = vmatprep.subr.mxu0 %v7116_v2 }
0x18ad   : > { %7917 = vmatpush3.msra.mxu0 %v7116_v2 }
0x18ae   : > { %7918 = vmatprep.subr.mxu0 %v7115_v21 }
0x18af   : > { %7919 = vmatpush3.msra.mxu0 %v7115_v21 }
0x18b0   : > { %7920 = vmatprep.subr.mxu0 %v7114_v48 }
0x18b1   : > { %7921 = vmatpush3.msra.mxu0 %v7114_v48 }
0x195e   : > { %v7896_v12 = vpop.f32.mrf.mxu1 }
0x195f   : > { %v10811_v15 = vadd.f32 %v7896_v12, %v7105_v6 }
0x1960   : > { %v5434_v58 = vpop.f32.mrf.mxu1 }
0x1961   : > { %v5474_v40 = vsub.f32 0.0, %v10811_v15  ;;  %v5435_v37 = vadd.f32 %v7105_v6, %v5434_v58 }
0x1963   : > { %v5483_v4 = vmul.f32 1.442695, %v5474_v40  ;;  %v5473_v62 = vsub.f32 0.0, %v5435_v37  ;;  %v7899_v34 = vpop.f32.mrf.mxu1 }
0x1964   : > { %v10814_v39 = vadd.f32 %v7899_v34, %v7105_v6 }
0x1965   : > { %8494 = vpow2.f32 %v5483_v4  ;;  %v5481_v38 = vmul.f32 1.442695, %v5473_v62  ;;  %v5444_v55 = vpop.f32.mrf.mxu1 }
0x1966   : > { %v5476_v24 = vsub.f32 0.0, %v10814_v39  ;;  %v5445_v30 = vadd.f32 %v7105_v6, %v5444_v55 }
0x1967   : > { %8496 = vpow2.f32 %v5481_v38  ;;  %v7902_v5 = vpop.f32.mrf.mxu1 }
0x1968   : > { %v5487_v19 = vmul.f32 1.442695, %v5476_v24  ;;  %v5475_v28 = vsub.f32 0.0, %v5445_v30  ;;  %v5460_v46 = vadd.f32 %v7902_v5, %v7105_v6 }
0x1969   : > { %v5454_v59 = vpop.f32.mrf.mxu1 }
0x196a   : > { %8498 = vpow2.f32 %v5487_v19  ;;  %v5485_v29 = vmul.f32 1.442695, %v5475_v28  ;;  %v5478_v50 = vsub.f32 0.0, %v5460_v46  ;;  %v5455_v32 = vadd.f32 %v7105_v6, %v5454_v59 }
0x196b   : > { %v7905_v45 = vpop.f32.mrf.mxu1 }
0x196c   : > { %8500 = vpow2.f32 %v5485_v29  ;;  %v5491_v57 = vmul.f32 1.442695, %v5478_v50  ;;  %v5477_v61 = vsub.f32 0.0, %v5455_v32  ;;  %v5470_v16 = vadd.f32 %v7905_v45, %v7105_v6 }
0x196d   : > { %v5464_v10 = vpop.f32.mrf.mxu1 }
0x196e   : > { %8502 = vpow2.f32 %v5491_v57  ;;  %v5489_v53 = vmul.f32 1.442695, %v5477_v61  ;;  %v5480_v3 = vsub.f32 0.0, %v5470_v16  ;;  %v5465_v20 = vadd.f32 %v7105_v6, %v5464_v10 }
0x1970   : > { %8504 = vpow2.f32 %v5489_v53  ;;  %v5495_v11 = vmul.f32 1.442695, %v5480_v3  ;;  %v5479_v33 = vsub.f32 0.0, %v5465_v20 }
0x1972   : > { %v8495_v41 = vpop.eup %8494  ;;  %8506 = vpow2.f32 %v5495_v11  ;;  %v5493_v22 = vmul.f32 1.442695, %v5479_v33 }
0x1973   : > { %v5498_v7 = vadd.f32 1.0, %v8495_v41 }
0x1974   : > { %v8497_v60 = vpop.eup %8496  ;;  %8508 = vpow2.f32 %v5493_v22 }
0x1975   : > { %v5497_v52 = vadd.f32 1.0, %v8497_v60  ;;  %8510 = vrcp.f32 %v5498_v7 }
0x1977   : > { %v8499_v47 = vpop.eup %8498  ;;  %8512 = vrcp.f32 %v5497_v52 }
0x1978   : > { %v5500_v31 = vadd.f32 1.0, %v8499_v47 }
0x1979   : > { %v8501_v23 = vpop.eup %8500 }
0x197a   : > { %v5499_v2 = vadd.f32 1.0, %v8501_v23  ;;  %8514 = vrcp.f32 %v5500_v31 }
0x197b   : > { %v8503_v21 = vpop.eup %8502 }
0x197c   : > { %8516 = vrcp.f32 %v5499_v2  ;;  %v5502_v48 = vadd.f32 1.0, %v8503_v21 }
0x197d   : > { %v8505_v6 = vpop.eup %8504 }
0x197e   : > { %v5501_v12 = vadd.f32 1.0, %v8505_v6  ;;  %8518 = vrcp.f32 %v5502_v48 }
0x197f   : > { %v8507_v58 = vpop.eup %8506 }
0x1980   : > { %8520 = vrcp.f32 %v5501_v12  ;;  %v5504_v40 = vadd.f32 1.0, %v8507_v58 }
0x1981   : > { %v8509_v4 = vpop.eup %8508 }
0x1982   : > { %v5503_v62 = vadd.f32 1.0, %v8509_v4  ;;  %v8511_v34 = vpop.eup %8510  ;;  %8522 = vrcp.f32 %v5504_v40 }
0x1983   : > { %v5522_v24 = vmul.f32 %v8511_v34, %v10811_v15 }
0x1984   : > { %v8513_v38 = vpop.eup %8512  ;;  %8524 = vrcp.f32 %v5503_v62 }
0x1985   : > { %v5521_v55 = vmul.f32 %v8513_v38, %v5435_v37 }
0x1987   : > { %7922 = vmatprep.mubr.msk.f32.mxu0 %vm1590_vm5, %v5521_v55  ;;  %v8515_v5 = vpop.eup %8514 }
0x1988   : > { %7923 = vmatmul.mubr.msk.f32.vlgmr.msra.gmra.mxu0 %vm1590_vm5, %v5522_v24  ;;  %v5524_v59 = vmul.f32 %v8515_v5, %v10814_v39 }
0x1989   : > { %v8517_v19 = vpop.eup %8516 }
0x198a   : > { %v5523_v28 = vmul.f32 %v8517_v19, %v5445_v30  ;;  %v7131_v30 = vld [vmem:[%s11449_s17 + $0x1] ss:$0 sm:$0xff] }
0x198b   : > { %v8519_v29 = vpop.eup %8518 }
0x198c   : > { %7925 = vmatprep.mubr.msk.f32.mxu0 %vm1590_vm5, %v5523_v28  ;;  %v5526_v57 = vmul.f32 %v8519_v29, %v5460_v46 }
0x198d   : > { %v8521_v50 = vpop.eup %8520  ;;  %7926 = vmatmul.mubr.msk.f32.gmra.mxu0 %vm1590_vm5, %v5524_v59 }
0x198e   : > { %v5525_v45 = vmul.f32 %v8521_v50, %v5455_v32 }
0x198f   : > { %v8523_v37 = vpop.eup %8522 }
0x1990   : > { %7928 = vmatprep.mubr.msk.f32.mxu0 %vm1590_vm5, %v5525_v45  ;;  %v5528_v10 = vmul.f32 %v8523_v37, %v5470_v16 }
0x1991   : > { %v8525_v15 = vpop.eup %8524  ;;  %7929 = vmatmul.mubr.msk.f32.gmra.mxu0 %vm1590_vm5, %v5526_v57 }
0x1992   : > { %v5527_v61 = vmul.f32 %v8525_v15, %v5465_v20 }
0x1994   : > { %7931 = vmatprep.mubr.msk.f32.mxu0 %vm1590_vm5, %v5527_v61 }
0x1995   : > { %7932 = vmatmul.mubr.msk.f32.gmra.mxu0 %vm1590_vm5, %v5528_v10 }
0x1a48   : > { %v7924_v39 = vpop.f32.mrf.mxu0 }
0x1a49   : > { %v5668_v32 = vadd.f32 %v7924_v39, %v10663_v27 }
0x1a4a   : > { %v5628_v46 = vpop.f32.mrf.mxu0 }
0x1a4b   : > { %v5684_v53 = vadd.f32 %v7131_v30, %v5668_v32  ;;  %v5667_v3 = vadd.f32 %v5628_v46, %v10666_v42 }
0x1a4d   : > { %v5683_v11 = vadd.f32 %v7131_v30, %v5667_v3  ;;  %v7927_v33 = vpop.f32.mrf.mxu0  ;;  %v5696_v20 = vsel %vm1572_vm3, %v5684_v53, 0.0 }
0x1a4e   : > { %v5670_v16 = vadd.f32 %v7927_v33, %v10671_v0  ;;  %5697 = vadd.xlane.f32.xlu1 %v5696_v20 }
0x1a4f   : > { %v5638_v41 = vpop.f32.mrf.mxu0  ;;  %v5693_v22 = vsel %vm1572_vm3, %v5683_v11, 0.0 }
0x1a50   : > { %v5686_v7 = vadd.f32 %v7131_v30, %v5670_v16  ;;  %v5669_v60 = vadd.f32 %v5638_v41, %v10676_v49  ;;  %5694 = vadd.xlane.f32.xlu0 %v5693_v22 }
0x1a51   : > { %v7930_v52 = vpop.f32.mrf.mxu0 }
0x1a52   : > { %v5685_v27 = vadd.f32 %v7131_v30, %v5669_v60  ;;  %v5672_v47 = vadd.f32 %v7930_v52, %v10681_v63  ;;  %v5702_v42 = vsel %vm1572_vm3, %v5686_v7, 0.0 }
0x1a53   : > { %5703 = vadd.xlane.f32.xlu1 %v5702_v42  ;;  %v5648_v31 = vpop.f32.mrf.mxu0 }
0x1a54   : > { %v5688_v23 = vadd.f32 %v7131_v30, %v5672_v47  ;;  %v5671_v2 = vadd.f32 %v5648_v31, %v10686_v18  ;;  %v5699_v0 = vsel %vm1572_vm3, %v5685_v27, 0.0 }
0x1a55   : > { %5700 = vadd.xlane.f32.xlu0 %v5699_v0  ;;  %v7933_v21 = vpop.f32.mrf.mxu0 }
0x1a56   : > { %v5687_v48 = vadd.f32 %v7131_v30, %v5671_v2  ;;  %v5674_v6 = vadd.f32 %v7933_v21, %v10689_v13  ;;  %v5708_v49 = vsel %vm1572_vm3, %v5688_v23, 0.0  ;;  %v5828_v21 = vld [vmem:[%s11452_s20 + $0x18] sm:$0xff] }
0x1a57   : > { %5709 = vadd.xlane.f32.xlu1 %v5708_v49  ;;  %v5658_v12 = vpop.f32.mrf.mxu0  ;;  %7934 = vmatprep.subr.mxu1 %v5828_v21  ;;  %v5825_v49 = vld [vmem:[%s11452_s20] sm:$0xff] }
0x1a58   : > { %v5690_v58 = vadd.f32 %v7131_v30, %v5674_v6  ;;  %v5673_v63 = vadd.f32 %v5658_v12, %v10696_v51  ;;  %v5705_v40 = vsel %vm1572_vm3, %v5687_v48, 0.0  ;;  %7935 = vmatpush3.msra.mxu1 %v5828_v21  ;;  %v5826_v6 = vld [vmem:[%s11452_s20 + $0x8] sm:$0xff] }
0x1a59   : > { %5706 = vadd.xlane.f32.xlu0 %v5705_v40 }
0x1a5a   : > { %v5689_v4 = vadd.f32 %v7131_v30, %v5673_v63  ;;  %v5714_v18 = vsel %vm1572_vm3, %v5690_v58, 0.0 }
0x1a5b   : > { %5715 = vadd.xlane.f32.xlu1 %v5714_v18 }
0x1a5c   : > { %v5711_v62 = vsel %vm1572_vm3, %v5689_v4, 0.0 }
0x1a5d   : > { %5712 = vadd.xlane.f32.xlu0 %v5711_v62 }
0x1ad7   : > { %v5698_v34 = vpop.xlane.xlu1 %5697 }
0x1ad8   : > { %v5718_v38 = vmul.f32 0.03125, %v5698_v34 }
0x1ad9   : > { %v5695_v13 = vpop.xlane.xlu0 %5694 }
0x1ada   : > { %v10846_v55 = vsub.f32 %v5684_v53, %v5718_v38  ;;  %v5717_v24 = vmul.f32 0.03125, %v5695_v13 }
0x1adc   : > { %v10848_v5 = vsub.f32 %v5683_v11, %v5717_v24  ;;  %v5704_v19 = vpop.xlane.xlu1 %5703  ;;  %v5734_v51 = vmul.f32 %v10846_v55, %v10846_v55 }
0x1add   : > { %v5720_v28 = vmul.f32 0.03125, %v5704_v19 }
0x1ade   : > { %v5701_v59 = vpop.xlane.xlu0 %5700  ;;  %v5744_v29 = vsel %vm1572_vm3, %v5734_v51, 0.0  ;;  %v5733_v50 = vmul.f32 %v10848_v5, %v10848_v5 }
0x1adf   : > { %v10855_v45 = vsub.f32 %v5686_v7, %v5720_v28  ;;  %v5719_v57 = vmul.f32 0.03125, %v5701_v59  ;;  %5745 = vadd.xlane.f32.xlu1 %v5744_v29 }
0x1ae0   : > { %v5710_v37 = vpop.xlane.xlu1 %5709  ;;  %v5741_v15 = vsel %vm1572_vm3, %v5733_v50, 0.0 }
0x1ae1   : > { %v10858_v61 = vsub.f32 %v5685_v27, %v5719_v57  ;;  %v5722_v10 = vmul.f32 0.03125, %v5710_v37  ;;  %5742 = vadd.xlane.f32.xlu0 %v5741_v15  ;;  %v5736_v39 = vmul.f32 %v10855_v45, %v10855_v45 }
0x1ae2   : > { %v5707_v30 = vpop.xlane.xlu0 %5706 }
0x1ae3   : > { %v10862_v32 = vsub.f32 %v5688_v23, %v5722_v10  ;;  %v5721_v46 = vmul.f32 0.03125, %v5707_v30  ;;  %v5750_v53 = vsel %vm1572_vm3, %v5736_v39, 0.0  ;;  %v5735_v3 = vmul.f32 %v10858_v61, %v10858_v61 }
0x1ae4   : > { %5751 = vadd.xlane.f32.xlu1 %v5750_v53  ;;  %v5716_v11 = vpop.xlane.xlu1 %5715 }
0x1ae5   : > { %v10867_v33 = vsub.f32 %v5687_v48, %v5721_v46  ;;  %v5724_v20 = vmul.f32 0.03125, %v5716_v11  ;;  %v5747_v16 = vsel %vm1572_vm3, %v5735_v3, 0.0  ;;  %v5738_v41 = vmul.f32 %v10862_v32, %v10862_v32  ;;  %v5827_v48 = vld [vmem:[%s11452_s20 + $0x10] sm:$0xff]  ;;  %v7132_v3 = vld [vmem:[%s11450_s18] ss:$0 sm:$0xff] }
0x1ae6   : > { %5748 = vadd.xlane.f32.xlu0 %v5747_v16  ;;  %v5713_v22 = vpop.xlane.xlu0 %5712  ;;  %7936 = vmatprep.subr.mxu1 %v5827_v48 }
0x1ae7   : > { %v10872_v7 = vsub.f32 %v5690_v58, %v5724_v20  ;;  %v5723_v60 = vmul.f32 0.03125, %v5713_v22  ;;  %v5756_v52 = vsel %vm1572_vm3, %v5738_v41, 0.0  ;;  %v5737_v27 = vmul.f32 %v10867_v33, %v10867_v33  ;;  %7937 = vmatpush3.msra.mxu1 %v5827_v48 }
0x1ae8   : > { %5757 = vadd.xlane.f32.xlu1 %v5756_v52  ;;  %7938 = vmatprep.subr.mxu1 %v5826_v6 }
0x1ae9   : > { %v10877_v47 = vsub.f32 %v5689_v4, %v5723_v60  ;;  %v5753_v42 = vsel %vm1572_vm3, %v5737_v27, 0.0  ;;  %v5740_v31 = vmul.f32 %v10872_v7, %v10872_v7  ;;  %7939 = vmatpush3.msra.mxu1 %v5826_v6  ;;  %v7133_v60 = vld [vmem:[%s11451_s19] ss:$0 sm:$0xff] }
0x1aea   : > { %5754 = vadd.xlane.f32.xlu0 %v5753_v42  ;;  %7940 = vmatprep.subr.mxu1 %v5825_v49 }
0x1aeb   : > { %v5762_v23 = vsel %vm1572_vm3, %v5740_v31, 0.0  ;;  %v5739_v2 = vmul.f32 %v10877_v47, %v10877_v47  ;;  %7941 = vmatpush3.msra.mxu1 %v5825_v49 }
0x1aec   : > { %5763 = vadd.xlane.f32.xlu1 %v5762_v23 }
0x1aed   : > { %v5759_v0 = vsel %vm1572_vm3, %v5739_v2, 0.0 }
0x1aee   : > { %5760 = vadd.xlane.f32.xlu0 %v5759_v0 }
0x1b68   : > { %v5746_v12 = vpop.xlane.xlu1 %5745 }
0x1b69   : > { %v5766_v58 = vmul.f32 0.03125, %v5746_v12 }
0x1b6a   : > { %v5743_v63 = vpop.xlane.xlu0 %5742 }
0x1b6b   : > { %v5774_v40 = vadd.f32 1e-05, %v5766_v58  ;;  %v5765_v4 = vmul.f32 0.03125, %v5743_v63 }
0x1b6d   : > { %8526 = vrsqrt.f32 %v5774_v40  ;;  %v5773_v18 = vadd.f32 1e-05, %v5765_v4  ;;  %v5752_v62 = vpop.xlane.xlu1 %5751 }
0x1b6e   : > { %v5768_v34 = vmul.f32 0.03125, %v5752_v62 }
0x1b6f   : > { %8528 = vrsqrt.f32 %v5773_v18  ;;  %v5749_v38 = vpop.xlane.xlu0 %5748 }
0x1b70   : > { %v5776_v13 = vadd.f32 1e-05, %v5768_v34  ;;  %v5767_v24 = vmul.f32 0.03125, %v5749_v38 }
0x1b71   : > { %v5758_v19 = vpop.xlane.xlu1 %5757 }
0x1b72   : > { %8530 = vrsqrt.f32 %v5776_v13  ;;  %v5775_v51 = vadd.f32 1e-05, %v5767_v24  ;;  %v5770_v28 = vmul.f32 0.03125, %v5758_v19 }
0x1b73   : > { %v5755_v59 = vpop.xlane.xlu0 %5754 }
0x1b74   : > { %8532 = vrsqrt.f32 %v5775_v51  ;;  %v5778_v29 = vadd.f32 1e-05, %v5770_v28  ;;  %v5769_v50 = vmul.f32 0.03125, %v5755_v59 }
0x1b75   : > { %v5764_v57 = vpop.xlane.xlu1 %5763 }
0x1b76   : > { %8534 = vrsqrt.f32 %v5778_v29  ;;  %v5777_v37 = vadd.f32 1e-05, %v5769_v50  ;;  %v5772_v15 = vmul.f32 0.03125, %v5764_v57 }
0x1b77   : > { %v5761_v10 = vpop.xlane.xlu0 %5760 }
0x1b78   : > { %8536 = vrsqrt.f32 %v5777_v37  ;;  %v5780_v39 = vadd.f32 1e-05, %v5772_v15  ;;  %v5771_v30 = vmul.f32 0.03125, %v5761_v10 }
0x1b7a   : > { %v8527_v46 = vpop.eup %8526  ;;  %8538 = vrsqrt.f32 %v5780_v39  ;;  %v5779_v53 = vadd.f32 1e-05, %v5771_v30 }
0x1b7b   : > { %v5790_v11 = vmul.f32 %v8527_v46, %v10846_v55 }
0x1b7c   : > { %v8529_v20 = vpop.eup %8528  ;;  %8540 = vrsqrt.f32 %v5779_v53 }
0x1b7d   : > { %v5789_v16 = vmul.f32 %v8529_v20, %v10848_v5  ;;  %v5804_v41 = vmul.f32 %v7132_v3, %v5790_v11 }
0x1b7f   : > { %v8531_v22 = vpop.eup %8530  ;;  %v5803_v52 = vmul.f32 %v7132_v3, %v5789_v16  ;;  %v5818_v23 = vadd.f32 %v7133_v60, %v5804_v41 }
0x1b80   : > { %v5792_v27 = vmul.f32 %v8531_v22, %v10855_v45 }
0x1b81   : > { %v8533_v42 = vpop.eup %8532  ;;  %v5817_v31 = vadd.f32 %v7133_v60, %v5803_v52 }
0x1b82   : > { %v5791_v2 = vmul.f32 %v8533_v42, %v10858_v61  ;;  %v5806_v55 = vmul.f32 %v7132_v3, %v5792_v27 }
0x1b83   : > { %v8535_v0 = vpop.eup %8534  ;;  %7942 = vmatprep.mubr.msk.f32.mxu1 %vm1572_vm3, %v5817_v31 }
0x1b84   : > { %7943 = vmatmul.mubr.msk.f32.vlgmr.msra.gmra.mxu1 %vm1572_vm3, %v5818_v23  ;;  %v5805_v5 = vmul.f32 %v7132_v3, %v5791_v2  ;;  %v5794_v21 = vmul.f32 %v8535_v0, %v10862_v32  ;;  %v5820_v45 = vadd.f32 %v7133_v60, %v5806_v55 }
0x1b85   : > { %v8537_v48 = vpop.eup %8536 }
0x1b86   : > { %v5819_v6 = vadd.f32 %v7133_v60, %v5805_v5  ;;  %v5793_v49 = vmul.f32 %v8537_v48, %v10867_v33  ;;  %v5808_v58 = vmul.f32 %v7132_v3, %v5794_v21 }
0x1b87   : > { %v8539_v12 = vpop.eup %8538 }
0x1b88   : > { %7945 = vmatprep.mubr.msk.f32.mxu1 %vm1572_vm3, %v5819_v6  ;;  %v5807_v63 = vmul.f32 %v7132_v3, %v5793_v49  ;;  %v5796_v61 = vmul.f32 %v8539_v12, %v10872_v7  ;;  %v5822_v62 = vadd.f32 %v7133_v60, %v5808_v58  ;;  %v7134_v7 = vld [vmem:[%s11453_s21] ss:$0 sm:$0xff] }
0x1b89   : > { %v8541_v40 = vpop.eup %8540  ;;  %7946 = vmatmul.mubr.msk.f32.gmra.mxu1 %vm1572_vm3, %v5820_v45 }
0x1b8a   : > { %v5821_v4 = vadd.f32 %v7133_v60, %v5807_v63  ;;  %v5795_v18 = vmul.f32 %v8541_v40, %v10877_v47  ;;  %v5810_v32 = vmul.f32 %v7132_v3, %v5796_v61 }
0x1b8c   : > { %7948 = vmatprep.mubr.msk.f32.mxu1 %vm1572_vm3, %v5821_v4  ;;  %v5809_v34 = vmul.f32 %v7132_v3, %v5795_v18  ;;  %v5824_v38 = vadd.f32 %v7133_v60, %v5810_v32  ;;  %v6096_v4 = vld [vmem:[%s11454_s22 + $0x118] sm:$0xff] }
0x1b8d   : > { %7949 = vmatmul.mubr.msk.f32.gmra.mxu1 %vm1572_vm3, %v5822_v62  ;;  %7954 = vmatprep.subr.mxu1 %v6096_v4 }
0x1b8e   : > { %v5823_v33 = vadd.f32 %v7133_v60, %v5809_v34  ;;  %7955 = vmatpush3.msra.mxu1 %v6096_v4  ;;  %v6095_v34 = vld [vmem:[%s11454_s22 + $0x110] sm:$0xff] }
0x1b8f   : > { %7956 = vmatprep.subr.mxu1 %v6095_v34 }
0x1b90   : > { %7951 = vmatprep.mubr.msk.f32.mxu1 %vm1572_vm3, %v5823_v33  ;;  %7957 = vmatpush3.msra.mxu1 %v6095_v34 }
0x1b91   : > { %7952 = vmatmul.mubr.msk.f32.gmra.mxu1 %vm1572_vm3, %v5824_v38 }
0x1c44   : > { %v7944_v13 = vpop.f32.mrf.mxu1 }
0x1c45   : > { %v10923_v24 = vadd.f32 %v7944_v13, %v7134_v7  ;;  %v6094_v13 = vld [vmem:[%s11454_s22 + $0x108] sm:$0xff] }
0x1c46   : > { %v5926_v47 = vpop.f32.mrf.mxu1  ;;  %7958 = vmatprep.subr.mxu1 %v6094_v13 }
0x1c47   : > { %v5966_v19 = vsub.f32 0.0, %v10923_v24  ;;  %v10926_v51 = vadd.f32 %v7134_v7, %v5926_v47  ;;  %7959 = vmatpush3.msra.mxu1 %v6094_v13 }
0x1c49   : > { %v5975_v28 = vmul.f32 1.442695, %v5966_v19  ;;  %v5965_v59 = vsub.f32 0.0, %v10926_v51  ;;  %v7947_v29 = vpop.f32.mrf.mxu1 }
0x1c4a   : > { %v10929_v50 = vadd.f32 %v7947_v29, %v7134_v7  ;;  %v6093_v29 = vld [vmem:[%s11454_s22 + $0x100] sm:$0xff] }
0x1c4b   : > { %8542 = vpow2.f32 %v5975_v28  ;;  %v5973_v57 = vmul.f32 1.442695, %v5965_v59  ;;  %v5936_v37 = vpop.f32.mrf.mxu1  ;;  %7960 = vmatprep.subr.mxu1 %v6093_v29 }
0x1c4c   : > { %v5968_v15 = vsub.f32 0.0, %v10929_v50  ;;  %v10932_v10 = vadd.f32 %v7134_v7, %v5936_v37  ;;  %7961 = vmatpush3.msra.mxu1 %v6093_v29  ;;  %v6080_v29 = vld [vmem:[%s11454_s22 + $0x98] sm:$0xff] }
0x1c4d   : > { %8544 = vpow2.f32 %v5973_v57  ;;  %v7950_v39 = vpop.f32.mrf.mxu1 }
0x1c4e   : > { %v5979_v30 = vmul.f32 1.442695, %v5968_v15  ;;  %v5967_v46 = vsub.f32 0.0, %v10932_v10  ;;  %v10935_v53 = vadd.f32 %v7950_v39, %v7134_v7 }
0x1c4f   : > { %v5946_v3 = vpop.f32.mrf.mxu1 }
0x1c50   : > { %8546 = vpow2.f32 %v5979_v30  ;;  %v5977_v11 = vmul.f32 1.442695, %v5967_v46  ;;  %v5970_v20 = vsub.f32 0.0, %v10935_v53  ;;  %v10938_v16 = vadd.f32 %v7134_v7, %v5946_v3 }
0x1c51   : > { %v7953_v41 = vpop.f32.mrf.mxu1 }
0x1c52   : > { %8548 = vpow2.f32 %v5977_v11  ;;  %v5983_v22 = vmul.f32 1.442695, %v5970_v20  ;;  %v5969_v60 = vsub.f32 0.0, %v10938_v16  ;;  %v10941_v52 = vadd.f32 %v7953_v41, %v7134_v7  ;;  %v6076_v11 = vld [vmem:[%s11454_s22 + $0x78] sm:$0xff]  ;;  %v6091_v20 = vld [vmem:[%s11454_s22 + $0xf0] sm:$0xff]  ;;  %v6090_v41 = vld [vmem:[%s11454_s22 + $0xe8] sm:$0xff] }
0x1c53   : > { %v5956_v27 = vpop.f32.mrf.mxu1 }
0x1c54   : > { %8550 = vpow2.f32 %v5983_v22  ;;  %v5981_v42 = vmul.f32 1.442695, %v5969_v60  ;;  %v5972_v31 = vsub.f32 0.0, %v10941_v52  ;;  %v10944_v23 = vadd.f32 %v7134_v7, %v5956_v27  ;;  %v6074_v22 = vld [vmem:[%s11454_s22 + $0x68] sm:$0xff]  ;;  %v6089_v60 = vld [vmem:[%s11454_s22 + $0xe0] sm:$0xff]  ;;  %v6088_v27 = vld [vmem:[%s11454_s22 + $0xd8] sm:$0xff] }
0x1c56   : > { %8552 = vpow2.f32 %v5981_v42  ;;  %v5987_v2 = vmul.f32 1.442695, %v5972_v31  ;;  %v5971_v0 = vsub.f32 0.0, %v10944_v23  ;;  %v6072_v42 = vld [vmem:[%s11454_s22 + $0x58] sm:$0xff]  ;;  %v6087_v31 = vld [vmem:[%s11454_s22 + $0xd0] sm:$0xff] }
0x1c58   : > { %v8543_v55 = vpop.eup %8542  ;;  %8554 = vpow2.f32 %v5987_v2  ;;  %v5985_v5 = vmul.f32 1.442695, %v5971_v0  ;;  %v6086_v2 = vld [vmem:[%s11454_s22 + $0xc8] sm:$0xff] }
0x1c59   : > { %v5990_v21 = vadd.f32 1.0, %v8543_v55  ;;  %v6070_v0 = vld [vmem:[%s11454_s22 + $0x48] sm:$0xff]  ;;  %v6085_v55 = vld [vmem:[%s11454_s22 + $0xc0] sm:$0xff] }
0x1c5a   : > { %v8545_v48 = vpop.eup %8544  ;;  %8556 = vpow2.f32 %v5985_v5  ;;  %v6069_v5 = vld [vmem:[%s11454_s22 + $0x40] sm:$0xff] }
0x1c5b   : > { %8558 = vrcp.f32 %v5990_v21  ;;  %v5989_v6 = vadd.f32 1.0, %v8545_v48  ;;  %v6084_v21 = vld [vmem:[%s11454_s22 + $0xb8] sm:$0xff] }
0x1c5c   : > { %v6068_v48 = vld [vmem:[%s11454_s22 + $0x38] sm:$0xff] }
0x1c5d   : > { %v8547_v49 = vpop.eup %8546  ;;  %8560 = vrcp.f32 %v5989_v6  ;;  %v6083_v6 = vld [vmem:[%s11454_s22 + $0xb0] sm:$0xff] }
0x1c5e   : > { %v5992_v12 = vadd.f32 1.0, %v8547_v49  ;;  %v6067_v49 = vld [vmem:[%s11454_s22 + $0x30] sm:$0xff] }
0x1c5f   : > { %v8549_v45 = vpop.eup %8548 }
0x1c60   : > { %8562 = vrcp.f32 %v5992_v12  ;;  %v5991_v58 = vadd.f32 1.0, %v8549_v45  ;;  %v6082_v12 = vld [vmem:[%s11454_s22 + $0xa8] sm:$0xff] }
0x1c61   : > { %v8551_v63 = vpop.eup %8550  ;;  %v6066_v45 = vld [vmem:[%s11454_s22 + $0x28] sm:$0xff] }
0x1c62   : > { %8564 = vrcp.f32 %v5991_v58  ;;  %v5994_v61 = vadd.f32 1.0, %v8551_v63  ;;  %v6081_v58 = vld [vmem:[%s11454_s22 + $0xa0] sm:$0xff] }
0x1c63   : > { %v8553_v40 = vpop.eup %8552  ;;  %v6065_v63 = vld [vmem:[%s11454_s22 + $0x20] sm:$0xff] }
0x1c64   : > { %8566 = vrcp.f32 %v5994_v61  ;;  %v5993_v18 = vadd.f32 1.0, %v8553_v40  ;;  %v8614_v40 = vld [vmem:[%s11633_s6 + $0x8] sm:$0xff] }
0x1c65   : > { %v8555_v62 = vpop.eup %8554 }
0x1c66   : > { %8568 = vrcp.f32 %v5993_v18  ;;  %v5996_v32 = vadd.f32 1.0, %v8555_v62  ;;  %v8615_v62 = vld [vmem:[%s11633_s6] sm:$0xff] }
0x1c67   : > { %v8557_v33 = vpop.eup %8556 }
0x1c68   : > { %v8559_v38 = vpop.eup %8558  ;;  %8570 = vrcp.f32 %v5996_v32  ;;  %v5995_v7 = vadd.f32 1.0, %v8557_v33 }
0x1c69   : > { %v6014_v47 = vmul.f32 %v8559_v38, %v10923_v24 }
0x1c6a   : > { %v8561_v19 = vpop.eup %8560  ;;  %8572 = vrcp.f32 %v5995_v7 }
0x1c6b   : > { %v6013_v28 = vmul.f32 %v8561_v19, %v10926_v51  ;;  %6031 = vrot.lane.b32.xlu1 %v6014_v47, %s11632_s26 }
0x1c6d   : > { %v8563_v59 = vpop.eup %8562  ;;  %6029 = vrot.lane.b32.xlu0 %v6013_v28, %s11632_s26  ;;  %v8616_v28 = vld [vmem:[%s11633_s6 + $0x18] sm:$0xff] }
0x1c6e   : > { %v6016_v37 = vmul.f32 %v8563_v59, %v10929_v50 }
0x1c6f   : > { %v8565_v57 = vpop.eup %8564 }
0x1c70   : > { %v6015_v24 = vmul.f32 %v8565_v57, %v10932_v10  ;;  %v6064_v57 = vld [vmem:[%s11454_s22 + $0x18] sm:$0xff] }
0x1c71   : > { %v8567_v15 = vpop.eup %8566  ;;  %6035 = vrot.lane.b32.xlu0 %v6016_v37, %s11632_s26  ;;  %v6079_v37 = vld [vmem:[%s11454_s22 + $0x90] sm:$0xff] }
0x1c72   : > { %6033 = vrot.lane.b32.xlu1 %v6015_v24, %s11632_s26  ;;  %v6018_v39 = vmul.f32 %v8567_v15, %v10935_v53  ;;  %v6092_v53 = vld [vmem:[%s11454_s22 + $0xf8] sm:$0xff] }
0x1c73   : > { %v8569_v51 = vpop.eup %8568  ;;  %7426 = vmatprep.subr.mxu0 %v6092_v53 }
0x1c74   : > { %v6017_v30 = vmul.f32 %v8569_v51, %v10938_v16  ;;  %v6075_v16 = vld [vmem:[%s11454_s22 + $0x70] sm:$0xff]  ;;  %7427 = vmatpush3.msra.mxu0 %v6076_v11 }
0x1c75   : > { %v8571_v46 = vpop.eup %8570  ;;  %6039 = vrot.lane.b32.xlu0 %v6018_v39, %s11632_s26  ;;  %7428 = vmatprep.subr.mxu0 %v6091_v20  ;;  %v8617_v51 = vld [vmem:[%s11633_s6 + $0x10] sm:$0xff] }
0x1c76   : > { %6037 = vrot.lane.b32.xlu1 %v6017_v30, %s11632_s26  ;;  %v6020_v3 = vmul.f32 %v8571_v46, %v10941_v52  ;;  %7429 = vmatpush3.msra.mxu0 %v6075_v16  ;;  %v6073_v52 = vld [vmem:[%s11454_s22 + $0x60] sm:$0xff]  ;;  %v6063_v46 = vld [vmem:[%s11454_s22 + $0x10] sm:$0xff] }
0x1c77   : > { %v8573_v50 = vpop.eup %8572  ;;  %7430 = vmatprep.subr.mxu0 %v6090_v41 }
0x1c78   : > { %v6019_v10 = vmul.f32 %v8573_v50, %v10944_v23  ;;  %7431 = vmatpush3.msra.mxu0 %v6074_v22  ;;  %v6071_v23 = vld [vmem:[%s11454_s22 + $0x50] sm:$0xff]  ;;  %v6078_v22 = vld [vmem:[%s11454_s22 + $0x88] sm:$0xff] }
0x1c79   : > { %6043 = vrot.lane.b32.xlu0 %v6020_v3, %s11632_s26  ;;  %7432 = vmatprep.subr.mxu0 %v6089_v60  ;;  %v6062_v60 = vld [vmem:[%s11454_s22 + $0x8] sm:$0xff] }
0x1c7a   : > { %6041 = vrot.lane.b32.xlu1 %v6019_v10, %s11632_s26  ;;  %7433 = vmatpush3.msra.mxu0 %v6073_v52 }
0x1c7b   : > { %7434 = vmatprep.subr.mxu0 %v6088_v27 }
0x1c7c   : > { %7435 = vmatpush3.msra.mxu0 %v6072_v42  ;;  %v8619_v42 = vld [vmem:[%s11633_s6 + $0x28] sm:$0xff] }
0x1c7d   : > { %7436 = vmatprep.subr.mxu0 %v6087_v31 }
0x1c7e   : > { %7437 = vmatpush3.msra.mxu0 %v6071_v23 }
0x1c7f   : > { %7438 = vmatprep.subr.mxu0 %v6086_v2 }
0x1c80   : > { %7439 = vmatpush3.msra.mxu0 %v6070_v0 }
0x1c81   : > { %7440 = vmatprep.subr.mxu0 %v6085_v55 }
0x1c82   : > { %7441 = vmatpush3.msra.mxu0 %v6069_v5 }
0x1c83   : > { %7442 = vmatprep.subr.mxu0 %v6084_v21 }
0x1c84   : > { %7443 = vmatpush3.msra.mxu0 %v6068_v48 }
0x1c85   : > { %7444 = vmatprep.subr.mxu0 %v6083_v6  ;;  %v8620_v6 = vld [vmem:[%s11633_s6 + $0x38] sm:$0xff] }
0x1c86   : > { %7445 = vmatpush3.msra.mxu0 %v6067_v49 }
0x1c87   : > { %7446 = vmatprep.subr.mxu0 %v6082_v12 }
0x1c88   : > { %7447 = vmatpush3.msra.mxu0 %v6066_v45 }
0x1c89   : > { %7448 = vmatprep.subr.mxu0 %v6081_v58 }
0x1c8a   : > { %7449 = vmatpush3.msra.mxu0 %v6065_v63 }
0x1c8b   : > { %7450 = vmatprep.subr.mxu0 %v6080_v29  ;;  %v11636_v29 = vld [vmem:[#allocation10_spill] sm:$0xff] }
0x1c8c   : > { %7451 = vmatpush3.msra.mxu0 %v6064_v57 }
0x1c8d   : > { %7452 = vmatprep.subr.mxu0 %v6079_v37 }
0x1c8e   : > { %7453 = vmatpush3.msra.mxu0 %v6063_v46 }
0x1c8f   : > { %7454 = vmatprep.subr.mxu0 %v6078_v22 }
0x1c90   : > { %7455 = vmatpush3.msra.mxu0 %v6062_v60  ;;  %v11642_v60 = vld [vmem:[#allocation9_spill] sm:$0xff] }
0x1cdd   : > { %v6032_v61 = vpop.permute.xlu1 %6031 }
0x1cde   : > { %v11049_v4 = vsel %vm1563_vm2, %v8614_v40, %v6032_v61 }
0x1cdf   : > { %v6030_v18 = vpop.permute.xlu0 %6029  ;;  %v6106_v38 = vrot.slane %v11049_v4, 7  ;;  %v6142_v7 = vrot.slane %v11049_v4, 1 }
0x1ce0   : > { %v11053_v32 = vsel %vm1563_vm2, %v8615_v62, %v6030_v18 }
0x1ce1   : > { %v6105_v34 = vrot.slane %v11053_v32, 7  ;;  %v6141_v33 = vrot.slane %v11053_v32, 1 }
0x1ce3   : > { %v6036_v13 = vpop.permute.xlu0 %6035  ;;  %v11062_v47 = vsel %vm772_vm1, %v6105_v34, %v6106_v38  ;;  %v6143_v24 = vsel %vm908_vm0, %v6141_v33, %v6142_v7  ;;  %v6164_v15 = vsel %vm908_vm0, 0.0, %v6141_v33  ;;  %v11089_v3 = vsel %vm772_vm1, 0.0, %v6105_v34 }
0x1ce4   : > { %v6034_v19 = vpop.permute.xlu1 %6033  ;;  %v11066_v59 = vsel %vm1563_vm2, %v8616_v28, %v6036_v13  ;;  %v6165_v53 = vmul.f32 %v6164_v15, %v8995_v8  ;;  %v6194_v16 = vmul.f32 %v6143_v24, %v9008_v14  ;;  %v6204_v41 = vmul.f32 %v11062_v47, %v9031_v25  ;;  %v6077_v8 = vld [vmem:[%s11454_s22 + $0x80] sm:$0xff]  ;;  %v11637_v15 = vld [vmem:[#allocation6_spill] sm:$0xff] }
0x1ce5   : > { %v11081_v39 = vsel %vm1563_vm2, %v8617_v51, %v6034_v19  ;;  %v6146_v30 = vrot.slane %v11066_v59, 1  ;;  %v6061_v14 = vld [vmem:[%s11454_s22] sm:$0xff]  ;;  %v6176_v23 = vmul.f32 %v11089_v3, %v8971_v1  ;;  %7456 = vmatprep.subr.mxu0 %v6077_v8  ;;  %v6110_v40 = vrot.slane %v11066_v59, 7  ;;  %v11638_v51 = vld [vmem:[#allocation58_spill] sm:$0xff] }
0x1ce6   : > { %v6144_v50 = vrot.slane %v11081_v39, 1  ;;  %v8618_v25 = vld [vmem:[%s11633_s6 + $0x20] sm:$0xff]  ;;  %v8118_v55 = vpack.i.bf16 %v9016_v17, %v6194_v16  ;;  %v8123_v5 = vpack.i.bf16 %v6165_v53, %v6204_v41  ;;  %7457 = vmatpush3.msra.mxu0 %v6061_v14  ;;  %v6108_v12 = vrot.slane %v11081_v39, 7  ;;  %v11641_v16 = vld [vmem:[#allocation7_spill] sm:$0xff]  ;;  %v11643_v14 = vld [vmem:[#allocation16_spill] sm:$0xff] }
0x1ce7   : > { %v6040_v10 = vpop.permute.xlu0 %6039  ;;  %v6212_v17 = vmul.f32 %v11049_v4, %v9054_v35  ;;  %v6177_v35 = vmul.f32 %v11062_v47, %v9056_v36  ;;  %v6166_v13 = vmul.f32 %v6143_v24, %v9033_v26  ;;  %v11635_v36 = vld [vmem:[#allocation12_spill] sm:$0xff]  ;;  %v11639_v24 = vld [vmem:[#allocation14_spill] sm:$0xff]  ;;  %v6134_v41 = vmul.f32 %v11049_v4, %v11641_v16 }
0x1ce8   : > { %v11093_v11 = vsel %vm908_vm0, %v6144_v50, %v6146_v30  ;;  %v6038_v20 = vpop.permute.xlu1 %6037  ;;  %v6145_v52 = vsel %vm908_vm0, %v6142_v7, %v6144_v50  ;;  %v11117_v31 = vsel %vm1563_vm2, %v8619_v42, %v6040_v10  ;;  %8119 = vrot.lane.b32.xlu1 %v8118_v55, %s11634_s0  ;;  %8124 = vrot.lane.b32.xlu0 %v8123_v5, %s11627_s29  ;;  %v11640_v10 = vld [vmem:[#allocation60_spill] sm:$0xff] }
0x1ce9   : > { %v11113_v27 = vsel %vm1563_vm2, %v8618_v25, %v6038_v20  ;;  %v6220_v2 = vmul.f32 %v11093_v11, %v9416_v56  ;;  %v6219_v21 = vmul.f32 %v6145_v52, %v9403_v44  ;;  %v6150_v45 = vrot.slane %v11117_v31, 1  ;;  %v8621_v56 = vld [vmem:[%s11633_s6 + $0x30] sm:$0xff]  ;;  %s11694_s6 = sld [smem:[#allocation73_spill]] }
0x1cea   : > { %v6148_v1 = vrot.slane %v11113_v27, 1  ;;  %v6213_v44 = vmul.f32 %v11081_v39, %v9136_v9  ;;  %v8128_v18 = vpack.i.bf16 %v6176_v23, %v6212_v17  ;;  %v11156_v9 = vsel %vm772_vm1, %v6106_v38, %v6108_v12  ;;  %v11644_v23 = vld [vmem:[#allocation62_spill] sm:$0xff] }
0x1ceb   : > { %v6044_v0 = vpop.permute.xlu0 %6043  ;;  %7962 = vmatprep.mubr.msk.f32.mxu1 %vm1572_vm3, %v6219_v21  ;;  %v6205_v19 = vmul.f32 %v11156_v9, %v11635_v36  ;;  %v6195_v57 = vmul.f32 %v6145_v52, %v11636_v29  ;;  %v6112_v46 = vrot.slane %v11113_v27, 7  ;;  %v11188_v20 = vsel %vm772_vm1, %v6108_v12, %v6110_v40  ;;  %v11646_v21 = vld [vmem:[#allocation18_spill] sm:$0xff]  ;;  %v11653_v36 = vld [vmem:[#allocation28_spill] sm:$0xff]  ;;  %v11654_v29 = vld [vmem:[#allocation15_spill] sm:$0xff] }
0x1cec   : > { %v6042_v48 = vpop.permute.xlu1 %6041  ;;  %v11127_v49 = vsel %vm1563_vm2, %v8620_v6, %v6044_v0  ;;  %7963 = vmatmul.mubr.msk.f32.vlgmr.msra.gmra.mxu1 %vm1572_vm3, %v6220_v2  ;;  %v6149_v62 = vsel %vm908_vm0, %v6146_v30, %v6148_v1  ;;  %v11151_v34 = vsel %vm908_vm0, %v6148_v1, %v6150_v45  ;;  %8129 = vrot.lane.b32.xlu1 %v8128_v18, %s11626_s7  ;;  %v11645_v0 = vld [vmem:[#allocation11_spill] sm:$0xff] }
0x1ced   : > { %v11134_v58 = vsel %vm1563_vm2, %v8621_v56, %v6042_v48  ;;  %v6154_v61 = vrot.slane %v11127_v49, 1  ;;  %v6221_v33 = vmul.f32 %v6149_v62, %v9440_v54  ;;  %v6222_v7 = vmul.f32 %v11151_v34, %v9451_v43  ;;  %v11647_v48 = vld [vmem:[#allocation27_spill] sm:$0xff] }
0x1cee   : > { %v6152_v63 = vrot.slane %v11134_v58, 1  ;;  %v8133_v28 = vpack.i.bf16 %v6177_v35, %v6213_v44  ;;  %v6133_v54 = vmul.f32 %v11053_v32, %v11637_v15  ;;  %v8143_v43 = vpack.i.bf16 %v6166_v13, %v6205_v19  ;;  %v11648_v1 = vld [vmem:[#allocation19_spill] sm:$0xff]  ;;  %v11649_v44 = vld [vmem:[#allocation25_spill] sm:$0xff] }
0x1cef   : > { %7965 = vmatprep.mubr.msk.f32.mxu1 %vm1572_vm3, %v6221_v33  ;;  %v6196_v30 = vmul.f32 %v11093_v11, %v11639_v24  ;;  %v11181_v50 = vsel %vm908_vm0, %v6154_v61, 0.0  ;;  %v6167_v8 = vmul.f32 %v6145_v52, %v11642_v60  ;;  %v6206_v25 = vmul.f32 %v11188_v20, %v11643_v14  ;;  %v11652_v33 = vld [vmem:[#allocation23_spill] sm:$0xff]  ;;  %v11657_v24 = vld [vmem:[#allocation30_spill] sm:$0xff]  ;;  %v11660_v60 = vld [vmem:[#allocation41_spill] sm:$0xff] }
0x1cf0   : > { %v11167_v37 = vsel %vm908_vm0, %v6150_v45, %v6152_v63  ;;  %v11170_v38 = vsel %vm908_vm0, %v6152_v63, %v6154_v61  ;;  %8134 = vrot.lane.b32.xlu0 %v8133_v28, %s11626_s7  ;;  %7966 = vmatmul.mubr.msk.f32.gmra.mxu1 %vm1572_vm3, %v6222_v7  ;;  %v8138_v22 = vpack.i.bf16 %v6133_v54, %v6195_v57  ;;  %v6114_v56 = vrot.slane %v11117_v31, 7  ;;  %v11650_v61 = vld [vmem:[#allocation63_spill] sm:$0xff]  ;;  %v11655_v54 = vld [vmem:[#allocation20_spill] sm:$0xff]  ;;  %v11661_v14 = vld [vmem:[#allocation33_spill] sm:$0xff] }
0x1cf1   : > { %v6223_v26 = vmul.f32 %v11167_v37, %v11638_v51  ;;  %v6224_v53 = vmul.f32 %v11170_v38, %v11640_v10  ;;  %8144 = vrot.lane.b32.xlu1 %v8143_v43, %s11627_s29  ;;  %v8148_v42 = vpack.i.bf16 %v6134_v41, %v6196_v30  ;;  %v6225_v2 = vmul.f32 %v11181_v50, %v11644_v23  ;;  %v11656_v51 = vld [vmem:[#allocation22_spill] sm:$0xff]  ;;  %v11658_v10 = vld [vmem:[#allocation24_spill] sm:$0xff] }
0x1cf2   : > { %v6178_v55 = vmul.f32 %v11156_v9, %v11645_v0  ;;  %v11204_v5 = vsel %vm772_vm1, %v6110_v40, %v6112_v46  ;;  %v6214_v52 = vmul.f32 %v11066_v59, %v11646_v21  ;;  %v6215_v6 = vmul.f32 %v11113_v27, %v11647_v48  ;;  %v11651_v40 = vld [vmem:[#allocation17_spill] sm:$0xff]  ;;  %v11659_v41 = vld [vmem:[#allocation32_spill] sm:$0xff] }
0x1cf3   : > { %7968 = vmatprep.mubr.msk.f32.mxu1 %vm1572_vm3, %v6223_v26  ;;  %v8153_v12 = vpack.i.bf16 %v6167_v8, %v6206_v25  ;;  %v6179_v45 = vmul.f32 %v11188_v20, %v11648_v1  ;;  %v6207_v63 = vmul.f32 %v11204_v5, %v11649_v44  ;;  %v6168_v18 = vmul.f32 %v11093_v11, %v11651_v40  ;;  %v11664_v48 = vld [vmem:[#allocation37_spill] sm:$0xff]  ;;  %v11668_v40 = vld [vmem:[#allocation36_spill] sm:$0xff] }
0x1cf4   : > { %8139 = vrot.lane.b32.xlu0 %v8138_v22, %s11634_s0  ;;  %7969 = vmatmul.mubr.msk.f32.gmra.mxu1 %vm1572_vm3, %v6224_v53  ;;  %v8158_v17 = vpack.i.bf16 %v6178_v55, %v6214_v52  ;;  %v6197_v7 = vmul.f32 %v6149_v62, %v11652_v33  ;;  %v6198_v19 = vmul.f32 %v11151_v34, %v11653_v36  ;;  %v6116_v15 = vrot.slane %v11134_v58, 7  ;;  %v11663_v55 = vld [vmem:[#allocation31_spill] sm:$0xff] }
0x1cf5   : > { %8149 = vrot.lane.b32.xlu1 %v8148_v42, %s11634_s0  ;;  %7971 = vmatprep.mubr.msk.f32.mxu1 %vm1572_vm3, %v6225_v2  ;;  %v8163_v35 = vpack.i.bf16 %v6179_v45, %v6215_v6  ;;  %v8173_v13 = vpack.i.bf16 %v6168_v18, %v6207_v63  ;;  %v11227_v28 = vsel %vm772_vm1, %v6112_v46, %v6114_v56  ;;  %v6173_v42 = vrot.slane %v11127_v49, 7  ;;  %v11662_v2 = vld [vmem:[#allocation39_spill] sm:$0xff]  ;;  %v11665_v45 = vld [vmem:[#allocation42_spill] sm:$0xff] }
0x1cf6   : > { %v6135_v57 = vmul.f32 %v11081_v39, %v11654_v29  ;;  %v6136_v11 = vmul.f32 %v11066_v59, %v11655_v54  ;;  %v6169_v26 = vmul.f32 %v6149_v62, %v11656_v51  ;;  %v6208_v30 = vmul.f32 %v11227_v28, %v11657_v24  ;;  %v11667_v63 = vld [vmem:[#allocation34_spill] sm:$0xff]  ;;  %v11671_v29 = vld [vmem:[#allocation47_spill] sm:$0xff] }
0x1cf7   : > { %v6180_v53 = vmul.f32 %v11204_v5, %v11658_v10  ;;  %v11243_v16 = vsel %vm772_vm1, %v6114_v56, %v6116_v15  ;;  %v6216_v22 = vmul.f32 %v11117_v31, %v11659_v41  ;;  %v6217_v62 = vmul.f32 %v11134_v58, %v11660_v60 }
0x1cf8   : > { %8154 = vrot.lane.b32.xlu0 %v8153_v12, %s11627_s29  ;;  %7972 = vmatmul.mubr.msk.f32.gmra.mxu1 %vm1572_vm3, %v11650_v61  ;;  %v8168_v43 = vpack.i.bf16 %v6135_v57, %v6197_v7  ;;  %v8178_v46 = vpack.i.bf16 %v6136_v11, %v6198_v19  ;;  %v8183_v8 = vpack.i.bf16 %v6169_v26, %v6208_v30  ;;  %v6203_v19 = vsel %vm772_vm1, %v6173_v42, 0.0  ;;  %v11674_v26 = vld [vmem:[#allocation44_spill] sm:$0xff]  ;;  %v11675_v30 = vld [vmem:[#allocation43_spill] sm:$0xff] }
0x1cf9   : > { %8159 = vrot.lane.b32.xlu1 %v8158_v17, %s11626_s7  ;;  %v6181_v25 = vmul.f32 %v11227_v28, %v11661_v14  ;;  %v8188_v23 = vpack.i.bf16 %v6180_v53, %v6216_v22  ;;  %v6209_v0 = vmul.f32 %v11243_v16, %v11662_v2  ;;  %v6170_v21 = vmul.f32 %v11151_v34, %v11663_v55  ;;  %v11666_v17 = vld [vmem:[#allocation29_spill] sm:$0xff]  ;;  %v11676_v53 = vld [vmem:[#allocation46_spill] sm:$0xff] }
0x1cfa   : > { %v6199_v6 = vmul.f32 %v11167_v37, %v11664_v48  ;;  %v6174_v12 = vsel %vm772_vm1, %v6116_v15, %v6173_v42  ;;  %v6200_v56 = vmul.f32 %v11170_v38, %v11665_v45  ;;  %v6137_v44 = vmul.f32 %v11113_v27, %v11666_v17  ;;  %v11672_v15 = vld [vmem:[#allocation50_spill] sm:$0xff] }
0x1cfb   : > { %v8193_v52 = vpack.i.bf16 %v6181_v25, %v6217_v62  ;;  %v8203_v1 = vpack.i.bf16 %v6170_v21, %v6209_v0  ;;  %v6138_v61 = vmul.f32 %v11117_v31, %v11667_v63  ;;  %v6171_v18 = vmul.f32 %v11167_v37, %v11668_v40  ;;  %v11673_v37 = vld [vmem:[#allocation49_spill] sm:$0xff]  ;;  %v11679_v0 = vld [vmem:[#allocation54_spill] sm:$0xff] }
0x1cfc   : > { %8164 = vrot.lane.b32.xlu0 %v8163_v35, %s11626_s7  ;;  %v8198_v34 = vpack.i.bf16 %v6137_v44, %v6199_v6  ;;  %v11669_v35 = vld [vmem:[#allocation45_spill] sm:$0xff]  ;;  %v6218_v57 = vmul.f32 %v11127_v49, %v11671_v29  ;;  %v6201_v54 = vmul.f32 %v11181_v50, %v11672_v15  ;;  %v6172_v24 = vmul.f32 %v11170_v38, %v11674_v26  ;;  %v11677_v50 = vld [vmem:[#allocation51_spill] sm:$0xff] }
0x1cfd   : > { %8174 = vrot.lane.b32.xlu1 %v8173_v13, %s11627_s29  ;;  %v6210_v33 = vmul.f32 %v6174_v12, %v11669_v35  ;;  %v8208_v7 = vpack.i.bf16 %v6138_v61, %v6200_v56  ;;  %v11670_v13 = vld [vmem:[#allocation38_spill] sm:$0xff]  ;;  %v6183_v41 = vmul.f32 %v6174_v12, %v11676_v53  ;;  %v11683_v15 = vld [vmem:[#allocation53_spill] sm:$0xff] }
0x1cfe   : > { %v6182_v36 = vmul.f32 %v11243_v16, %v11670_v13 }
0x1cff   : > { %v8213_v11 = vpack.i.bf16 %v6171_v18, %v6210_v33  ;;  %v8233_v60 = vpack.i.bf16 %v6183_v41, %v11677_v50  ;;  %v11681_v18 = vld [vmem:[#allocation52_spill] sm:$0xff] }
0x1d00   : > { %8169 = vrot.lane.b32.xlu0 %v8168_v43, %s11634_s0  ;;  %v6211_v43 = vmul.f32 %v6203_v19, %v11673_v37  ;;  %v8223_v51 = vpack.i.bf16 %v6182_v36, %v6218_v57  ;;  %v6126_v35 = vmul.f32 %v11089_v3, %v11681_v18  ;;  %v11682_v36 = vld [vmem:[#allocation13_spill] sm:$0xff] }
0x1d01   : > { %8179 = vrot.lane.b32.xlu1 %v8178_v46, %s11634_s0  ;;  %v6139_v46 = vmul.f32 %v11134_v58, %v11675_v30  ;;  %v6186_v19 = vmul.f32 %v11081_v39, %v11682_v36 }
0x1d02   : > { %v8228_v22 = vpack.i.bf16 %v6172_v24, %v6211_v43 }
0x1d03   : > { %v8218_v10 = vpack.i.bf16 %v6139_v46, %v6201_v54  ;;  %v6127_v54 = vmul.f32 %v11062_v47, %v11683_v15 }
0x1d04   : > { %8184 = vrot.lane.b32.xlu0 %v8183_v8, %s11627_s29  ;;  %v11678_v8 = vld [vmem:[#allocation5_spill] sm:$0xff] }
0x1d05   : > { %8189 = vrot.lane.b32.xlu1 %v8188_v23, %s11626_s7  ;;  %v6184_v14 = vmul.f32 %v11053_v32, %v11678_v8 }
0x1d08   : > { %8194 = vrot.lane.b32.xlu0 %v8193_v52, %s11626_s7 }
0x1d09   : > { %8204 = vrot.lane.b32.xlu1 %v8203_v1, %s11627_s29 }
0x1d0c   : > { %8199 = vrot.lane.b32.xlu0 %v8198_v34, %s11634_s0  ;;  %v11680_v34 = vld [vmem:[#allocation8_spill] sm:$0xff] }
0x1d0d   : > { %8209 = vrot.lane.b32.xlu1 %v8208_v7, %s11634_s0  ;;  %v6185_v40 = vmul.f32 %v11049_v4, %v11680_v34 }
0x1d10   : > { %8214 = vrot.lane.b32.xlu0 %v8213_v11, %s11627_s29 }
0x1d11   : > { %8224 = vrot.lane.b32.xlu1 %v8223_v51, %s11626_s7 }
0x1d14   : > { %8219 = vrot.lane.b32.xlu0 %v8218_v10, %s11634_s0 }
0x1d15   : > { %8229 = vrot.lane.b32.xlu1 %v8228_v22, %s11627_s29 }
0x1d18   : > { %8234 = vrot.lane.b32.xlu0 %v8233_v60, %s11626_s7 }
0x1d5a   : > { %v8120_v38 = vpop.permute.xlu1 %8119  ;;  %v8125_v62 = vpop.permute.xlu0 %8124 }
0x1d5b   : > { %v8122_v25 = vunpack.i.h.bf16 %v8120_v38  ;;  %v8121_v42 = vunpack.i.l.bf16 %v8120_v38  ;;  %v8127_v23 = vunpack.i.h.bf16 %v8125_v62  ;;  %v8126_v2 = vunpack.i.l.bf16 %v8125_v62 }
0x1d5d   : > { %v6416_v55 = vsel %vm1572_vm3, %v11679_v0, %v8122_v25  ;;  %v6440_v21 = vsel %vm1572_vm3, %v6184_v14, %v8121_v42 }
0x1d5e   : > { %v8130_v52 = vpop.permute.xlu1 %8129  ;;  %v6424_v12 = vsel %vm1590_vm5, %v6416_v55, %v8127_v23  ;;  %v6448_v1 = vsel %vm1590_vm5, %v6440_v21, %v8126_v2  ;;  %v11684_v2 = vld [vmem:[#allocation21_spill] sm:$0xff] }
0x1d5f   : > { %v8132_v48 = vunpack.i.h.bf16 %v8130_v52  ;;  %v8131_v6 = vunpack.i.l.bf16 %v8130_v52  ;;  %v6187_v0 = vmul.f32 %v11066_v59, %v11684_v2 }
0x1d61   : > { %v6456_v56 = vsel %vm1608_vm7, %v6448_v1, %v8131_v6  ;;  %v6432_v32 = vsel %vm1608_vm7, %v6424_v12, %v8132_v48  ;;  %v11685_v48 = vld [vmem:[#allocation55_spill] sm:$0xff]  ;;  %v11686_v12 = vld [vmem:[#allocation26_spill] sm:$0xff] }
0x1d62   : > { %v8135_v45 = vpop.permute.xlu0 %8134  ;;  %6557 = vmatprep.mubr.f32.mxu0 %v6456_v56  ;;  %v6128_v6 = vmul.f32 %v11156_v9, %v11685_v48  ;;  %v6188_v1 = vmul.f32 %v11113_v27, %v11686_v12 }
0x1d63   : > { %v8145_v17 = vpop.permute.xlu1 %8144  ;;  %6558 = vmatmul.mubr.f32.vlgmr.msra.gmra.mxu0 %v6432_v32  ;;  %v8137_v11 = vunpack.i.h.bf16 %v8135_v45  ;;  %v8136_v37 = vunpack.i.l.bf16 %v8135_v45  ;;  %v11687_v32 = vld [vmem:[#allocation56_spill] sm:$0xff] }
0x1d64   : > { %v8147_v44 = vunpack.i.h.bf16 %v8145_v17  ;;  %v8146_v63 = vunpack.i.l.bf16 %v8145_v17  ;;  %v6129_v17 = vmul.f32 %v11188_v20, %v11687_v32 }
0x1d66   : > { %v8140_v61 = vpop.permute.xlu0 %8139 }
0x1d67   : > { %v8142_v33 = vunpack.i.h.bf16 %v8140_v61  ;;  %v8141_v7 = vunpack.i.l.bf16 %v8140_v61  ;;  %v8150_v13 = vpop.permute.xlu1 %8149 }
0x1d68   : > { %v8152_v29 = vunpack.i.h.bf16 %v8150_v13  ;;  %v8151_v57 = vunpack.i.l.bf16 %v8150_v13 }
0x1d69   : > { %v6441_v43 = vsel %vm1572_vm3, %v6185_v40, %v8141_v7  ;;  %v6417_v4 = vsel %vm1572_vm3, %v6126_v35, %v8142_v33 }
0x1d6a   : > { %v8155_v51 = vpop.permute.xlu0 %8154  ;;  %v6449_v3 = vsel %vm1590_vm5, %v6441_v43, %v8146_v63  ;;  %v6425_v26 = vsel %vm1590_vm5, %v6417_v4, %v8147_v44  ;;  %v6442_v24 = vsel %vm1572_vm3, %v6186_v19, %v8151_v57  ;;  %v6418_v39 = vsel %vm1572_vm3, %v6127_v54, %v8152_v29 }
0x1d6b   : > { %v8157_v30 = vunpack.i.h.bf16 %v8155_v51  ;;  %v8156_v46 = vunpack.i.l.bf16 %v8155_v51  ;;  %v6457_v10 = vsel %vm1608_vm7, %v6449_v3, %v8136_v37  ;;  %v6433_v47 = vsel %vm1608_vm7, %v6425_v26, %v8137_v11  ;;  %v8160_v53 = vpop.permute.xlu1 %8159  ;;  %v11688_v3 = vld [vmem:[#allocation35_spill] sm:$0xff] }
0x1d6c   : > { %6562 = vmatprep.mubr.f32.mxu0 %v6457_v10  ;;  %v8162_v41 = vunpack.i.h.bf16 %v8160_v53  ;;  %v8161_v22 = vunpack.i.l.bf16 %v8160_v53  ;;  %v6189_v26 = vmul.f32 %v11117_v31, %v11688_v3 }
0x1d6d   : > { %6563 = vmatmul.mubr.f32.gmra.mxu0 %v6433_v47  ;;  %v6450_v50 = vsel %vm1590_vm5, %v6442_v24, %v8156_v46  ;;  %v6426_v60 = vsel %vm1590_vm5, %v6418_v39, %v8157_v30  ;;  %v11689_v46 = vld [vmem:[#allocation57_spill] sm:$0xff]  ;;  %v11690_v47 = vld [vmem:[#allocation40_spill] sm:$0xff] }
0x1d6e   : > { %v8165_v38 = vpop.permute.xlu0 %8164  ;;  %v6458_v62 = vsel %vm1608_vm7, %v6450_v50, %v8161_v22  ;;  %v6434_v8 = vsel %vm1608_vm7, %v6426_v60, %v8162_v41  ;;  %v6130_v10 = vmul.f32 %v11204_v5, %v11689_v46  ;;  %v6190_v53 = vmul.f32 %v11134_v58, %v11690_v47  ;;  %v11691_v50 = vld [vmem:[#allocation59_spill] sm:$0xff] }
0x1d6f   : > { %v8175_v14 = vpop.permute.xlu1 %8174  ;;  %6567 = vmatprep.mubr.f32.mxu0 %v6458_v62  ;;  %v8167_v44 = vunpack.i.h.bf16 %v8165_v38  ;;  %v8166_v63 = vunpack.i.l.bf16 %v8165_v38  ;;  %v6131_v60 = vmul.f32 %v11227_v28, %v11691_v50 }
0x1d70   : > { %v8177_v25 = vunpack.i.h.bf16 %v8175_v14  ;;  %v8176_v42 = vunpack.i.l.bf16 %v8175_v14 }
0x1d71   : > { %6568 = vmatmul.mubr.f32.gmra.mxu0 %v6434_v8 }
0x1d72   : > { %v8170_v23 = vpop.permute.xlu0 %8169 }
0x1d73   : > { %v8172_v55 = vunpack.i.h.bf16 %v8170_v23  ;;  %v8171_v21 = vunpack.i.l.bf16 %v8170_v23  ;;  %v8180_v52 = vpop.permute.xlu1 %8179 }
0x1d74   : > { %v8182_v45 = vunpack.i.h.bf16 %v8180_v52  ;;  %v8181_v56 = vunpack.i.l.bf16 %v8180_v52 }
0x1d75   : > { %v6443_v61 = vsel %vm1572_vm3, %v6187_v0, %v8171_v21  ;;  %v6419_v59 = vsel %vm1572_vm3, %v6128_v6, %v8172_v55 }
0x1d76   : > { %v8185_v34 = vpop.permute.xlu0 %8184  ;;  %v6451_v40 = vsel %vm1590_vm5, %v6443_v61, %v8176_v42  ;;  %v6427_v18 = vsel %vm1590_vm5, %v6419_v59, %v8177_v25  ;;  %v6444_v9 = vsel %vm1572_vm3, %v6188_v1, %v8181_v56  ;;  %v6420_v27 = vsel %vm1572_vm3, %v6129_v17, %v8182_v45  ;;  %v11692_v56 = vld [vmem:[#allocation48_spill] sm:$0xff]  ;;  %v11693_v61 = vld [vmem:[#allocation61_spill] sm:$0xff] }
0x1d77   : > { %v8187_v35 = vunpack.i.h.bf16 %v8185_v34  ;;  %v8186_v33 = vunpack.i.l.bf16 %v8185_v34  ;;  %v6459_v7 = vsel %vm1608_vm7, %v6451_v40, %v8166_v63  ;;  %v6435_v20 = vsel %vm1608_vm7, %v6427_v18, %v8167_v44  ;;  %v8190_v13 = vpop.permute.xlu1 %8189 }
0x1d78   : > { %6572 = vmatprep.mubr.f32.mxu0 %v6459_v7  ;;  %v8192_v36 = vunpack.i.h.bf16 %v8190_v13  ;;  %v8191_v19 = vunpack.i.l.bf16 %v8190_v13  ;;  %v6191_v32 = vmul.f32 %v11127_v49, %v11692_v56  ;;  %v6132_v59 = vmul.f32 %v11243_v16, %v11693_v61 }
0x1d79   : > { %6573 = vmatmul.mubr.f32.gmra.mxu0 %v6435_v20  ;;  %v6452_v29 = vsel %vm1590_vm5, %v6444_v9, %v8186_v33  ;;  %v6428_v57 = vsel %vm1590_vm5, %v6420_v27, %v8187_v35 }
0x1d7a   : > { %v8195_v15 = vpop.permute.xlu0 %8194  ;;  %v6460_v54 = vsel %vm1608_vm7, %v6452_v29, %v8191_v19  ;;  %v6436_v11 = vsel %vm1608_vm7, %v6428_v57, %v8192_v36  ;;  %v11376_v19 = vld [vmem:[%s11694_s6] ss:$0 sm:$0xff] }
0x1d7b   : > { %v8205_v37 = vpop.permute.xlu1 %8204  ;;  %6577 = vmatprep.mubr.f32.mxu0 %v6460_v54  ;;  %v8197_v38 = vunpack.i.h.bf16 %v8195_v15  ;;  %v8196_v62 = vunpack.i.l.bf16 %v8195_v15 }
0x1d7c   : > { %v8207_v43 = vunpack.i.h.bf16 %v8205_v37  ;;  %v8206_v4 = vunpack.i.l.bf16 %v8205_v37 }
0x1d7d   : > { %6578 = vmatmul.mubr.f32.gmra.mxu0 %v6436_v11 }
0x1d7e   : > { %v8200_v51 = vpop.permute.xlu0 %8199 }
0x1d7f   : > { %v8202_v24 = vunpack.i.h.bf16 %v8200_v51  ;;  %v8201_v39 = vunpack.i.l.bf16 %v8200_v51  ;;  %v8210_v30 = vpop.permute.xlu1 %8209 }
0x1d80   : > { %v8212_v41 = vunpack.i.h.bf16 %v8210_v30  ;;  %v8211_v22 = vunpack.i.l.bf16 %v8210_v30 }
0x1d81   : > { %v6445_v8 = vsel %vm1572_vm3, %v6189_v26, %v8201_v39  ;;  %v6421_v31 = vsel %vm1572_vm3, %v6130_v10, %v8202_v24 }
0x1d82   : > { %v8215_v14 = vpop.permute.xlu0 %8214  ;;  %v6453_v25 = vsel %vm1590_vm5, %v6445_v8, %v8206_v4  ;;  %v6429_v42 = vsel %vm1590_vm5, %v6421_v31, %v8207_v43  ;;  %v6446_v5 = vsel %vm1572_vm3, %v6190_v53, %v8211_v22  ;;  %v6422_v58 = vsel %vm1572_vm3, %v6131_v60, %v8212_v41 }
0x1d83   : > { %v8217_v23 = vunpack.i.h.bf16 %v8215_v14  ;;  %v8216_v2 = vunpack.i.l.bf16 %v8215_v14  ;;  %v6461_v0 = vsel %vm1608_vm7, %v6453_v25, %v8196_v62  ;;  %v6437_v28 = vsel %vm1608_vm7, %v6429_v42, %v8197_v38  ;;  %v8225_v55 = vpop.permute.xlu1 %8224 }
0x1d84   : > { %6582 = vmatprep.mubr.f32.mxu0 %v6461_v0  ;;  %v8227_v21 = vunpack.i.h.bf16 %v8225_v55  ;;  %v8226_v52 = vunpack.i.l.bf16 %v8225_v55 }
0x1d85   : > { %6583 = vmatmul.mubr.f32.gmra.mxu0 %v6437_v28  ;;  %v6454_v48 = vsel %vm1590_vm5, %v6446_v5, %v8216_v2  ;;  %v6430_v6 = vsel %vm1590_vm5, %v6422_v58, %v8217_v23 }
0x1d86   : > { %v8220_v12 = vpop.permute.xlu0 %8219  ;;  %v6462_v1 = vsel %vm1608_vm7, %v6454_v48, %v8226_v52  ;;  %v6438_v45 = vsel %vm1608_vm7, %v6430_v6, %v8227_v21 }
0x1d87   : > { %v8222_v17 = vunpack.i.h.bf16 %v8220_v12  ;;  %v8221_v44 = vunpack.i.l.bf16 %v8220_v12  ;;  %v8230_v63 = vpop.permute.xlu1 %8229  ;;  %6587 = vmatprep.mubr.f32.mxu0 %v6462_v1 }
0x1d88   : > { %v8232_v34 = vunpack.i.h.bf16 %v8230_v63  ;;  %v8231_v40 = vunpack.i.l.bf16 %v8230_v63 }
0x1d89   : > { %6588 = vmatmul.mubr.f32.gmra.mxu0 %v6438_v45  ;;  %v6447_v18 = vsel %vm1572_vm3, %v6191_v32, %v8221_v44  ;;  %v6423_v9 = vsel %vm1572_vm3, %v6132_v59, %v8222_v17 }
0x1d8a   : > { %v8235_v27 = vpop.permute.xlu0 %8234  ;;  %v6455_v35 = vsel %vm1590_vm5, %v6447_v18, %v8231_v40  ;;  %v6431_v33 = vsel %vm1590_vm5, %v6423_v9, %v8232_v34 }
0x1d8b   : > { %v8237_v49 = vunpack.i.h.bf16 %v8235_v27  ;;  %v8236_v7 = vunpack.i.l.bf16 %v8235_v27 }
0x1d8d   : > { %v6463_v20 = vsel %vm1608_vm7, %v6455_v35, %v8236_v7  ;;  %v6439_v13 = vsel %vm1608_vm7, %v6431_v33, %v8237_v49 }
0x1d8e   : > { %6592 = vmatprep.mubr.f32.mxu0 %v6463_v20 }
0x1d8f   : > { %6593 = vmatmul.mubr.f32.gmra.mxu0 %v6439_v13 }
0x1dac   : > { %v7964_v36 = vpop.f32.mrf.mxu1 }
0x1dae   : > { %v6664_v54 = vpop.f32.mrf.mxu1 }
0x1db0   : > { %v7967_v39 = vpop.f32.mrf.mxu1 }
0x1db2   : > { %v6674_v41 = vpop.f32.mrf.mxu1 }
0x1db4   : > { %v7970_v5 = vpop.f32.mrf.mxu1 }
0x1db6   : > { %v6684_v21 = vpop.f32.mrf.mxu1 }
0x1db8   : > { %v7973_v59 = vpop.f32.mrf.mxu1 }
0x1dba   : > { %v6694_v49 = vpop.f32.mrf.mxu1 }
0x1e23   : > { %v7458_v16 = vpop.f32.mrf.mxu0 }
0x1e25   : > { %v7459_v29 = vpop.f32.mrf.mxu0 }
0x1e26   : > { %v7460_v57 = vadd.f32 %v7459_v29, %v7458_v16 }
0x1e28   : > { %v6560_v15 = vadd.f32 %v7460_v57, %v11376_v19 }
0x1e2a   : > { %v11379_v11 = vadd.f32 %v6664_v54, %v6560_v15 }
0x1e2c   : > { %v6703_v37 = vsub.f32 0.0, %v11379_v11 }
0x1e2d   : > { %v7461_v43 = vpop.f32.mrf.mxu0 }
0x1e2e   : > { %v6711_v4 = vmul.f32 1.442695, %v6703_v37 }
0x1e2f   : > { %v7462_v51 = vpop.f32.mrf.mxu0 }
0x1e30   : > { %v7463_v3 = vadd.f32 %v7462_v51, %v7461_v43  ;;  %8574 = vpow2.f32 %v6711_v4 }
0x1e31   : > { %v7464_v26 = vpop.f32.mrf.mxu0 }
0x1e32   : > { %v6565_v24 = vadd.f32 %v7463_v3, %v11376_v19 }
0x1e33   : > { %v7465_v30 = vpop.f32.mrf.mxu0 }
0x1e34   : > { %v11383_v46 = vadd.f32 %v7964_v36, %v6565_v24  ;;  %v7466_v10 = vadd.f32 %v7465_v30, %v7464_v26 }
0x1e36   : > { %v6704_v47 = vsub.f32 0.0, %v11383_v46  ;;  %v6570_v53 = vadd.f32 %v7466_v10, %v11376_v19 }
0x1e38   : > { %v6713_v22 = vmul.f32 1.442695, %v6704_v47  ;;  %v11387_v50 = vadd.f32 %v6674_v41, %v6570_v53 }
0x1e39   : > { %v7467_v60 = vpop.f32.mrf.mxu0 }
0x1e3a   : > { %8576 = vpow2.f32 %v6713_v22  ;;  %v6705_v38 = vsub.f32 0.0, %v11387_v50 }
0x1e3b   : > { %v7468_v62 = vpop.f32.mrf.mxu0 }
0x1e3c   : > { %v6715_v8 = vmul.f32 1.442695, %v6705_v38  ;;  %v7469_v31 = vadd.f32 %v7468_v62, %v7467_v60 }
0x1e3d   : > { %v7470_v14 = vpop.f32.mrf.mxu0  ;;  %v8575_v25 = vpop.eup %8574 }
0x1e3e   : > { %8578 = vpow2.f32 %v6715_v8  ;;  %v6575_v42 = vadd.f32 %v7469_v31, %v11376_v19  ;;  %v6727_v58 = vadd.f32 1.0, %v8575_v25 }
0x1e3f   : > { %v7471_v23 = vpop.f32.mrf.mxu0 }
0x1e40   : > { %v11391_v2 = vadd.f32 %v7967_v39, %v6575_v42  ;;  %v7472_v0 = vadd.f32 %v7471_v23, %v7470_v14  ;;  %8580 = vrcp.f32 %v6727_v58 }
0x1e42   : > { %v6706_v28 = vsub.f32 0.0, %v11391_v2  ;;  %v6580_v55 = vadd.f32 %v7472_v0, %v11376_v19 }
0x1e44   : > { %v6717_v52 = vmul.f32 1.442695, %v6706_v28  ;;  %v11395_v48 = vadd.f32 %v6684_v21, %v6580_v55 }
0x1e45   : > { %v7473_v6 = vpop.f32.mrf.mxu0 }
0x1e46   : > { %8582 = vpow2.f32 %v6717_v52  ;;  %v6707_v12 = vsub.f32 0.0, %v11395_v48 }
0x1e47   : > { %v8577_v1 = vpop.eup %8576  ;;  %v7474_v45 = vpop.f32.mrf.mxu0 }
0x1e48   : > { %v6728_v56 = vadd.f32 1.0, %v8577_v1  ;;  %v6719_v32 = vmul.f32 1.442695, %v6707_v12  ;;  %v7475_v17 = vadd.f32 %v7474_v45, %v7473_v6 }
0x1e49   : > { %v7476_v44 = vpop.f32.mrf.mxu0 }
0x1e4a   : > { %8584 = vrcp.f32 %v6728_v56  ;;  %v6585_v63 = vadd.f32 %v7475_v17, %v11376_v19 }
0x1e4b   : > { %v8579_v61 = vpop.eup %8578  ;;  %8586 = vpow2.f32 %v6719_v32  ;;  %v7477_v34 = vpop.f32.mrf.mxu0 }
0x1e4c   : > { %v6729_v40 = vadd.f32 1.0, %v8579_v61  ;;  %v6690_v18 = vadd.f32 %v7970_v5, %v6585_v63  ;;  %v7478_v9 = vadd.f32 %v7477_v34, %v7476_v44 }
0x1e4d   : > { %v8581_v27 = vpop.eup %8580 }
0x1e4e   : > { %8588 = vrcp.f32 %v6729_v40  ;;  %v6708_v35 = vsub.f32 0.0, %v6690_v18  ;;  %v6590_v33 = vadd.f32 %v7478_v9, %v11376_v19  ;;  %v6751_v7 = vmul.f32 %v8581_v27, %v11379_v11 }
0x1e4f   : > { %v7479_v20 = vpop.f32.mrf.mxu0 }
0x1e50   : > { %v6721_v13 = vmul.f32 1.442695, %v6708_v35  ;;  %v6695_v16 = vadd.f32 %v6694_v49, %v6590_v33  ;;  %6759 = vst.msk [vmem:[%s11404_s1] sm:$0xff] %vm1563_vm2, %v6751_v7 }
0x1e51   : > { %v7480_v36 = vpop.f32.mrf.mxu0 }
0x1e52   : > { %8590 = vpow2.f32 %v6721_v13  ;;  %v6709_v29 = vsub.f32 0.0, %v6695_v16  ;;  %v7481_v57 = vadd.f32 %v7480_v36, %v7479_v20 }
0x1e53   : > { %v8583_v15 = vpop.eup %8582 }
0x1e54   : > { %v6730_v54 = vadd.f32 1.0, %v8583_v15  ;;  %v6723_v37 = vmul.f32 1.442695, %v6709_v29  ;;  %v6595_v43 = vadd.f32 %v7481_v57, %v11376_v19 }
0x1e56   : > { %8592 = vrcp.f32 %v6730_v54  ;;  %v6700_v4 = vadd.f32 %v7973_v59, %v6595_v43 }
0x1e57   : > { %v8585_v51 = vpop.eup %8584  ;;  %8594 = vpow2.f32 %v6723_v37 }
0x1e58   : > { %v8587_v11 = vpop.eup %8586  ;;  %v6752_v3 = vmul.f32 %v8585_v51, %v11383_v46  ;;  %v6710_v26 = vsub.f32 0.0, %v6700_v4 }
0x1e59   : > { %v6731_v24 = vadd.f32 1.0, %v8587_v11 }
0x1e5a   : > { %6760 = vst.msk [vmem:[%s11404_s1 + $0x8] sm:$0xff] %vm1563_vm2, %v6752_v3  ;;  %v6725_v39 = vmul.f32 1.442695, %v6710_v26 }
0x1e5b   : > { %v8589_v30 = vpop.eup %8588  ;;  %8596 = vrcp.f32 %v6731_v24 }
0x1e5c   : > { %v6753_v10 = vmul.f32 %v8589_v30, %v11387_v50  ;;  %8598 = vpow2.f32 %v6725_v39 }
0x1e5e   : > { %6761 = vst.msk [vmem:[%s11404_s1 + $0x10] sm:$0xff] %vm1563_vm2, %v6753_v10 }
0x1e5f   : > { %v8591_v19 = vpop.eup %8590 }
0x1e60   : > { %v6732_v47 = vadd.f32 1.0, %v8591_v19 }
0x1e62   : > { %8600 = vrcp.f32 %v6732_v47 }
0x1e63   : > { %v8593_v53 = vpop.eup %8592 }
0x1e64   : > { %v8595_v46 = vpop.eup %8594  ;;  %v6754_v41 = vmul.f32 %v8593_v53, %v11391_v2 }
0x1e65   : > { %v6733_v22 = vadd.f32 1.0, %v8595_v46 }
0x1e66   : > { %6762 = vst.msk [vmem:[%s11404_s1 + $0x18] sm:$0xff] %vm1563_vm2, %v6754_v41 }
0x1e67   : > { %8602 = vrcp.f32 %v6733_v22 }
0x1e68   : > { %v8597_v60 = vpop.eup %8596 }
0x1e69   : > { %v8599_v50 = vpop.eup %8598  ;;  %v6755_v38 = vmul.f32 %v8597_v60, %v11395_v48 }
0x1e6a   : > { %v6734_v62 = vadd.f32 1.0, %v8599_v50 }
0x1e6b   : > { %6763 = vst.msk [vmem:[%s11404_s1 + $0x20] sm:$0xff] %vm1563_vm2, %v6755_v38 }
0x1e6c   : > { %8604 = vrcp.f32 %v6734_v62 }
0x1e6f   : > { %v8601_v8 = vpop.eup %8600 }
0x1e70   : > { %v6756_v31 = vmul.f32 %v8601_v8, %v6690_v18 }
0x1e72   : > { %6764 = vst.msk [vmem:[%s11404_s1 + $0x28] sm:$0xff] %vm1563_vm2, %v6756_v31 }
0x1e74   : > { %v8603_v14 = vpop.eup %8602 }
0x1e75   : > { %v6757_v25 = vmul.f32 %v8603_v14, %v6695_v16 }
0x1e77   : > { %6765 = vst.msk [vmem:[%s11404_s1 + $0x30] sm:$0xff] %vm1563_vm2, %v6757_v25 }
0x1e79   : > { %v8605_v42 = vpop.eup %8604 }
0x1e7a   : > { %v6758_v5 = vmul.f32 %v8605_v42, %v6700_v4 }
0x1e7c   : > { %6766 = vst.msk [vmem:[%s11404_s1 + $0x38] sm:$0xff] %vm1563_vm2, %v6758_v5 }
0x1e7d PF: > { %s11698_s26 = sld [smem:[#allocation2_spill]] }
0x1e83   : > { %s34_s5 = sadd.s32 1, %s11698_s26  }
0x1e84   : > { %p31_p4 = scmp.ge.s32.totalorder %s34_s5, 4  }
0x1e86   :  { %33 = sbr.rel (!%p31_p4) target bundleno = 12 (0xc), region = 166 }

</bundles_post_ra>
